<compile_context>
chip_gen: v6e
topology: v6e:2x2x1
jax: 0.10.0
libtpu: 0.0.40
codegen_flags: <defaults>
</compile_context>

<pallas_src>
import math

import jax
import jax.numpy as jnp
from jax.experimental import pallas as pl
from jax.experimental.pallas import tpu as pltpu  # noqa: F401


# ---------------------------------------------------------------------------
# Pallas kernels
# ---------------------------------------------------------------------------
def bigru_hidden_kernel(x_ref, mask_ref, wih_ref, bih_ref, whhf_ref, whhb_ref,
                        bhn_ref, h_ref):
    """Fused fwd+bwd masked GRU over N sequences; final hidden states only.

    x_ref:    (T*N, E)  bf16  time-major flattened embeddings (row = t*N + n)
    mask_ref: (T*N, 1)  f32   1.0 where the token is valid (packed-seq emul.)
    wih_ref:  (E, 6H)   bf16  fused input weights  [fwd r|z|n | bwd r|z|n]
    bih_ref:  (1, 6H)   f32   input bias with recurrent r/z bias folded in
    whhf_ref: (H, 3H)   bf16  forward  recurrent weights
    whhb_ref: (H, 3H)   bf16  backward recurrent weights
    bhn_ref:  (1, 2H)   f32   [fwd | bwd] recurrent bias of the n gate
    h_ref:    (N, 2H)   bf16  [h_fwd | h_bwd] final hidden states
    """
    N, H2 = h_ref.shape
    H = H2 // 2
    T = x_ref.shape[0] // N

    # Hoisted input projection: one MXU pass over all timesteps & directions.
    xg = jnp.dot(x_ref[...], wih_ref[...],
                 preferred_element_type=jnp.float32) + bih_ref[...]
    msk = mask_ref[...]
    whhf = whhf_ref[...]
    whhb = whhb_ref[...]
    bhnf = bhn_ref[:, :H]
    bhnb = bhn_ref[:, H:]

    def gru_step(xgd, h, whh, bhn):
        hg = jnp.dot(h.astype(jnp.bfloat16), whh,
                     preferred_element_type=jnp.float32)
        r = jax.nn.sigmoid(xgd[:, :H] + hg[:, :H])
        z = jax.nn.sigmoid(xgd[:, H:2 * H] + hg[:, H:2 * H])
        n = jnp.tanh(xgd[:, 2 * H:] + r * (hg[:, 2 * H:] + bhn))
        return (1.0 - z) * n + z * h

    hf = jnp.zeros((N, H), jnp.float32)
    hb = jnp.zeros((N, H), jnp.float32)
    for t in range(T):                       # static unroll; both directions
        tb = T - 1 - t                       # interleave in one body
        hf_new = gru_step(xg[t * N:(t + 1) * N, :3 * H], hf, whhf, bhnf)
        hf = jnp.where(msk[t * N:(t + 1) * N] > 0.5, hf_new, hf)
        hb_new = gru_step(xg[tb * N:(tb + 1) * N, 3 * H:], hb, whhb, bhnb)
        hb = jnp.where(msk[tb * N:(tb + 1) * N] > 0.5, hb_new, hb)

    h_ref[...] = jnp.concatenate([hf, hb], axis=-1).astype(h_ref.dtype)


def decoder_kernel(xc_ref, c_ref, m_ref,
                   woutw_ref, woutb_ref,
                   wih1_ref, bih1_ref, whh1f_ref, whh1b_ref, bhn1_ref,
                   wo1_ref, wctx_ref, b2_ref, whh2f_ref, whh2b_ref,
                   wi_ref, bi_ref, ws_ref, bs_ref,
                   intent_ref, slot_ref):
    """attention + w_out + decoder_1 biGRU + decoder_2 biLSTM + heads, fused.

    xc_ref: (T*B, E) bf16    c_ref: (B, 1, 2H) bf16    m_ref: (B, NT, 2H) bf16
    intent_ref: (B, PAD) f32 (padded)   slot_ref: (T*B, PAD) f32 (time-major)
    """
    B = c_ref.shape[0]
    T = xc_ref.shape[0] // B
    Hd = whh1f_ref.shape[0]            # decoder hidden size (= 2 * base H)
    G1 = 3 * Hd                        # GRU gate width per direction
    G2 = 4 * Hd                        # LSTM gate width per direction

    # ---- memory attention + w_out (prologue; MXU contractions) ----
    c = c_ref[...]                                              # (B, 1, 2H)
    m = m_ref[...]                                              # (B, NT, 2H)
    scores = jnp.einsum('bqd,bkd->bqk', c, m,
                        preferred_element_type=jnp.float32)     # (B, 1, NT)
    scores = scores - jnp.max(scores, axis=-1, keepdims=True)
    e = jnp.exp(scores)
    attn = e * pl.reciprocal(jnp.sum(e, axis=-1, keepdims=True), approx=True)
    wsum = jnp.einsum('bqk,bkd->bqd', attn.astype(jnp.bfloat16), m,
                      preferred_element_type=jnp.float32)       # (B, 1, 2H)
    hsum = wsum[:, 0, :] + c[:, 0, :].astype(jnp.float32)
    hctx = (jnp.dot(hsum.astype(jnp.bfloat16), woutw_ref[...],
                    preferred_element_type=jnp.float32)
            + woutb_ref[...])                                   # (B, 4H)

    # ---- decoder_1: unmasked bidirectional GRU over current embeddings ----
    xg1 = jnp.dot(xc_ref[...], wih1_ref[...],
                  preferred_element_type=jnp.float32) + bih1_ref[...]
    whh1f = whh1f_ref[...]
    whh1b = whh1b_ref[...]
    bhn1f = bhn1_ref[:, :Hd]
    bhn1b = bhn1_ref[:, Hd:]

    def gru_step(xgd, h, whh, bhn):
        hg = jnp.dot(h.astype(jnp.bfloat16), whh,
                     preferred_element_type=jnp.float32)
        r = jax.nn.sigmoid(xgd[:, :Hd] + hg[:, :Hd])
        z = jax.nn.sigmoid(xgd[:, Hd:2 * Hd] + hg[:, Hd:2 * Hd])
        n = jnp.tanh(xgd[:, 2 * Hd:] + r * (hg[:, 2 * Hd:] + bhn))
        return (1.0 - z) * n + z * h

    hf = jnp.zeros((B, Hd), jnp.float32)
    hb = jnp.zeros((B, Hd), jnp.float32)
    o1f = [None] * T
    o1b = [None] * T
    for t in range(T):
        tb = T - 1 - t
        hf = gru_step(xg1[t * B:(t + 1) * B, :G1], hf, whh1f, bhn1f)
        o1f[t] = hf
        hb = gru_step(xg1[tb * B:(tb + 1) * B, G1:], hb, whh1b, bhn1b)
        o1b[tb] = hb
    o1 = jnp.concatenate(
        [jnp.concatenate([o1f[t], o1b[t]], axis=-1) for t in range(T)],
        axis=0).astype(jnp.bfloat16)                            # (T*B, 4H)

    # ---- decoder_2: bidirectional LSTM over [O1 | Hctx] (zero init) ----
    xg2 = jnp.dot(o1, wo1_ref[...], preferred_element_type=jnp.float32)
    xgc = (jnp.dot(hctx.astype(jnp.bfloat16), wctx_ref[...],
                   preferred_element_type=jnp.float32) + b2_ref[...])
    whh2f = whh2f_ref[...]
    whh2b = whh2b_ref[...]

    def lstm_step(g, h, cst, whh):
        g = g + jnp.dot(h.astype(jnp.bfloat16), whh,
                        preferred_element_type=jnp.float32)
        i = jax.nn.sigmoid(g[:, :Hd])
        f = jax.nn.sigmoid(g[:, Hd:2 * Hd])
        gg = jnp.tanh(g[:, 2 * Hd:3 * Hd])
        o = jax.nn.sigmoid(g[:, 3 * Hd:])
        c_new = f * cst + i * gg
        return o * jnp.tanh(c_new), c_new

    hf = jnp.zeros((B, Hd), jnp.float32)
    cf = jnp.zeros((B, Hd), jnp.float32)
    hb = jnp.zeros((B, Hd), jnp.float32)
    cb = jnp.zeros((B, Hd), jnp.float32)
    o2f = [None] * T
    o2b = [None] * T
    for t in range(T):
        tb = T - 1 - t
        hf, cf = lstm_step(xg2[t * B:(t + 1) * B, :G2] + xgc[:, :G2],
                           hf, cf, whh2f)
        o2f[t] = hf
        hb, cb = lstm_step(xg2[tb * B:(tb + 1) * B, G2:] + xgc[:, G2:],
                           hb, cb, whh2b)
        o2b[tb] = hb
    o2 = jnp.concatenate(
        [jnp.concatenate([o2f[t], o2b[t]], axis=-1) for t in range(T)],
        axis=0).astype(jnp.bfloat16)                            # (T*B, 4H)
    s = jnp.concatenate([hf, hb], axis=-1).astype(jnp.bfloat16)  # (B, 4H)

    # ---- output heads (lane-dense, padded to 128 lanes) ----
    intent_ref[...] = (jnp.dot(s, wi_ref[...],
                               preferred_element_type=jnp.float32)
                       + bi_ref[...])
    slot_ref[...] = (jnp.dot(o2, ws_ref[...],
                             preferred_element_type=jnp.float32)
                     + bs_ref[...])


# ---------------------------------------------------------------------------
# pallas_call wrappers (whole arrays resident in VMEM; no grid needed at
# these sizes -> no per-grid-step overhead, no duplicate weight DMAs)
# ---------------------------------------------------------------------------
def bigru_hidden(x_flat, mask_flat, g, nseq):
    hid = g['whhf'].shape[0]
    return pl.pallas_call(
        bigru_hidden_kernel,
        out_shape=jax.ShapeDtypeStruct((nseq, 2 * hid), jnp.bfloat16),
    )(x_flat, mask_flat, g['wih'], g['bih'], g['whhf'], g['whhb'], g['bhn'])


def decoder_heads(x_c, C, M, kp, B, Tc):
    pad_i = kp['intent_b'].shape[1]
    pad_s = kp['slot_b'].shape[1]
    d1, d2 = kp['dec1'], kp['dec2']
    return pl.pallas_call(
        decoder_kernel,
        out_shape=(jax.ShapeDtypeStruct((B, pad_i), jnp.float32),
                   jax.ShapeDtypeStruct((Tc * B, pad_s), jnp.float32)),
    )(x_c, C[:, None, :], M,
      kp['wout_w'], kp['wout_b'],
      d1['wih'], d1['bih'], d1['whhf'], d1['whhb'], d1['bhn'],
      d2['wo1'], d2['wctx'], d2['b'], d2['whhf'], d2['whhb'],
      kp['intent_w'], kp['intent_b'], kp['slot_w'], kp['slot_b'])


# ---------------------------------------------------------------------------
# Parameter init (xavier-uniform for >1D params, zero biases — matches the
# reference init loop) and one-time kernel-layout preparation.
# ---------------------------------------------------------------------------
def _xavier(key, shape):
    fan_out, fan_in = shape[0], shape[1]
    limit = math.sqrt(6.0 / (fan_in + fan_out))
    return jax.random.uniform(key, shape, jnp.float32, -limit, limit)


def init_params(key, vocab, E, H, slot, intent):
    keys = iter(jax.random.split(key, 64))

    def rnn_dir(gates, in_dim, hid):
        w_ih = _xavier(next(keys), (gates * hid, in_dim))
        w_hh = _xavier(next(keys), (gates * hid, hid))
        b_ih = jnp.zeros((gates * hid,), jnp.float32)
        b_hh = jnp.zeros((gates * hid,), jnp.float32)
        return (w_ih, w_hh, b_ih, b_hh)

    def bi_rnn(gates, in_dim, hid):
        return {'fwd': rnn_dir(gates, in_dim, hid),
                'bwd': rnn_dir(gates, in_dim, hid)}

    return {
        'embed': _xavier(next(keys), (vocab, E)),
        'bigru_m': bi_rnn(3, E, H),
        'bigru_c': bi_rnn(3, E, H),
        'dec1': bi_rnn(3, E, 2 * H),            # decoder_1: biGRU(E -> 2H)
        'dec2': bi_rnn(4, 8 * H, 2 * H),        # decoder_2: biLSTM(8H -> 2H)
        'w_out': (_xavier(next(keys), (4 * H, 2 * H)),
                  jnp.zeros((4 * H,), jnp.float32)),
        'intent': (_xavier(next(keys), (intent, 4 * H)),
                   jnp.zeros((intent,), jnp.float32)),
        'slot': (_xavier(next(keys), (slot, 4 * H)),
                 jnp.zeros((slot,), jnp.float32)),
    }


def _prep_gru(p, hid):
    """Fuse both directions: wih (in, 6H) bf16, folded biases, per-dir whh."""
    wih_l, bih_l, bhn_l, whh = [], [], [], {}
    for d in ('fwd', 'bwd'):
        w_ih, w_hh, b_ih, b_hh = p[d]
        wih_l.append(w_ih.T)                                     # (in, 3H)
        whh[d] = w_hh.T.astype(jnp.bfloat16)                     # (H, 3H)
        b_fold = b_ih + jnp.concatenate(                         # fold b_hr,b_hz
            [b_hh[:2 * hid], jnp.zeros((hid,), jnp.float32)])
        bih_l.append(b_fold)
        bhn_l.append(b_hh[2 * hid:])                             # n-gate rec bias
    return {'wih': jnp.concatenate(wih_l, axis=1).astype(jnp.bfloat16),
            'bih': jnp.concatenate(bih_l).reshape(1, 6 * hid),
            'whhf': whh['fwd'], 'whhb': whh['bwd'],
            'bhn': jnp.concatenate(bhn_l).reshape(1, 2 * hid)}


def _prep_lstm(p, hid, in_o1):
    """Split fused input weights into O1 / context parts; fuse directions."""
    wo1_l, wctx_l, b_l, whh = [], [], [], {}
    for d in ('fwd', 'bwd'):
        w_ih, w_hh, b_ih, b_hh = p[d]
        wt = w_ih.T                                              # (in, 4H)
        wo1_l.append(wt[:in_o1])
        wctx_l.append(wt[in_o1:])
        whh[d] = w_hh.T.astype(jnp.bfloat16)
        b_l.append(b_ih + b_hh)
    return {'wo1': jnp.concatenate(wo1_l, axis=1).astype(jnp.bfloat16),
            'wctx': jnp.concatenate(wctx_l, axis=1).astype(jnp.bfloat16),
            'b': jnp.concatenate(b_l).reshape(1, 8 * hid),
            'whhf': whh['fwd'], 'whhb': whh['bwd']}


def _prep_head(W, b):
    """Transpose and pad the output dim to a multiple of 128 (lane-dense)."""
    out = W.shape[0]
    pad = max(128, int(pl.cdiv(out, 128)) * 128)
    Wt = W.T
    Wp = jnp.zeros((Wt.shape[0], pad), jnp.float32).at[:, :out].set(Wt)
    bp = jnp.zeros((1, pad), jnp.float32).at[:, :out].set(b)
    return Wp.astype(jnp.bfloat16), bp


def prep_params(params, H):
    wout_W, wout_b = params['w_out']
    wi, bi = _prep_head(*params['intent'])
    ws, bs = _prep_head(*params['slot'])
    return {
        'embed': params['embed'],
        'bigru_m': _prep_gru(params['bigru_m'], H),
        'bigru_c': _prep_gru(params['bigru_c'], H),
        'dec1': _prep_gru(params['dec1'], 2 * H),
        'dec2': _prep_lstm(params['dec2'], 2 * H, 4 * H),
        'wout_w': wout_W.T.astype(jnp.bfloat16),                 # (2H, 4H)
        'wout_b': wout_b.reshape(1, -1),
        'intent_w': wi, 'intent_b': bi,
        'slot_w': ws, 'slot_b': bs,
    }


# ---------------------------------------------------------------------------
# MemNet forward (non-slm branch)
# ---------------------------------------------------------------------------
def memnet_forward(kp, history, current, hidden_size, slot_size, intent_size,
                   pad_idx=0):
    B, NT, Th = history.shape
    Tc = current.shape[1]
    E = kp['embed'].shape[1]
    H2 = 2 * hidden_size

    # ---- encode every history turn with bigru_m, final hidden only ----
    h_flat = history.reshape(B * NT, Th)
    mask_h = (h_flat != pad_idx).astype(jnp.float32)
    len_h = mask_h.sum(1)
    # emulate `lens = [l if l > 0 else 1]`
    mask_h = jnp.where((len_h == 0)[:, None] & (jnp.arange(Th) == 0)[None, :],
                       1.0, mask_h)
    emb_h = kp['embed'][h_flat]                                   # (B*NT, Th, E)
    x_h = jnp.transpose(emb_h, (1, 0, 2)).reshape(Th * B * NT, E)
    m_h = jnp.transpose(mask_h, (1, 0)).reshape(Th * B * NT, 1)
    M = bigru_hidden(x_h.astype(jnp.bfloat16), m_h, kp['bigru_m'], B * NT)
    M = M.reshape(B, NT, H2)                                      # (B, NT, 2H)

    # ---- encode current utterance with bigru_c ----
    mask_c = (current != pad_idx).astype(jnp.float32)
    len_c = mask_c.sum(1)
    mask_c = jnp.where((len_c == 0)[:, None] & (jnp.arange(Tc) == 0)[None, :],
                       1.0, mask_c)
    emb_c = kp['embed'][current]                                  # (B, Tc, E)
    x_c = jnp.transpose(emb_c, (1, 0, 2)).reshape(Tc * B, E).astype(jnp.bfloat16)
    m_c = jnp.transpose(mask_c, (1, 0)).reshape(Tc * B, 1)
    C = bigru_hidden(x_c, m_c, kp['bigru_c'], B)                  # (B, 2H)

    # ---- fused attention + w_out + decoder_1 + decoder_2 + heads ----
    intent_pad, slot_pad = decoder_heads(x_c, C, M, kp, B, Tc)

    intent_prob = intent_pad[:, :intent_size]
    slot_prob = jnp.transpose(slot_pad.reshape(Tc, B, -1),
                              (1, 0, 2)).reshape(B * Tc, -1)[:, :slot_size]
    return slot_prob, intent_prob
    # TODO(synk): the `slm=True` branch (candidate scoring via slm_linear) is not implemented.


# ---------------------------------------------------------------------------
# Main
# ---------------------------------------------------------------------------
if __name__ == "__main__":
    VOCAB, E, H = 50, 16, 16
    SLOT, INTENT = 10, 5
    B, NT, TH, TC = 2, 3, 6, 8

    key = jax.random.PRNGKey(0)
    k_par, k_h, k_hl, k_c, k_cl = jax.random.split(key, 5)

    params = init_params(k_par, VOCAB, E, H, SLOT, INTENT)
    kparams = prep_params(params, H)

    # history / current token ids with trailing padding (pad_idx = 0)
    history = jax.random.randint(k_h, (B, NT, TH), 1, VOCAB)
    hist_len = jax.random.randint(k_hl, (B, NT), 2, TH + 1)
    history = jnp.where(jnp.arange(TH)[None, None, :] < hist_len[:, :, None],
                        history, 0).astype(jnp.int32)

    current = jax.random.randint(k_c, (B, TC), 1, VOCAB)
    cur_len = jax.random.randint(k_cl, (B,), 3, TC + 1)
    current = jnp.where(jnp.arange(TC)[None, :] < cur_len[:, None],
                        current, 0).astype(jnp.int32)

    fwd = jax.jit(lambda p, h, c: memnet_forward(p, h, c, H, SLOT, INTENT))
    slot_prob, intent_prob = fwd(kparams, history, current)
    jax.block_until_ready(slot_prob)
    jax.block_until_ready(intent_prob)

    assert slot_prob.shape == (B * TC, SLOT)
    assert intent_prob.shape == (B, INTENT)
    print("KERNEL_OK")
</pallas_src>

<mosaic_0001>
module attributes {stable_mosaic.version = 11 : i64} {
  func.func @bigru_hidden_kernel(%arg0: memref<16x16xbf16, #tpu.memory_space<vmem>>, %arg1: memref<16x1xf32, #tpu.memory_space<vmem>>, %arg2: memref<16x96xbf16, #tpu.memory_space<vmem>>, %arg3: memref<1x96xf32, #tpu.memory_space<vmem>>, %arg4: memref<16x48xbf16, #tpu.memory_space<vmem>>, %arg5: memref<16x48xbf16, #tpu.memory_space<vmem>>, %arg6: memref<1x32xf32, #tpu.memory_space<vmem>>, %arg7: memref<2x32xbf16, #tpu.memory_space<vmem>>) attributes {dimension_semantics = [], scalar_prefetch = 0 : i64, scratch_operands = 0 : i64, tpu.core_type = #tpu.core_type<tc>} {
    %c0 = arith.constant 0 : index
    %c0_0 = arith.constant 0 : index
    %0 = vector.load %arg0[%c0, %c0_0] : memref<16x16xbf16, #tpu.memory_space<vmem>>, vector<16x16xbf16>
    %c0_1 = arith.constant 0 : index
    %c0_2 = arith.constant 0 : index
    %1 = vector.load %arg2[%c0_1, %c0_2] : memref<16x96xbf16, #tpu.memory_space<vmem>>, vector<16x96xbf16>
    %cst = arith.constant dense<0.000000e+00> : vector<16x96xf32>
    %2 = tpu.matmul %0, %1, %cst {dimension_numbers = #tpu.dot_dimension_numbers<[1], [0], [0], [1], [0, 0, 1, 1], [], []>} : vector<16x16xbf16>, vector<16x96xbf16>, vector<16x96xf32> -> vector<16x96xf32>
    %c0_3 = arith.constant 0 : index
    %c0_4 = arith.constant 0 : index
    %3 = vector.load %arg3[%c0_3, %c0_4] : memref<1x96xf32, #tpu.memory_space<vmem>>, vector<1x96xf32>
    %4 = vector.broadcast %3 : vector<1x96xf32> to vector<16x96xf32>
    %5 = arith.addf %2, %4 : vector<16x96xf32>
    %c0_5 = arith.constant 0 : index
    %c0_6 = arith.constant 0 : index
    %6 = vector.load %arg1[%c0_5, %c0_6] : memref<16x1xf32, #tpu.memory_space<vmem>>, vector<16x1xf32>
    %c0_7 = arith.constant 0 : index
    %c0_8 = arith.constant 0 : index
    %7 = vector.load %arg4[%c0_7, %c0_8] : memref<16x48xbf16, #tpu.memory_space<vmem>>, vector<16x48xbf16>
    %c0_9 = arith.constant 0 : index
    %c0_10 = arith.constant 0 : index
    %8 = vector.load %arg5[%c0_9, %c0_10] : memref<16x48xbf16, #tpu.memory_space<vmem>>, vector<16x48xbf16>
    %c0_11 = arith.constant 0 : index
    %c0_12 = arith.constant 0 : index
    %9 = vector.load %arg6[%c0_11, %c0_12] : memref<1x32xf32, #tpu.memory_space<vmem>>, vector<1x16xf32>
    %c0_13 = arith.constant 0 : index
    %c16 = arith.constant 16 : index
    %10 = vector.load %arg6[%c0_13, %c16] : memref<1x32xf32, #tpu.memory_space<vmem>>, vector<1x16xf32>
    %cst_14 = arith.constant 0.000000e+00 : f32
    %11 = vector.broadcast %cst_14 : f32 to vector<2x16xf32>
    %cst_15 = arith.constant 0.000000e+00 : f32
    %12 = vector.broadcast %cst_15 : f32 to vector<2x16xf32>
    %13 = vector.extract_strided_slice %5 {offsets = [0, 0], sizes = [2, 48], strides = [1, 1]} : vector<16x96xf32> to vector<2x48xf32>
    %14 = arith.truncf %11 : vector<2x16xf32> to vector<2x16xbf16>
    %cst_16 = arith.constant dense<0.000000e+00> : vector<2x48xf32>
    %15 = tpu.matmul %14, %7, %cst_16 {dimension_numbers = #tpu.dot_dimension_numbers<[1], [0], [0], [1], [0, 0, 1, 1], [], []>} : vector<2x16xbf16>, vector<16x48xbf16>, vector<2x48xf32> -> vector<2x48xf32>
    %16 = vector.extract_strided_slice %13 {offsets = [0, 0], sizes = [2, 16], strides = [1, 1]} : vector<2x48xf32> to vector<2x16xf32>
    %17 = vector.extract_strided_slice %15 {offsets = [0, 0], sizes = [2, 16], strides = [1, 1]} : vector<2x48xf32> to vector<2x16xf32>
    %18 = arith.addf %16, %17 : vector<2x16xf32>
    %19 = arith.negf %18 : vector<2x16xf32>
    %20 = math.exp %19 : vector<2x16xf32>
    %cst_17 = arith.constant 1.000000e+00 : f32
    %21 = vector.broadcast %cst_17 : f32 to vector<2x16xf32>
    %22 = arith.addf %21, %20 : vector<2x16xf32>
    %23 = arith.divf %21, %22 : vector<2x16xf32>
    %24 = vector.extract_strided_slice %13 {offsets = [0, 16], sizes = [2, 16], strides = [1, 1]} : vector<2x48xf32> to vector<2x16xf32>
    %25 = vector.extract_strided_slice %15 {offsets = [0, 16], sizes = [2, 16], strides = [1, 1]} : vector<2x48xf32> to vector<2x16xf32>
    %26 = arith.addf %24, %25 : vector<2x16xf32>
    %27 = arith.negf %26 : vector<2x16xf32>
    %28 = math.exp %27 : vector<2x16xf32>
    %cst_18 = arith.constant 1.000000e+00 : f32
    %29 = vector.broadcast %cst_18 : f32 to vector<2x16xf32>
    %30 = arith.addf %29, %28 : vector<2x16xf32>
    %31 = arith.divf %29, %30 : vector<2x16xf32>
    %32 = vector.extract_strided_slice %13 {offsets = [0, 32], sizes = [2, 16], strides = [1, 1]} : vector<2x48xf32> to vector<2x16xf32>
    %33 = vector.extract_strided_slice %15 {offsets = [0, 32], sizes = [2, 16], strides = [1, 1]} : vector<2x48xf32> to vector<2x16xf32>
    %34 = vector.broadcast %9 : vector<1x16xf32> to vector<2x16xf32>
    %35 = arith.addf %33, %34 : vector<2x16xf32>
    %36 = arith.mulf %23, %35 : vector<2x16xf32>
    %37 = arith.addf %32, %36 : vector<2x16xf32>
    %38 = math.tanh %37 : vector<2x16xf32>
    %cst_19 = arith.constant 1.000000e+00 : f32
    %39 = vector.broadcast %cst_19 : f32 to vector<2x16xf32>
    %40 = arith.subf %39, %31 : vector<2x16xf32>
    %41 = arith.mulf %40, %38 : vector<2x16xf32>
    %42 = arith.mulf %31, %11 : vector<2x16xf32>
    %43 = arith.addf %41, %42 : vector<2x16xf32>
    %44 = vector.extract_strided_slice %6 {offsets = [0, 0], sizes = [2, 1], strides = [1, 1]} : vector<16x1xf32> to vector<2x1xf32>
    %cst_20 = arith.constant 5.000000e-01 : f32
    %45 = vector.broadcast %cst_20 : f32 to vector<2x1xf32>
    %46 = arith.cmpf ogt, %44, %45 : vector<2x1xf32>
    %47 = vector.shape_cast %46 : vector<2x1xi1> to vector<2x1xi1>
    %48 = vector.broadcast %47 : vector<2x1xi1> to vector<2x16xi1>
    %49 = arith.select %48, %43, %11 : vector<2x16xi1>, vector<2x16xf32>
    %50 = vector.extract_strided_slice %5 {offsets = [14, 48], sizes = [2, 48], strides = [1, 1]} : vector<16x96xf32> to vector<2x48xf32>
    %51 = arith.truncf %12 : vector<2x16xf32> to vector<2x16xbf16>
    %cst_21 = arith.constant dense<0.000000e+00> : vector<2x48xf32>
    %52 = tpu.matmul %51, %8, %cst_21 {dimension_numbers = #tpu.dot_dimension_numbers<[1], [0], [0], [1], [0, 0, 1, 1], [], []>} : vector<2x16xbf16>, vector<16x48xbf16>, vector<2x48xf32> -> vector<2x48xf32>
    %53 = vector.extract_strided_slice %50 {offsets = [0, 0], sizes = [2, 16], strides = [1, 1]} : vector<2x48xf32> to vector<2x16xf32>
    %54 = vector.extract_strided_slice %52 {offsets = [0, 0], sizes = [2, 16], strides = [1, 1]} : vector<2x48xf32> to vector<2x16xf32>
    %55 = arith.addf %53, %54 : vector<2x16xf32>
    %56 = arith.negf %55 : vector<2x16xf32>
    %57 = math.exp %56 : vector<2x16xf32>
    %cst_22 = arith.constant 1.000000e+00 : f32
    %58 = vector.broadcast %cst_22 : f32 to vector<2x16xf32>
    %59 = arith.addf %58, %57 : vector<2x16xf32>
    %60 = arith.divf %58, %59 : vector<2x16xf32>
    %61 = vector.extract_strided_slice %50 {offsets = [0, 16], sizes = [2, 16], strides = [1, 1]} : vector<2x48xf32> to vector<2x16xf32>
    %62 = vector.extract_strided_slice %52 {offsets = [0, 16], sizes = [2, 16], strides = [1, 1]} : vector<2x48xf32> to vector<2x16xf32>
    %63 = arith.addf %61, %62 : vector<2x16xf32>
    %64 = arith.negf %63 : vector<2x16xf32>
    %65 = math.exp %64 : vector<2x16xf32>
    %cst_23 = arith.constant 1.000000e+00 : f32
    %66 = vector.broadcast %cst_23 : f32 to vector<2x16xf32>
    %67 = arith.addf %66, %65 : vector<2x16xf32>
    %68 = arith.divf %66, %67 : vector<2x16xf32>
    %69 = vector.extract_strided_slice %50 {offsets = [0, 32], sizes = [2, 16], strides = [1, 1]} : vector<2x48xf32> to vector<2x16xf32>
    %70 = vector.extract_strided_slice %52 {offsets = [0, 32], sizes = [2, 16], strides = [1, 1]} : vector<2x48xf32> to vector<2x16xf32>
    %71 = vector.broadcast %10 : vector<1x16xf32> to vector<2x16xf32>
    %72 = arith.addf %70, %71 : vector<2x16xf32>
    %73 = arith.mulf %60, %72 : vector<2x16xf32>
    %74 = arith.addf %69, %73 : vector<2x16xf32>
    %75 = math.tanh %74 : vector<2x16xf32>
    %cst_24 = arith.constant 1.000000e+00 : f32
    %76 = vector.broadcast %cst_24 : f32 to vector<2x16xf32>
    %77 = arith.subf %76, %68 : vector<2x16xf32>
    %78 = arith.mulf %77, %75 : vector<2x16xf32>
    %79 = arith.mulf %68, %12 : vector<2x16xf32>
    %80 = arith.addf %78, %79 : vector<2x16xf32>
    %81 = vector.extract_strided_slice %6 {offsets = [14, 0], sizes = [2, 1], strides = [1, 1]} : vector<16x1xf32> to vector<2x1xf32>
    %cst_25 = arith.constant 5.000000e-01 : f32
    %82 = vector.broadcast %cst_25 : f32 to vector<2x1xf32>
    %83 = arith.cmpf ogt, %81, %82 : vector<2x1xf32>
    %84 = vector.shape_cast %83 : vector<2x1xi1> to vector<2x1xi1>
    %85 = vector.broadcast %84 : vector<2x1xi1> to vector<2x16xi1>
    %86 = arith.select %85, %80, %12 : vector<2x16xi1>, vector<2x16xf32>
    %87 = vector.extract_strided_slice %5 {offsets = [2, 0], sizes = [2, 48], strides = [1, 1]} : vector<16x96xf32> to vector<2x48xf32>
    %88 = arith.truncf %49 : vector<2x16xf32> to vector<2x16xbf16>
    %cst_26 = arith.constant dense<0.000000e+00> : vector<2x48xf32>
    %89 = tpu.matmul %88, %7, %cst_26 {dimension_numbers = #tpu.dot_dimension_numbers<[1], [0], [0], [1], [0, 0, 1, 1], [], []>} : vector<2x16xbf16>, vector<16x48xbf16>, vector<2x48xf32> -> vector<2x48xf32>
    %90 = vector.extract_strided_slice %87 {offsets = [0, 0], sizes = [2, 16], strides = [1, 1]} : vector<2x48xf32> to vector<2x16xf32>
    %91 = vector.extract_strided_slice %89 {offsets = [0, 0], sizes = [2, 16], strides = [1, 1]} : vector<2x48xf32> to vector<2x16xf32>
    %92 = arith.addf %90, %91 : vector<2x16xf32>
    %93 = arith.negf %92 : vector<2x16xf32>
    %94 = math.exp %93 : vector<2x16xf32>
    %cst_27 = arith.constant 1.000000e+00 : f32
    %95 = vector.broadcast %cst_27 : f32 to vector<2x16xf32>
    %96 = arith.addf %95, %94 : vector<2x16xf32>
    %97 = arith.divf %95, %96 : vector<2x16xf32>
    %98 = vector.extract_strided_slice %87 {offsets = [0, 16], sizes = [2, 16], strides = [1, 1]} : vector<2x48xf32> to vector<2x16xf32>
    %99 = vector.extract_strided_slice %89 {offsets = [0, 16], sizes = [2, 16], strides = [1, 1]} : vector<2x48xf32> to vector<2x16xf32>
    %100 = arith.addf %98, %99 : vector<2x16xf32>
    %101 = arith.negf %100 : vector<2x16xf32>
    %102 = math.exp %101 : vector<2x16xf32>
    %cst_28 = arith.constant 1.000000e+00 : f32
    %103 = vector.broadcast %cst_28 : f32 to vector<2x16xf32>
    %104 = arith.addf %103, %102 : vector<2x16xf32>
    %105 = arith.divf %103, %104 : vector<2x16xf32>
    %106 = vector.extract_strided_slice %87 {offsets = [0, 32], sizes = [2, 16], strides = [1, 1]} : vector<2x48xf32> to vector<2x16xf32>
    %107 = vector.extract_strided_slice %89 {offsets = [0, 32], sizes = [2, 16], strides = [1, 1]} : vector<2x48xf32> to vector<2x16xf32>
    %108 = vector.broadcast %9 : vector<1x16xf32> to vector<2x16xf32>
    %109 = arith.addf %107, %108 : vector<2x16xf32>
    %110 = arith.mulf %97, %109 : vector<2x16xf32>
    %111 = arith.addf %106, %110 : vector<2x16xf32>
    %112 = math.tanh %111 : vector<2x16xf32>
    %cst_29 = arith.constant 1.000000e+00 : f32
    %113 = vector.broadcast %cst_29 : f32 to vector<2x16xf32>
    %114 = arith.subf %113, %105 : vector<2x16xf32>
    %115 = arith.mulf %114, %112 : vector<2x16xf32>
    %116 = arith.mulf %105, %49 : vector<2x16xf32>
    %117 = arith.addf %115, %116 : vector<2x16xf32>
    %118 = vector.extract_strided_slice %6 {offsets = [2, 0], sizes = [2, 1], strides = [1, 1]} : vector<16x1xf32> to vector<2x1xf32>
    %cst_30 = arith.constant 5.000000e-01 : f32
    %119 = vector.broadcast %cst_30 : f32 to vector<2x1xf32>
    %120 = arith.cmpf ogt, %118, %119 : vector<2x1xf32>
    %121 = vector.shape_cast %120 : vector<2x1xi1> to vector<2x1xi1>
    %122 = vector.broadcast %121 : vector<2x1xi1> to vector<2x16xi1>
    %123 = arith.select %122, %117, %49 : vector<2x16xi1>, vector<2x16xf32>
    %124 = vector.extract_strided_slice %5 {offsets = [12, 48], sizes = [2, 48], strides = [1, 1]} : vector<16x96xf32> to vector<2x48xf32>
    %125 = arith.truncf %86 : vector<2x16xf32> to vector<2x16xbf16>
    %cst_31 = arith.constant dense<0.000000e+00> : vector<2x48xf32>
    %126 = tpu.matmul %125, %8, %cst_31 {dimension_numbers = #tpu.dot_dimension_numbers<[1], [0], [0], [1], [0, 0, 1, 1], [], []>} : vector<2x16xbf16>, vector<16x48xbf16>, vector<2x48xf32> -> vector<2x48xf32>
    %127 = vector.extract_strided_slice %124 {offsets = [0, 0], sizes = [2, 16], strides = [1, 1]} : vector<2x48xf32> to vector<2x16xf32>
    %128 = vector.extract_strided_slice %126 {offsets = [0, 0], sizes = [2, 16], strides = [1, 1]} : vector<2x48xf32> to vector<2x16xf32>
    %129 = arith.addf %127, %128 : vector<2x16xf32>
    %130 = arith.negf %129 : vector<2x16xf32>
    %131 = math.exp %130 : vector<2x16xf32>
    %cst_32 = arith.constant 1.000000e+00 : f32
    %132 = vector.broadcast %cst_32 : f32 to vector<2x16xf32>
    %133 = arith.addf %132, %131 : vector<2x16xf32>
    %134 = arith.divf %132, %133 : vector<2x16xf32>
    %135 = vector.extract_strided_slice %124 {offsets = [0, 16], sizes = [2, 16], strides = [1, 1]} : vector<2x48xf32> to vector<2x16xf32>
    %136 = vector.extract_strided_slice %126 {offsets = [0, 16], sizes = [2, 16], strides = [1, 1]} : vector<2x48xf32> to vector<2x16xf32>
    %137 = arith.addf %135, %136 : vector<2x16xf32>
    %138 = arith.negf %137 : vector<2x16xf32>
    %139 = math.exp %138 : vector<2x16xf32>
    %cst_33 = arith.constant 1.000000e+00 : f32
    %140 = vector.broadcast %cst_33 : f32 to vector<2x16xf32>
    %141 = arith.addf %140, %139 : vector<2x16xf32>
    %142 = arith.divf %140, %141 : vector<2x16xf32>
    %143 = vector.extract_strided_slice %124 {offsets = [0, 32], sizes = [2, 16], strides = [1, 1]} : vector<2x48xf32> to vector<2x16xf32>
    %144 = vector.extract_strided_slice %126 {offsets = [0, 32], sizes = [2, 16], strides = [1, 1]} : vector<2x48xf32> to vector<2x16xf32>
    %145 = vector.broadcast %10 : vector<1x16xf32> to vector<2x16xf32>
    %146 = arith.addf %144, %145 : vector<2x16xf32>
    %147 = arith.mulf %134, %146 : vector<2x16xf32>
    %148 = arith.addf %143, %147 : vector<2x16xf32>
    %149 = math.tanh %148 : vector<2x16xf32>
    %cst_34 = arith.constant 1.000000e+00 : f32
    %150 = vector.broadcast %cst_34 : f32 to vector<2x16xf32>
    %151 = arith.subf %150, %142 : vector<2x16xf32>
    %152 = arith.mulf %151, %149 : vector<2x16xf32>
    %153 = arith.mulf %142, %86 : vector<2x16xf32>
    %154 = arith.addf %152, %153 : vector<2x16xf32>
    %155 = vector.extract_strided_slice %6 {offsets = [12, 0], sizes = [2, 1], strides = [1, 1]} : vector<16x1xf32> to vector<2x1xf32>
    %cst_35 = arith.constant 5.000000e-01 : f32
    %156 = vector.broadcast %cst_35 : f32 to vector<2x1xf32>
    %157 = arith.cmpf ogt, %155, %156 : vector<2x1xf32>
    %158 = vector.shape_cast %157 : vector<2x1xi1> to vector<2x1xi1>
    %159 = vector.broadcast %158 : vector<2x1xi1> to vector<2x16xi1>
    %160 = arith.select %159, %154, %86 : vector<2x16xi1>, vector<2x16xf32>
    %161 = vector.extract_strided_slice %5 {offsets = [4, 0], sizes = [2, 48], strides = [1, 1]} : vector<16x96xf32> to vector<2x48xf32>
    %162 = arith.truncf %123 : vector<2x16xf32> to vector<2x16xbf16>
    %cst_36 = arith.constant dense<0.000000e+00> : vector<2x48xf32>
    %163 = tpu.matmul %162, %7, %cst_36 {dimension_numbers = #tpu.dot_dimension_numbers<[1], [0], [0], [1], [0, 0, 1, 1], [], []>} : vector<2x16xbf16>, vector<16x48xbf16>, vector<2x48xf32> -> vector<2x48xf32>
    %164 = vector.extract_strided_slice %161 {offsets = [0, 0], sizes = [2, 16], strides = [1, 1]} : vector<2x48xf32> to vector<2x16xf32>
    %165 = vector.extract_strided_slice %163 {offsets = [0, 0], sizes = [2, 16], strides = [1, 1]} : vector<2x48xf32> to vector<2x16xf32>
    %166 = arith.addf %164, %165 : vector<2x16xf32>
    %167 = arith.negf %166 : vector<2x16xf32>
    %168 = math.exp %167 : vector<2x16xf32>
    %cst_37 = arith.constant 1.000000e+00 : f32
    %169 = vector.broadcast %cst_37 : f32 to vector<2x16xf32>
    %170 = arith.addf %169, %168 : vector<2x16xf32>
    %171 = arith.divf %169, %170 : vector<2x16xf32>
    %172 = vector.extract_strided_slice %161 {offsets = [0, 16], sizes = [2, 16], strides = [1, 1]} : vector<2x48xf32> to vector<2x16xf32>
    %173 = vector.extract_strided_slice %163 {offsets = [0, 16], sizes = [2, 16], strides = [1, 1]} : vector<2x48xf32> to vector<2x16xf32>
    %174 = arith.addf %172, %173 : vector<2x16xf32>
    %175 = arith.negf %174 : vector<2x16xf32>
    %176 = math.exp %175 : vector<2x16xf32>
    %cst_38 = arith.constant 1.000000e+00 : f32
    %177 = vector.broadcast %cst_38 : f32 to vector<2x16xf32>
    %178 = arith.addf %177, %176 : vector<2x16xf32>
    %179 = arith.divf %177, %178 : vector<2x16xf32>
    %180 = vector.extract_strided_slice %161 {offsets = [0, 32], sizes = [2, 16], strides = [1, 1]} : vector<2x48xf32> to vector<2x16xf32>
    %181 = vector.extract_strided_slice %163 {offsets = [0, 32], sizes = [2, 16], strides = [1, 1]} : vector<2x48xf32> to vector<2x16xf32>
    %182 = vector.broadcast %9 : vector<1x16xf32> to vector<2x16xf32>
    %183 = arith.addf %181, %182 : vector<2x16xf32>
    %184 = arith.mulf %171, %183 : vector<2x16xf32>
    %185 = arith.addf %180, %184 : vector<2x16xf32>
    %186 = math.tanh %185 : vector<2x16xf32>
    %cst_39 = arith.constant 1.000000e+00 : f32
    %187 = vector.broadcast %cst_39 : f32 to vector<2x16xf32>
    %188 = arith.subf %187, %179 : vector<2x16xf32>
    %189 = arith.mulf %188, %186 : vector<2x16xf32>
    %190 = arith.mulf %179, %123 : vector<2x16xf32>
    %191 = arith.addf %189, %190 : vector<2x16xf32>
    %192 = vector.extract_strided_slice %6 {offsets = [4, 0], sizes = [2, 1], strides = [1, 1]} : vector<16x1xf32> to vector<2x1xf32>
    %cst_40 = arith.constant 5.000000e-01 : f32
    %193 = vector.broadcast %cst_40 : f32 to vector<2x1xf32>
    %194 = arith.cmpf ogt, %192, %193 : vector<2x1xf32>
    %195 = vector.shape_cast %194 : vector<2x1xi1> to vector<2x1xi1>
    %196 = vector.broadcast %195 : vector<2x1xi1> to vector<2x16xi1>
    %197 = arith.select %196, %191, %123 : vector<2x16xi1>, vector<2x16xf32>
    %198 = vector.extract_strided_slice %5 {offsets = [10, 48], sizes = [2, 48], strides = [1, 1]} : vector<16x96xf32> to vector<2x48xf32>
    %199 = arith.truncf %160 : vector<2x16xf32> to vector<2x16xbf16>
    %cst_41 = arith.constant dense<0.000000e+00> : vector<2x48xf32>
    %200 = tpu.matmul %199, %8, %cst_41 {dimension_numbers = #tpu.dot_dimension_numbers<[1], [0], [0], [1], [0, 0, 1, 1], [], []>} : vector<2x16xbf16>, vector<16x48xbf16>, vector<2x48xf32> -> vector<2x48xf32>
    %201 = vector.extract_strided_slice %198 {offsets = [0, 0], sizes = [2, 16], strides = [1, 1]} : vector<2x48xf32> to vector<2x16xf32>
    %202 = vector.extract_strided_slice %200 {offsets = [0, 0], sizes = [2, 16], strides = [1, 1]} : vector<2x48xf32> to vector<2x16xf32>
    %203 = arith.addf %201, %202 : vector<2x16xf32>
    %204 = arith.negf %203 : vector<2x16xf32>
    %205 = math.exp %204 : vector<2x16xf32>
    %cst_42 = arith.constant 1.000000e+00 : f32
    %206 = vector.broadcast %cst_42 : f32 to vector<2x16xf32>
    %207 = arith.addf %206, %205 : vector<2x16xf32>
    %208 = arith.divf %206, %207 : vector<2x16xf32>
    %209 = vector.extract_strided_slice %198 {offsets = [0, 16], sizes = [2, 16], strides = [1, 1]} : vector<2x48xf32> to vector<2x16xf32>
    %210 = vector.extract_strided_slice %200 {offsets = [0, 16], sizes = [2, 16], strides = [1, 1]} : vector<2x48xf32> to vector<2x16xf32>
    %211 = arith.addf %209, %210 : vector<2x16xf32>
    %212 = arith.negf %211 : vector<2x16xf32>
    %213 = math.exp %212 : vector<2x16xf32>
    %cst_43 = arith.constant 1.000000e+00 : f32
    %214 = vector.broadcast %cst_43 : f32 to vector<2x16xf32>
    %215 = arith.addf %214, %213 : vector<2x16xf32>
    %216 = arith.divf %214, %215 : vector<2x16xf32>
    %217 = vector.extract_strided_slice %198 {offsets = [0, 32], sizes = [2, 16], strides = [1, 1]} : vector<2x48xf32> to vector<2x16xf32>
    %218 = vector.extract_strided_slice %200 {offsets = [0, 32], sizes = [2, 16], strides = [1, 1]} : vector<2x48xf32> to vector<2x16xf32>
    %219 = vector.broadcast %10 : vector<1x16xf32> to vector<2x16xf32>
    %220 = arith.addf %218, %219 : vector<2x16xf32>
    %221 = arith.mulf %208, %220 : vector<2x16xf32>
    %222 = arith.addf %217, %221 : vector<2x16xf32>
    %223 = math.tanh %222 : vector<2x16xf32>
    %cst_44 = arith.constant 1.000000e+00 : f32
    %224 = vector.broadcast %cst_44 : f32 to vector<2x16xf32>
    %225 = arith.subf %224, %216 : vector<2x16xf32>
    %226 = arith.mulf %225, %223 : vector<2x16xf32>
    %227 = arith.mulf %216, %160 : vector<2x16xf32>
    %228 = arith.addf %226, %227 : vector<2x16xf32>
    %229 = vector.extract_strided_slice %6 {offsets = [10, 0], sizes = [2, 1], strides = [1, 1]} : vector<16x1xf32> to vector<2x1xf32>
    %cst_45 = arith.constant 5.000000e-01 : f32
    %230 = vector.broadcast %cst_45 : f32 to vector<2x1xf32>
    %231 = arith.cmpf ogt, %229, %230 : vector<2x1xf32>
    %232 = vector.shape_cast %231 : vector<2x1xi1> to vector<2x1xi1>
    %233 = vector.broadcast %232 : vector<2x1xi1> to vector<2x16xi1>
    %234 = arith.select %233, %228, %160 : vector<2x16xi1>, vector<2x16xf32>
    %235 = vector.extract_strided_slice %5 {offsets = [6, 0], sizes = [2, 48], strides = [1, 1]} : vector<16x96xf32> to vector<2x48xf32>
    %236 = arith.truncf %197 : vector<2x16xf32> to vector<2x16xbf16>
    %cst_46 = arith.constant dense<0.000000e+00> : vector<2x48xf32>
    %237 = tpu.matmul %236, %7, %cst_46 {dimension_numbers = #tpu.dot_dimension_numbers<[1], [0], [0], [1], [0, 0, 1, 1], [], []>} : vector<2x16xbf16>, vector<16x48xbf16>, vector<2x48xf32> -> vector<2x48xf32>
    %238 = vector.extract_strided_slice %235 {offsets = [0, 0], sizes = [2, 16], strides = [1, 1]} : vector<2x48xf32> to vector<2x16xf32>
    %239 = vector.extract_strided_slice %237 {offsets = [0, 0], sizes = [2, 16], strides = [1, 1]} : vector<2x48xf32> to vector<2x16xf32>
    %240 = arith.addf %238, %239 : vector<2x16xf32>
    %241 = arith.negf %240 : vector<2x16xf32>
    %242 = math.exp %241 : vector<2x16xf32>
    %cst_47 = arith.constant 1.000000e+00 : f32
    %243 = vector.broadcast %cst_47 : f32 to vector<2x16xf32>
    %244 = arith.addf %243, %242 : vector<2x16xf32>
    %245 = arith.divf %243, %244 : vector<2x16xf32>
    %246 = vector.extract_strided_slice %235 {offsets = [0, 16], sizes = [2, 16], strides = [1, 1]} : vector<2x48xf32> to vector<2x16xf32>
    %247 = vector.extract_strided_slice %237 {offsets = [0, 16], sizes = [2, 16], strides = [1, 1]} : vector<2x48xf32> to vector<2x16xf32>
    %248 = arith.addf %246, %247 : vector<2x16xf32>
    %249 = arith.negf %248 : vector<2x16xf32>
    %250 = math.exp %249 : vector<2x16xf32>
    %cst_48 = arith.constant 1.000000e+00 : f32
    %251 = vector.broadcast %cst_48 : f32 to vector<2x16xf32>
    %252 = arith.addf %251, %250 : vector<2x16xf32>
    %253 = arith.divf %251, %252 : vector<2x16xf32>
    %254 = vector.extract_strided_slice %235 {offsets = [0, 32], sizes = [2, 16], strides = [1, 1]} : vector<2x48xf32> to vector<2x16xf32>
    %255 = vector.extract_strided_slice %237 {offsets = [0, 32], sizes = [2, 16], strides = [1, 1]} : vector<2x48xf32> to vector<2x16xf32>
    %256 = vector.broadcast %9 : vector<1x16xf32> to vector<2x16xf32>
    %257 = arith.addf %255, %256 : vector<2x16xf32>
    %258 = arith.mulf %245, %257 : vector<2x16xf32>
    %259 = arith.addf %254, %258 : vector<2x16xf32>
    %260 = math.tanh %259 : vector<2x16xf32>
    %cst_49 = arith.constant 1.000000e+00 : f32
    %261 = vector.broadcast %cst_49 : f32 to vector<2x16xf32>
    %262 = arith.subf %261, %253 : vector<2x16xf32>
    %263 = arith.mulf %262, %260 : vector<2x16xf32>
    %264 = arith.mulf %253, %197 : vector<2x16xf32>
    %265 = arith.addf %263, %264 : vector<2x16xf32>
    %266 = vector.extract_strided_slice %6 {offsets = [6, 0], sizes = [2, 1], strides = [1, 1]} : vector<16x1xf32> to vector<2x1xf32>
    %cst_50 = arith.constant 5.000000e-01 : f32
    %267 = vector.broadcast %cst_50 : f32 to vector<2x1xf32>
    %268 = arith.cmpf ogt, %266, %267 : vector<2x1xf32>
    %269 = vector.shape_cast %268 : vector<2x1xi1> to vector<2x1xi1>
    %270 = vector.broadcast %269 : vector<2x1xi1> to vector<2x16xi1>
    %271 = arith.select %270, %265, %197 : vector<2x16xi1>, vector<2x16xf32>
    %272 = vector.extract_strided_slice %5 {offsets = [8, 48], sizes = [2, 48], strides = [1, 1]} : vector<16x96xf32> to vector<2x48xf32>
    %273 = arith.truncf %234 : vector<2x16xf32> to vector<2x16xbf16>
    %cst_51 = arith.constant dense<0.000000e+00> : vector<2x48xf32>
    %274 = tpu.matmul %273, %8, %cst_51 {dimension_numbers = #tpu.dot_dimension_numbers<[1], [0], [0], [1], [0, 0, 1, 1], [], []>} : vector<2x16xbf16>, vector<16x48xbf16>, vector<2x48xf32> -> vector<2x48xf32>
    %275 = vector.extract_strided_slice %272 {offsets = [0, 0], sizes = [2, 16], strides = [1, 1]} : vector<2x48xf32> to vector<2x16xf32>
    %276 = vector.extract_strided_slice %274 {offsets = [0, 0], sizes = [2, 16], strides = [1, 1]} : vector<2x48xf32> to vector<2x16xf32>
    %277 = arith.addf %275, %276 : vector<2x16xf32>
    %278 = arith.negf %277 : vector<2x16xf32>
    %279 = math.exp %278 : vector<2x16xf32>
    %cst_52 = arith.constant 1.000000e+00 : f32
    %280 = vector.broadcast %cst_52 : f32 to vector<2x16xf32>
    %281 = arith.addf %280, %279 : vector<2x16xf32>
    %282 = arith.divf %280, %281 : vector<2x16xf32>
    %283 = vector.extract_strided_slice %272 {offsets = [0, 16], sizes = [2, 16], strides = [1, 1]} : vector<2x48xf32> to vector<2x16xf32>
    %284 = vector.extract_strided_slice %274 {offsets = [0, 16], sizes = [2, 16], strides = [1, 1]} : vector<2x48xf32> to vector<2x16xf32>
    %285 = arith.addf %283, %284 : vector<2x16xf32>
    %286 = arith.negf %285 : vector<2x16xf32>
    %287 = math.exp %286 : vector<2x16xf32>
    %cst_53 = arith.constant 1.000000e+00 : f32
    %288 = vector.broadcast %cst_53 : f32 to vector<2x16xf32>
    %289 = arith.addf %288, %287 : vector<2x16xf32>
    %290 = arith.divf %288, %289 : vector<2x16xf32>
    %291 = vector.extract_strided_slice %272 {offsets = [0, 32], sizes = [2, 16], strides = [1, 1]} : vector<2x48xf32> to vector<2x16xf32>
    %292 = vector.extract_strided_slice %274 {offsets = [0, 32], sizes = [2, 16], strides = [1, 1]} : vector<2x48xf32> to vector<2x16xf32>
    %293 = vector.broadcast %10 : vector<1x16xf32> to vector<2x16xf32>
    %294 = arith.addf %292, %293 : vector<2x16xf32>
    %295 = arith.mulf %282, %294 : vector<2x16xf32>
    %296 = arith.addf %291, %295 : vector<2x16xf32>
    %297 = math.tanh %296 : vector<2x16xf32>
    %cst_54 = arith.constant 1.000000e+00 : f32
    %298 = vector.broadcast %cst_54 : f32 to vector<2x16xf32>
    %299 = arith.subf %298, %290 : vector<2x16xf32>
    %300 = arith.mulf %299, %297 : vector<2x16xf32>
    %301 = arith.mulf %290, %234 : vector<2x16xf32>
    %302 = arith.addf %300, %301 : vector<2x16xf32>
    %303 = vector.extract_strided_slice %6 {offsets = [8, 0], sizes = [2, 1], strides = [1, 1]} : vector<16x1xf32> to vector<2x1xf32>
    %cst_55 = arith.constant 5.000000e-01 : f32
    %304 = vector.broadcast %cst_55 : f32 to vector<2x1xf32>
    %305 = arith.cmpf ogt, %303, %304 : vector<2x1xf32>
    %306 = vector.shape_cast %305 : vector<2x1xi1> to vector<2x1xi1>
    %307 = vector.broadcast %306 : vector<2x1xi1> to vector<2x16xi1>
    %308 = arith.select %307, %302, %234 : vector<2x16xi1>, vector<2x16xf32>
    %309 = vector.extract_strided_slice %5 {offsets = [8, 0], sizes = [2, 48], strides = [1, 1]} : vector<16x96xf32> to vector<2x48xf32>
    %310 = arith.truncf %271 : vector<2x16xf32> to vector<2x16xbf16>
    %cst_56 = arith.constant dense<0.000000e+00> : vector<2x48xf32>
    %311 = tpu.matmul %310, %7, %cst_56 {dimension_numbers = #tpu.dot_dimension_numbers<[1], [0], [0], [1], [0, 0, 1, 1], [], []>} : vector<2x16xbf16>, vector<16x48xbf16>, vector<2x48xf32> -> vector<2x48xf32>
    %312 = vector.extract_strided_slice %309 {offsets = [0, 0], sizes = [2, 16], strides = [1, 1]} : vector<2x48xf32> to vector<2x16xf32>
    %313 = vector.extract_strided_slice %311 {offsets = [0, 0], sizes = [2, 16], strides = [1, 1]} : vector<2x48xf32> to vector<2x16xf32>
    %314 = arith.addf %312, %313 : vector<2x16xf32>
    %315 = arith.negf %314 : vector<2x16xf32>
    %316 = math.exp %315 : vector<2x16xf32>
    %cst_57 = arith.constant 1.000000e+00 : f32
    %317 = vector.broadcast %cst_57 : f32 to vector<2x16xf32>
    %318 = arith.addf %317, %316 : vector<2x16xf32>
    %319 = arith.divf %317, %318 : vector<2x16xf32>
    %320 = vector.extract_strided_slice %309 {offsets = [0, 16], sizes = [2, 16], strides = [1, 1]} : vector<2x48xf32> to vector<2x16xf32>
    %321 = vector.extract_strided_slice %311 {offsets = [0, 16], sizes = [2, 16], strides = [1, 1]} : vector<2x48xf32> to vector<2x16xf32>
    %322 = arith.addf %320, %321 : vector<2x16xf32>
    %323 = arith.negf %322 : vector<2x16xf32>
    %324 = math.exp %323 : vector<2x16xf32>
    %cst_58 = arith.constant 1.000000e+00 : f32
    %325 = vector.broadcast %cst_58 : f32 to vector<2x16xf32>
    %326 = arith.addf %325, %324 : vector<2x16xf32>
    %327 = arith.divf %325, %326 : vector<2x16xf32>
    %328 = vector.extract_strided_slice %309 {offsets = [0, 32], sizes = [2, 16], strides = [1, 1]} : vector<2x48xf32> to vector<2x16xf32>
    %329 = vector.extract_strided_slice %311 {offsets = [0, 32], sizes = [2, 16], strides = [1, 1]} : vector<2x48xf32> to vector<2x16xf32>
    %330 = vector.broadcast %9 : vector<1x16xf32> to vector<2x16xf32>
    %331 = arith.addf %329, %330 : vector<2x16xf32>
    %332 = arith.mulf %319, %331 : vector<2x16xf32>
    %333 = arith.addf %328, %332 : vector<2x16xf32>
    %334 = math.tanh %333 : vector<2x16xf32>
    %cst_59 = arith.constant 1.000000e+00 : f32
    %335 = vector.broadcast %cst_59 : f32 to vector<2x16xf32>
    %336 = arith.subf %335, %327 : vector<2x16xf32>
    %337 = arith.mulf %336, %334 : vector<2x16xf32>
    %338 = arith.mulf %327, %271 : vector<2x16xf32>
    %339 = arith.addf %337, %338 : vector<2x16xf32>
    %340 = vector.extract_strided_slice %6 {offsets = [8, 0], sizes = [2, 1], strides = [1, 1]} : vector<16x1xf32> to vector<2x1xf32>
    %cst_60 = arith.constant 5.000000e-01 : f32
    %341 = vector.broadcast %cst_60 : f32 to vector<2x1xf32>
    %342 = arith.cmpf ogt, %340, %341 : vector<2x1xf32>
    %343 = vector.shape_cast %342 : vector<2x1xi1> to vector<2x1xi1>
    %344 = vector.broadcast %343 : vector<2x1xi1> to vector<2x16xi1>
    %345 = arith.select %344, %339, %271 : vector<2x16xi1>, vector<2x16xf32>
    %346 = vector.extract_strided_slice %5 {offsets = [6, 48], sizes = [2, 48], strides = [1, 1]} : vector<16x96xf32> to vector<2x48xf32>
    %347 = arith.truncf %308 : vector<2x16xf32> to vector<2x16xbf16>
    %cst_61 = arith.constant dense<0.000000e+00> : vector<2x48xf32>
    %348 = tpu.matmul %347, %8, %cst_61 {dimension_numbers = #tpu.dot_dimension_numbers<[1], [0], [0], [1], [0, 0, 1, 1], [], []>} : vector<2x16xbf16>, vector<16x48xbf16>, vector<2x48xf32> -> vector<2x48xf32>
    %349 = vector.extract_strided_slice %346 {offsets = [0, 0], sizes = [2, 16], strides = [1, 1]} : vector<2x48xf32> to vector<2x16xf32>
    %350 = vector.extract_strided_slice %348 {offsets = [0, 0], sizes = [2, 16], strides = [1, 1]} : vector<2x48xf32> to vector<2x16xf32>
    %351 = arith.addf %349, %350 : vector<2x16xf32>
    %352 = arith.negf %351 : vector<2x16xf32>
    %353 = math.exp %352 : vector<2x16xf32>
    %cst_62 = arith.constant 1.000000e+00 : f32
    %354 = vector.broadcast %cst_62 : f32 to vector<2x16xf32>
    %355 = arith.addf %354, %353 : vector<2x16xf32>
    %356 = arith.divf %354, %355 : vector<2x16xf32>
    %357 = vector.extract_strided_slice %346 {offsets = [0, 16], sizes = [2, 16], strides = [1, 1]} : vector<2x48xf32> to vector<2x16xf32>
    %358 = vector.extract_strided_slice %348 {offsets = [0, 16], sizes = [2, 16], strides = [1, 1]} : vector<2x48xf32> to vector<2x16xf32>
    %359 = arith.addf %357, %358 : vector<2x16xf32>
    %360 = arith.negf %359 : vector<2x16xf32>
    %361 = math.exp %360 : vector<2x16xf32>
    %cst_63 = arith.constant 1.000000e+00 : f32
    %362 = vector.broadcast %cst_63 : f32 to vector<2x16xf32>
    %363 = arith.addf %362, %361 : vector<2x16xf32>
    %364 = arith.divf %362, %363 : vector<2x16xf32>
    %365 = vector.extract_strided_slice %346 {offsets = [0, 32], sizes = [2, 16], strides = [1, 1]} : vector<2x48xf32> to vector<2x16xf32>
    %366 = vector.extract_strided_slice %348 {offsets = [0, 32], sizes = [2, 16], strides = [1, 1]} : vector<2x48xf32> to vector<2x16xf32>
    %367 = vector.broadcast %10 : vector<1x16xf32> to vector<2x16xf32>
    %368 = arith.addf %366, %367 : vector<2x16xf32>
    %369 = arith.mulf %356, %368 : vector<2x16xf32>
    %370 = arith.addf %365, %369 : vector<2x16xf32>
    %371 = math.tanh %370 : vector<2x16xf32>
    %cst_64 = arith.constant 1.000000e+00 : f32
    %372 = vector.broadcast %cst_64 : f32 to vector<2x16xf32>
    %373 = arith.subf %372, %364 : vector<2x16xf32>
    %374 = arith.mulf %373, %371 : vector<2x16xf32>
    %375 = arith.mulf %364, %308 : vector<2x16xf32>
    %376 = arith.addf %374, %375 : vector<2x16xf32>
    %377 = vector.extract_strided_slice %6 {offsets = [6, 0], sizes = [2, 1], strides = [1, 1]} : vector<16x1xf32> to vector<2x1xf32>
    %cst_65 = arith.constant 5.000000e-01 : f32
    %378 = vector.broadcast %cst_65 : f32 to vector<2x1xf32>
    %379 = arith.cmpf ogt, %377, %378 : vector<2x1xf32>
    %380 = vector.shape_cast %379 : vector<2x1xi1> to vector<2x1xi1>
    %381 = vector.broadcast %380 : vector<2x1xi1> to vector<2x16xi1>
    %382 = arith.select %381, %376, %308 : vector<2x16xi1>, vector<2x16xf32>
    %383 = vector.extract_strided_slice %5 {offsets = [10, 0], sizes = [2, 48], strides = [1, 1]} : vector<16x96xf32> to vector<2x48xf32>
    %384 = arith.truncf %345 : vector<2x16xf32> to vector<2x16xbf16>
    %cst_66 = arith.constant dense<0.000000e+00> : vector<2x48xf32>
    %385 = tpu.matmul %384, %7, %cst_66 {dimension_numbers = #tpu.dot_dimension_numbers<[1], [0], [0], [1], [0, 0, 1, 1], [], []>} : vector<2x16xbf16>, vector<16x48xbf16>, vector<2x48xf32> -> vector<2x48xf32>
    %386 = vector.extract_strided_slice %383 {offsets = [0, 0], sizes = [2, 16], strides = [1, 1]} : vector<2x48xf32> to vector<2x16xf32>
    %387 = vector.extract_strided_slice %385 {offsets = [0, 0], sizes = [2, 16], strides = [1, 1]} : vector<2x48xf32> to vector<2x16xf32>
    %388 = arith.addf %386, %387 : vector<2x16xf32>
    %389 = arith.negf %388 : vector<2x16xf32>
    %390 = math.exp %389 : vector<2x16xf32>
    %cst_67 = arith.constant 1.000000e+00 : f32
    %391 = vector.broadcast %cst_67 : f32 to vector<2x16xf32>
    %392 = arith.addf %391, %390 : vector<2x16xf32>
    %393 = arith.divf %391, %392 : vector<2x16xf32>
    %394 = vector.extract_strided_slice %383 {offsets = [0, 16], sizes = [2, 16], strides = [1, 1]} : vector<2x48xf32> to vector<2x16xf32>
    %395 = vector.extract_strided_slice %385 {offsets = [0, 16], sizes = [2, 16], strides = [1, 1]} : vector<2x48xf32> to vector<2x16xf32>
    %396 = arith.addf %394, %395 : vector<2x16xf32>
    %397 = arith.negf %396 : vector<2x16xf32>
    %398 = math.exp %397 : vector<2x16xf32>
    %cst_68 = arith.constant 1.000000e+00 : f32
    %399 = vector.broadcast %cst_68 : f32 to vector<2x16xf32>
    %400 = arith.addf %399, %398 : vector<2x16xf32>
    %401 = arith.divf %399, %400 : vector<2x16xf32>
    %402 = vector.extract_strided_slice %383 {offsets = [0, 32], sizes = [2, 16], strides = [1, 1]} : vector<2x48xf32> to vector<2x16xf32>
    %403 = vector.extract_strided_slice %385 {offsets = [0, 32], sizes = [2, 16], strides = [1, 1]} : vector<2x48xf32> to vector<2x16xf32>
    %404 = vector.broadcast %9 : vector<1x16xf32> to vector<2x16xf32>
    %405 = arith.addf %403, %404 : vector<2x16xf32>
    %406 = arith.mulf %393, %405 : vector<2x16xf32>
    %407 = arith.addf %402, %406 : vector<2x16xf32>
    %408 = math.tanh %407 : vector<2x16xf32>
    %cst_69 = arith.constant 1.000000e+00 : f32
    %409 = vector.broadcast %cst_69 : f32 to vector<2x16xf32>
    %410 = arith.subf %409, %401 : vector<2x16xf32>
    %411 = arith.mulf %410, %408 : vector<2x16xf32>
    %412 = arith.mulf %401, %345 : vector<2x16xf32>
    %413 = arith.addf %411, %412 : vector<2x16xf32>
    %414 = vector.extract_strided_slice %6 {offsets = [10, 0], sizes = [2, 1], strides = [1, 1]} : vector<16x1xf32> to vector<2x1xf32>
    %cst_70 = arith.constant 5.000000e-01 : f32
    %415 = vector.broadcast %cst_70 : f32 to vector<2x1xf32>
    %416 = arith.cmpf ogt, %414, %415 : vector<2x1xf32>
    %417 = vector.shape_cast %416 : vector<2x1xi1> to vector<2x1xi1>
    %418 = vector.broadcast %417 : vector<2x1xi1> to vector<2x16xi1>
    %419 = arith.select %418, %413, %345 : vector<2x16xi1>, vector<2x16xf32>
    %420 = vector.extract_strided_slice %5 {offsets = [4, 48], sizes = [2, 48], strides = [1, 1]} : vector<16x96xf32> to vector<2x48xf32>
    %421 = arith.truncf %382 : vector<2x16xf32> to vector<2x16xbf16>
    %cst_71 = arith.constant dense<0.000000e+00> : vector<2x48xf32>
    %422 = tpu.matmul %421, %8, %cst_71 {dimension_numbers = #tpu.dot_dimension_numbers<[1], [0], [0], [1], [0, 0, 1, 1], [], []>} : vector<2x16xbf16>, vector<16x48xbf16>, vector<2x48xf32> -> vector<2x48xf32>
    %423 = vector.extract_strided_slice %420 {offsets = [0, 0], sizes = [2, 16], strides = [1, 1]} : vector<2x48xf32> to vector<2x16xf32>
    %424 = vector.extract_strided_slice %422 {offsets = [0, 0], sizes = [2, 16], strides = [1, 1]} : vector<2x48xf32> to vector<2x16xf32>
    %425 = arith.addf %423, %424 : vector<2x16xf32>
    %426 = arith.negf %425 : vector<2x16xf32>
    %427 = math.exp %426 : vector<2x16xf32>
    %cst_72 = arith.constant 1.000000e+00 : f32
    %428 = vector.broadcast %cst_72 : f32 to vector<2x16xf32>
    %429 = arith.addf %428, %427 : vector<2x16xf32>
    %430 = arith.divf %428, %429 : vector<2x16xf32>
    %431 = vector.extract_strided_slice %420 {offsets = [0, 16], sizes = [2, 16], strides = [1, 1]} : vector<2x48xf32> to vector<2x16xf32>
    %432 = vector.extract_strided_slice %422 {offsets = [0, 16], sizes = [2, 16], strides = [1, 1]} : vector<2x48xf32> to vector<2x16xf32>
    %433 = arith.addf %431, %432 : vector<2x16xf32>
    %434 = arith.negf %433 : vector<2x16xf32>
    %435 = math.exp %434 : vector<2x16xf32>
    %cst_73 = arith.constant 1.000000e+00 : f32
    %436 = vector.broadcast %cst_73 : f32 to vector<2x16xf32>
    %437 = arith.addf %436, %435 : vector<2x16xf32>
    %438 = arith.divf %436, %437 : vector<2x16xf32>
    %439 = vector.extract_strided_slice %420 {offsets = [0, 32], sizes = [2, 16], strides = [1, 1]} : vector<2x48xf32> to vector<2x16xf32>
    %440 = vector.extract_strided_slice %422 {offsets = [0, 32], sizes = [2, 16], strides = [1, 1]} : vector<2x48xf32> to vector<2x16xf32>
    %441 = vector.broadcast %10 : vector<1x16xf32> to vector<2x16xf32>
    %442 = arith.addf %440, %441 : vector<2x16xf32>
    %443 = arith.mulf %430, %442 : vector<2x16xf32>
    %444 = arith.addf %439, %443 : vector<2x16xf32>
    %445 = math.tanh %444 : vector<2x16xf32>
    %cst_74 = arith.constant 1.000000e+00 : f32
    %446 = vector.broadcast %cst_74 : f32 to vector<2x16xf32>
    %447 = arith.subf %446, %438 : vector<2x16xf32>
    %448 = arith.mulf %447, %445 : vector<2x16xf32>
    %449 = arith.mulf %438, %382 : vector<2x16xf32>
    %450 = arith.addf %448, %449 : vector<2x16xf32>
    %451 = vector.extract_strided_slice %6 {offsets = [4, 0], sizes = [2, 1], strides = [1, 1]} : vector<16x1xf32> to vector<2x1xf32>
    %cst_75 = arith.constant 5.000000e-01 : f32
    %452 = vector.broadcast %cst_75 : f32 to vector<2x1xf32>
    %453 = arith.cmpf ogt, %451, %452 : vector<2x1xf32>
    %454 = vector.shape_cast %453 : vector<2x1xi1> to vector<2x1xi1>
    %455 = vector.broadcast %454 : vector<2x1xi1> to vector<2x16xi1>
    %456 = arith.select %455, %450, %382 : vector<2x16xi1>, vector<2x16xf32>
    %457 = vector.extract_strided_slice %5 {offsets = [12, 0], sizes = [2, 48], strides = [1, 1]} : vector<16x96xf32> to vector<2x48xf32>
    %458 = arith.truncf %419 : vector<2x16xf32> to vector<2x16xbf16>
    %cst_76 = arith.constant dense<0.000000e+00> : vector<2x48xf32>
    %459 = tpu.matmul %458, %7, %cst_76 {dimension_numbers = #tpu.dot_dimension_numbers<[1], [0], [0], [1], [0, 0, 1, 1], [], []>} : vector<2x16xbf16>, vector<16x48xbf16>, vector<2x48xf32> -> vector<2x48xf32>
    %460 = vector.extract_strided_slice %457 {offsets = [0, 0], sizes = [2, 16], strides = [1, 1]} : vector<2x48xf32> to vector<2x16xf32>
    %461 = vector.extract_strided_slice %459 {offsets = [0, 0], sizes = [2, 16], strides = [1, 1]} : vector<2x48xf32> to vector<2x16xf32>
    %462 = arith.addf %460, %461 : vector<2x16xf32>
    %463 = arith.negf %462 : vector<2x16xf32>
    %464 = math.exp %463 : vector<2x16xf32>
    %cst_77 = arith.constant 1.000000e+00 : f32
    %465 = vector.broadcast %cst_77 : f32 to vector<2x16xf32>
    %466 = arith.addf %465, %464 : vector<2x16xf32>
    %467 = arith.divf %465, %466 : vector<2x16xf32>
    %468 = vector.extract_strided_slice %457 {offsets = [0, 16], sizes = [2, 16], strides = [1, 1]} : vector<2x48xf32> to vector<2x16xf32>
    %469 = vector.extract_strided_slice %459 {offsets = [0, 16], sizes = [2, 16], strides = [1, 1]} : vector<2x48xf32> to vector<2x16xf32>
    %470 = arith.addf %468, %469 : vector<2x16xf32>
    %471 = arith.negf %470 : vector<2x16xf32>
    %472 = math.exp %471 : vector<2x16xf32>
    %cst_78 = arith.constant 1.000000e+00 : f32
    %473 = vector.broadcast %cst_78 : f32 to vector<2x16xf32>
    %474 = arith.addf %473, %472 : vector<2x16xf32>
    %475 = arith.divf %473, %474 : vector<2x16xf32>
    %476 = vector.extract_strided_slice %457 {offsets = [0, 32], sizes = [2, 16], strides = [1, 1]} : vector<2x48xf32> to vector<2x16xf32>
    %477 = vector.extract_strided_slice %459 {offsets = [0, 32], sizes = [2, 16], strides = [1, 1]} : vector<2x48xf32> to vector<2x16xf32>
    %478 = vector.broadcast %9 : vector<1x16xf32> to vector<2x16xf32>
    %479 = arith.addf %477, %478 : vector<2x16xf32>
    %480 = arith.mulf %467, %479 : vector<2x16xf32>
    %481 = arith.addf %476, %480 : vector<2x16xf32>
    %482 = math.tanh %481 : vector<2x16xf32>
    %cst_79 = arith.constant 1.000000e+00 : f32
    %483 = vector.broadcast %cst_79 : f32 to vector<2x16xf32>
    %484 = arith.subf %483, %475 : vector<2x16xf32>
    %485 = arith.mulf %484, %482 : vector<2x16xf32>
    %486 = arith.mulf %475, %419 : vector<2x16xf32>
    %487 = arith.addf %485, %486 : vector<2x16xf32>
    %488 = vector.extract_strided_slice %6 {offsets = [12, 0], sizes = [2, 1], strides = [1, 1]} : vector<16x1xf32> to vector<2x1xf32>
    %cst_80 = arith.constant 5.000000e-01 : f32
    %489 = vector.broadcast %cst_80 : f32 to vector<2x1xf32>
    %490 = arith.cmpf ogt, %488, %489 : vector<2x1xf32>
    %491 = vector.shape_cast %490 : vector<2x1xi1> to vector<2x1xi1>
    %492 = vector.broadcast %491 : vector<2x1xi1> to vector<2x16xi1>
    %493 = arith.select %492, %487, %419 : vector<2x16xi1>, vector<2x16xf32>
    %494 = vector.extract_strided_slice %5 {offsets = [2, 48], sizes = [2, 48], strides = [1, 1]} : vector<16x96xf32> to vector<2x48xf32>
    %495 = arith.truncf %456 : vector<2x16xf32> to vector<2x16xbf16>
    %cst_81 = arith.constant dense<0.000000e+00> : vector<2x48xf32>
    %496 = tpu.matmul %495, %8, %cst_81 {dimension_numbers = #tpu.dot_dimension_numbers<[1], [0], [0], [1], [0, 0, 1, 1], [], []>} : vector<2x16xbf16>, vector<16x48xbf16>, vector<2x48xf32> -> vector<2x48xf32>
    %497 = vector.extract_strided_slice %494 {offsets = [0, 0], sizes = [2, 16], strides = [1, 1]} : vector<2x48xf32> to vector<2x16xf32>
    %498 = vector.extract_strided_slice %496 {offsets = [0, 0], sizes = [2, 16], strides = [1, 1]} : vector<2x48xf32> to vector<2x16xf32>
    %499 = arith.addf %497, %498 : vector<2x16xf32>
    %500 = arith.negf %499 : vector<2x16xf32>
    %501 = math.exp %500 : vector<2x16xf32>
    %cst_82 = arith.constant 1.000000e+00 : f32
    %502 = vector.broadcast %cst_82 : f32 to vector<2x16xf32>
    %503 = arith.addf %502, %501 : vector<2x16xf32>
    %504 = arith.divf %502, %503 : vector<2x16xf32>
    %505 = vector.extract_strided_slice %494 {offsets = [0, 16], sizes = [2, 16], strides = [1, 1]} : vector<2x48xf32> to vector<2x16xf32>
    %506 = vector.extract_strided_slice %496 {offsets = [0, 16], sizes = [2, 16], strides = [1, 1]} : vector<2x48xf32> to vector<2x16xf32>
    %507 = arith.addf %505, %506 : vector<2x16xf32>
    %508 = arith.negf %507 : vector<2x16xf32>
    %509 = math.exp %508 : vector<2x16xf32>
    %cst_83 = arith.constant 1.000000e+00 : f32
    %510 = vector.broadcast %cst_83 : f32 to vector<2x16xf32>
    %511 = arith.addf %510, %509 : vector<2x16xf32>
    %512 = arith.divf %510, %511 : vector<2x16xf32>
    %513 = vector.extract_strided_slice %494 {offsets = [0, 32], sizes = [2, 16], strides = [1, 1]} : vector<2x48xf32> to vector<2x16xf32>
    %514 = vector.extract_strided_slice %496 {offsets = [0, 32], sizes = [2, 16], strides = [1, 1]} : vector<2x48xf32> to vector<2x16xf32>
    %515 = vector.broadcast %10 : vector<1x16xf32> to vector<2x16xf32>
    %516 = arith.addf %514, %515 : vector<2x16xf32>
    %517 = arith.mulf %504, %516 : vector<2x16xf32>
    %518 = arith.addf %513, %517 : vector<2x16xf32>
    %519 = math.tanh %518 : vector<2x16xf32>
    %cst_84 = arith.constant 1.000000e+00 : f32
    %520 = vector.broadcast %cst_84 : f32 to vector<2x16xf32>
    %521 = arith.subf %520, %512 : vector<2x16xf32>
    %522 = arith.mulf %521, %519 : vector<2x16xf32>
    %523 = arith.mulf %512, %456 : vector<2x16xf32>
    %524 = arith.addf %522, %523 : vector<2x16xf32>
    %525 = vector.extract_strided_slice %6 {offsets = [2, 0], sizes = [2, 1], strides = [1, 1]} : vector<16x1xf32> to vector<2x1xf32>
    %cst_85 = arith.constant 5.000000e-01 : f32
    %526 = vector.broadcast %cst_85 : f32 to vector<2x1xf32>
    %527 = arith.cmpf ogt, %525, %526 : vector<2x1xf32>
    %528 = vector.shape_cast %527 : vector<2x1xi1> to vector<2x1xi1>
    %529 = vector.broadcast %528 : vector<2x1xi1> to vector<2x16xi1>
    %530 = arith.select %529, %524, %456 : vector<2x16xi1>, vector<2x16xf32>
    %531 = vector.extract_strided_slice %5 {offsets = [14, 0], sizes = [2, 48], strides = [1, 1]} : vector<16x96xf32> to vector<2x48xf32>
    %532 = arith.truncf %493 : vector<2x16xf32> to vector<2x16xbf16>
    %cst_86 = arith.constant dense<0.000000e+00> : vector<2x48xf32>
    %533 = tpu.matmul %532, %7, %cst_86 {dimension_numbers = #tpu.dot_dimension_numbers<[1], [0], [0], [1], [0, 0, 1, 1], [], []>} : vector<2x16xbf16>, vector<16x48xbf16>, vector<2x48xf32> -> vector<2x48xf32>
    %534 = vector.extract_strided_slice %531 {offsets = [0, 0], sizes = [2, 16], strides = [1, 1]} : vector<2x48xf32> to vector<2x16xf32>
    %535 = vector.extract_strided_slice %533 {offsets = [0, 0], sizes = [2, 16], strides = [1, 1]} : vector<2x48xf32> to vector<2x16xf32>
    %536 = arith.addf %534, %535 : vector<2x16xf32>
    %537 = arith.negf %536 : vector<2x16xf32>
    %538 = math.exp %537 : vector<2x16xf32>
    %cst_87 = arith.constant 1.000000e+00 : f32
    %539 = vector.broadcast %cst_87 : f32 to vector<2x16xf32>
    %540 = arith.addf %539, %538 : vector<2x16xf32>
    %541 = arith.divf %539, %540 : vector<2x16xf32>
    %542 = vector.extract_strided_slice %531 {offsets = [0, 16], sizes = [2, 16], strides = [1, 1]} : vector<2x48xf32> to vector<2x16xf32>
    %543 = vector.extract_strided_slice %533 {offsets = [0, 16], sizes = [2, 16], strides = [1, 1]} : vector<2x48xf32> to vector<2x16xf32>
    %544 = arith.addf %542, %543 : vector<2x16xf32>
    %545 = arith.negf %544 : vector<2x16xf32>
    %546 = math.exp %545 : vector<2x16xf32>
    %cst_88 = arith.constant 1.000000e+00 : f32
    %547 = vector.broadcast %cst_88 : f32 to vector<2x16xf32>
    %548 = arith.addf %547, %546 : vector<2x16xf32>
    %549 = arith.divf %547, %548 : vector<2x16xf32>
    %550 = vector.extract_strided_slice %531 {offsets = [0, 32], sizes = [2, 16], strides = [1, 1]} : vector<2x48xf32> to vector<2x16xf32>
    %551 = vector.extract_strided_slice %533 {offsets = [0, 32], sizes = [2, 16], strides = [1, 1]} : vector<2x48xf32> to vector<2x16xf32>
    %552 = vector.broadcast %9 : vector<1x16xf32> to vector<2x16xf32>
    %553 = arith.addf %551, %552 : vector<2x16xf32>
    %554 = arith.mulf %541, %553 : vector<2x16xf32>
    %555 = arith.addf %550, %554 : vector<2x16xf32>
    %556 = math.tanh %555 : vector<2x16xf32>
    %cst_89 = arith.constant 1.000000e+00 : f32
    %557 = vector.broadcast %cst_89 : f32 to vector<2x16xf32>
    %558 = arith.subf %557, %549 : vector<2x16xf32>
    %559 = arith.mulf %558, %556 : vector<2x16xf32>
    %560 = arith.mulf %549, %493 : vector<2x16xf32>
    %561 = arith.addf %559, %560 : vector<2x16xf32>
    %562 = vector.extract_strided_slice %6 {offsets = [14, 0], sizes = [2, 1], strides = [1, 1]} : vector<16x1xf32> to vector<2x1xf32>
    %cst_90 = arith.constant 5.000000e-01 : f32
    %563 = vector.broadcast %cst_90 : f32 to vector<2x1xf32>
    %564 = arith.cmpf ogt, %562, %563 : vector<2x1xf32>
    %565 = vector.shape_cast %564 : vector<2x1xi1> to vector<2x1xi1>
    %566 = vector.broadcast %565 : vector<2x1xi1> to vector<2x16xi1>
    %567 = arith.select %566, %561, %493 : vector<2x16xi1>, vector<2x16xf32>
    %568 = vector.extract_strided_slice %5 {offsets = [0, 48], sizes = [2, 48], strides = [1, 1]} : vector<16x96xf32> to vector<2x48xf32>
    %569 = arith.truncf %530 : vector<2x16xf32> to vector<2x16xbf16>
    %cst_91 = arith.constant dense<0.000000e+00> : vector<2x48xf32>
    %570 = tpu.matmul %569, %8, %cst_91 {dimension_numbers = #tpu.dot_dimension_numbers<[1], [0], [0], [1], [0, 0, 1, 1], [], []>} : vector<2x16xbf16>, vector<16x48xbf16>, vector<2x48xf32> -> vector<2x48xf32>
    %571 = vector.extract_strided_slice %568 {offsets = [0, 0], sizes = [2, 16], strides = [1, 1]} : vector<2x48xf32> to vector<2x16xf32>
    %572 = vector.extract_strided_slice %570 {offsets = [0, 0], sizes = [2, 16], strides = [1, 1]} : vector<2x48xf32> to vector<2x16xf32>
    %573 = arith.addf %571, %572 : vector<2x16xf32>
    %574 = arith.negf %573 : vector<2x16xf32>
    %575 = math.exp %574 : vector<2x16xf32>
    %cst_92 = arith.constant 1.000000e+00 : f32
    %576 = vector.broadcast %cst_92 : f32 to vector<2x16xf32>
    %577 = arith.addf %576, %575 : vector<2x16xf32>
    %578 = arith.divf %576, %577 : vector<2x16xf32>
    %579 = vector.extract_strided_slice %568 {offsets = [0, 16], sizes = [2, 16], strides = [1, 1]} : vector<2x48xf32> to vector<2x16xf32>
    %580 = vector.extract_strided_slice %570 {offsets = [0, 16], sizes = [2, 16], strides = [1, 1]} : vector<2x48xf32> to vector<2x16xf32>
    %581 = arith.addf %579, %580 : vector<2x16xf32>
    %582 = arith.negf %581 : vector<2x16xf32>
    %583 = math.exp %582 : vector<2x16xf32>
    %cst_93 = arith.constant 1.000000e+00 : f32
    %584 = vector.broadcast %cst_93 : f32 to vector<2x16xf32>
    %585 = arith.addf %584, %583 : vector<2x16xf32>
    %586 = arith.divf %584, %585 : vector<2x16xf32>
    %587 = vector.extract_strided_slice %568 {offsets = [0, 32], sizes = [2, 16], strides = [1, 1]} : vector<2x48xf32> to vector<2x16xf32>
    %588 = vector.extract_strided_slice %570 {offsets = [0, 32], sizes = [2, 16], strides = [1, 1]} : vector<2x48xf32> to vector<2x16xf32>
    %589 = vector.broadcast %10 : vector<1x16xf32> to vector<2x16xf32>
    %590 = arith.addf %588, %589 : vector<2x16xf32>
    %591 = arith.mulf %578, %590 : vector<2x16xf32>
    %592 = arith.addf %587, %591 : vector<2x16xf32>
    %593 = math.tanh %592 : vector<2x16xf32>
    %cst_94 = arith.constant 1.000000e+00 : f32
    %594 = vector.broadcast %cst_94 : f32 to vector<2x16xf32>
    %595 = arith.subf %594, %586 : vector<2x16xf32>
    %596 = arith.mulf %595, %593 : vector<2x16xf32>
    %597 = arith.mulf %586, %530 : vector<2x16xf32>
    %598 = arith.addf %596, %597 : vector<2x16xf32>
    %599 = vector.extract_strided_slice %6 {offsets = [0, 0], sizes = [2, 1], strides = [1, 1]} : vector<16x1xf32> to vector<2x1xf32>
    %cst_95 = arith.constant 5.000000e-01 : f32
    %600 = vector.broadcast %cst_95 : f32 to vector<2x1xf32>
    %601 = arith.cmpf ogt, %599, %600 : vector<2x1xf32>
    %602 = vector.shape_cast %601 : vector<2x1xi1> to vector<2x1xi1>
    %603 = vector.broadcast %602 : vector<2x1xi1> to vector<2x16xi1>
    %604 = arith.select %603, %598, %530 : vector<2x16xi1>, vector<2x16xf32>
    %605 = tpu.concatenate %567, %604 in 1 : vector<2x16xf32>, vector<2x16xf32> -> vector<2x32xf32>
    %606 = arith.truncf %605 : vector<2x32xf32> to vector<2x32xbf16>
    %c0_96 = arith.constant 0 : index
    %c0_97 = arith.constant 0 : index
    %607 = vector.load %arg7[%c0_96, %c0_97] : memref<2x32xbf16, #tpu.memory_space<vmem>>, vector<2x32xbf16>
    tpu.vector_store %arg7[%c0_96, %c0_97], %606 {strides = array<i32>} : memref<2x32xbf16, #tpu.memory_space<vmem>>, vector<2x32xbf16>,
    return
  }
}

module attributes {stable_mosaic.version = 11 : i64} {
  func.func @bigru_hidden_kernel(%arg0: memref<36x16xbf16, #tpu.memory_space<vmem>>, %arg1: memref<36x1xf32, #tpu.memory_space<vmem>>, %arg2: memref<16x96xbf16, #tpu.memory_space<vmem>>, %arg3: memref<1x96xf32, #tpu.memory_space<vmem>>, %arg4: memref<16x48xbf16, #tpu.memory_space<vmem>>, %arg5: memref<16x48xbf16, #tpu.memory_space<vmem>>, %arg6: memref<1x32xf32, #tpu.memory_space<vmem>>, %arg7: memref<6x32xbf16, #tpu.memory_space<vmem>>) attributes {dimension_semantics = [], scalar_prefetch = 0 : i64, scratch_operands = 0 : i64, tpu.core_type = #tpu.core_type<tc>} {
    %c0 = arith.constant 0 : index
    %c0_0 = arith.constant 0 : index
    %0 = vector.load %arg0[%c0, %c0_0] : memref<36x16xbf16, #tpu.memory_space<vmem>>, vector<36x16xbf16>
    %c0_1 = arith.constant 0 : index
    %c0_2 = arith.constant 0 : index
    %1 = vector.load %arg2[%c0_1, %c0_2] : memref<16x96xbf16, #tpu.memory_space<vmem>>, vector<16x96xbf16>
    %cst = arith.constant dense<0.000000e+00> : vector<36x96xf32>
    %2 = tpu.matmul %0, %1, %cst {dimension_numbers = #tpu.dot_dimension_numbers<[1], [0], [0], [1], [0, 0, 1, 1], [], []>} : vector<36x16xbf16>, vector<16x96xbf16>, vector<36x96xf32> -> vector<36x96xf32>
    %c0_3 = arith.constant 0 : index
    %c0_4 = arith.constant 0 : index
    %3 = vector.load %arg3[%c0_3, %c0_4] : memref<1x96xf32, #tpu.memory_space<vmem>>, vector<1x96xf32>
    %4 = vector.broadcast %3 : vector<1x96xf32> to vector<36x96xf32>
    %5 = arith.addf %2, %4 : vector<36x96xf32>
    %c0_5 = arith.constant 0 : index
    %c0_6 = arith.constant 0 : index
    %6 = vector.load %arg1[%c0_5, %c0_6] : memref<36x1xf32, #tpu.memory_space<vmem>>, vector<36x1xf32>
    %c0_7 = arith.constant 0 : index
    %c0_8 = arith.constant 0 : index
    %7 = vector.load %arg4[%c0_7, %c0_8] : memref<16x48xbf16, #tpu.memory_space<vmem>>, vector<16x48xbf16>
    %c0_9 = arith.constant 0 : index
    %c0_10 = arith.constant 0 : index
    %8 = vector.load %arg5[%c0_9, %c0_10] : memref<16x48xbf16, #tpu.memory_space<vmem>>, vector<16x48xbf16>
    %c0_11 = arith.constant 0 : index
    %c0_12 = arith.constant 0 : index
    %9 = vector.load %arg6[%c0_11, %c0_12] : memref<1x32xf32, #tpu.memory_space<vmem>>, vector<1x16xf32>
    %c0_13 = arith.constant 0 : index
    %c16 = arith.constant 16 : index
    %10 = vector.load %arg6[%c0_13, %c16] : memref<1x32xf32, #tpu.memory_space<vmem>>, vector<1x16xf32>
    %cst_14 = arith.constant 0.000000e+00 : f32
    %11 = vector.broadcast %cst_14 : f32 to vector<6x16xf32>
    %cst_15 = arith.constant 0.000000e+00 : f32
    %12 = vector.broadcast %cst_15 : f32 to vector<6x16xf32>
    %13 = vector.extract_strided_slice %5 {offsets = [0, 0], sizes = [6, 48], strides = [1, 1]} : vector<36x96xf32> to vector<6x48xf32>
    %14 = arith.truncf %11 : vector<6x16xf32> to vector<6x16xbf16>
    %cst_16 = arith.constant dense<0.000000e+00> : vector<6x48xf32>
    %15 = tpu.matmul %14, %7, %cst_16 {dimension_numbers = #tpu.dot_dimension_numbers<[1], [0], [0], [1], [0, 0, 1, 1], [], []>} : vector<6x16xbf16>, vector<16x48xbf16>, vector<6x48xf32> -> vector<6x48xf32>
    %16 = vector.extract_strided_slice %13 {offsets = [0, 0], sizes = [6, 16], strides = [1, 1]} : vector<6x48xf32> to vector<6x16xf32>
    %17 = vector.extract_strided_slice %15 {offsets = [0, 0], sizes = [6, 16], strides = [1, 1]} : vector<6x48xf32> to vector<6x16xf32>
    %18 = arith.addf %16, %17 : vector<6x16xf32>
    %19 = arith.negf %18 : vector<6x16xf32>
    %20 = math.exp %19 : vector<6x16xf32>
    %cst_17 = arith.constant 1.000000e+00 : f32
    %21 = vector.broadcast %cst_17 : f32 to vector<6x16xf32>
    %22 = arith.addf %21, %20 : vector<6x16xf32>
    %23 = arith.divf %21, %22 : vector<6x16xf32>
    %24 = vector.extract_strided_slice %13 {offsets = [0, 16], sizes = [6, 16], strides = [1, 1]} : vector<6x48xf32> to vector<6x16xf32>
    %25 = vector.extract_strided_slice %15 {offsets = [0, 16], sizes = [6, 16], strides = [1, 1]} : vector<6x48xf32> to vector<6x16xf32>
    %26 = arith.addf %24, %25 : vector<6x16xf32>
    %27 = arith.negf %26 : vector<6x16xf32>
    %28 = math.exp %27 : vector<6x16xf32>
    %cst_18 = arith.constant 1.000000e+00 : f32
    %29 = vector.broadcast %cst_18 : f32 to vector<6x16xf32>
    %30 = arith.addf %29, %28 : vector<6x16xf32>
    %31 = arith.divf %29, %30 : vector<6x16xf32>
    %32 = vector.extract_strided_slice %13 {offsets = [0, 32], sizes = [6, 16], strides = [1, 1]} : vector<6x48xf32> to vector<6x16xf32>
    %33 = vector.extract_strided_slice %15 {offsets = [0, 32], sizes = [6, 16], strides = [1, 1]} : vector<6x48xf32> to vector<6x16xf32>
    %34 = vector.broadcast %9 : vector<1x16xf32> to vector<6x16xf32>
    %35 = arith.addf %33, %34 : vector<6x16xf32>
    %36 = arith.mulf %23, %35 : vector<6x16xf32>
    %37 = arith.addf %32, %36 : vector<6x16xf32>
    %38 = math.tanh %37 : vector<6x16xf32>
    %cst_19 = arith.constant 1.000000e+00 : f32
    %39 = vector.broadcast %cst_19 : f32 to vector<6x16xf32>
    %40 = arith.subf %39, %31 : vector<6x16xf32>
    %41 = arith.mulf %40, %38 : vector<6x16xf32>
    %42 = arith.mulf %31, %11 : vector<6x16xf32>
    %43 = arith.addf %41, %42 : vector<6x16xf32>
    %44 = vector.extract_strided_slice %6 {offsets = [0, 0], sizes = [6, 1], strides = [1, 1]} : vector<36x1xf32> to vector<6x1xf32>
    %cst_20 = arith.constant 5.000000e-01 : f32
    %45 = vector.broadcast %cst_20 : f32 to vector<6x1xf32>
    %46 = arith.cmpf ogt, %44, %45 : vector<6x1xf32>
    %47 = vector.shape_cast %46 : vector<6x1xi1> to vector<6x1xi1>
    %48 = vector.broadcast %47 : vector<6x1xi1> to vector<6x16xi1>
    %49 = arith.select %48, %43, %11 : vector<6x16xi1>, vector<6x16xf32>
    %50 = vector.extract_strided_slice %5 {offsets = [30, 48], sizes = [6, 48], strides = [1, 1]} : vector<36x96xf32> to vector<6x48xf32>
    %51 = arith.truncf %12 : vector<6x16xf32> to vector<6x16xbf16>
    %cst_21 = arith.constant dense<0.000000e+00> : vector<6x48xf32>
    %52 = tpu.matmul %51, %8, %cst_21 {dimension_numbers = #tpu.dot_dimension_numbers<[1], [0], [0], [1], [0, 0, 1, 1], [], []>} : vector<6x16xbf16>, vector<16x48xbf16>, vector<6x48xf32> -> vector<6x48xf32>
    %53 = vector.extract_strided_slice %50 {offsets = [0, 0], sizes = [6, 16], strides = [1, 1]} : vector<6x48xf32> to vector<6x16xf32>
    %54 = vector.extract_strided_slice %52 {offsets = [0, 0], sizes = [6, 16], strides = [1, 1]} : vector<6x48xf32> to vector<6x16xf32>
    %55 = arith.addf %53, %54 : vector<6x16xf32>
    %56 = arith.negf %55 : vector<6x16xf32>
    %57 = math.exp %56 : vector<6x16xf32>
    %cst_22 = arith.constant 1.000000e+00 : f32
    %58 = vector.broadcast %cst_22 : f32 to vector<6x16xf32>
    %59 = arith.addf %58, %57 : vector<6x16xf32>
    %60 = arith.divf %58, %59 : vector<6x16xf32>
    %61 = vector.extract_strided_slice %50 {offsets = [0, 16], sizes = [6, 16], strides = [1, 1]} : vector<6x48xf32> to vector<6x16xf32>
    %62 = vector.extract_strided_slice %52 {offsets = [0, 16], sizes = [6, 16], strides = [1, 1]} : vector<6x48xf32> to vector<6x16xf32>
    %63 = arith.addf %61, %62 : vector<6x16xf32>
    %64 = arith.negf %63 : vector<6x16xf32>
    %65 = math.exp %64 : vector<6x16xf32>
    %cst_23 = arith.constant 1.000000e+00 : f32
    %66 = vector.broadcast %cst_23 : f32 to vector<6x16xf32>
    %67 = arith.addf %66, %65 : vector<6x16xf32>
    %68 = arith.divf %66, %67 : vector<6x16xf32>
    %69 = vector.extract_strided_slice %50 {offsets = [0, 32], sizes = [6, 16], strides = [1, 1]} : vector<6x48xf32> to vector<6x16xf32>
    %70 = vector.extract_strided_slice %52 {offsets = [0, 32], sizes = [6, 16], strides = [1, 1]} : vector<6x48xf32> to vector<6x16xf32>
    %71 = vector.broadcast %10 : vector<1x16xf32> to vector<6x16xf32>
    %72 = arith.addf %70, %71 : vector<6x16xf32>
    %73 = arith.mulf %60, %72 : vector<6x16xf32>
    %74 = arith.addf %69, %73 : vector<6x16xf32>
    %75 = math.tanh %74 : vector<6x16xf32>
    %cst_24 = arith.constant 1.000000e+00 : f32
    %76 = vector.broadcast %cst_24 : f32 to vector<6x16xf32>
    %77 = arith.subf %76, %68 : vector<6x16xf32>
    %78 = arith.mulf %77, %75 : vector<6x16xf32>
    %79 = arith.mulf %68, %12 : vector<6x16xf32>
    %80 = arith.addf %78, %79 : vector<6x16xf32>
    %81 = vector.extract_strided_slice %6 {offsets = [30, 0], sizes = [6, 1], strides = [1, 1]} : vector<36x1xf32> to vector<6x1xf32>
    %cst_25 = arith.constant 5.000000e-01 : f32
    %82 = vector.broadcast %cst_25 : f32 to vector<6x1xf32>
    %83 = arith.cmpf ogt, %81, %82 : vector<6x1xf32>
    %84 = vector.shape_cast %83 : vector<6x1xi1> to vector<6x1xi1>
    %85 = vector.broadcast %84 : vector<6x1xi1> to vector<6x16xi1>
    %86 = arith.select %85, %80, %12 : vector<6x16xi1>, vector<6x16xf32>
    %87 = vector.extract_strided_slice %5 {offsets = [6, 0], sizes = [6, 48], strides = [1, 1]} : vector<36x96xf32> to vector<6x48xf32>
    %88 = arith.truncf %49 : vector<6x16xf32> to vector<6x16xbf16>
    %cst_26 = arith.constant dense<0.000000e+00> : vector<6x48xf32>
    %89 = tpu.matmul %88, %7, %cst_26 {dimension_numbers = #tpu.dot_dimension_numbers<[1], [0], [0], [1], [0, 0, 1, 1], [], []>} : vector<6x16xbf16>, vector<16x48xbf16>, vector<6x48xf32> -> vector<6x48xf32>
    %90 = vector.extract_strided_slice %87 {offsets = [0, 0], sizes = [6, 16], strides = [1, 1]} : vector<6x48xf32> to vector<6x16xf32>
    %91 = vector.extract_strided_slice %89 {offsets = [0, 0], sizes = [6, 16], strides = [1, 1]} : vector<6x48xf32> to vector<6x16xf32>
    %92 = arith.addf %90, %91 : vector<6x16xf32>
    %93 = arith.negf %92 : vector<6x16xf32>
    %94 = math.exp %93 : vector<6x16xf32>
    %cst_27 = arith.constant 1.000000e+00 : f32
    %95 = vector.broadcast %cst_27 : f32 to vector<6x16xf32>
    %96 = arith.addf %95, %94 : vector<6x16xf32>
    %97 = arith.divf %95, %96 : vector<6x16xf32>
    %98 = vector.extract_strided_slice %87 {offsets = [0, 16], sizes = [6, 16], strides = [1, 1]} : vector<6x48xf32> to vector<6x16xf32>
    %99 = vector.extract_strided_slice %89 {offsets = [0, 16], sizes = [6, 16], strides = [1, 1]} : vector<6x48xf32> to vector<6x16xf32>
    %100 = arith.addf %98, %99 : vector<6x16xf32>
    %101 = arith.negf %100 : vector<6x16xf32>
    %102 = math.exp %101 : vector<6x16xf32>
    %cst_28 = arith.constant 1.000000e+00 : f32
    %103 = vector.broadcast %cst_28 : f32 to vector<6x16xf32>
    %104 = arith.addf %103, %102 : vector<6x16xf32>
    %105 = arith.divf %103, %104 : vector<6x16xf32>
    %106 = vector.extract_strided_slice %87 {offsets = [0, 32], sizes = [6, 16], strides = [1, 1]} : vector<6x48xf32> to vector<6x16xf32>
    %107 = vector.extract_strided_slice %89 {offsets = [0, 32], sizes = [6, 16], strides = [1, 1]} : vector<6x48xf32> to vector<6x16xf32>
    %108 = vector.broadcast %9 : vector<1x16xf32> to vector<6x16xf32>
    %109 = arith.addf %107, %108 : vector<6x16xf32>
    %110 = arith.mulf %97, %109 : vector<6x16xf32>
    %111 = arith.addf %106, %110 : vector<6x16xf32>
    %112 = math.tanh %111 : vector<6x16xf32>
    %cst_29 = arith.constant 1.000000e+00 : f32
    %113 = vector.broadcast %cst_29 : f32 to vector<6x16xf32>
    %114 = arith.subf %113, %105 : vector<6x16xf32>
    %115 = arith.mulf %114, %112 : vector<6x16xf32>
    %116 = arith.mulf %105, %49 : vector<6x16xf32>
    %117 = arith.addf %115, %116 : vector<6x16xf32>
    %118 = vector.extract_strided_slice %6 {offsets = [6, 0], sizes = [6, 1], strides = [1, 1]} : vector<36x1xf32> to vector<6x1xf32>
    %cst_30 = arith.constant 5.000000e-01 : f32
    %119 = vector.broadcast %cst_30 : f32 to vector<6x1xf32>
    %120 = arith.cmpf ogt, %118, %119 : vector<6x1xf32>
    %121 = vector.shape_cast %120 : vector<6x1xi1> to vector<6x1xi1>
    %122 = vector.broadcast %121 : vector<6x1xi1> to vector<6x16xi1>
    %123 = arith.select %122, %117, %49 : vector<6x16xi1>, vector<6x16xf32>
    %124 = vector.extract_strided_slice %5 {offsets = [24, 48], sizes = [6, 48], strides = [1, 1]} : vector<36x96xf32> to vector<6x48xf32>
    %125 = arith.truncf %86 : vector<6x16xf32> to vector<6x16xbf16>
    %cst_31 = arith.constant dense<0.000000e+00> : vector<6x48xf32>
    %126 = tpu.matmul %125, %8, %cst_31 {dimension_numbers = #tpu.dot_dimension_numbers<[1], [0], [0], [1], [0, 0, 1, 1], [], []>} : vector<6x16xbf16>, vector<16x48xbf16>, vector<6x48xf32> -> vector<6x48xf32>
    %127 = vector.extract_strided_slice %124 {offsets = [0, 0], sizes = [6, 16], strides = [1, 1]} : vector<6x48xf32> to vector<6x16xf32>
    %128 = vector.extract_strided_slice %126 {offsets = [0, 0], sizes = [6, 16], strides = [1, 1]} : vector<6x48xf32> to vector<6x16xf32>
    %129 = arith.addf %127, %128 : vector<6x16xf32>
    %130 = arith.negf %129 : vector<6x16xf32>
    %131 = math.exp %130 : vector<6x16xf32>
    %cst_32 = arith.constant 1.000000e+00 : f32
    %132 = vector.broadcast %cst_32 : f32 to vector<6x16xf32>
    %133 = arith.addf %132, %131 : vector<6x16xf32>
    %134 = arith.divf %132, %133 : vector<6x16xf32>
    %135 = vector.extract_strided_slice %124 {offsets = [0, 16], sizes = [6, 16], strides = [1, 1]} : vector<6x48xf32> to vector<6x16xf32>
    %136 = vector.extract_strided_slice %126 {offsets = [0, 16], sizes = [6, 16], strides = [1, 1]} : vector<6x48xf32> to vector<6x16xf32>
    %137 = arith.addf %135, %136 : vector<6x16xf32>
    %138 = arith.negf %137 : vector<6x16xf32>
    %139 = math.exp %138 : vector<6x16xf32>
    %cst_33 = arith.constant 1.000000e+00 : f32
    %140 = vector.broadcast %cst_33 : f32 to vector<6x16xf32>
    %141 = arith.addf %140, %139 : vector<6x16xf32>
    %142 = arith.divf %140, %141 : vector<6x16xf32>
    %143 = vector.extract_strided_slice %124 {offsets = [0, 32], sizes = [6, 16], strides = [1, 1]} : vector<6x48xf32> to vector<6x16xf32>
    %144 = vector.extract_strided_slice %126 {offsets = [0, 32], sizes = [6, 16], strides = [1, 1]} : vector<6x48xf32> to vector<6x16xf32>
    %145 = vector.broadcast %10 : vector<1x16xf32> to vector<6x16xf32>
    %146 = arith.addf %144, %145 : vector<6x16xf32>
    %147 = arith.mulf %134, %146 : vector<6x16xf32>
    %148 = arith.addf %143, %147 : vector<6x16xf32>
    %149 = math.tanh %148 : vector<6x16xf32>
    %cst_34 = arith.constant 1.000000e+00 : f32
    %150 = vector.broadcast %cst_34 : f32 to vector<6x16xf32>
    %151 = arith.subf %150, %142 : vector<6x16xf32>
    %152 = arith.mulf %151, %149 : vector<6x16xf32>
    %153 = arith.mulf %142, %86 : vector<6x16xf32>
    %154 = arith.addf %152, %153 : vector<6x16xf32>
    %155 = vector.extract_strided_slice %6 {offsets = [24, 0], sizes = [6, 1], strides = [1, 1]} : vector<36x1xf32> to vector<6x1xf32>
    %cst_35 = arith.constant 5.000000e-01 : f32
    %156 = vector.broadcast %cst_35 : f32 to vector<6x1xf32>
    %157 = arith.cmpf ogt, %155, %156 : vector<6x1xf32>
    %158 = vector.shape_cast %157 : vector<6x1xi1> to vector<6x1xi1>
    %159 = vector.broadcast %158 : vector<6x1xi1> to vector<6x16xi1>
    %160 = arith.select %159, %154, %86 : vector<6x16xi1>, vector<6x16xf32>
    %161 = vector.extract_strided_slice %5 {offsets = [12, 0], sizes = [6, 48], strides = [1, 1]} : vector<36x96xf32> to vector<6x48xf32>
    %162 = arith.truncf %123 : vector<6x16xf32> to vector<6x16xbf16>
    %cst_36 = arith.constant dense<0.000000e+00> : vector<6x48xf32>
    %163 = tpu.matmul %162, %7, %cst_36 {dimension_numbers = #tpu.dot_dimension_numbers<[1], [0], [0], [1], [0, 0, 1, 1], [], []>} : vector<6x16xbf16>, vector<16x48xbf16>, vector<6x48xf32> -> vector<6x48xf32>
    %164 = vector.extract_strided_slice %161 {offsets = [0, 0], sizes = [6, 16], strides = [1, 1]} : vector<6x48xf32> to vector<6x16xf32>
    %165 = vector.extract_strided_slice %163 {offsets = [0, 0], sizes = [6, 16], strides = [1, 1]} : vector<6x48xf32> to vector<6x16xf32>
    %166 = arith.addf %164, %165 : vector<6x16xf32>
    %167 = arith.negf %166 : vector<6x16xf32>
    %168 = math.exp %167 : vector<6x16xf32>
    %cst_37 = arith.constant 1.000000e+00 : f32
    %169 = vector.broadcast %cst_37 : f32 to vector<6x16xf32>
    %170 = arith.addf %169, %168 : vector<6x16xf32>
    %171 = arith.divf %169, %170 : vector<6x16xf32>
    %172 = vector.extract_strided_slice %161 {offsets = [0, 16], sizes = [6, 16], strides = [1, 1]} : vector<6x48xf32> to vector<6x16xf32>
    %173 = vector.extract_strided_slice %163 {offsets = [0, 16], sizes = [6, 16], strides = [1, 1]} : vector<6x48xf32> to vector<6x16xf32>
    %174 = arith.addf %172, %173 : vector<6x16xf32>
    %175 = arith.negf %174 : vector<6x16xf32>
    %176 = math.exp %175 : vector<6x16xf32>
    %cst_38 = arith.constant 1.000000e+00 : f32
    %177 = vector.broadcast %cst_38 : f32 to vector<6x16xf32>
    %178 = arith.addf %177, %176 : vector<6x16xf32>
    %179 = arith.divf %177, %178 : vector<6x16xf32>
    %180 = vector.extract_strided_slice %161 {offsets = [0, 32], sizes = [6, 16], strides = [1, 1]} : vector<6x48xf32> to vector<6x16xf32>
    %181 = vector.extract_strided_slice %163 {offsets = [0, 32], sizes = [6, 16], strides = [1, 1]} : vector<6x48xf32> to vector<6x16xf32>
    %182 = vector.broadcast %9 : vector<1x16xf32> to vector<6x16xf32>
    %183 = arith.addf %181, %182 : vector<6x16xf32>
    %184 = arith.mulf %171, %183 : vector<6x16xf32>
    %185 = arith.addf %180, %184 : vector<6x16xf32>
    %186 = math.tanh %185 : vector<6x16xf32>
    %cst_39 = arith.constant 1.000000e+00 : f32
    %187 = vector.broadcast %cst_39 : f32 to vector<6x16xf32>
    %188 = arith.subf %187, %179 : vector<6x16xf32>
    %189 = arith.mulf %188, %186 : vector<6x16xf32>
    %190 = arith.mulf %179, %123 : vector<6x16xf32>
    %191 = arith.addf %189, %190 : vector<6x16xf32>
    %192 = vector.extract_strided_slice %6 {offsets = [12, 0], sizes = [6, 1], strides = [1, 1]} : vector<36x1xf32> to vector<6x1xf32>
    %cst_40 = arith.constant 5.000000e-01 : f32
    %193 = vector.broadcast %cst_40 : f32 to vector<6x1xf32>
    %194 = arith.cmpf ogt, %192, %193 : vector<6x1xf32>
    %195 = vector.shape_cast %194 : vector<6x1xi1> to vector<6x1xi1>
    %196 = vector.broadcast %195 : vector<6x1xi1> to vector<6x16xi1>
    %197 = arith.select %196, %191, %123 : vector<6x16xi1>, vector<6x16xf32>
    %198 = vector.extract_strided_slice %5 {offsets = [18, 48], sizes = [6, 48], strides = [1, 1]} : vector<36x96xf32> to vector<6x48xf32>
    %199 = arith.truncf %160 : vector<6x16xf32> to vector<6x16xbf16>
    %cst_41 = arith.constant dense<0.000000e+00> : vector<6x48xf32>
    %200 = tpu.matmul %199, %8, %cst_41 {dimension_numbers = #tpu.dot_dimension_numbers<[1], [0], [0], [1], [0, 0, 1, 1], [], []>} : vector<6x16xbf16>, vector<16x48xbf16>, vector<6x48xf32> -> vector<6x48xf32>
    %201 = vector.extract_strided_slice %198 {offsets = [0, 0], sizes = [6, 16], strides = [1, 1]} : vector<6x48xf32> to vector<6x16xf32>
    %202 = vector.extract_strided_slice %200 {offsets = [0, 0], sizes = [6, 16], strides = [1, 1]} : vector<6x48xf32> to vector<6x16xf32>
    %203 = arith.addf %201, %202 : vector<6x16xf32>
    %204 = arith.negf %203 : vector<6x16xf32>
    %205 = math.exp %204 : vector<6x16xf32>
    %cst_42 = arith.constant 1.000000e+00 : f32
    %206 = vector.broadcast %cst_42 : f32 to vector<6x16xf32>
    %207 = arith.addf %206, %205 : vector<6x16xf32>
    %208 = arith.divf %206, %207 : vector<6x16xf32>
    %209 = vector.extract_strided_slice %198 {offsets = [0, 16], sizes = [6, 16], strides = [1, 1]} : vector<6x48xf32> to vector<6x16xf32>
    %210 = vector.extract_strided_slice %200 {offsets = [0, 16], sizes = [6, 16], strides = [1, 1]} : vector<6x48xf32> to vector<6x16xf32>
    %211 = arith.addf %209, %210 : vector<6x16xf32>
    %212 = arith.negf %211 : vector<6x16xf32>
    %213 = math.exp %212 : vector<6x16xf32>
    %cst_43 = arith.constant 1.000000e+00 : f32
    %214 = vector.broadcast %cst_43 : f32 to vector<6x16xf32>
    %215 = arith.addf %214, %213 : vector<6x16xf32>
    %216 = arith.divf %214, %215 : vector<6x16xf32>
    %217 = vector.extract_strided_slice %198 {offsets = [0, 32], sizes = [6, 16], strides = [1, 1]} : vector<6x48xf32> to vector<6x16xf32>
    %218 = vector.extract_strided_slice %200 {offsets = [0, 32], sizes = [6, 16], strides = [1, 1]} : vector<6x48xf32> to vector<6x16xf32>
    %219 = vector.broadcast %10 : vector<1x16xf32> to vector<6x16xf32>
    %220 = arith.addf %218, %219 : vector<6x16xf32>
    %221 = arith.mulf %208, %220 : vector<6x16xf32>
    %222 = arith.addf %217, %221 : vector<6x16xf32>
    %223 = math.tanh %222 : vector<6x16xf32>
    %cst_44 = arith.constant 1.000000e+00 : f32
    %224 = vector.broadcast %cst_44 : f32 to vector<6x16xf32>
    %225 = arith.subf %224, %216 : vector<6x16xf32>
    %226 = arith.mulf %225, %223 : vector<6x16xf32>
    %227 = arith.mulf %216, %160 : vector<6x16xf32>
    %228 = arith.addf %226, %227 : vector<6x16xf32>
    %229 = vector.extract_strided_slice %6 {offsets = [18, 0], sizes = [6, 1], strides = [1, 1]} : vector<36x1xf32> to vector<6x1xf32>
    %cst_45 = arith.constant 5.000000e-01 : f32
    %230 = vector.broadcast %cst_45 : f32 to vector<6x1xf32>
    %231 = arith.cmpf ogt, %229, %230 : vector<6x1xf32>
    %232 = vector.shape_cast %231 : vector<6x1xi1> to vector<6x1xi1>
    %233 = vector.broadcast %232 : vector<6x1xi1> to vector<6x16xi1>
    %234 = arith.select %233, %228, %160 : vector<6x16xi1>, vector<6x16xf32>
    %235 = vector.extract_strided_slice %5 {offsets = [18, 0], sizes = [6, 48], strides = [1, 1]} : vector<36x96xf32> to vector<6x48xf32>
    %236 = arith.truncf %197 : vector<6x16xf32> to vector<6x16xbf16>
    %cst_46 = arith.constant dense<0.000000e+00> : vector<6x48xf32>
    %237 = tpu.matmul %236, %7, %cst_46 {dimension_numbers = #tpu.dot_dimension_numbers<[1], [0], [0], [1], [0, 0, 1, 1], [], []>} : vector<6x16xbf16>, vector<16x48xbf16>, vector<6x48xf32> -> vector<6x48xf32>
    %238 = vector.extract_strided_slice %235 {offsets = [0, 0], sizes = [6, 16], strides = [1, 1]} : vector<6x48xf32> to vector<6x16xf32>
    %239 = vector.extract_strided_slice %237 {offsets = [0, 0], sizes = [6, 16], strides = [1, 1]} : vector<6x48xf32> to vector<6x16xf32>
    %240 = arith.addf %238, %239 : vector<6x16xf32>
    %241 = arith.negf %240 : vector<6x16xf32>
    %242 = math.exp %241 : vector<6x16xf32>
    %cst_47 = arith.constant 1.000000e+00 : f32
    %243 = vector.broadcast %cst_47 : f32 to vector<6x16xf32>
    %244 = arith.addf %243, %242 : vector<6x16xf32>
    %245 = arith.divf %243, %244 : vector<6x16xf32>
    %246 = vector.extract_strided_slice %235 {offsets = [0, 16], sizes = [6, 16], strides = [1, 1]} : vector<6x48xf32> to vector<6x16xf32>
    %247 = vector.extract_strided_slice %237 {offsets = [0, 16], sizes = [6, 16], strides = [1, 1]} : vector<6x48xf32> to vector<6x16xf32>
    %248 = arith.addf %246, %247 : vector<6x16xf32>
    %249 = arith.negf %248 : vector<6x16xf32>
    %250 = math.exp %249 : vector<6x16xf32>
    %cst_48 = arith.constant 1.000000e+00 : f32
    %251 = vector.broadcast %cst_48 : f32 to vector<6x16xf32>
    %252 = arith.addf %251, %250 : vector<6x16xf32>
    %253 = arith.divf %251, %252 : vector<6x16xf32>
    %254 = vector.extract_strided_slice %235 {offsets = [0, 32], sizes = [6, 16], strides = [1, 1]} : vector<6x48xf32> to vector<6x16xf32>
    %255 = vector.extract_strided_slice %237 {offsets = [0, 32], sizes = [6, 16], strides = [1, 1]} : vector<6x48xf32> to vector<6x16xf32>
    %256 = vector.broadcast %9 : vector<1x16xf32> to vector<6x16xf32>
    %257 = arith.addf %255, %256 : vector<6x16xf32>
    %258 = arith.mulf %245, %257 : vector<6x16xf32>
    %259 = arith.addf %254, %258 : vector<6x16xf32>
    %260 = math.tanh %259 : vector<6x16xf32>
    %cst_49 = arith.constant 1.000000e+00 : f32
    %261 = vector.broadcast %cst_49 : f32 to vector<6x16xf32>
    %262 = arith.subf %261, %253 : vector<6x16xf32>
    %263 = arith.mulf %262, %260 : vector<6x16xf32>
    %264 = arith.mulf %253, %197 : vector<6x16xf32>
    %265 = arith.addf %263, %264 : vector<6x16xf32>
    %266 = vector.extract_strided_slice %6 {offsets = [18, 0], sizes = [6, 1], strides = [1, 1]} : vector<36x1xf32> to vector<6x1xf32>
    %cst_50 = arith.constant 5.000000e-01 : f32
    %267 = vector.broadcast %cst_50 : f32 to vector<6x1xf32>
    %268 = arith.cmpf ogt, %266, %267 : vector<6x1xf32>
    %269 = vector.shape_cast %268 : vector<6x1xi1> to vector<6x1xi1>
    %270 = vector.broadcast %269 : vector<6x1xi1> to vector<6x16xi1>
    %271 = arith.select %270, %265, %197 : vector<6x16xi1>, vector<6x16xf32>
    %272 = vector.extract_strided_slice %5 {offsets = [12, 48], sizes = [6, 48], strides = [1, 1]} : vector<36x96xf32> to vector<6x48xf32>
    %273 = arith.truncf %234 : vector<6x16xf32> to vector<6x16xbf16>
    %cst_51 = arith.constant dense<0.000000e+00> : vector<6x48xf32>
    %274 = tpu.matmul %273, %8, %cst_51 {dimension_numbers = #tpu.dot_dimension_numbers<[1], [0], [0], [1], [0, 0, 1, 1], [], []>} : vector<6x16xbf16>, vector<16x48xbf16>, vector<6x48xf32> -> vector<6x48xf32>
    %275 = vector.extract_strided_slice %272 {offsets = [0, 0], sizes = [6, 16], strides = [1, 1]} : vector<6x48xf32> to vector<6x16xf32>
    %276 = vector.extract_strided_slice %274 {offsets = [0, 0], sizes = [6, 16], strides = [1, 1]} : vector<6x48xf32> to vector<6x16xf32>
    %277 = arith.addf %275, %276 : vector<6x16xf32>
    %278 = arith.negf %277 : vector<6x16xf32>
    %279 = math.exp %278 : vector<6x16xf32>
    %cst_52 = arith.constant 1.000000e+00 : f32
    %280 = vector.broadcast %cst_52 : f32 to vector<6x16xf32>
    %281 = arith.addf %280, %279 : vector<6x16xf32>
    %282 = arith.divf %280, %281 : vector<6x16xf32>
    %283 = vector.extract_strided_slice %272 {offsets = [0, 16], sizes = [6, 16], strides = [1, 1]} : vector<6x48xf32> to vector<6x16xf32>
    %284 = vector.extract_strided_slice %274 {offsets = [0, 16], sizes = [6, 16], strides = [1, 1]} : vector<6x48xf32> to vector<6x16xf32>
    %285 = arith.addf %283, %284 : vector<6x16xf32>
    %286 = arith.negf %285 : vector<6x16xf32>
    %287 = math.exp %286 : vector<6x16xf32>
    %cst_53 = arith.constant 1.000000e+00 : f32
    %288 = vector.broadcast %cst_53 : f32 to vector<6x16xf32>
    %289 = arith.addf %288, %287 : vector<6x16xf32>
    %290 = arith.divf %288, %289 : vector<6x16xf32>
    %291 = vector.extract_strided_slice %272 {offsets = [0, 32], sizes = [6, 16], strides = [1, 1]} : vector<6x48xf32> to vector<6x16xf32>
    %292 = vector.extract_strided_slice %274 {offsets = [0, 32], sizes = [6, 16], strides = [1, 1]} : vector<6x48xf32> to vector<6x16xf32>
    %293 = vector.broadcast %10 : vector<1x16xf32> to vector<6x16xf32>
    %294 = arith.addf %292, %293 : vector<6x16xf32>
    %295 = arith.mulf %282, %294 : vector<6x16xf32>
    %296 = arith.addf %291, %295 : vector<6x16xf32>
    %297 = math.tanh %296 : vector<6x16xf32>
    %cst_54 = arith.constant 1.000000e+00 : f32
    %298 = vector.broadcast %cst_54 : f32 to vector<6x16xf32>
    %299 = arith.subf %298, %290 : vector<6x16xf32>
    %300 = arith.mulf %299, %297 : vector<6x16xf32>
    %301 = arith.mulf %290, %234 : vector<6x16xf32>
    %302 = arith.addf %300, %301 : vector<6x16xf32>
    %303 = vector.extract_strided_slice %6 {offsets = [12, 0], sizes = [6, 1], strides = [1, 1]} : vector<36x1xf32> to vector<6x1xf32>
    %cst_55 = arith.constant 5.000000e-01 : f32
    %304 = vector.broadcast %cst_55 : f32 to vector<6x1xf32>
    %305 = arith.cmpf ogt, %303, %304 : vector<6x1xf32>
    %306 = vector.shape_cast %305 : vector<6x1xi1> to vector<6x1xi1>
    %307 = vector.broadcast %306 : vector<6x1xi1> to vector<6x16xi1>
    %308 = arith.select %307, %302, %234 : vector<6x16xi1>, vector<6x16xf32>
    %309 = vector.extract_strided_slice %5 {offsets = [24, 0], sizes = [6, 48], strides = [1, 1]} : vector<36x96xf32> to vector<6x48xf32>
    %310 = arith.truncf %271 : vector<6x16xf32> to vector<6x16xbf16>
    %cst_56 = arith.constant dense<0.000000e+00> : vector<6x48xf32>
    %311 = tpu.matmul %310, %7, %cst_56 {dimension_numbers = #tpu.dot_dimension_numbers<[1], [0], [0], [1], [0, 0, 1, 1], [], []>} : vector<6x16xbf16>, vector<16x48xbf16>, vector<6x48xf32> -> vector<6x48xf32>
    %312 = vector.extract_strided_slice %309 {offsets = [0, 0], sizes = [6, 16], strides = [1, 1]} : vector<6x48xf32> to vector<6x16xf32>
    %313 = vector.extract_strided_slice %311 {offsets = [0, 0], sizes = [6, 16], strides = [1, 1]} : vector<6x48xf32> to vector<6x16xf32>
    %314 = arith.addf %312, %313 : vector<6x16xf32>
    %315 = arith.negf %314 : vector<6x16xf32>
    %316 = math.exp %315 : vector<6x16xf32>
    %cst_57 = arith.constant 1.000000e+00 : f32
    %317 = vector.broadcast %cst_57 : f32 to vector<6x16xf32>
    %318 = arith.addf %317, %316 : vector<6x16xf32>
    %319 = arith.divf %317, %318 : vector<6x16xf32>
    %320 = vector.extract_strided_slice %309 {offsets = [0, 16], sizes = [6, 16], strides = [1, 1]} : vector<6x48xf32> to vector<6x16xf32>
    %321 = vector.extract_strided_slice %311 {offsets = [0, 16], sizes = [6, 16], strides = [1, 1]} : vector<6x48xf32> to vector<6x16xf32>
    %322 = arith.addf %320, %321 : vector<6x16xf32>
    %323 = arith.negf %322 : vector<6x16xf32>
    %324 = math.exp %323 : vector<6x16xf32>
    %cst_58 = arith.constant 1.000000e+00 : f32
    %325 = vector.broadcast %cst_58 : f32 to vector<6x16xf32>
    %326 = arith.addf %325, %324 : vector<6x16xf32>
    %327 = arith.divf %325, %326 : vector<6x16xf32>
    %328 = vector.extract_strided_slice %309 {offsets = [0, 32], sizes = [6, 16], strides = [1, 1]} : vector<6x48xf32> to vector<6x16xf32>
    %329 = vector.extract_strided_slice %311 {offsets = [0, 32], sizes = [6, 16], strides = [1, 1]} : vector<6x48xf32> to vector<6x16xf32>
    %330 = vector.broadcast %9 : vector<1x16xf32> to vector<6x16xf32>
    %331 = arith.addf %329, %330 : vector<6x16xf32>
    %332 = arith.mulf %319, %331 : vector<6x16xf32>
    %333 = arith.addf %328, %332 : vector<6x16xf32>
    %334 = math.tanh %333 : vector<6x16xf32>
    %cst_59 = arith.constant 1.000000e+00 : f32
    %335 = vector.broadcast %cst_59 : f32 to vector<6x16xf32>
    %336 = arith.subf %335, %327 : vector<6x16xf32>
    %337 = arith.mulf %336, %334 : vector<6x16xf32>
    %338 = arith.mulf %327, %271 : vector<6x16xf32>
    %339 = arith.addf %337, %338 : vector<6x16xf32>
    %340 = vector.extract_strided_slice %6 {offsets = [24, 0], sizes = [6, 1], strides = [1, 1]} : vector<36x1xf32> to vector<6x1xf32>
    %cst_60 = arith.constant 5.000000e-01 : f32
    %341 = vector.broadcast %cst_60 : f32 to vector<6x1xf32>
    %342 = arith.cmpf ogt, %340, %341 : vector<6x1xf32>
    %343 = vector.shape_cast %342 : vector<6x1xi1> to vector<6x1xi1>
    %344 = vector.broadcast %343 : vector<6x1xi1> to vector<6x16xi1>
    %345 = arith.select %344, %339, %271 : vector<6x16xi1>, vector<6x16xf32>
    %346 = vector.extract_strided_slice %5 {offsets = [6, 48], sizes = [6, 48], strides = [1, 1]} : vector<36x96xf32> to vector<6x48xf32>
    %347 = arith.truncf %308 : vector<6x16xf32> to vector<6x16xbf16>
    %cst_61 = arith.constant dense<0.000000e+00> : vector<6x48xf32>
    %348 = tpu.matmul %347, %8, %cst_61 {dimension_numbers = #tpu.dot_dimension_numbers<[1], [0], [0], [1], [0, 0, 1, 1], [], []>} : vector<6x16xbf16>, vector<16x48xbf16>, vector<6x48xf32> -> vector<6x48xf32>
    %349 = vector.extract_strided_slice %346 {offsets = [0, 0], sizes = [6, 16], strides = [1, 1]} : vector<6x48xf32> to vector<6x16xf32>
    %350 = vector.extract_strided_slice %348 {offsets = [0, 0], sizes = [6, 16], strides = [1, 1]} : vector<6x48xf32> to vector<6x16xf32>
    %351 = arith.addf %349, %350 : vector<6x16xf32>
    %352 = arith.negf %351 : vector<6x16xf32>
    %353 = math.exp %352 : vector<6x16xf32>
    %cst_62 = arith.constant 1.000000e+00 : f32
    %354 = vector.broadcast %cst_62 : f32 to vector<6x16xf32>
    %355 = arith.addf %354, %353 : vector<6x16xf32>
    %356 = arith.divf %354, %355 : vector<6x16xf32>
    %357 = vector.extract_strided_slice %346 {offsets = [0, 16], sizes = [6, 16], strides = [1, 1]} : vector<6x48xf32> to vector<6x16xf32>
    %358 = vector.extract_strided_slice %348 {offsets = [0, 16], sizes = [6, 16], strides = [1, 1]} : vector<6x48xf32> to vector<6x16xf32>
    %359 = arith.addf %357, %358 : vector<6x16xf32>
    %360 = arith.negf %359 : vector<6x16xf32>
    %361 = math.exp %360 : vector<6x16xf32>
    %cst_63 = arith.constant 1.000000e+00 : f32
    %362 = vector.broadcast %cst_63 : f32 to vector<6x16xf32>
    %363 = arith.addf %362, %361 : vector<6x16xf32>
    %364 = arith.divf %362, %363 : vector<6x16xf32>
    %365 = vector.extract_strided_slice %346 {offsets = [0, 32], sizes = [6, 16], strides = [1, 1]} : vector<6x48xf32> to vector<6x16xf32>
    %366 = vector.extract_strided_slice %348 {offsets = [0, 32], sizes = [6, 16], strides = [1, 1]} : vector<6x48xf32> to vector<6x16xf32>
    %367 = vector.broadcast %10 : vector<1x16xf32> to vector<6x16xf32>
    %368 = arith.addf %366, %367 : vector<6x16xf32>
    %369 = arith.mulf %356, %368 : vector<6x16xf32>
    %370 = arith.addf %365, %369 : vector<6x16xf32>
    %371 = math.tanh %370 : vector<6x16xf32>
    %cst_64 = arith.constant 1.000000e+00 : f32
    %372 = vector.broadcast %cst_64 : f32 to vector<6x16xf32>
    %373 = arith.subf %372, %364 : vector<6x16xf32>
    %374 = arith.mulf %373, %371 : vector<6x16xf32>
    %375 = arith.mulf %364, %308 : vector<6x16xf32>
    %376 = arith.addf %374, %375 : vector<6x16xf32>
    %377 = vector.extract_strided_slice %6 {offsets = [6, 0], sizes = [6, 1], strides = [1, 1]} : vector<36x1xf32> to vector<6x1xf32>
    %cst_65 = arith.constant 5.000000e-01 : f32
    %378 = vector.broadcast %cst_65 : f32 to vector<6x1xf32>
    %379 = arith.cmpf ogt, %377, %378 : vector<6x1xf32>
    %380 = vector.shape_cast %379 : vector<6x1xi1> to vector<6x1xi1>
    %381 = vector.broadcast %380 : vector<6x1xi1> to vector<6x16xi1>
    %382 = arith.select %381, %376, %308 : vector<6x16xi1>, vector<6x16xf32>
    %383 = vector.extract_strided_slice %5 {offsets = [30, 0], sizes = [6, 48], strides = [1, 1]} : vector<36x96xf32> to vector<6x48xf32>
    %384 = arith.truncf %345 : vector<6x16xf32> to vector<6x16xbf16>
    %cst_66 = arith.constant dense<0.000000e+00> : vector<6x48xf32>
    %385 = tpu.matmul %384, %7, %cst_66 {dimension_numbers = #tpu.dot_dimension_numbers<[1], [0], [0], [1], [0, 0, 1, 1], [], []>} : vector<6x16xbf16>, vector<16x48xbf16>, vector<6x48xf32> -> vector<6x48xf32>
    %386 = vector.extract_strided_slice %383 {offsets = [0, 0], sizes = [6, 16], strides = [1, 1]} : vector<6x48xf32> to vector<6x16xf32>
    %387 = vector.extract_strided_slice %385 {offsets = [0, 0], sizes = [6, 16], strides = [1, 1]} : vector<6x48xf32> to vector<6x16xf32>
    %388 = arith.addf %386, %387 : vector<6x16xf32>
    %389 = arith.negf %388 : vector<6x16xf32>
    %390 = math.exp %389 : vector<6x16xf32>
    %cst_67 = arith.constant 1.000000e+00 : f32
    %391 = vector.broadcast %cst_67 : f32 to vector<6x16xf32>
    %392 = arith.addf %391, %390 : vector<6x16xf32>
    %393 = arith.divf %391, %392 : vector<6x16xf32>
    %394 = vector.extract_strided_slice %383 {offsets = [0, 16], sizes = [6, 16], strides = [1, 1]} : vector<6x48xf32> to vector<6x16xf32>
    %395 = vector.extract_strided_slice %385 {offsets = [0, 16], sizes = [6, 16], strides = [1, 1]} : vector<6x48xf32> to vector<6x16xf32>
    %396 = arith.addf %394, %395 : vector<6x16xf32>
    %397 = arith.negf %396 : vector<6x16xf32>
    %398 = math.exp %397 : vector<6x16xf32>
    %cst_68 = arith.constant 1.000000e+00 : f32
    %399 = vector.broadcast %cst_68 : f32 to vector<6x16xf32>
    %400 = arith.addf %399, %398 : vector<6x16xf32>
    %401 = arith.divf %399, %400 : vector<6x16xf32>
    %402 = vector.extract_strided_slice %383 {offsets = [0, 32], sizes = [6, 16], strides = [1, 1]} : vector<6x48xf32> to vector<6x16xf32>
    %403 = vector.extract_strided_slice %385 {offsets = [0, 32], sizes = [6, 16], strides = [1, 1]} : vector<6x48xf32> to vector<6x16xf32>
    %404 = vector.broadcast %9 : vector<1x16xf32> to vector<6x16xf32>
    %405 = arith.addf %403, %404 : vector<6x16xf32>
    %406 = arith.mulf %393, %405 : vector<6x16xf32>
    %407 = arith.addf %402, %406 : vector<6x16xf32>
    %408 = math.tanh %407 : vector<6x16xf32>
    %cst_69 = arith.constant 1.000000e+00 : f32
    %409 = vector.broadcast %cst_69 : f32 to vector<6x16xf32>
    %410 = arith.subf %409, %401 : vector<6x16xf32>
    %411 = arith.mulf %410, %408 : vector<6x16xf32>
    %412 = arith.mulf %401, %345 : vector<6x16xf32>
    %413 = arith.addf %411, %412 : vector<6x16xf32>
    %414 = vector.extract_strided_slice %6 {offsets = [30, 0], sizes = [6, 1], strides = [1, 1]} : vector<36x1xf32> to vector<6x1xf32>
    %cst_70 = arith.constant 5.000000e-01 : f32
    %415 = vector.broadcast %cst_70 : f32 to vector<6x1xf32>
    %416 = arith.cmpf ogt, %414, %415 : vector<6x1xf32>
    %417 = vector.shape_cast %416 : vector<6x1xi1> to vector<6x1xi1>
    %418 = vector.broadcast %417 : vector<6x1xi1> to vector<6x16xi1>
    %419 = arith.select %418, %413, %345 : vector<6x16xi1>, vector<6x16xf32>
    %420 = vector.extract_strided_slice %5 {offsets = [0, 48], sizes = [6, 48], strides = [1, 1]} : vector<36x96xf32> to vector<6x48xf32>
    %421 = arith.truncf %382 : vector<6x16xf32> to vector<6x16xbf16>
    %cst_71 = arith.constant dense<0.000000e+00> : vector<6x48xf32>
    %422 = tpu.matmul %421, %8, %cst_71 {dimension_numbers = #tpu.dot_dimension_numbers<[1], [0], [0], [1], [0, 0, 1, 1], [], []>} : vector<6x16xbf16>, vector<16x48xbf16>, vector<6x48xf32> -> vector<6x48xf32>
    %423 = vector.extract_strided_slice %420 {offsets = [0, 0], sizes = [6, 16], strides = [1, 1]} : vector<6x48xf32> to vector<6x16xf32>
    %424 = vector.extract_strided_slice %422 {offsets = [0, 0], sizes = [6, 16], strides = [1, 1]} : vector<6x48xf32> to vector<6x16xf32>
    %425 = arith.addf %423, %424 : vector<6x16xf32>
    %426 = arith.negf %425 : vector<6x16xf32>
    %427 = math.exp %426 : vector<6x16xf32>
    %cst_72 = arith.constant 1.000000e+00 : f32
    %428 = vector.broadcast %cst_72 : f32 to vector<6x16xf32>
    %429 = arith.addf %428, %427 : vector<6x16xf32>
    %430 = arith.divf %428, %429 : vector<6x16xf32>
    %431 = vector.extract_strided_slice %420 {offsets = [0, 16], sizes = [6, 16], strides = [1, 1]} : vector<6x48xf32> to vector<6x16xf32>
    %432 = vector.extract_strided_slice %422 {offsets = [0, 16], sizes = [6, 16], strides = [1, 1]} : vector<6x48xf32> to vector<6x16xf32>
    %433 = arith.addf %431, %432 : vector<6x16xf32>
    %434 = arith.negf %433 : vector<6x16xf32>
    %435 = math.exp %434 : vector<6x16xf32>
    %cst_73 = arith.constant 1.000000e+00 : f32
    %436 = vector.broadcast %cst_73 : f32 to vector<6x16xf32>
    %437 = arith.addf %436, %435 : vector<6x16xf32>
    %438 = arith.divf %436, %437 : vector<6x16xf32>
    %439 = vector.extract_strided_slice %420 {offsets = [0, 32], sizes = [6, 16], strides = [1, 1]} : vector<6x48xf32> to vector<6x16xf32>
    %440 = vector.extract_strided_slice %422 {offsets = [0, 32], sizes = [6, 16], strides = [1, 1]} : vector<6x48xf32> to vector<6x16xf32>
    %441 = vector.broadcast %10 : vector<1x16xf32> to vector<6x16xf32>
    %442 = arith.addf %440, %441 : vector<6x16xf32>
    %443 = arith.mulf %430, %442 : vector<6x16xf32>
    %444 = arith.addf %439, %443 : vector<6x16xf32>
    %445 = math.tanh %444 : vector<6x16xf32>
    %cst_74 = arith.constant 1.000000e+00 : f32
    %446 = vector.broadcast %cst_74 : f32 to vector<6x16xf32>
    %447 = arith.subf %446, %438 : vector<6x16xf32>
    %448 = arith.mulf %447, %445 : vector<6x16xf32>
    %449 = arith.mulf %438, %382 : vector<6x16xf32>
    %450 = arith.addf %448, %449 : vector<6x16xf32>
    %451 = vector.extract_strided_slice %6 {offsets = [0, 0], sizes = [6, 1], strides = [1, 1]} : vector<36x1xf32> to vector<6x1xf32>
    %cst_75 = arith.constant 5.000000e-01 : f32
    %452 = vector.broadcast %cst_75 : f32 to vector<6x1xf32>
    %453 = arith.cmpf ogt, %451, %452 : vector<6x1xf32>
    %454 = vector.shape_cast %453 : vector<6x1xi1> to vector<6x1xi1>
    %455 = vector.broadcast %454 : vector<6x1xi1> to vector<6x16xi1>
    %456 = arith.select %455, %450, %382 : vector<6x16xi1>, vector<6x16xf32>
    %457 = tpu.concatenate %419, %456 in 1 : vector<6x16xf32>, vector<6x16xf32> -> vector<6x32xf32>
    %458 = arith.truncf %457 : vector<6x32xf32> to vector<6x32xbf16>
    %c0_76 = arith.constant 0 : index
    %c0_77 = arith.constant 0 : index
    %459 = vector.load %arg7[%c0_76, %c0_77] : memref<6x32xbf16, #tpu.memory_space<vmem>>, vector<6x32xbf16>
    tpu.vector_store %arg7[%c0_76, %c0_77], %458 {strides = array<i32>} : memref<6x32xbf16, #tpu.memory_space<vmem>>, vector<6x32xbf16>,
    return
  }
}

module attributes {stable_mosaic.version = 11 : i64} {
  func.func @decoder_kernel(%arg0: memref<16x16xbf16, #tpu.memory_space<vmem>>, %arg1: memref<2x1x32xbf16, #tpu.memory_space<vmem>>, %arg2: memref<2x3x32xbf16, #tpu.memory_space<vmem>>, %arg3: memref<32x64xbf16, #tpu.memory_space<vmem>>, %arg4: memref<1x64xf32, #tpu.memory_space<vmem>>, %arg5: memref<16x192xbf16, #tpu.memory_space<vmem>>, %arg6: memref<1x192xf32, #tpu.memory_space<vmem>>, %arg7: memref<32x96xbf16, #tpu.memory_space<vmem>>, %arg8: memref<32x96xbf16, #tpu.memory_space<vmem>>, %arg9: memref<1x64xf32, #tpu.memory_space<vmem>>, %arg10: memref<64x256xbf16, #tpu.memory_space<vmem>>, %arg11: memref<64x256xbf16, #tpu.memory_space<vmem>>, %arg12: memref<1x256xf32, #tpu.memory_space<vmem>>, %arg13: memref<32x128xbf16, #tpu.memory_space<vmem>>, %arg14: memref<32x128xbf16, #tpu.memory_space<vmem>>, %arg15: memref<64x128xbf16, #tpu.memory_space<vmem>>, %arg16: memref<1x128xf32, #tpu.memory_space<vmem>>, %arg17: memref<64x128xbf16, #tpu.memory_space<vmem>>, %arg18: memref<1x128xf32, #tpu.memory_space<vmem>>, %arg19: memref<2x128xf32, #tpu.memory_space<vmem>>, %arg20: memref<16x128xf32, #tpu.memory_space<vmem>>) attributes {dimension_semantics = [], scalar_prefetch = 0 : i64, scratch_operands = 0 : i64, tpu.core_type = #tpu.core_type<tc>} {
    %c0 = arith.constant 0 : index
    %c0_0 = arith.constant 0 : index
    %c0_1 = arith.constant 0 : index
    %0 = vector.load %arg1[%c0, %c0_0, %c0_1] : memref<2x1x32xbf16, #tpu.memory_space<vmem>>, vector<2x1x32xbf16>
    %c0_2 = arith.constant 0 : index
    %c0_3 = arith.constant 0 : index
    %c0_4 = arith.constant 0 : index
    %1 = vector.load %arg2[%c0_2, %c0_3, %c0_4] : memref<2x3x32xbf16, #tpu.memory_space<vmem>>, vector<2x3x32xbf16>
    "tpu.trace_start"() <{level = 10 : i32, message = "bqd,bkd->bqk"}> : () -> ()
    %cst = arith.constant dense<0.000000e+00> : vector<2x1x3xf32>
    %2 = tpu.matmul %0, %1, %cst {dimension_numbers = #tpu.dot_dimension_numbers<[2], [2], [1], [1], [0, 0, 0, 1, 1, 1], [0], [0]>} : vector<2x1x32xbf16>, vector<2x3x32xbf16>, vector<2x1x3xf32> -> vector<2x1x3xf32>
    "tpu.trace_stop"() : () -> ()
    %cst_5 = arith.constant dense<0xFF800000> : vector<2x1xf32>
    %3 = vector.multi_reduction <maximumf>, %2, %cst_5 [2] : vector<2x1x3xf32> to vector<2x1xf32>
    %4 = vector.shape_cast %3 : vector<2x1xf32> to vector<2x1x1xf32>
    %5 = vector.broadcast %4 : vector<2x1x1xf32> to vector<2x1x3xf32>
    %6 = arith.subf %2, %5 : vector<2x1x3xf32>
    %7 = math.exp %6 : vector<2x1x3xf32>
    %cst_6 = arith.constant dense<0.000000e+00> : vector<2x1xf32>
    %8 = vector.multi_reduction <add>, %7, %cst_6 [2] : vector<2x1x3xf32> to vector<2x1xf32>
    %9 = vector.shape_cast %8 : vector<2x1xf32> to vector<2x1x1xf32>
    %10 = tpu.reciprocal %9 {approx = true} : vector<2x1x1xf32> -> vector<2x1x1xf32>
    %11 = vector.broadcast %10 : vector<2x1x1xf32> to vector<2x1x3xf32>
    %12 = arith.mulf %7, %11 : vector<2x1x3xf32>
    %13 = arith.truncf %12 : vector<2x1x3xf32> to vector<2x1x3xbf16>
    "tpu.trace_start"() <{level = 10 : i32, message = "bqk,bkd->bqd"}> : () -> ()
    %cst_7 = arith.constant dense<0.000000e+00> : vector<2x1x32xf32>
    %14 = tpu.matmul %13, %1, %cst_7 {dimension_numbers = #tpu.dot_dimension_numbers<[2], [1], [1], [2], [0, 0, 0, 1, 1, 2], [0], [0]>} : vector<2x1x3xbf16>, vector<2x3x32xbf16>, vector<2x1x32xf32> -> vector<2x1x32xf32>
    "tpu.trace_stop"() : () -> ()
    %15 = vector.shape_cast %14 : vector<2x1x32xf32> to vector<2x32xf32>
    %16 = vector.shape_cast %0 : vector<2x1x32xbf16> to vector<2x32xbf16>
    %17 = arith.extf %16 : vector<2x32xbf16> to vector<2x32xf32>
    %18 = arith.addf %15, %17 : vector<2x32xf32>
    %19 = arith.truncf %18 : vector<2x32xf32> to vector<2x32xbf16>
    %c0_8 = arith.constant 0 : index
    %c0_9 = arith.constant 0 : index
    %20 = vector.load %arg3[%c0_8, %c0_9] : memref<32x64xbf16, #tpu.memory_space<vmem>>, vector<32x64xbf16>
    %cst_10 = arith.constant dense<0.000000e+00> : vector<2x64xf32>
    %21 = tpu.matmul %19, %20, %cst_10 {dimension_numbers = #tpu.dot_dimension_numbers<[1], [0], [0], [1], [0, 0, 1, 1], [], []>} : vector<2x32xbf16>, vector<32x64xbf16>, vector<2x64xf32> -> vector<2x64xf32>
    %c0_11 = arith.constant 0 : index
    %c0_12 = arith.constant 0 : index
    %22 = vector.load %arg4[%c0_11, %c0_12] : memref<1x64xf32, #tpu.memory_space<vmem>>, vector<1x64xf32>
    %23 = vector.broadcast %22 : vector<1x64xf32> to vector<2x64xf32>
    %24 = arith.addf %21, %23 : vector<2x64xf32>
    %c0_13 = arith.constant 0 : index
    %c0_14 = arith.constant 0 : index
    %25 = vector.load %arg0[%c0_13, %c0_14] : memref<16x16xbf16, #tpu.memory_space<vmem>>, vector<16x16xbf16>
    %c0_15 = arith.constant 0 : index
    %c0_16 = arith.constant 0 : index
    %26 = vector.load %arg5[%c0_15, %c0_16] : memref<16x192xbf16, #tpu.memory_space<vmem>>, vector<16x192xbf16>
    %cst_17 = arith.constant dense<0.000000e+00> : vector<16x192xf32>
    %27 = tpu.matmul %25, %26, %cst_17 {dimension_numbers = #tpu.dot_dimension_numbers<[1], [0], [0], [1], [0, 0, 1, 1], [], []>} : vector<16x16xbf16>, vector<16x192xbf16>, vector<16x192xf32> -> vector<16x192xf32>
    %c0_18 = arith.constant 0 : index
    %c0_19 = arith.constant 0 : index
    %28 = vector.load %arg6[%c0_18, %c0_19] : memref<1x192xf32, #tpu.memory_space<vmem>>, vector<1x192xf32>
    %29 = vector.broadcast %28 : vector<1x192xf32> to vector<16x192xf32>
    %30 = arith.addf %27, %29 : vector<16x192xf32>
    %c0_20 = arith.constant 0 : index
    %c0_21 = arith.constant 0 : index
    %31 = vector.load %arg7[%c0_20, %c0_21] : memref<32x96xbf16, #tpu.memory_space<vmem>>, vector<32x96xbf16>
    %c0_22 = arith.constant 0 : index
    %c0_23 = arith.constant 0 : index
    %32 = vector.load %arg8[%c0_22, %c0_23] : memref<32x96xbf16, #tpu.memory_space<vmem>>, vector<32x96xbf16>
    %c0_24 = arith.constant 0 : index
    %c0_25 = arith.constant 0 : index
    %33 = vector.load %arg9[%c0_24, %c0_25] : memref<1x64xf32, #tpu.memory_space<vmem>>, vector<1x32xf32>
    %c0_26 = arith.constant 0 : index
    %c32 = arith.constant 32 : index
    %34 = vector.load %arg9[%c0_26, %c32] : memref<1x64xf32, #tpu.memory_space<vmem>>, vector<1x32xf32>
    %cst_27 = arith.constant 0.000000e+00 : f32
    %35 = vector.broadcast %cst_27 : f32 to vector<2x32xf32>
    %cst_28 = arith.constant 0.000000e+00 : f32
    %36 = vector.broadcast %cst_28 : f32 to vector<2x32xf32>
    %37 = vector.extract_strided_slice %30 {offsets = [0, 0], sizes = [2, 96], strides = [1, 1]} : vector<16x192xf32> to vector<2x96xf32>
    %38 = arith.truncf %35 : vector<2x32xf32> to vector<2x32xbf16>
    %cst_29 = arith.constant dense<0.000000e+00> : vector<2x96xf32>
    %39 = tpu.matmul %38, %31, %cst_29 {dimension_numbers = #tpu.dot_dimension_numbers<[1], [0], [0], [1], [0, 0, 1, 1], [], []>} : vector<2x32xbf16>, vector<32x96xbf16>, vector<2x96xf32> -> vector<2x96xf32>
    %40 = vector.extract_strided_slice %37 {offsets = [0, 0], sizes = [2, 32], strides = [1, 1]} : vector<2x96xf32> to vector<2x32xf32>
    %41 = vector.extract_strided_slice %39 {offsets = [0, 0], sizes = [2, 32], strides = [1, 1]} : vector<2x96xf32> to vector<2x32xf32>
    %42 = arith.addf %40, %41 : vector<2x32xf32>
    %43 = arith.negf %42 : vector<2x32xf32>
    %44 = math.exp %43 : vector<2x32xf32>
    %cst_30 = arith.constant 1.000000e+00 : f32
    %45 = vector.broadcast %cst_30 : f32 to vector<2x32xf32>
    %46 = arith.addf %45, %44 : vector<2x32xf32>
    %47 = arith.divf %45, %46 : vector<2x32xf32>
    %48 = vector.extract_strided_slice %37 {offsets = [0, 32], sizes = [2, 32], strides = [1, 1]} : vector<2x96xf32> to vector<2x32xf32>
    %49 = vector.extract_strided_slice %39 {offsets = [0, 32], sizes = [2, 32], strides = [1, 1]} : vector<2x96xf32> to vector<2x32xf32>
    %50 = arith.addf %48, %49 : vector<2x32xf32>
    %51 = arith.negf %50 : vector<2x32xf32>
    %52 = math.exp %51 : vector<2x32xf32>
    %cst_31 = arith.constant 1.000000e+00 : f32
    %53 = vector.broadcast %cst_31 : f32 to vector<2x32xf32>
    %54 = arith.addf %53, %52 : vector<2x32xf32>
    %55 = arith.divf %53, %54 : vector<2x32xf32>
    %56 = vector.extract_strided_slice %37 {offsets = [0, 64], sizes = [2, 32], strides = [1, 1]} : vector<2x96xf32> to vector<2x32xf32>
    %57 = vector.extract_strided_slice %39 {offsets = [0, 64], sizes = [2, 32], strides = [1, 1]} : vector<2x96xf32> to vector<2x32xf32>
    %58 = vector.broadcast %33 : vector<1x32xf32> to vector<2x32xf32>
    %59 = arith.addf %57, %58 : vector<2x32xf32>
    %60 = arith.mulf %47, %59 : vector<2x32xf32>
    %61 = arith.addf %56, %60 : vector<2x32xf32>
    %62 = math.tanh %61 : vector<2x32xf32>
    %cst_32 = arith.constant 1.000000e+00 : f32
    %63 = vector.broadcast %cst_32 : f32 to vector<2x32xf32>
    %64 = arith.subf %63, %55 : vector<2x32xf32>
    %65 = arith.mulf %64, %62 : vector<2x32xf32>
    %66 = arith.mulf %55, %35 : vector<2x32xf32>
    %67 = arith.addf %65, %66 : vector<2x32xf32>
    %68 = vector.extract_strided_slice %30 {offsets = [14, 96], sizes = [2, 96], strides = [1, 1]} : vector<16x192xf32> to vector<2x96xf32>
    %69 = arith.truncf %36 : vector<2x32xf32> to vector<2x32xbf16>
    %cst_33 = arith.constant dense<0.000000e+00> : vector<2x96xf32>
    %70 = tpu.matmul %69, %32, %cst_33 {dimension_numbers = #tpu.dot_dimension_numbers<[1], [0], [0], [1], [0, 0, 1, 1], [], []>} : vector<2x32xbf16>, vector<32x96xbf16>, vector<2x96xf32> -> vector<2x96xf32>
    %71 = vector.extract_strided_slice %68 {offsets = [0, 0], sizes = [2, 32], strides = [1, 1]} : vector<2x96xf32> to vector<2x32xf32>
    %72 = vector.extract_strided_slice %70 {offsets = [0, 0], sizes = [2, 32], strides = [1, 1]} : vector<2x96xf32> to vector<2x32xf32>
    %73 = arith.addf %71, %72 : vector<2x32xf32>
    %74 = arith.negf %73 : vector<2x32xf32>
    %75 = math.exp %74 : vector<2x32xf32>
    %cst_34 = arith.constant 1.000000e+00 : f32
    %76 = vector.broadcast %cst_34 : f32 to vector<2x32xf32>
    %77 = arith.addf %76, %75 : vector<2x32xf32>
    %78 = arith.divf %76, %77 : vector<2x32xf32>
    %79 = vector.extract_strided_slice %68 {offsets = [0, 32], sizes = [2, 32], strides = [1, 1]} : vector<2x96xf32> to vector<2x32xf32>
    %80 = vector.extract_strided_slice %70 {offsets = [0, 32], sizes = [2, 32], strides = [1, 1]} : vector<2x96xf32> to vector<2x32xf32>
    %81 = arith.addf %79, %80 : vector<2x32xf32>
    %82 = arith.negf %81 : vector<2x32xf32>
    %83 = math.exp %82 : vector<2x32xf32>
    %cst_35 = arith.constant 1.000000e+00 : f32
    %84 = vector.broadcast %cst_35 : f32 to vector<2x32xf32>
    %85 = arith.addf %84, %83 : vector<2x32xf32>
    %86 = arith.divf %84, %85 : vector<2x32xf32>
    %87 = vector.extract_strided_slice %68 {offsets = [0, 64], sizes = [2, 32], strides = [1, 1]} : vector<2x96xf32> to vector<2x32xf32>
    %88 = vector.extract_strided_slice %70 {offsets = [0, 64], sizes = [2, 32], strides = [1, 1]} : vector<2x96xf32> to vector<2x32xf32>
    %89 = vector.broadcast %34 : vector<1x32xf32> to vector<2x32xf32>
    %90 = arith.addf %88, %89 : vector<2x32xf32>
    %91 = arith.mulf %78, %90 : vector<2x32xf32>
    %92 = arith.addf %87, %91 : vector<2x32xf32>
    %93 = math.tanh %92 : vector<2x32xf32>
    %cst_36 = arith.constant 1.000000e+00 : f32
    %94 = vector.broadcast %cst_36 : f32 to vector<2x32xf32>
    %95 = arith.subf %94, %86 : vector<2x32xf32>
    %96 = arith.mulf %95, %93 : vector<2x32xf32>
    %97 = arith.mulf %86, %36 : vector<2x32xf32>
    %98 = arith.addf %96, %97 : vector<2x32xf32>
    %99 = vector.extract_strided_slice %30 {offsets = [2, 0], sizes = [2, 96], strides = [1, 1]} : vector<16x192xf32> to vector<2x96xf32>
    %100 = arith.truncf %67 : vector<2x32xf32> to vector<2x32xbf16>
    %cst_37 = arith.constant dense<0.000000e+00> : vector<2x96xf32>
    %101 = tpu.matmul %100, %31, %cst_37 {dimension_numbers = #tpu.dot_dimension_numbers<[1], [0], [0], [1], [0, 0, 1, 1], [], []>} : vector<2x32xbf16>, vector<32x96xbf16>, vector<2x96xf32> -> vector<2x96xf32>
    %102 = vector.extract_strided_slice %99 {offsets = [0, 0], sizes = [2, 32], strides = [1, 1]} : vector<2x96xf32> to vector<2x32xf32>
    %103 = vector.extract_strided_slice %101 {offsets = [0, 0], sizes = [2, 32], strides = [1, 1]} : vector<2x96xf32> to vector<2x32xf32>
    %104 = arith.addf %102, %103 : vector<2x32xf32>
    %105 = arith.negf %104 : vector<2x32xf32>
    %106 = math.exp %105 : vector<2x32xf32>
    %cst_38 = arith.constant 1.000000e+00 : f32
    %107 = vector.broadcast %cst_38 : f32 to vector<2x32xf32>
    %108 = arith.addf %107, %106 : vector<2x32xf32>
    %109 = arith.divf %107, %108 : vector<2x32xf32>
    %110 = vector.extract_strided_slice %99 {offsets = [0, 32], sizes = [2, 32], strides = [1, 1]} : vector<2x96xf32> to vector<2x32xf32>
    %111 = vector.extract_strided_slice %101 {offsets = [0, 32], sizes = [2, 32], strides = [1, 1]} : vector<2x96xf32> to vector<2x32xf32>
    %112 = arith.addf %110, %111 : vector<2x32xf32>
    %113 = arith.negf %112 : vector<2x32xf32>
    %114 = math.exp %113 : vector<2x32xf32>
    %cst_39 = arith.constant 1.000000e+00 : f32
    %115 = vector.broadcast %cst_39 : f32 to vector<2x32xf32>
    %116 = arith.addf %115, %114 : vector<2x32xf32>
    %117 = arith.divf %115, %116 : vector<2x32xf32>
    %118 = vector.extract_strided_slice %99 {offsets = [0, 64], sizes = [2, 32], strides = [1, 1]} : vector<2x96xf32> to vector<2x32xf32>
    %119 = vector.extract_strided_slice %101 {offsets = [0, 64], sizes = [2, 32], strides = [1, 1]} : vector<2x96xf32> to vector<2x32xf32>
    %120 = vector.broadcast %33 : vector<1x32xf32> to vector<2x32xf32>
    %121 = arith.addf %119, %120 : vector<2x32xf32>
    %122 = arith.mulf %109, %121 : vector<2x32xf32>
    %123 = arith.addf %118, %122 : vector<2x32xf32>
    %124 = math.tanh %123 : vector<2x32xf32>
    %cst_40 = arith.constant 1.000000e+00 : f32
    %125 = vector.broadcast %cst_40 : f32 to vector<2x32xf32>
    %126 = arith.subf %125, %117 : vector<2x32xf32>
    %127 = arith.mulf %126, %124 : vector<2x32xf32>
    %128 = arith.mulf %117, %67 : vector<2x32xf32>
    %129 = arith.addf %127, %128 : vector<2x32xf32>
    %130 = vector.extract_strided_slice %30 {offsets = [12, 96], sizes = [2, 96], strides = [1, 1]} : vector<16x192xf32> to vector<2x96xf32>
    %131 = arith.truncf %98 : vector<2x32xf32> to vector<2x32xbf16>
    %cst_41 = arith.constant dense<0.000000e+00> : vector<2x96xf32>
    %132 = tpu.matmul %131, %32, %cst_41 {dimension_numbers = #tpu.dot_dimension_numbers<[1], [0], [0], [1], [0, 0, 1, 1], [], []>} : vector<2x32xbf16>, vector<32x96xbf16>, vector<2x96xf32> -> vector<2x96xf32>
    %133 = vector.extract_strided_slice %130 {offsets = [0, 0], sizes = [2, 32], strides = [1, 1]} : vector<2x96xf32> to vector<2x32xf32>
    %134 = vector.extract_strided_slice %132 {offsets = [0, 0], sizes = [2, 32], strides = [1, 1]} : vector<2x96xf32> to vector<2x32xf32>
    %135 = arith.addf %133, %134 : vector<2x32xf32>
    %136 = arith.negf %135 : vector<2x32xf32>
    %137 = math.exp %136 : vector<2x32xf32>
    %cst_42 = arith.constant 1.000000e+00 : f32
    %138 = vector.broadcast %cst_42 : f32 to vector<2x32xf32>
    %139 = arith.addf %138, %137 : vector<2x32xf32>
    %140 = arith.divf %138, %139 : vector<2x32xf32>
    %141 = vector.extract_strided_slice %130 {offsets = [0, 32], sizes = [2, 32], strides = [1, 1]} : vector<2x96xf32> to vector<2x32xf32>
    %142 = vector.extract_strided_slice %132 {offsets = [0, 32], sizes = [2, 32], strides = [1, 1]} : vector<2x96xf32> to vector<2x32xf32>
    %143 = arith.addf %141, %142 : vector<2x32xf32>
    %144 = arith.negf %143 : vector<2x32xf32>
    %145 = math.exp %144 : vector<2x32xf32>
    %cst_43 = arith.constant 1.000000e+00 : f32
    %146 = vector.broadcast %cst_43 : f32 to vector<2x32xf32>
    %147 = arith.addf %146, %145 : vector<2x32xf32>
    %148 = arith.divf %146, %147 : vector<2x32xf32>
    %149 = vector.extract_strided_slice %130 {offsets = [0, 64], sizes = [2, 32], strides = [1, 1]} : vector<2x96xf32> to vector<2x32xf32>
    %150 = vector.extract_strided_slice %132 {offsets = [0, 64], sizes = [2, 32], strides = [1, 1]} : vector<2x96xf32> to vector<2x32xf32>
    %151 = vector.broadcast %34 : vector<1x32xf32> to vector<2x32xf32>
    %152 = arith.addf %150, %151 : vector<2x32xf32>
    %153 = arith.mulf %140, %152 : vector<2x32xf32>
    %154 = arith.addf %149, %153 : vector<2x32xf32>
    %155 = math.tanh %154 : vector<2x32xf32>
    %cst_44 = arith.constant 1.000000e+00 : f32
    %156 = vector.broadcast %cst_44 : f32 to vector<2x32xf32>
    %157 = arith.subf %156, %148 : vector<2x32xf32>
    %158 = arith.mulf %157, %155 : vector<2x32xf32>
    %159 = arith.mulf %148, %98 : vector<2x32xf32>
    %160 = arith.addf %158, %159 : vector<2x32xf32>
    %161 = vector.extract_strided_slice %30 {offsets = [4, 0], sizes = [2, 96], strides = [1, 1]} : vector<16x192xf32> to vector<2x96xf32>
    %162 = arith.truncf %129 : vector<2x32xf32> to vector<2x32xbf16>
    %cst_45 = arith.constant dense<0.000000e+00> : vector<2x96xf32>
    %163 = tpu.matmul %162, %31, %cst_45 {dimension_numbers = #tpu.dot_dimension_numbers<[1], [0], [0], [1], [0, 0, 1, 1], [], []>} : vector<2x32xbf16>, vector<32x96xbf16>, vector<2x96xf32> -> vector<2x96xf32>
    %164 = vector.extract_strided_slice %161 {offsets = [0, 0], sizes = [2, 32], strides = [1, 1]} : vector<2x96xf32> to vector<2x32xf32>
    %165 = vector.extract_strided_slice %163 {offsets = [0, 0], sizes = [2, 32], strides = [1, 1]} : vector<2x96xf32> to vector<2x32xf32>
    %166 = arith.addf %164, %165 : vector<2x32xf32>
    %167 = arith.negf %166 : vector<2x32xf32>
    %168 = math.exp %167 : vector<2x32xf32>
    %cst_46 = arith.constant 1.000000e+00 : f32
    %169 = vector.broadcast %cst_46 : f32 to vector<2x32xf32>
    %170 = arith.addf %169, %168 : vector<2x32xf32>
    %171 = arith.divf %169, %170 : vector<2x32xf32>
    %172 = vector.extract_strided_slice %161 {offsets = [0, 32], sizes = [2, 32], strides = [1, 1]} : vector<2x96xf32> to vector<2x32xf32>
    %173 = vector.extract_strided_slice %163 {offsets = [0, 32], sizes = [2, 32], strides = [1, 1]} : vector<2x96xf32> to vector<2x32xf32>
    %174 = arith.addf %172, %173 : vector<2x32xf32>
    %175 = arith.negf %174 : vector<2x32xf32>
    %176 = math.exp %175 : vector<2x32xf32>
    %cst_47 = arith.constant 1.000000e+00 : f32
    %177 = vector.broadcast %cst_47 : f32 to vector<2x32xf32>
    %178 = arith.addf %177, %176 : vector<2x32xf32>
    %179 = arith.divf %177, %178 : vector<2x32xf32>
    %180 = vector.extract_strided_slice %161 {offsets = [0, 64], sizes = [2, 32], strides = [1, 1]} : vector<2x96xf32> to vector<2x32xf32>
    %181 = vector.extract_strided_slice %163 {offsets = [0, 64], sizes = [2, 32], strides = [1, 1]} : vector<2x96xf32> to vector<2x32xf32>
    %182 = vector.broadcast %33 : vector<1x32xf32> to vector<2x32xf32>
    %183 = arith.addf %181, %182 : vector<2x32xf32>
    %184 = arith.mulf %171, %183 : vector<2x32xf32>
    %185 = arith.addf %180, %184 : vector<2x32xf32>
    %186 = math.tanh %185 : vector<2x32xf32>
    %cst_48 = arith.constant 1.000000e+00 : f32
    %187 = vector.broadcast %cst_48 : f32 to vector<2x32xf32>
    %188 = arith.subf %187, %179 : vector<2x32xf32>
    %189 = arith.mulf %188, %186 : vector<2x32xf32>
    %190 = arith.mulf %179, %129 : vector<2x32xf32>
    %191 = arith.addf %189, %190 : vector<2x32xf32>
    %192 = vector.extract_strided_slice %30 {offsets = [10, 96], sizes = [2, 96], strides = [1, 1]} : vector<16x192xf32> to vector<2x96xf32>
    %193 = arith.truncf %160 : vector<2x32xf32> to vector<2x32xbf16>
    %cst_49 = arith.constant dense<0.000000e+00> : vector<2x96xf32>
    %194 = tpu.matmul %193, %32, %cst_49 {dimension_numbers = #tpu.dot_dimension_numbers<[1], [0], [0], [1], [0, 0, 1, 1], [], []>} : vector<2x32xbf16>, vector<32x96xbf16>, vector<2x96xf32> -> vector<2x96xf32>
    %195 = vector.extract_strided_slice %192 {offsets = [0, 0], sizes = [2, 32], strides = [1, 1]} : vector<2x96xf32> to vector<2x32xf32>
    %196 = vector.extract_strided_slice %194 {offsets = [0, 0], sizes = [2, 32], strides = [1, 1]} : vector<2x96xf32> to vector<2x32xf32>
    %197 = arith.addf %195, %196 : vector<2x32xf32>
    %198 = arith.negf %197 : vector<2x32xf32>
    %199 = math.exp %198 : vector<2x32xf32>
    %cst_50 = arith.constant 1.000000e+00 : f32
    %200 = vector.broadcast %cst_50 : f32 to vector<2x32xf32>
    %201 = arith.addf %200, %199 : vector<2x32xf32>
    %202 = arith.divf %200, %201 : vector<2x32xf32>
    %203 = vector.extract_strided_slice %192 {offsets = [0, 32], sizes = [2, 32], strides = [1, 1]} : vector<2x96xf32> to vector<2x32xf32>
    %204 = vector.extract_strided_slice %194 {offsets = [0, 32], sizes = [2, 32], strides = [1, 1]} : vector<2x96xf32> to vector<2x32xf32>
    %205 = arith.addf %203, %204 : vector<2x32xf32>
    %206 = arith.negf %205 : vector<2x32xf32>
    %207 = math.exp %206 : vector<2x32xf32>
    %cst_51 = arith.constant 1.000000e+00 : f32
    %208 = vector.broadcast %cst_51 : f32 to vector<2x32xf32>
    %209 = arith.addf %208, %207 : vector<2x32xf32>
    %210 = arith.divf %208, %209 : vector<2x32xf32>
    %211 = vector.extract_strided_slice %192 {offsets = [0, 64], sizes = [2, 32], strides = [1, 1]} : vector<2x96xf32> to vector<2x32xf32>
    %212 = vector.extract_strided_slice %194 {offsets = [0, 64], sizes = [2, 32], strides = [1, 1]} : vector<2x96xf32> to vector<2x32xf32>
    %213 = vector.broadcast %34 : vector<1x32xf32> to vector<2x32xf32>
    %214 = arith.addf %212, %213 : vector<2x32xf32>
    %215 = arith.mulf %202, %214 : vector<2x32xf32>
    %216 = arith.addf %211, %215 : vector<2x32xf32>
    %217 = math.tanh %216 : vector<2x32xf32>
    %cst_52 = arith.constant 1.000000e+00 : f32
    %218 = vector.broadcast %cst_52 : f32 to vector<2x32xf32>
    %219 = arith.subf %218, %210 : vector<2x32xf32>
    %220 = arith.mulf %219, %217 : vector<2x32xf32>
    %221 = arith.mulf %210, %160 : vector<2x32xf32>
    %222 = arith.addf %220, %221 : vector<2x32xf32>
    %223 = vector.extract_strided_slice %30 {offsets = [6, 0], sizes = [2, 96], strides = [1, 1]} : vector<16x192xf32> to vector<2x96xf32>
    %224 = arith.truncf %191 : vector<2x32xf32> to vector<2x32xbf16>
    %cst_53 = arith.constant dense<0.000000e+00> : vector<2x96xf32>
    %225 = tpu.matmul %224, %31, %cst_53 {dimension_numbers = #tpu.dot_dimension_numbers<[1], [0], [0], [1], [0, 0, 1, 1], [], []>} : vector<2x32xbf16>, vector<32x96xbf16>, vector<2x96xf32> -> vector<2x96xf32>
    %226 = vector.extract_strided_slice %223 {offsets = [0, 0], sizes = [2, 32], strides = [1, 1]} : vector<2x96xf32> to vector<2x32xf32>
    %227 = vector.extract_strided_slice %225 {offsets = [0, 0], sizes = [2, 32], strides = [1, 1]} : vector<2x96xf32> to vector<2x32xf32>
    %228 = arith.addf %226, %227 : vector<2x32xf32>
    %229 = arith.negf %228 : vector<2x32xf32>
    %230 = math.exp %229 : vector<2x32xf32>
    %cst_54 = arith.constant 1.000000e+00 : f32
    %231 = vector.broadcast %cst_54 : f32 to vector<2x32xf32>
    %232 = arith.addf %231, %230 : vector<2x32xf32>
    %233 = arith.divf %231, %232 : vector<2x32xf32>
    %234 = vector.extract_strided_slice %223 {offsets = [0, 32], sizes = [2, 32], strides = [1, 1]} : vector<2x96xf32> to vector<2x32xf32>
    %235 = vector.extract_strided_slice %225 {offsets = [0, 32], sizes = [2, 32], strides = [1, 1]} : vector<2x96xf32> to vector<2x32xf32>
    %236 = arith.addf %234, %235 : vector<2x32xf32>
    %237 = arith.negf %236 : vector<2x32xf32>
    %238 = math.exp %237 : vector<2x32xf32>
    %cst_55 = arith.constant 1.000000e+00 : f32
    %239 = vector.broadcast %cst_55 : f32 to vector<2x32xf32>
    %240 = arith.addf %239, %238 : vector<2x32xf32>
    %241 = arith.divf %239, %240 : vector<2x32xf32>
    %242 = vector.extract_strided_slice %223 {offsets = [0, 64], sizes = [2, 32], strides = [1, 1]} : vector<2x96xf32> to vector<2x32xf32>
    %243 = vector.extract_strided_slice %225 {offsets = [0, 64], sizes = [2, 32], strides = [1, 1]} : vector<2x96xf32> to vector<2x32xf32>
    %244 = vector.broadcast %33 : vector<1x32xf32> to vector<2x32xf32>
    %245 = arith.addf %243, %244 : vector<2x32xf32>
    %246 = arith.mulf %233, %245 : vector<2x32xf32>
    %247 = arith.addf %242, %246 : vector<2x32xf32>
    %248 = math.tanh %247 : vector<2x32xf32>
    %cst_56 = arith.constant 1.000000e+00 : f32
    %249 = vector.broadcast %cst_56 : f32 to vector<2x32xf32>
    %250 = arith.subf %249, %241 : vector<2x32xf32>
    %251 = arith.mulf %250, %248 : vector<2x32xf32>
    %252 = arith.mulf %241, %191 : vector<2x32xf32>
    %253 = arith.addf %251, %252 : vector<2x32xf32>
    %254 = vector.extract_strided_slice %30 {offsets = [8, 96], sizes = [2, 96], strides = [1, 1]} : vector<16x192xf32> to vector<2x96xf32>
    %255 = arith.truncf %222 : vector<2x32xf32> to vector<2x32xbf16>
    %cst_57 = arith.constant dense<0.000000e+00> : vector<2x96xf32>
    %256 = tpu.matmul %255, %32, %cst_57 {dimension_numbers = #tpu.dot_dimension_numbers<[1], [0], [0], [1], [0, 0, 1, 1], [], []>} : vector<2x32xbf16>, vector<32x96xbf16>, vector<2x96xf32> -> vector<2x96xf32>
    %257 = vector.extract_strided_slice %254 {offsets = [0, 0], sizes = [2, 32], strides = [1, 1]} : vector<2x96xf32> to vector<2x32xf32>
    %258 = vector.extract_strided_slice %256 {offsets = [0, 0], sizes = [2, 32], strides = [1, 1]} : vector<2x96xf32> to vector<2x32xf32>
    %259 = arith.addf %257, %258 : vector<2x32xf32>
    %260 = arith.negf %259 : vector<2x32xf32>
    %261 = math.exp %260 : vector<2x32xf32>
    %cst_58 = arith.constant 1.000000e+00 : f32
    %262 = vector.broadcast %cst_58 : f32 to vector<2x32xf32>
    %263 = arith.addf %262, %261 : vector<2x32xf32>
    %264 = arith.divf %262, %263 : vector<2x32xf32>
    %265 = vector.extract_strided_slice %254 {offsets = [0, 32], sizes = [2, 32], strides = [1, 1]} : vector<2x96xf32> to vector<2x32xf32>
    %266 = vector.extract_strided_slice %256 {offsets = [0, 32], sizes = [2, 32], strides = [1, 1]} : vector<2x96xf32> to vector<2x32xf32>
    %267 = arith.addf %265, %266 : vector<2x32xf32>
    %268 = arith.negf %267 : vector<2x32xf32>
    %269 = math.exp %268 : vector<2x32xf32>
    %cst_59 = arith.constant 1.000000e+00 : f32
    %270 = vector.broadcast %cst_59 : f32 to vector<2x32xf32>
    %271 = arith.addf %270, %269 : vector<2x32xf32>
    %272 = arith.divf %270, %271 : vector<2x32xf32>
    %273 = vector.extract_strided_slice %254 {offsets = [0, 64], sizes = [2, 32], strides = [1, 1]} : vector<2x96xf32> to vector<2x32xf32>
    %274 = vector.extract_strided_slice %256 {offsets = [0, 64], sizes = [2, 32], strides = [1, 1]} : vector<2x96xf32> to vector<2x32xf32>
    %275 = vector.broadcast %34 : vector<1x32xf32> to vector<2x32xf32>
    %276 = arith.addf %274, %275 : vector<2x32xf32>
    %277 = arith.mulf %264, %276 : vector<2x32xf32>
    %278 = arith.addf %273, %277 : vector<2x32xf32>
    %279 = math.tanh %278 : vector<2x32xf32>
    %cst_60 = arith.constant 1.000000e+00 : f32
    %280 = vector.broadcast %cst_60 : f32 to vector<2x32xf32>
    %281 = arith.subf %280, %272 : vector<2x32xf32>
    %282 = arith.mulf %281, %279 : vector<2x32xf32>
    %283 = arith.mulf %272, %222 : vector<2x32xf32>
    %284 = arith.addf %282, %283 : vector<2x32xf32>
    %285 = vector.extract_strided_slice %30 {offsets = [8, 0], sizes = [2, 96], strides = [1, 1]} : vector<16x192xf32> to vector<2x96xf32>
    %286 = arith.truncf %253 : vector<2x32xf32> to vector<2x32xbf16>
    %cst_61 = arith.constant dense<0.000000e+00> : vector<2x96xf32>
    %287 = tpu.matmul %286, %31, %cst_61 {dimension_numbers = #tpu.dot_dimension_numbers<[1], [0], [0], [1], [0, 0, 1, 1], [], []>} : vector<2x32xbf16>, vector<32x96xbf16>, vector<2x96xf32> -> vector<2x96xf32>
    %288 = vector.extract_strided_slice %285 {offsets = [0, 0], sizes = [2, 32], strides = [1, 1]} : vector<2x96xf32> to vector<2x32xf32>
    %289 = vector.extract_strided_slice %287 {offsets = [0, 0], sizes = [2, 32], strides = [1, 1]} : vector<2x96xf32> to vector<2x32xf32>
    %290 = arith.addf %288, %289 : vector<2x32xf32>
    %291 = arith.negf %290 : vector<2x32xf32>
    %292 = math.exp %291 : vector<2x32xf32>
    %cst_62 = arith.constant 1.000000e+00 : f32
    %293 = vector.broadcast %cst_62 : f32 to vector<2x32xf32>
    %294 = arith.addf %293, %292 : vector<2x32xf32>
    %295 = arith.divf %293, %294 : vector<2x32xf32>
    %296 = vector.extract_strided_slice %285 {offsets = [0, 32], sizes = [2, 32], strides = [1, 1]} : vector<2x96xf32> to vector<2x32xf32>
    %297 = vector.extract_strided_slice %287 {offsets = [0, 32], sizes = [2, 32], strides = [1, 1]} : vector<2x96xf32> to vector<2x32xf32>
    %298 = arith.addf %296, %297 : vector<2x32xf32>
    %299 = arith.negf %298 : vector<2x32xf32>
    %300 = math.exp %299 : vector<2x32xf32>
    %cst_63 = arith.constant 1.000000e+00 : f32
    %301 = vector.broadcast %cst_63 : f32 to vector<2x32xf32>
    %302 = arith.addf %301, %300 : vector<2x32xf32>
    %303 = arith.divf %301, %302 : vector<2x32xf32>
    %304 = vector.extract_strided_slice %285 {offsets = [0, 64], sizes = [2, 32], strides = [1, 1]} : vector<2x96xf32> to vector<2x32xf32>
    %305 = vector.extract_strided_slice %287 {offsets = [0, 64], sizes = [2, 32], strides = [1, 1]} : vector<2x96xf32> to vector<2x32xf32>
    %306 = vector.broadcast %33 : vector<1x32xf32> to vector<2x32xf32>
    %307 = arith.addf %305, %306 : vector<2x32xf32>
    %308 = arith.mulf %295, %307 : vector<2x32xf32>
    %309 = arith.addf %304, %308 : vector<2x32xf32>
    %310 = math.tanh %309 : vector<2x32xf32>
    %cst_64 = arith.constant 1.000000e+00 : f32
    %311 = vector.broadcast %cst_64 : f32 to vector<2x32xf32>
    %312 = arith.subf %311, %303 : vector<2x32xf32>
    %313 = arith.mulf %312, %310 : vector<2x32xf32>
    %314 = arith.mulf %303, %253 : vector<2x32xf32>
    %315 = arith.addf %313, %314 : vector<2x32xf32>
    %316 = vector.extract_strided_slice %30 {offsets = [6, 96], sizes = [2, 96], strides = [1, 1]} : vector<16x192xf32> to vector<2x96xf32>
    %317 = arith.truncf %284 : vector<2x32xf32> to vector<2x32xbf16>
    %cst_65 = arith.constant dense<0.000000e+00> : vector<2x96xf32>
    %318 = tpu.matmul %317, %32, %cst_65 {dimension_numbers = #tpu.dot_dimension_numbers<[1], [0], [0], [1], [0, 0, 1, 1], [], []>} : vector<2x32xbf16>, vector<32x96xbf16>, vector<2x96xf32> -> vector<2x96xf32>
    %319 = vector.extract_strided_slice %316 {offsets = [0, 0], sizes = [2, 32], strides = [1, 1]} : vector<2x96xf32> to vector<2x32xf32>
    %320 = vector.extract_strided_slice %318 {offsets = [0, 0], sizes = [2, 32], strides = [1, 1]} : vector<2x96xf32> to vector<2x32xf32>
    %321 = arith.addf %319, %320 : vector<2x32xf32>
    %322 = arith.negf %321 : vector<2x32xf32>
    %323 = math.exp %322 : vector<2x32xf32>
    %cst_66 = arith.constant 1.000000e+00 : f32
    %324 = vector.broadcast %cst_66 : f32 to vector<2x32xf32>
    %325 = arith.addf %324, %323 : vector<2x32xf32>
    %326 = arith.divf %324, %325 : vector<2x32xf32>
    %327 = vector.extract_strided_slice %316 {offsets = [0, 32], sizes = [2, 32], strides = [1, 1]} : vector<2x96xf32> to vector<2x32xf32>
    %328 = vector.extract_strided_slice %318 {offsets = [0, 32], sizes = [2, 32], strides = [1, 1]} : vector<2x96xf32> to vector<2x32xf32>
    %329 = arith.addf %327, %328 : vector<2x32xf32>
    %330 = arith.negf %329 : vector<2x32xf32>
    %331 = math.exp %330 : vector<2x32xf32>
    %cst_67 = arith.constant 1.000000e+00 : f32
    %332 = vector.broadcast %cst_67 : f32 to vector<2x32xf32>
    %333 = arith.addf %332, %331 : vector<2x32xf32>
    %334 = arith.divf %332, %333 : vector<2x32xf32>
    %335 = vector.extract_strided_slice %316 {offsets = [0, 64], sizes = [2, 32], strides = [1, 1]} : vector<2x96xf32> to vector<2x32xf32>
    %336 = vector.extract_strided_slice %318 {offsets = [0, 64], sizes = [2, 32], strides = [1, 1]} : vector<2x96xf32> to vector<2x32xf32>
    %337 = vector.broadcast %34 : vector<1x32xf32> to vector<2x32xf32>
    %338 = arith.addf %336, %337 : vector<2x32xf32>
    %339 = arith.mulf %326, %338 : vector<2x32xf32>
    %340 = arith.addf %335, %339 : vector<2x32xf32>
    %341 = math.tanh %340 : vector<2x32xf32>
    %cst_68 = arith.constant 1.000000e+00 : f32
    %342 = vector.broadcast %cst_68 : f32 to vector<2x32xf32>
    %343 = arith.subf %342, %334 : vector<2x32xf32>
    %344 = arith.mulf %343, %341 : vector<2x32xf32>
    %345 = arith.mulf %334, %284 : vector<2x32xf32>
    %346 = arith.addf %344, %345 : vector<2x32xf32>
    %347 = vector.extract_strided_slice %30 {offsets = [10, 0], sizes = [2, 96], strides = [1, 1]} : vector<16x192xf32> to vector<2x96xf32>
    %348 = arith.truncf %315 : vector<2x32xf32> to vector<2x32xbf16>
    %cst_69 = arith.constant dense<0.000000e+00> : vector<2x96xf32>
    %349 = tpu.matmul %348, %31, %cst_69 {dimension_numbers = #tpu.dot_dimension_numbers<[1], [0], [0], [1], [0, 0, 1, 1], [], []>} : vector<2x32xbf16>, vector<32x96xbf16>, vector<2x96xf32> -> vector<2x96xf32>
    %350 = vector.extract_strided_slice %347 {offsets = [0, 0], sizes = [2, 32], strides = [1, 1]} : vector<2x96xf32> to vector<2x32xf32>
    %351 = vector.extract_strided_slice %349 {offsets = [0, 0], sizes = [2, 32], strides = [1, 1]} : vector<2x96xf32> to vector<2x32xf32>
    %352 = arith.addf %350, %351 : vector<2x32xf32>
    %353 = arith.negf %352 : vector<2x32xf32>
    %354 = math.exp %353 : vector<2x32xf32>
    %cst_70 = arith.constant 1.000000e+00 : f32
    %355 = vector.broadcast %cst_70 : f32 to vector<2x32xf32>
    %356 = arith.addf %355, %354 : vector<2x32xf32>
    %357 = arith.divf %355, %356 : vector<2x32xf32>
    %358 = vector.extract_strided_slice %347 {offsets = [0, 32], sizes = [2, 32], strides = [1, 1]} : vector<2x96xf32> to vector<2x32xf32>
    %359 = vector.extract_strided_slice %349 {offsets = [0, 32], sizes = [2, 32], strides = [1, 1]} : vector<2x96xf32> to vector<2x32xf32>
    %360 = arith.addf %358, %359 : vector<2x32xf32>
    %361 = arith.negf %360 : vector<2x32xf32>
    %362 = math.exp %361 : vector<2x32xf32>
    %cst_71 = arith.constant 1.000000e+00 : f32
    %363 = vector.broadcast %cst_71 : f32 to vector<2x32xf32>
    %364 = arith.addf %363, %362 : vector<2x32xf32>
    %365 = arith.divf %363, %364 : vector<2x32xf32>
    %366 = vector.extract_strided_slice %347 {offsets = [0, 64], sizes = [2, 32], strides = [1, 1]} : vector<2x96xf32> to vector<2x32xf32>
    %367 = vector.extract_strided_slice %349 {offsets = [0, 64], sizes = [2, 32], strides = [1, 1]} : vector<2x96xf32> to vector<2x32xf32>
    %368 = vector.broadcast %33 : vector<1x32xf32> to vector<2x32xf32>
    %369 = arith.addf %367, %368 : vector<2x32xf32>
    %370 = arith.mulf %357, %369 : vector<2x32xf32>
    %371 = arith.addf %366, %370 : vector<2x32xf32>
    %372 = math.tanh %371 : vector<2x32xf32>
    %cst_72 = arith.constant 1.000000e+00 : f32
    %373 = vector.broadcast %cst_72 : f32 to vector<2x32xf32>
    %374 = arith.subf %373, %365 : vector<2x32xf32>
    %375 = arith.mulf %374, %372 : vector<2x32xf32>
    %376 = arith.mulf %365, %315 : vector<2x32xf32>
    %377 = arith.addf %375, %376 : vector<2x32xf32>
    %378 = vector.extract_strided_slice %30 {offsets = [4, 96], sizes = [2, 96], strides = [1, 1]} : vector<16x192xf32> to vector<2x96xf32>
    %379 = arith.truncf %346 : vector<2x32xf32> to vector<2x32xbf16>
    %cst_73 = arith.constant dense<0.000000e+00> : vector<2x96xf32>
    %380 = tpu.matmul %379, %32, %cst_73 {dimension_numbers = #tpu.dot_dimension_numbers<[1], [0], [0], [1], [0, 0, 1, 1], [], []>} : vector<2x32xbf16>, vector<32x96xbf16>, vector<2x96xf32> -> vector<2x96xf32>
    %381 = vector.extract_strided_slice %378 {offsets = [0, 0], sizes = [2, 32], strides = [1, 1]} : vector<2x96xf32> to vector<2x32xf32>
    %382 = vector.extract_strided_slice %380 {offsets = [0, 0], sizes = [2, 32], strides = [1, 1]} : vector<2x96xf32> to vector<2x32xf32>
    %383 = arith.addf %381, %382 : vector<2x32xf32>
    %384 = arith.negf %383 : vector<2x32xf32>
    %385 = math.exp %384 : vector<2x32xf32>
    %cst_74 = arith.constant 1.000000e+00 : f32
    %386 = vector.broadcast %cst_74 : f32 to vector<2x32xf32>
    %387 = arith.addf %386, %385 : vector<2x32xf32>
    %388 = arith.divf %386, %387 : vector<2x32xf32>
    %389 = vector.extract_strided_slice %378 {offsets = [0, 32], sizes = [2, 32], strides = [1, 1]} : vector<2x96xf32> to vector<2x32xf32>
    %390 = vector.extract_strided_slice %380 {offsets = [0, 32], sizes = [2, 32], strides = [1, 1]} : vector<2x96xf32> to vector<2x32xf32>
    %391 = arith.addf %389, %390 : vector<2x32xf32>
    %392 = arith.negf %391 : vector<2x32xf32>
    %393 = math.exp %392 : vector<2x32xf32>
    %cst_75 = arith.constant 1.000000e+00 : f32
    %394 = vector.broadcast %cst_75 : f32 to vector<2x32xf32>
    %395 = arith.addf %394, %393 : vector<2x32xf32>
    %396 = arith.divf %394, %395 : vector<2x32xf32>
    %397 = vector.extract_strided_slice %378 {offsets = [0, 64], sizes = [2, 32], strides = [1, 1]} : vector<2x96xf32> to vector<2x32xf32>
    %398 = vector.extract_strided_slice %380 {offsets = [0, 64], sizes = [2, 32], strides = [1, 1]} : vector<2x96xf32> to vector<2x32xf32>
    %399 = vector.broadcast %34 : vector<1x32xf32> to vector<2x32xf32>
    %400 = arith.addf %398, %399 : vector<2x32xf32>
    %401 = arith.mulf %388, %400 : vector<2x32xf32>
    %402 = arith.addf %397, %401 : vector<2x32xf32>
    %403 = math.tanh %402 : vector<2x32xf32>
    %cst_76 = arith.constant 1.000000e+00 : f32
    %404 = vector.broadcast %cst_76 : f32 to vector<2x32xf32>
    %405 = arith.subf %404, %396 : vector<2x32xf32>
    %406 = arith.mulf %405, %403 : vector<2x32xf32>
    %407 = arith.mulf %396, %346 : vector<2x32xf32>
    %408 = arith.addf %406, %407 : vector<2x32xf32>
    %409 = vector.extract_strided_slice %30 {offsets = [12, 0], sizes = [2, 96], strides = [1, 1]} : vector<16x192xf32> to vector<2x96xf32>
    %410 = arith.truncf %377 : vector<2x32xf32> to vector<2x32xbf16>
    %cst_77 = arith.constant dense<0.000000e+00> : vector<2x96xf32>
    %411 = tpu.matmul %410, %31, %cst_77 {dimension_numbers = #tpu.dot_dimension_numbers<[1], [0], [0], [1], [0, 0, 1, 1], [], []>} : vector<2x32xbf16>, vector<32x96xbf16>, vector<2x96xf32> -> vector<2x96xf32>
    %412 = vector.extract_strided_slice %409 {offsets = [0, 0], sizes = [2, 32], strides = [1, 1]} : vector<2x96xf32> to vector<2x32xf32>
    %413 = vector.extract_strided_slice %411 {offsets = [0, 0], sizes = [2, 32], strides = [1, 1]} : vector<2x96xf32> to vector<2x32xf32>
    %414 = arith.addf %412, %413 : vector<2x32xf32>
    %415 = arith.negf %414 : vector<2x32xf32>
    %416 = math.exp %415 : vector<2x32xf32>
    %cst_78 = arith.constant 1.000000e+00 : f32
    %417 = vector.broadcast %cst_78 : f32 to vector<2x32xf32>
    %418 = arith.addf %417, %416 : vector<2x32xf32>
    %419 = arith.divf %417, %418 : vector<2x32xf32>
    %420 = vector.extract_strided_slice %409 {offsets = [0, 32], sizes = [2, 32], strides = [1, 1]} : vector<2x96xf32> to vector<2x32xf32>
    %421 = vector.extract_strided_slice %411 {offsets = [0, 32], sizes = [2, 32], strides = [1, 1]} : vector<2x96xf32> to vector<2x32xf32>
    %422 = arith.addf %420, %421 : vector<2x32xf32>
    %423 = arith.negf %422 : vector<2x32xf32>
    %424 = math.exp %423 : vector<2x32xf32>
    %cst_79 = arith.constant 1.000000e+00 : f32
    %425 = vector.broadcast %cst_79 : f32 to vector<2x32xf32>
    %426 = arith.addf %425, %424 : vector<2x32xf32>
    %427 = arith.divf %425, %426 : vector<2x32xf32>
    %428 = vector.extract_strided_slice %409 {offsets = [0, 64], sizes = [2, 32], strides = [1, 1]} : vector<2x96xf32> to vector<2x32xf32>
    %429 = vector.extract_strided_slice %411 {offsets = [0, 64], sizes = [2, 32], strides = [1, 1]} : vector<2x96xf32> to vector<2x32xf32>
    %430 = vector.broadcast %33 : vector<1x32xf32> to vector<2x32xf32>
    %431 = arith.addf %429, %430 : vector<2x32xf32>
    %432 = arith.mulf %419, %431 : vector<2x32xf32>
    %433 = arith.addf %428, %432 : vector<2x32xf32>
    %434 = math.tanh %433 : vector<2x32xf32>
    %cst_80 = arith.constant 1.000000e+00 : f32
    %435 = vector.broadcast %cst_80 : f32 to vector<2x32xf32>
    %436 = arith.subf %435, %427 : vector<2x32xf32>
    %437 = arith.mulf %436, %434 : vector<2x32xf32>
    %438 = arith.mulf %427, %377 : vector<2x32xf32>
    %439 = arith.addf %437, %438 : vector<2x32xf32>
    %440 = vector.extract_strided_slice %30 {offsets = [2, 96], sizes = [2, 96], strides = [1, 1]} : vector<16x192xf32> to vector<2x96xf32>
    %441 = arith.truncf %408 : vector<2x32xf32> to vector<2x32xbf16>
    %cst_81 = arith.constant dense<0.000000e+00> : vector<2x96xf32>
    %442 = tpu.matmul %441, %32, %cst_81 {dimension_numbers = #tpu.dot_dimension_numbers<[1], [0], [0], [1], [0, 0, 1, 1], [], []>} : vector<2x32xbf16>, vector<32x96xbf16>, vector<2x96xf32> -> vector<2x96xf32>
    %443 = vector.extract_strided_slice %440 {offsets = [0, 0], sizes = [2, 32], strides = [1, 1]} : vector<2x96xf32> to vector<2x32xf32>
    %444 = vector.extract_strided_slice %442 {offsets = [0, 0], sizes = [2, 32], strides = [1, 1]} : vector<2x96xf32> to vector<2x32xf32>
    %445 = arith.addf %443, %444 : vector<2x32xf32>
    %446 = arith.negf %445 : vector<2x32xf32>
    %447 = math.exp %446 : vector<2x32xf32>
    %cst_82 = arith.constant 1.000000e+00 : f32
    %448 = vector.broadcast %cst_82 : f32 to vector<2x32xf32>
    %449 = arith.addf %448, %447 : vector<2x32xf32>
    %450 = arith.divf %448, %449 : vector<2x32xf32>
    %451 = vector.extract_strided_slice %440 {offsets = [0, 32], sizes = [2, 32], strides = [1, 1]} : vector<2x96xf32> to vector<2x32xf32>
    %452 = vector.extract_strided_slice %442 {offsets = [0, 32], sizes = [2, 32], strides = [1, 1]} : vector<2x96xf32> to vector<2x32xf32>
    %453 = arith.addf %451, %452 : vector<2x32xf32>
    %454 = arith.negf %453 : vector<2x32xf32>
    %455 = math.exp %454 : vector<2x32xf32>
    %cst_83 = arith.constant 1.000000e+00 : f32
    %456 = vector.broadcast %cst_83 : f32 to vector<2x32xf32>
    %457 = arith.addf %456, %455 : vector<2x32xf32>
    %458 = arith.divf %456, %457 : vector<2x32xf32>
    %459 = vector.extract_strided_slice %440 {offsets = [0, 64], sizes = [2, 32], strides = [1, 1]} : vector<2x96xf32> to vector<2x32xf32>
    %460 = vector.extract_strided_slice %442 {offsets = [0, 64], sizes = [2, 32], strides = [1, 1]} : vector<2x96xf32> to vector<2x32xf32>
    %461 = vector.broadcast %34 : vector<1x32xf32> to vector<2x32xf32>
    %462 = arith.addf %460, %461 : vector<2x32xf32>
    %463 = arith.mulf %450, %462 : vector<2x32xf32>
    %464 = arith.addf %459, %463 : vector<2x32xf32>
    %465 = math.tanh %464 : vector<2x32xf32>
    %cst_84 = arith.constant 1.000000e+00 : f32
    %466 = vector.broadcast %cst_84 : f32 to vector<2x32xf32>
    %467 = arith.subf %466, %458 : vector<2x32xf32>
    %468 = arith.mulf %467, %465 : vector<2x32xf32>
    %469 = arith.mulf %458, %408 : vector<2x32xf32>
    %470 = arith.addf %468, %469 : vector<2x32xf32>
    %471 = vector.extract_strided_slice %30 {offsets = [14, 0], sizes = [2, 96], strides = [1, 1]} : vector<16x192xf32> to vector<2x96xf32>
    %472 = arith.truncf %439 : vector<2x32xf32> to vector<2x32xbf16>
    %cst_85 = arith.constant dense<0.000000e+00> : vector<2x96xf32>
    %473 = tpu.matmul %472, %31, %cst_85 {dimension_numbers = #tpu.dot_dimension_numbers<[1], [0], [0], [1], [0, 0, 1, 1], [], []>} : vector<2x32xbf16>, vector<32x96xbf16>, vector<2x96xf32> -> vector<2x96xf32>
    %474 = vector.extract_strided_slice %471 {offsets = [0, 0], sizes = [2, 32], strides = [1, 1]} : vector<2x96xf32> to vector<2x32xf32>
    %475 = vector.extract_strided_slice %473 {offsets = [0, 0], sizes = [2, 32], strides = [1, 1]} : vector<2x96xf32> to vector<2x32xf32>
    %476 = arith.addf %474, %475 : vector<2x32xf32>
    %477 = arith.negf %476 : vector<2x32xf32>
    %478 = math.exp %477 : vector<2x32xf32>
    %cst_86 = arith.constant 1.000000e+00 : f32
    %479 = vector.broadcast %cst_86 : f32 to vector<2x32xf32>
    %480 = arith.addf %479, %478 : vector<2x32xf32>
    %481 = arith.divf %479, %480 : vector<2x32xf32>
    %482 = vector.extract_strided_slice %471 {offsets = [0, 32], sizes = [2, 32], strides = [1, 1]} : vector<2x96xf32> to vector<2x32xf32>
    %483 = vector.extract_strided_slice %473 {offsets = [0, 32], sizes = [2, 32], strides = [1, 1]} : vector<2x96xf32> to vector<2x32xf32>
    %484 = arith.addf %482, %483 : vector<2x32xf32>
    %485 = arith.negf %484 : vector<2x32xf32>
    %486 = math.exp %485 : vector<2x32xf32>
    %cst_87 = arith.constant 1.000000e+00 : f32
    %487 = vector.broadcast %cst_87 : f32 to vector<2x32xf32>
    %488 = arith.addf %487, %486 : vector<2x32xf32>
    %489 = arith.divf %487, %488 : vector<2x32xf32>
    %490 = vector.extract_strided_slice %471 {offsets = [0, 64], sizes = [2, 32], strides = [1, 1]} : vector<2x96xf32> to vector<2x32xf32>
    %491 = vector.extract_strided_slice %473 {offsets = [0, 64], sizes = [2, 32], strides = [1, 1]} : vector<2x96xf32> to vector<2x32xf32>
    %492 = vector.broadcast %33 : vector<1x32xf32> to vector<2x32xf32>
    %493 = arith.addf %491, %492 : vector<2x32xf32>
    %494 = arith.mulf %481, %493 : vector<2x32xf32>
    %495 = arith.addf %490, %494 : vector<2x32xf32>
    %496 = math.tanh %495 : vector<2x32xf32>
    %cst_88 = arith.constant 1.000000e+00 : f32
    %497 = vector.broadcast %cst_88 : f32 to vector<2x32xf32>
    %498 = arith.subf %497, %489 : vector<2x32xf32>
    %499 = arith.mulf %498, %496 : vector<2x32xf32>
    %500 = arith.mulf %489, %439 : vector<2x32xf32>
    %501 = arith.addf %499, %500 : vector<2x32xf32>
    %502 = vector.extract_strided_slice %30 {offsets = [0, 96], sizes = [2, 96], strides = [1, 1]} : vector<16x192xf32> to vector<2x96xf32>
    %503 = arith.truncf %470 : vector<2x32xf32> to vector<2x32xbf16>
    %cst_89 = arith.constant dense<0.000000e+00> : vector<2x96xf32>
    %504 = tpu.matmul %503, %32, %cst_89 {dimension_numbers = #tpu.dot_dimension_numbers<[1], [0], [0], [1], [0, 0, 1, 1], [], []>} : vector<2x32xbf16>, vector<32x96xbf16>, vector<2x96xf32> -> vector<2x96xf32>
    %505 = vector.extract_strided_slice %502 {offsets = [0, 0], sizes = [2, 32], strides = [1, 1]} : vector<2x96xf32> to vector<2x32xf32>
    %506 = vector.extract_strided_slice %504 {offsets = [0, 0], sizes = [2, 32], strides = [1, 1]} : vector<2x96xf32> to vector<2x32xf32>
    %507 = arith.addf %505, %506 : vector<2x32xf32>
    %508 = arith.negf %507 : vector<2x32xf32>
    %509 = math.exp %508 : vector<2x32xf32>
    %cst_90 = arith.constant 1.000000e+00 : f32
    %510 = vector.broadcast %cst_90 : f32 to vector<2x32xf32>
    %511 = arith.addf %510, %509 : vector<2x32xf32>
    %512 = arith.divf %510, %511 : vector<2x32xf32>
    %513 = vector.extract_strided_slice %502 {offsets = [0, 32], sizes = [2, 32], strides = [1, 1]} : vector<2x96xf32> to vector<2x32xf32>
    %514 = vector.extract_strided_slice %504 {offsets = [0, 32], sizes = [2, 32], strides = [1, 1]} : vector<2x96xf32> to vector<2x32xf32>
    %515 = arith.addf %513, %514 : vector<2x32xf32>
    %516 = arith.negf %515 : vector<2x32xf32>
    %517 = math.exp %516 : vector<2x32xf32>
    %cst_91 = arith.constant 1.000000e+00 : f32
    %518 = vector.broadcast %cst_91 : f32 to vector<2x32xf32>
    %519 = arith.addf %518, %517 : vector<2x32xf32>
    %520 = arith.divf %518, %519 : vector<2x32xf32>
    %521 = vector.extract_strided_slice %502 {offsets = [0, 64], sizes = [2, 32], strides = [1, 1]} : vector<2x96xf32> to vector<2x32xf32>
    %522 = vector.extract_strided_slice %504 {offsets = [0, 64], sizes = [2, 32], strides = [1, 1]} : vector<2x96xf32> to vector<2x32xf32>
    %523 = vector.broadcast %34 : vector<1x32xf32> to vector<2x32xf32>
    %524 = arith.addf %522, %523 : vector<2x32xf32>
    %525 = arith.mulf %512, %524 : vector<2x32xf32>
    %526 = arith.addf %521, %525 : vector<2x32xf32>
    %527 = math.tanh %526 : vector<2x32xf32>
    %cst_92 = arith.constant 1.000000e+00 : f32
    %528 = vector.broadcast %cst_92 : f32 to vector<2x32xf32>
    %529 = arith.subf %528, %520 : vector<2x32xf32>
    %530 = arith.mulf %529, %527 : vector<2x32xf32>
    %531 = arith.mulf %520, %470 : vector<2x32xf32>
    %532 = arith.addf %530, %531 : vector<2x32xf32>
    %533 = tpu.concatenate %67, %532 in 1 : vector<2x32xf32>, vector<2x32xf32> -> vector<2x64xf32>
    %534 = tpu.concatenate %129, %470 in 1 : vector<2x32xf32>, vector<2x32xf32> -> vector<2x64xf32>
    %535 = tpu.concatenate %191, %408 in 1 : vector<2x32xf32>, vector<2x32xf32> -> vector<2x64xf32>
    %536 = tpu.concatenate %253, %346 in 1 : vector<2x32xf32>, vector<2x32xf32> -> vector<2x64xf32>
    %537 = tpu.concatenate %315, %284 in 1 : vector<2x32xf32>, vector<2x32xf32> -> vector<2x64xf32>
    %538 = tpu.concatenate %377, %222 in 1 : vector<2x32xf32>, vector<2x32xf32> -> vector<2x64xf32>
    %539 = tpu.concatenate %439, %160 in 1 : vector<2x32xf32>, vector<2x32xf32> -> vector<2x64xf32>
    %540 = tpu.concatenate %501, %98 in 1 : vector<2x32xf32>, vector<2x32xf32> -> vector<2x64xf32>
    %541 = tpu.concatenate %533, %534, %535, %536, %537, %538, %539, %540 in 0 : vector<2x64xf32>, vector<2x64xf32>, vector<2x64xf32>, vector<2x64xf32>, vector<2x64xf32>, vector<2x64xf32>, vector<2x64xf32>, vector<2x64xf32> -> vector<16x64xf32>
    %542 = arith.truncf %541 : vector<16x64xf32> to vector<16x64xbf16>
    %c0_93 = arith.constant 0 : index
    %c0_94 = arith.constant 0 : index
    %543 = vector.load %arg10[%c0_93, %c0_94] : memref<64x256xbf16, #tpu.memory_space<vmem>>, vector<64x256xbf16>
    %cst_95 = arith.constant dense<0.000000e+00> : vector<16x256xf32>
    %544 = tpu.matmul %542, %543, %cst_95 {dimension_numbers = #tpu.dot_dimension_numbers<[1], [0], [0], [1], [0, 0, 1, 1], [], []>} : vector<16x64xbf16>, vector<64x256xbf16>, vector<16x256xf32> -> vector<16x256xf32>
    %545 = arith.truncf %24 : vector<2x64xf32> to vector<2x64xbf16>
    %c0_96 = arith.constant 0 : index
    %c0_97 = arith.constant 0 : index
    %546 = vector.load %arg11[%c0_96, %c0_97] : memref<64x256xbf16, #tpu.memory_space<vmem>>, vector<64x256xbf16>
    %cst_98 = arith.constant dense<0.000000e+00> : vector<2x256xf32>
    %547 = tpu.matmul %545, %546, %cst_98 {dimension_numbers = #tpu.dot_dimension_numbers<[1], [0], [0], [1], [0, 0, 1, 1], [], []>} : vector<2x64xbf16>, vector<64x256xbf16>, vector<2x256xf32> -> vector<2x256xf32>
    %c0_99 = arith.constant 0 : index
    %c0_100 = arith.constant 0 : index
    %548 = vector.load %arg12[%c0_99, %c0_100] : memref<1x256xf32, #tpu.memory_space<vmem>>, vector<1x256xf32>
    %549 = vector.broadcast %548 : vector<1x256xf32> to vector<2x256xf32>
    %550 = arith.addf %547, %549 : vector<2x256xf32>
    %c0_101 = arith.constant 0 : index
    %c0_102 = arith.constant 0 : index
    %551 = vector.load %arg13[%c0_101, %c0_102] : memref<32x128xbf16, #tpu.memory_space<vmem>>, vector<32x128xbf16>
    %c0_103 = arith.constant 0 : index
    %c0_104 = arith.constant 0 : index
    %552 = vector.load %arg14[%c0_103, %c0_104] : memref<32x128xbf16, #tpu.memory_space<vmem>>, vector<32x128xbf16>
    %cst_105 = arith.constant 0.000000e+00 : f32
    %553 = vector.broadcast %cst_105 : f32 to vector<2x32xf32>
    %cst_106 = arith.constant 0.000000e+00 : f32
    %554 = vector.broadcast %cst_106 : f32 to vector<2x32xf32>
    %cst_107 = arith.constant 0.000000e+00 : f32
    %555 = vector.broadcast %cst_107 : f32 to vector<2x32xf32>
    %cst_108 = arith.constant 0.000000e+00 : f32
    %556 = vector.broadcast %cst_108 : f32 to vector<2x32xf32>
    %557 = vector.extract_strided_slice %544 {offsets = [0, 0], sizes = [2, 128], strides = [1, 1]} : vector<16x256xf32> to vector<2x128xf32>
    %558 = vector.extract_strided_slice %550 {offsets = [0, 0], sizes = [2, 128], strides = [1, 1]} : vector<2x256xf32> to vector<2x128xf32>
    %559 = arith.addf %557, %558 : vector<2x128xf32>
    %560 = arith.truncf %553 : vector<2x32xf32> to vector<2x32xbf16>
    %cst_109 = arith.constant dense<0.000000e+00> : vector<2x128xf32>
    %561 = tpu.matmul %560, %551, %cst_109 {dimension_numbers = #tpu.dot_dimension_numbers<[1], [0], [0], [1], [0, 0, 1, 1], [], []>} : vector<2x32xbf16>, vector<32x128xbf16>, vector<2x128xf32> -> vector<2x128xf32>
    %562 = arith.addf %559, %561 : vector<2x128xf32>
    %563 = vector.extract_strided_slice %562 {offsets = [0, 0], sizes = [2, 32], strides = [1, 1]} : vector<2x128xf32> to vector<2x32xf32>
    %564 = arith.negf %563 : vector<2x32xf32>
    %565 = math.exp %564 : vector<2x32xf32>
    %cst_110 = arith.constant 1.000000e+00 : f32
    %566 = vector.broadcast %cst_110 : f32 to vector<2x32xf32>
    %567 = arith.addf %566, %565 : vector<2x32xf32>
    %568 = arith.divf %566, %567 : vector<2x32xf32>
    %569 = vector.extract_strided_slice %562 {offsets = [0, 32], sizes = [2, 32], strides = [1, 1]} : vector<2x128xf32> to vector<2x32xf32>
    %570 = arith.negf %569 : vector<2x32xf32>
    %571 = math.exp %570 : vector<2x32xf32>
    %cst_111 = arith.constant 1.000000e+00 : f32
    %572 = vector.broadcast %cst_111 : f32 to vector<2x32xf32>
    %573 = arith.addf %572, %571 : vector<2x32xf32>
    %574 = arith.divf %572, %573 : vector<2x32xf32>
    %575 = vector.extract_strided_slice %562 {offsets = [0, 64], sizes = [2, 32], strides = [1, 1]} : vector<2x128xf32> to vector<2x32xf32>
    %576 = math.tanh %575 : vector<2x32xf32>
    %577 = vector.extract_strided_slice %562 {offsets = [0, 96], sizes = [2, 32], strides = [1, 1]} : vector<2x128xf32> to vector<2x32xf32>
    %578 = arith.negf %577 : vector<2x32xf32>
    %579 = math.exp %578 : vector<2x32xf32>
    %cst_112 = arith.constant 1.000000e+00 : f32
    %580 = vector.broadcast %cst_112 : f32 to vector<2x32xf32>
    %581 = arith.addf %580, %579 : vector<2x32xf32>
    %582 = arith.divf %580, %581 : vector<2x32xf32>
    %583 = arith.mulf %574, %554 : vector<2x32xf32>
    %584 = arith.mulf %568, %576 : vector<2x32xf32>
    %585 = arith.addf %583, %584 : vector<2x32xf32>
    %586 = math.tanh %585 : vector<2x32xf32>
    %587 = arith.mulf %582, %586 : vector<2x32xf32>
    %588 = vector.extract_strided_slice %544 {offsets = [14, 128], sizes = [2, 128], strides = [1, 1]} : vector<16x256xf32> to vector<2x128xf32>
    %589 = vector.extract_strided_slice %550 {offsets = [0, 128], sizes = [2, 128], strides = [1, 1]} : vector<2x256xf32> to vector<2x128xf32>
    %590 = arith.addf %588, %589 : vector<2x128xf32>
    %591 = arith.truncf %555 : vector<2x32xf32> to vector<2x32xbf16>
    %cst_113 = arith.constant dense<0.000000e+00> : vector<2x128xf32>
    %592 = tpu.matmul %591, %552, %cst_113 {dimension_numbers = #tpu.dot_dimension_numbers<[1], [0], [0], [1], [0, 0, 1, 1], [], []>} : vector<2x32xbf16>, vector<32x128xbf16>, vector<2x128xf32> -> vector<2x128xf32>
    %593 = arith.addf %590, %592 : vector<2x128xf32>
    %594 = vector.extract_strided_slice %593 {offsets = [0, 0], sizes = [2, 32], strides = [1, 1]} : vector<2x128xf32> to vector<2x32xf32>
    %595 = arith.negf %594 : vector<2x32xf32>
    %596 = math.exp %595 : vector<2x32xf32>
    %cst_114 = arith.constant 1.000000e+00 : f32
    %597 = vector.broadcast %cst_114 : f32 to vector<2x32xf32>
    %598 = arith.addf %597, %596 : vector<2x32xf32>
    %599 = arith.divf %597, %598 : vector<2x32xf32>
    %600 = vector.extract_strided_slice %593 {offsets = [0, 32], sizes = [2, 32], strides = [1, 1]} : vector<2x128xf32> to vector<2x32xf32>
    %601 = arith.negf %600 : vector<2x32xf32>
    %602 = math.exp %601 : vector<2x32xf32>
    %cst_115 = arith.constant 1.000000e+00 : f32
    %603 = vector.broadcast %cst_115 : f32 to vector<2x32xf32>
    %604 = arith.addf %603, %602 : vector<2x32xf32>
    %605 = arith.divf %603, %604 : vector<2x32xf32>
    %606 = vector.extract_strided_slice %593 {offsets = [0, 64], sizes = [2, 32], strides = [1, 1]} : vector<2x128xf32> to vector<2x32xf32>
    %607 = math.tanh %606 : vector<2x32xf32>
    %608 = vector.extract_strided_slice %593 {offsets = [0, 96], sizes = [2, 32], strides = [1, 1]} : vector<2x128xf32> to vector<2x32xf32>
    %609 = arith.negf %608 : vector<2x32xf32>
    %610 = math.exp %609 : vector<2x32xf32>
    %cst_116 = arith.constant 1.000000e+00 : f32
    %611 = vector.broadcast %cst_116 : f32 to vector<2x32xf32>
    %612 = arith.addf %611, %610 : vector<2x32xf32>
    %613 = arith.divf %611, %612 : vector<2x32xf32>
    %614 = arith.mulf %605, %556 : vector<2x32xf32>
    %615 = arith.mulf %599, %607 : vector<2x32xf32>
    %616 = arith.addf %614, %615 : vector<2x32xf32>
    %617 = math.tanh %616 : vector<2x32xf32>
    %618 = arith.mulf %613, %617 : vector<2x32xf32>
    %619 = vector.extract_strided_slice %544 {offsets = [2, 0], sizes = [2, 128], strides = [1, 1]} : vector<16x256xf32> to vector<2x128xf32>
    %620 = vector.extract_strided_slice %550 {offsets = [0, 0], sizes = [2, 128], strides = [1, 1]} : vector<2x256xf32> to vector<2x128xf32>
    %621 = arith.addf %619, %620 : vector<2x128xf32>
    %622 = arith.truncf %587 : vector<2x32xf32> to vector<2x32xbf16>
    %cst_117 = arith.constant dense<0.000000e+00> : vector<2x128xf32>
    %623 = tpu.matmul %622, %551, %cst_117 {dimension_numbers = #tpu.dot_dimension_numbers<[1], [0], [0], [1], [0, 0, 1, 1], [], []>} : vector<2x32xbf16>, vector<32x128xbf16>, vector<2x128xf32> -> vector<2x128xf32>
    %624 = arith.addf %621, %623 : vector<2x128xf32>
    %625 = vector.extract_strided_slice %624 {offsets = [0, 0], sizes = [2, 32], strides = [1, 1]} : vector<2x128xf32> to vector<2x32xf32>
    %626 = arith.negf %625 : vector<2x32xf32>
    %627 = math.exp %626 : vector<2x32xf32>
    %cst_118 = arith.constant 1.000000e+00 : f32
    %628 = vector.broadcast %cst_118 : f32 to vector<2x32xf32>
    %629 = arith.addf %628, %627 : vector<2x32xf32>
    %630 = arith.divf %628, %629 : vector<2x32xf32>
    %631 = vector.extract_strided_slice %624 {offsets = [0, 32], sizes = [2, 32], strides = [1, 1]} : vector<2x128xf32> to vector<2x32xf32>
    %632 = arith.negf %631 : vector<2x32xf32>
    %633 = math.exp %632 : vector<2x32xf32>
    %cst_119 = arith.constant 1.000000e+00 : f32
    %634 = vector.broadcast %cst_119 : f32 to vector<2x32xf32>
    %635 = arith.addf %634, %633 : vector<2x32xf32>
    %636 = arith.divf %634, %635 : vector<2x32xf32>
    %637 = vector.extract_strided_slice %624 {offsets = [0, 64], sizes = [2, 32], strides = [1, 1]} : vector<2x128xf32> to vector<2x32xf32>
    %638 = math.tanh %637 : vector<2x32xf32>
    %639 = vector.extract_strided_slice %624 {offsets = [0, 96], sizes = [2, 32], strides = [1, 1]} : vector<2x128xf32> to vector<2x32xf32>
    %640 = arith.negf %639 : vector<2x32xf32>
    %641 = math.exp %640 : vector<2x32xf32>
    %cst_120 = arith.constant 1.000000e+00 : f32
    %642 = vector.broadcast %cst_120 : f32 to vector<2x32xf32>
    %643 = arith.addf %642, %641 : vector<2x32xf32>
    %644 = arith.divf %642, %643 : vector<2x32xf32>
    %645 = arith.mulf %636, %585 : vector<2x32xf32>
    %646 = arith.mulf %630, %638 : vector<2x32xf32>
    %647 = arith.addf %645, %646 : vector<2x32xf32>
    %648 = math.tanh %647 : vector<2x32xf32>
    %649 = arith.mulf %644, %648 : vector<2x32xf32>
    %650 = vector.extract_strided_slice %544 {offsets = [12, 128], sizes = [2, 128], strides = [1, 1]} : vector<16x256xf32> to vector<2x128xf32>
    %651 = vector.extract_strided_slice %550 {offsets = [0, 128], sizes = [2, 128], strides = [1, 1]} : vector<2x256xf32> to vector<2x128xf32>
    %652 = arith.addf %650, %651 : vector<2x128xf32>
    %653 = arith.truncf %618 : vector<2x32xf32> to vector<2x32xbf16>
    %cst_121 = arith.constant dense<0.000000e+00> : vector<2x128xf32>
    %654 = tpu.matmul %653, %552, %cst_121 {dimension_numbers = #tpu.dot_dimension_numbers<[1], [0], [0], [1], [0, 0, 1, 1], [], []>} : vector<2x32xbf16>, vector<32x128xbf16>, vector<2x128xf32> -> vector<2x128xf32>
    %655 = arith.addf %652, %654 : vector<2x128xf32>
    %656 = vector.extract_strided_slice %655 {offsets = [0, 0], sizes = [2, 32], strides = [1, 1]} : vector<2x128xf32> to vector<2x32xf32>
    %657 = arith.negf %656 : vector<2x32xf32>
    %658 = math.exp %657 : vector<2x32xf32>
    %cst_122 = arith.constant 1.000000e+00 : f32
    %659 = vector.broadcast %cst_122 : f32 to vector<2x32xf32>
    %660 = arith.addf %659, %658 : vector<2x32xf32>
    %661 = arith.divf %659, %660 : vector<2x32xf32>
    %662 = vector.extract_strided_slice %655 {offsets = [0, 32], sizes = [2, 32], strides = [1, 1]} : vector<2x128xf32> to vector<2x32xf32>
    %663 = arith.negf %662 : vector<2x32xf32>
    %664 = math.exp %663 : vector<2x32xf32>
    %cst_123 = arith.constant 1.000000e+00 : f32
    %665 = vector.broadcast %cst_123 : f32 to vector<2x32xf32>
    %666 = arith.addf %665, %664 : vector<2x32xf32>
    %667 = arith.divf %665, %666 : vector<2x32xf32>
    %668 = vector.extract_strided_slice %655 {offsets = [0, 64], sizes = [2, 32], strides = [1, 1]} : vector<2x128xf32> to vector<2x32xf32>
    %669 = math.tanh %668 : vector<2x32xf32>
    %670 = vector.extract_strided_slice %655 {offsets = [0, 96], sizes = [2, 32], strides = [1, 1]} : vector<2x128xf32> to vector<2x32xf32>
    %671 = arith.negf %670 : vector<2x32xf32>
    %672 = math.exp %671 : vector<2x32xf32>
    %cst_124 = arith.constant 1.000000e+00 : f32
    %673 = vector.broadcast %cst_124 : f32 to vector<2x32xf32>
    %674 = arith.addf %673, %672 : vector<2x32xf32>
    %675 = arith.divf %673, %674 : vector<2x32xf32>
    %676 = arith.mulf %667, %616 : vector<2x32xf32>
    %677 = arith.mulf %661, %669 : vector<2x32xf32>
    %678 = arith.addf %676, %677 : vector<2x32xf32>
    %679 = math.tanh %678 : vector<2x32xf32>
    %680 = arith.mulf %675, %679 : vector<2x32xf32>
    %681 = vector.extract_strided_slice %544 {offsets = [4, 0], sizes = [2, 128], strides = [1, 1]} : vector<16x256xf32> to vector<2x128xf32>
    %682 = vector.extract_strided_slice %550 {offsets = [0, 0], sizes = [2, 128], strides = [1, 1]} : vector<2x256xf32> to vector<2x128xf32>
    %683 = arith.addf %681, %682 : vector<2x128xf32>
    %684 = arith.truncf %649 : vector<2x32xf32> to vector<2x32xbf16>
    %cst_125 = arith.constant dense<0.000000e+00> : vector<2x128xf32>
    %685 = tpu.matmul %684, %551, %cst_125 {dimension_numbers = #tpu.dot_dimension_numbers<[1], [0], [0], [1], [0, 0, 1, 1], [], []>} : vector<2x32xbf16>, vector<32x128xbf16>, vector<2x128xf32> -> vector<2x128xf32>
    %686 = arith.addf %683, %685 : vector<2x128xf32>
    %687 = vector.extract_strided_slice %686 {offsets = [0, 0], sizes = [2, 32], strides = [1, 1]} : vector<2x128xf32> to vector<2x32xf32>
    %688 = arith.negf %687 : vector<2x32xf32>
    %689 = math.exp %688 : vector<2x32xf32>
    %cst_126 = arith.constant 1.000000e+00 : f32
    %690 = vector.broadcast %cst_126 : f32 to vector<2x32xf32>
    %691 = arith.addf %690, %689 : vector<2x32xf32>
    %692 = arith.divf %690, %691 : vector<2x32xf32>
    %693 = vector.extract_strided_slice %686 {offsets = [0, 32], sizes = [2, 32], strides = [1, 1]} : vector<2x128xf32> to vector<2x32xf32>
    %694 = arith.negf %693 : vector<2x32xf32>
    %695 = math.exp %694 : vector<2x32xf32>
    %cst_127 = arith.constant 1.000000e+00 : f32
    %696 = vector.broadcast %cst_127 : f32 to vector<2x32xf32>
    %697 = arith.addf %696, %695 : vector<2x32xf32>
    %698 = arith.divf %696, %697 : vector<2x32xf32>
    %699 = vector.extract_strided_slice %686 {offsets = [0, 64], sizes = [2, 32], strides = [1, 1]} : vector<2x128xf32> to vector<2x32xf32>
    %700 = math.tanh %699 : vector<2x32xf32>
    %701 = vector.extract_strided_slice %686 {offsets = [0, 96], sizes = [2, 32], strides = [1, 1]} : vector<2x128xf32> to vector<2x32xf32>
    %702 = arith.negf %701 : vector<2x32xf32>
    %703 = math.exp %702 : vector<2x32xf32>
    %cst_128 = arith.constant 1.000000e+00 : f32
    %704 = vector.broadcast %cst_128 : f32 to vector<2x32xf32>
    %705 = arith.addf %704, %703 : vector<2x32xf32>
    %706 = arith.divf %704, %705 : vector<2x32xf32>
    %707 = arith.mulf %698, %647 : vector<2x32xf32>
    %708 = arith.mulf %692, %700 : vector<2x32xf32>
    %709 = arith.addf %707, %708 : vector<2x32xf32>
    %710 = math.tanh %709 : vector<2x32xf32>
    %711 = arith.mulf %706, %710 : vector<2x32xf32>
    %712 = vector.extract_strided_slice %544 {offsets = [10, 128], sizes = [2, 128], strides = [1, 1]} : vector<16x256xf32> to vector<2x128xf32>
    %713 = vector.extract_strided_slice %550 {offsets = [0, 128], sizes = [2, 128], strides = [1, 1]} : vector<2x256xf32> to vector<2x128xf32>
    %714 = arith.addf %712, %713 : vector<2x128xf32>
    %715 = arith.truncf %680 : vector<2x32xf32> to vector<2x32xbf16>
    %cst_129 = arith.constant dense<0.000000e+00> : vector<2x128xf32>
    %716 = tpu.matmul %715, %552, %cst_129 {dimension_numbers = #tpu.dot_dimension_numbers<[1], [0], [0], [1], [0, 0, 1, 1], [], []>} : vector<2x32xbf16>, vector<32x128xbf16>, vector<2x128xf32> -> vector<2x128xf32>
    %717 = arith.addf %714, %716 : vector<2x128xf32>
    %718 = vector.extract_strided_slice %717 {offsets = [0, 0], sizes = [2, 32], strides = [1, 1]} : vector<2x128xf32> to vector<2x32xf32>
    %719 = arith.negf %718 : vector<2x32xf32>
    %720 = math.exp %719 : vector<2x32xf32>
    %cst_130 = arith.constant 1.000000e+00 : f32
    %721 = vector.broadcast %cst_130 : f32 to vector<2x32xf32>
    %722 = arith.addf %721, %720 : vector<2x32xf32>
    %723 = arith.divf %721, %722 : vector<2x32xf32>
    %724 = vector.extract_strided_slice %717 {offsets = [0, 32], sizes = [2, 32], strides = [1, 1]} : vector<2x128xf32> to vector<2x32xf32>
    %725 = arith.negf %724 : vector<2x32xf32>
    %726 = math.exp %725 : vector<2x32xf32>
    %cst_131 = arith.constant 1.000000e+00 : f32
    %727 = vector.broadcast %cst_131 : f32 to vector<2x32xf32>
    %728 = arith.addf %727, %726 : vector<2x32xf32>
    %729 = arith.divf %727, %728 : vector<2x32xf32>
    %730 = vector.extract_strided_slice %717 {offsets = [0, 64], sizes = [2, 32], strides = [1, 1]} : vector<2x128xf32> to vector<2x32xf32>
    %731 = math.tanh %730 : vector<2x32xf32>
    %732 = vector.extract_strided_slice %717 {offsets = [0, 96], sizes = [2, 32], strides = [1, 1]} : vector<2x128xf32> to vector<2x32xf32>
    %733 = arith.negf %732 : vector<2x32xf32>
    %734 = math.exp %733 : vector<2x32xf32>
    %cst_132 = arith.constant 1.000000e+00 : f32
    %735 = vector.broadcast %cst_132 : f32 to vector<2x32xf32>
    %736 = arith.addf %735, %734 : vector<2x32xf32>
    %737 = arith.divf %735, %736 : vector<2x32xf32>
    %738 = arith.mulf %729, %678 : vector<2x32xf32>
    %739 = arith.mulf %723, %731 : vector<2x32xf32>
    %740 = arith.addf %738, %739 : vector<2x32xf32>
    %741 = math.tanh %740 : vector<2x32xf32>
    %742 = arith.mulf %737, %741 : vector<2x32xf32>
    %743 = vector.extract_strided_slice %544 {offsets = [6, 0], sizes = [2, 128], strides = [1, 1]} : vector<16x256xf32> to vector<2x128xf32>
    %744 = vector.extract_strided_slice %550 {offsets = [0, 0], sizes = [2, 128], strides = [1, 1]} : vector<2x256xf32> to vector<2x128xf32>
    %745 = arith.addf %743, %744 : vector<2x128xf32>
    %746 = arith.truncf %711 : vector<2x32xf32> to vector<2x32xbf16>
    %cst_133 = arith.constant dense<0.000000e+00> : vector<2x128xf32>
    %747 = tpu.matmul %746, %551, %cst_133 {dimension_numbers = #tpu.dot_dimension_numbers<[1], [0], [0], [1], [0, 0, 1, 1], [], []>} : vector<2x32xbf16>, vector<32x128xbf16>, vector<2x128xf32> -> vector<2x128xf32>
    %748 = arith.addf %745, %747 : vector<2x128xf32>
    %749 = vector.extract_strided_slice %748 {offsets = [0, 0], sizes = [2, 32], strides = [1, 1]} : vector<2x128xf32> to vector<2x32xf32>
    %750 = arith.negf %749 : vector<2x32xf32>
    %751 = math.exp %750 : vector<2x32xf32>
    %cst_134 = arith.constant 1.000000e+00 : f32
    %752 = vector.broadcast %cst_134 : f32 to vector<2x32xf32>
    %753 = arith.addf %752, %751 : vector<2x32xf32>
    %754 = arith.divf %752, %753 : vector<2x32xf32>
    %755 = vector.extract_strided_slice %748 {offsets = [0, 32], sizes = [2, 32], strides = [1, 1]} : vector<2x128xf32> to vector<2x32xf32>
    %756 = arith.negf %755 : vector<2x32xf32>
    %757 = math.exp %756 : vector<2x32xf32>
    %cst_135 = arith.constant 1.000000e+00 : f32
    %758 = vector.broadcast %cst_135 : f32 to vector<2x32xf32>
    %759 = arith.addf %758, %757 : vector<2x32xf32>
    %760 = arith.divf %758, %759 : vector<2x32xf32>
    %761 = vector.extract_strided_slice %748 {offsets = [0, 64], sizes = [2, 32], strides = [1, 1]} : vector<2x128xf32> to vector<2x32xf32>
    %762 = math.tanh %761 : vector<2x32xf32>
    %763 = vector.extract_strided_slice %748 {offsets = [0, 96], sizes = [2, 32], strides = [1, 1]} : vector<2x128xf32> to vector<2x32xf32>
    %764 = arith.negf %763 : vector<2x32xf32>
    %765 = math.exp %764 : vector<2x32xf32>
    %cst_136 = arith.constant 1.000000e+00 : f32
    %766 = vector.broadcast %cst_136 : f32 to vector<2x32xf32>
    %767 = arith.addf %766, %765 : vector<2x32xf32>
    %768 = arith.divf %766, %767 : vector<2x32xf32>
    %769 = arith.mulf %760, %709 : vector<2x32xf32>
    %770 = arith.mulf %754, %762 : vector<2x32xf32>
    %771 = arith.addf %769, %770 : vector<2x32xf32>
    %772 = math.tanh %771 : vector<2x32xf32>
    %773 = arith.mulf %768, %772 : vector<2x32xf32>
    %774 = vector.extract_strided_slice %544 {offsets = [8, 128], sizes = [2, 128], strides = [1, 1]} : vector<16x256xf32> to vector<2x128xf32>
    %775 = vector.extract_strided_slice %550 {offsets = [0, 128], sizes = [2, 128], strides = [1, 1]} : vector<2x256xf32> to vector<2x128xf32>
    %776 = arith.addf %774, %775 : vector<2x128xf32>
    %777 = arith.truncf %742 : vector<2x32xf32> to vector<2x32xbf16>
    %cst_137 = arith.constant dense<0.000000e+00> : vector<2x128xf32>
    %778 = tpu.matmul %777, %552, %cst_137 {dimension_numbers = #tpu.dot_dimension_numbers<[1], [0], [0], [1], [0, 0, 1, 1], [], []>} : vector<2x32xbf16>, vector<32x128xbf16>, vector<2x128xf32> -> vector<2x128xf32>
    %779 = arith.addf %776, %778 : vector<2x128xf32>
    %780 = vector.extract_strided_slice %779 {offsets = [0, 0], sizes = [2, 32], strides = [1, 1]} : vector<2x128xf32> to vector<2x32xf32>
    %781 = arith.negf %780 : vector<2x32xf32>
    %782 = math.exp %781 : vector<2x32xf32>
    %cst_138 = arith.constant 1.000000e+00 : f32
    %783 = vector.broadcast %cst_138 : f32 to vector<2x32xf32>
    %784 = arith.addf %783, %782 : vector<2x32xf32>
    %785 = arith.divf %783, %784 : vector<2x32xf32>
    %786 = vector.extract_strided_slice %779 {offsets = [0, 32], sizes = [2, 32], strides = [1, 1]} : vector<2x128xf32> to vector<2x32xf32>
    %787 = arith.negf %786 : vector<2x32xf32>
    %788 = math.exp %787 : vector<2x32xf32>
    %cst_139 = arith.constant 1.000000e+00 : f32
    %789 = vector.broadcast %cst_139 : f32 to vector<2x32xf32>
    %790 = arith.addf %789, %788 : vector<2x32xf32>
    %791 = arith.divf %789, %790 : vector<2x32xf32>
    %792 = vector.extract_strided_slice %779 {offsets = [0, 64], sizes = [2, 32], strides = [1, 1]} : vector<2x128xf32> to vector<2x32xf32>
    %793 = math.tanh %792 : vector<2x32xf32>
    %794 = vector.extract_strided_slice %779 {offsets = [0, 96], sizes = [2, 32], strides = [1, 1]} : vector<2x128xf32> to vector<2x32xf32>
    %795 = arith.negf %794 : vector<2x32xf32>
    %796 = math.exp %795 : vector<2x32xf32>
    %cst_140 = arith.constant 1.000000e+00 : f32
    %797 = vector.broadcast %cst_140 : f32 to vector<2x32xf32>
    %798 = arith.addf %797, %796 : vector<2x32xf32>
    %799 = arith.divf %797, %798 : vector<2x32xf32>
    %800 = arith.mulf %791, %740 : vector<2x32xf32>
    %801 = arith.mulf %785, %793 : vector<2x32xf32>
    %802 = arith.addf %800, %801 : vector<2x32xf32>
    %803 = math.tanh %802 : vector<2x32xf32>
    %804 = arith.mulf %799, %803 : vector<2x32xf32>
    %805 = vector.extract_strided_slice %544 {offsets = [8, 0], sizes = [2, 128], strides = [1, 1]} : vector<16x256xf32> to vector<2x128xf32>
    %806 = vector.extract_strided_slice %550 {offsets = [0, 0], sizes = [2, 128], strides = [1, 1]} : vector<2x256xf32> to vector<2x128xf32>
    %807 = arith.addf %805, %806 : vector<2x128xf32>
    %808 = arith.truncf %773 : vector<2x32xf32> to vector<2x32xbf16>
    %cst_141 = arith.constant dense<0.000000e+00> : vector<2x128xf32>
    %809 = tpu.matmul %808, %551, %cst_141 {dimension_numbers = #tpu.dot_dimension_numbers<[1], [0], [0], [1], [0, 0, 1, 1], [], []>} : vector<2x32xbf16>, vector<32x128xbf16>, vector<2x128xf32> -> vector<2x128xf32>
    %810 = arith.addf %807, %809 : vector<2x128xf32>
    %811 = vector.extract_strided_slice %810 {offsets = [0, 0], sizes = [2, 32], strides = [1, 1]} : vector<2x128xf32> to vector<2x32xf32>
    %812 = arith.negf %811 : vector<2x32xf32>
    %813 = math.exp %812 : vector<2x32xf32>
    %cst_142 = arith.constant 1.000000e+00 : f32
    %814 = vector.broadcast %cst_142 : f32 to vector<2x32xf32>
    %815 = arith.addf %814, %813 : vector<2x32xf32>
    %816 = arith.divf %814, %815 : vector<2x32xf32>
    %817 = vector.extract_strided_slice %810 {offsets = [0, 32], sizes = [2, 32], strides = [1, 1]} : vector<2x128xf32> to vector<2x32xf32>
    %818 = arith.negf %817 : vector<2x32xf32>
    %819 = math.exp %818 : vector<2x32xf32>
    %cst_143 = arith.constant 1.000000e+00 : f32
    %820 = vector.broadcast %cst_143 : f32 to vector<2x32xf32>
    %821 = arith.addf %820, %819 : vector<2x32xf32>
    %822 = arith.divf %820, %821 : vector<2x32xf32>
    %823 = vector.extract_strided_slice %810 {offsets = [0, 64], sizes = [2, 32], strides = [1, 1]} : vector<2x128xf32> to vector<2x32xf32>
    %824 = math.tanh %823 : vector<2x32xf32>
    %825 = vector.extract_strided_slice %810 {offsets = [0, 96], sizes = [2, 32], strides = [1, 1]} : vector<2x128xf32> to vector<2x32xf32>
    %826 = arith.negf %825 : vector<2x32xf32>
    %827 = math.exp %826 : vector<2x32xf32>
    %cst_144 = arith.constant 1.000000e+00 : f32
    %828 = vector.broadcast %cst_144 : f32 to vector<2x32xf32>
    %829 = arith.addf %828, %827 : vector<2x32xf32>
    %830 = arith.divf %828, %829 : vector<2x32xf32>
    %831 = arith.mulf %822, %771 : vector<2x32xf32>
    %832 = arith.mulf %816, %824 : vector<2x32xf32>
    %833 = arith.addf %831, %832 : vector<2x32xf32>
    %834 = math.tanh %833 : vector<2x32xf32>
    %835 = arith.mulf %830, %834 : vector<2x32xf32>
    %836 = vector.extract_strided_slice %544 {offsets = [6, 128], sizes = [2, 128], strides = [1, 1]} : vector<16x256xf32> to vector<2x128xf32>
    %837 = vector.extract_strided_slice %550 {offsets = [0, 128], sizes = [2, 128], strides = [1, 1]} : vector<2x256xf32> to vector<2x128xf32>
    %838 = arith.addf %836, %837 : vector<2x128xf32>
    %839 = arith.truncf %804 : vector<2x32xf32> to vector<2x32xbf16>
    %cst_145 = arith.constant dense<0.000000e+00> : vector<2x128xf32>
    %840 = tpu.matmul %839, %552, %cst_145 {dimension_numbers = #tpu.dot_dimension_numbers<[1], [0], [0], [1], [0, 0, 1, 1], [], []>} : vector<2x32xbf16>, vector<32x128xbf16>, vector<2x128xf32> -> vector<2x128xf32>
    %841 = arith.addf %838, %840 : vector<2x128xf32>
    %842 = vector.extract_strided_slice %841 {offsets = [0, 0], sizes = [2, 32], strides = [1, 1]} : vector<2x128xf32> to vector<2x32xf32>
    %843 = arith.negf %842 : vector<2x32xf32>
    %844 = math.exp %843 : vector<2x32xf32>
    %cst_146 = arith.constant 1.000000e+00 : f32
    %845 = vector.broadcast %cst_146 : f32 to vector<2x32xf32>
    %846 = arith.addf %845, %844 : vector<2x32xf32>
    %847 = arith.divf %845, %846 : vector<2x32xf32>
    %848 = vector.extract_strided_slice %841 {offsets = [0, 32], sizes = [2, 32], strides = [1, 1]} : vector<2x128xf32> to vector<2x32xf32>
    %849 = arith.negf %848 : vector<2x32xf32>
    %850 = math.exp %849 : vector<2x32xf32>
    %cst_147 = arith.constant 1.000000e+00 : f32
    %851 = vector.broadcast %cst_147 : f32 to vector<2x32xf32>
    %852 = arith.addf %851, %850 : vector<2x32xf32>
    %853 = arith.divf %851, %852 : vector<2x32xf32>
    %854 = vector.extract_strided_slice %841 {offsets = [0, 64], sizes = [2, 32], strides = [1, 1]} : vector<2x128xf32> to vector<2x32xf32>
    %855 = math.tanh %854 : vector<2x32xf32>
    %856 = vector.extract_strided_slice %841 {offsets = [0, 96], sizes = [2, 32], strides = [1, 1]} : vector<2x128xf32> to vector<2x32xf32>
    %857 = arith.negf %856 : vector<2x32xf32>
    %858 = math.exp %857 : vector<2x32xf32>
    %cst_148 = arith.constant 1.000000e+00 : f32
    %859 = vector.broadcast %cst_148 : f32 to vector<2x32xf32>
    %860 = arith.addf %859, %858 : vector<2x32xf32>
    %861 = arith.divf %859, %860 : vector<2x32xf32>
    %862 = arith.mulf %853, %802 : vector<2x32xf32>
    %863 = arith.mulf %847, %855 : vector<2x32xf32>
    %864 = arith.addf %862, %863 : vector<2x32xf32>
    %865 = math.tanh %864 : vector<2x32xf32>
    %866 = arith.mulf %861, %865 : vector<2x32xf32>
    %867 = vector.extract_strided_slice %544 {offsets = [10, 0], sizes = [2, 128], strides = [1, 1]} : vector<16x256xf32> to vector<2x128xf32>
    %868 = vector.extract_strided_slice %550 {offsets = [0, 0], sizes = [2, 128], strides = [1, 1]} : vector<2x256xf32> to vector<2x128xf32>
    %869 = arith.addf %867, %868 : vector<2x128xf32>
    %870 = arith.truncf %835 : vector<2x32xf32> to vector<2x32xbf16>
    %cst_149 = arith.constant dense<0.000000e+00> : vector<2x128xf32>
    %871 = tpu.matmul %870, %551, %cst_149 {dimension_numbers = #tpu.dot_dimension_numbers<[1], [0], [0], [1], [0, 0, 1, 1], [], []>} : vector<2x32xbf16>, vector<32x128xbf16>, vector<2x128xf32> -> vector<2x128xf32>
    %872 = arith.addf %869, %871 : vector<2x128xf32>
    %873 = vector.extract_strided_slice %872 {offsets = [0, 0], sizes = [2, 32], strides = [1, 1]} : vector<2x128xf32> to vector<2x32xf32>
    %874 = arith.negf %873 : vector<2x32xf32>
    %875 = math.exp %874 : vector<2x32xf32>
    %cst_150 = arith.constant 1.000000e+00 : f32
    %876 = vector.broadcast %cst_150 : f32 to vector<2x32xf32>
    %877 = arith.addf %876, %875 : vector<2x32xf32>
    %878 = arith.divf %876, %877 : vector<2x32xf32>
    %879 = vector.extract_strided_slice %872 {offsets = [0, 32], sizes = [2, 32], strides = [1, 1]} : vector<2x128xf32> to vector<2x32xf32>
    %880 = arith.negf %879 : vector<2x32xf32>
    %881 = math.exp %880 : vector<2x32xf32>
    %cst_151 = arith.constant 1.000000e+00 : f32
    %882 = vector.broadcast %cst_151 : f32 to vector<2x32xf32>
    %883 = arith.addf %882, %881 : vector<2x32xf32>
    %884 = arith.divf %882, %883 : vector<2x32xf32>
    %885 = vector.extract_strided_slice %872 {offsets = [0, 64], sizes = [2, 32], strides = [1, 1]} : vector<2x128xf32> to vector<2x32xf32>
    %886 = math.tanh %885 : vector<2x32xf32>
    %887 = vector.extract_strided_slice %872 {offsets = [0, 96], sizes = [2, 32], strides = [1, 1]} : vector<2x128xf32> to vector<2x32xf32>
    %888 = arith.negf %887 : vector<2x32xf32>
    %889 = math.exp %888 : vector<2x32xf32>
    %cst_152 = arith.constant 1.000000e+00 : f32
    %890 = vector.broadcast %cst_152 : f32 to vector<2x32xf32>
    %891 = arith.addf %890, %889 : vector<2x32xf32>
    %892 = arith.divf %890, %891 : vector<2x32xf32>
    %893 = arith.mulf %884, %833 : vector<2x32xf32>
    %894 = arith.mulf %878, %886 : vector<2x32xf32>
    %895 = arith.addf %893, %894 : vector<2x32xf32>
    %896 = math.tanh %895 : vector<2x32xf32>
    %897 = arith.mulf %892, %896 : vector<2x32xf32>
    %898 = vector.extract_strided_slice %544 {offsets = [4, 128], sizes = [2, 128], strides = [1, 1]} : vector<16x256xf32> to vector<2x128xf32>
    %899 = vector.extract_strided_slice %550 {offsets = [0, 128], sizes = [2, 128], strides = [1, 1]} : vector<2x256xf32> to vector<2x128xf32>
    %900 = arith.addf %898, %899 : vector<2x128xf32>
    %901 = arith.truncf %866 : vector<2x32xf32> to vector<2x32xbf16>
    %cst_153 = arith.constant dense<0.000000e+00> : vector<2x128xf32>
    %902 = tpu.matmul %901, %552, %cst_153 {dimension_numbers = #tpu.dot_dimension_numbers<[1], [0], [0], [1], [0, 0, 1, 1], [], []>} : vector<2x32xbf16>, vector<32x128xbf16>, vector<2x128xf32> -> vector<2x128xf32>
    %903 = arith.addf %900, %902 : vector<2x128xf32>
    %904 = vector.extract_strided_slice %903 {offsets = [0, 0], sizes = [2, 32], strides = [1, 1]} : vector<2x128xf32> to vector<2x32xf32>
    %905 = arith.negf %904 : vector<2x32xf32>
    %906 = math.exp %905 : vector<2x32xf32>
    %cst_154 = arith.constant 1.000000e+00 : f32
    %907 = vector.broadcast %cst_154 : f32 to vector<2x32xf32>
    %908 = arith.addf %907, %906 : vector<2x32xf32>
    %909 = arith.divf %907, %908 : vector<2x32xf32>
    %910 = vector.extract_strided_slice %903 {offsets = [0, 32], sizes = [2, 32], strides = [1, 1]} : vector<2x128xf32> to vector<2x32xf32>
    %911 = arith.negf %910 : vector<2x32xf32>
    %912 = math.exp %911 : vector<2x32xf32>
    %cst_155 = arith.constant 1.000000e+00 : f32
    %913 = vector.broadcast %cst_155 : f32 to vector<2x32xf32>
    %914 = arith.addf %913, %912 : vector<2x32xf32>
    %915 = arith.divf %913, %914 : vector<2x32xf32>
    %916 = vector.extract_strided_slice %903 {offsets = [0, 64], sizes = [2, 32], strides = [1, 1]} : vector<2x128xf32> to vector<2x32xf32>
    %917 = math.tanh %916 : vector<2x32xf32>
    %918 = vector.extract_strided_slice %903 {offsets = [0, 96], sizes = [2, 32], strides = [1, 1]} : vector<2x128xf32> to vector<2x32xf32>
    %919 = arith.negf %918 : vector<2x32xf32>
    %920 = math.exp %919 : vector<2x32xf32>
    %cst_156 = arith.constant 1.000000e+00 : f32
    %921 = vector.broadcast %cst_156 : f32 to vector<2x32xf32>
    %922 = arith.addf %921, %920 : vector<2x32xf32>
    %923 = arith.divf %921, %922 : vector<2x32xf32>
    %924 = arith.mulf %915, %864 : vector<2x32xf32>
    %925 = arith.mulf %909, %917 : vector<2x32xf32>
    %926 = arith.addf %924, %925 : vector<2x32xf32>
    %927 = math.tanh %926 : vector<2x32xf32>
    %928 = arith.mulf %923, %927 : vector<2x32xf32>
    %929 = vector.extract_strided_slice %544 {offsets = [12, 0], sizes = [2, 128], strides = [1, 1]} : vector<16x256xf32> to vector<2x128xf32>
    %930 = vector.extract_strided_slice %550 {offsets = [0, 0], sizes = [2, 128], strides = [1, 1]} : vector<2x256xf32> to vector<2x128xf32>
    %931 = arith.addf %929, %930 : vector<2x128xf32>
    %932 = arith.truncf %897 : vector<2x32xf32> to vector<2x32xbf16>
    %cst_157 = arith.constant dense<0.000000e+00> : vector<2x128xf32>
    %933 = tpu.matmul %932, %551, %cst_157 {dimension_numbers = #tpu.dot_dimension_numbers<[1], [0], [0], [1], [0, 0, 1, 1], [], []>} : vector<2x32xbf16>, vector<32x128xbf16>, vector<2x128xf32> -> vector<2x128xf32>
    %934 = arith.addf %931, %933 : vector<2x128xf32>
    %935 = vector.extract_strided_slice %934 {offsets = [0, 0], sizes = [2, 32], strides = [1, 1]} : vector<2x128xf32> to vector<2x32xf32>
    %936 = arith.negf %935 : vector<2x32xf32>
    %937 = math.exp %936 : vector<2x32xf32>
    %cst_158 = arith.constant 1.000000e+00 : f32
    %938 = vector.broadcast %cst_158 : f32 to vector<2x32xf32>
    %939 = arith.addf %938, %937 : vector<2x32xf32>
    %940 = arith.divf %938, %939 : vector<2x32xf32>
    %941 = vector.extract_strided_slice %934 {offsets = [0, 32], sizes = [2, 32], strides = [1, 1]} : vector<2x128xf32> to vector<2x32xf32>
    %942 = arith.negf %941 : vector<2x32xf32>
    %943 = math.exp %942 : vector<2x32xf32>
    %cst_159 = arith.constant 1.000000e+00 : f32
    %944 = vector.broadcast %cst_159 : f32 to vector<2x32xf32>
    %945 = arith.addf %944, %943 : vector<2x32xf32>
    %946 = arith.divf %944, %945 : vector<2x32xf32>
    %947 = vector.extract_strided_slice %934 {offsets = [0, 64], sizes = [2, 32], strides = [1, 1]} : vector<2x128xf32> to vector<2x32xf32>
    %948 = math.tanh %947 : vector<2x32xf32>
    %949 = vector.extract_strided_slice %934 {offsets = [0, 96], sizes = [2, 32], strides = [1, 1]} : vector<2x128xf32> to vector<2x32xf32>
    %950 = arith.negf %949 : vector<2x32xf32>
    %951 = math.exp %950 : vector<2x32xf32>
    %cst_160 = arith.constant 1.000000e+00 : f32
    %952 = vector.broadcast %cst_160 : f32 to vector<2x32xf32>
    %953 = arith.addf %952, %951 : vector<2x32xf32>
    %954 = arith.divf %952, %953 : vector<2x32xf32>
    %955 = arith.mulf %946, %895 : vector<2x32xf32>
    %956 = arith.mulf %940, %948 : vector<2x32xf32>
    %957 = arith.addf %955, %956 : vector<2x32xf32>
    %958 = math.tanh %957 : vector<2x32xf32>
    %959 = arith.mulf %954, %958 : vector<2x32xf32>
    %960 = vector.extract_strided_slice %544 {offsets = [2, 128], sizes = [2, 128], strides = [1, 1]} : vector<16x256xf32> to vector<2x128xf32>
    %961 = vector.extract_strided_slice %550 {offsets = [0, 128], sizes = [2, 128], strides = [1, 1]} : vector<2x256xf32> to vector<2x128xf32>
    %962 = arith.addf %960, %961 : vector<2x128xf32>
    %963 = arith.truncf %928 : vector<2x32xf32> to vector<2x32xbf16>
    %cst_161 = arith.constant dense<0.000000e+00> : vector<2x128xf32>
    %964 = tpu.matmul %963, %552, %cst_161 {dimension_numbers = #tpu.dot_dimension_numbers<[1], [0], [0], [1], [0, 0, 1, 1], [], []>} : vector<2x32xbf16>, vector<32x128xbf16>, vector<2x128xf32> -> vector<2x128xf32>
    %965 = arith.addf %962, %964 : vector<2x128xf32>
    %966 = vector.extract_strided_slice %965 {offsets = [0, 0], sizes = [2, 32], strides = [1, 1]} : vector<2x128xf32> to vector<2x32xf32>
    %967 = arith.negf %966 : vector<2x32xf32>
    %968 = math.exp %967 : vector<2x32xf32>
    %cst_162 = arith.constant 1.000000e+00 : f32
    %969 = vector.broadcast %cst_162 : f32 to vector<2x32xf32>
    %970 = arith.addf %969, %968 : vector<2x32xf32>
    %971 = arith.divf %969, %970 : vector<2x32xf32>
    %972 = vector.extract_strided_slice %965 {offsets = [0, 32], sizes = [2, 32], strides = [1, 1]} : vector<2x128xf32> to vector<2x32xf32>
    %973 = arith.negf %972 : vector<2x32xf32>
    %974 = math.exp %973 : vector<2x32xf32>
    %cst_163 = arith.constant 1.000000e+00 : f32
    %975 = vector.broadcast %cst_163 : f32 to vector<2x32xf32>
    %976 = arith.addf %975, %974 : vector<2x32xf32>
    %977 = arith.divf %975, %976 : vector<2x32xf32>
    %978 = vector.extract_strided_slice %965 {offsets = [0, 64], sizes = [2, 32], strides = [1, 1]} : vector<2x128xf32> to vector<2x32xf32>
    %979 = math.tanh %978 : vector<2x32xf32>
    %980 = vector.extract_strided_slice %965 {offsets = [0, 96], sizes = [2, 32], strides = [1, 1]} : vector<2x128xf32> to vector<2x32xf32>
    %981 = arith.negf %980 : vector<2x32xf32>
    %982 = math.exp %981 : vector<2x32xf32>
    %cst_164 = arith.constant 1.000000e+00 : f32
    %983 = vector.broadcast %cst_164 : f32 to vector<2x32xf32>
    %984 = arith.addf %983, %982 : vector<2x32xf32>
    %985 = arith.divf %983, %984 : vector<2x32xf32>
    %986 = arith.mulf %977, %926 : vector<2x32xf32>
    %987 = arith.mulf %971, %979 : vector<2x32xf32>
    %988 = arith.addf %986, %987 : vector<2x32xf32>
    %989 = math.tanh %988 : vector<2x32xf32>
    %990 = arith.mulf %985, %989 : vector<2x32xf32>
    %991 = vector.extract_strided_slice %544 {offsets = [14, 0], sizes = [2, 128], strides = [1, 1]} : vector<16x256xf32> to vector<2x128xf32>
    %992 = vector.extract_strided_slice %550 {offsets = [0, 0], sizes = [2, 128], strides = [1, 1]} : vector<2x256xf32> to vector<2x128xf32>
    %993 = arith.addf %991, %992 : vector<2x128xf32>
    %994 = arith.truncf %959 : vector<2x32xf32> to vector<2x32xbf16>
    %cst_165 = arith.constant dense<0.000000e+00> : vector<2x128xf32>
    %995 = tpu.matmul %994, %551, %cst_165 {dimension_numbers = #tpu.dot_dimension_numbers<[1], [0], [0], [1], [0, 0, 1, 1], [], []>} : vector<2x32xbf16>, vector<32x128xbf16>, vector<2x128xf32> -> vector<2x128xf32>
    %996 = arith.addf %993, %995 : vector<2x128xf32>
    %997 = vector.extract_strided_slice %996 {offsets = [0, 0], sizes = [2, 32], strides = [1, 1]} : vector<2x128xf32> to vector<2x32xf32>
    %998 = arith.negf %997 : vector<2x32xf32>
    %999 = math.exp %998 : vector<2x32xf32>
    %cst_166 = arith.constant 1.000000e+00 : f32
    %1000 = vector.broadcast %cst_166 : f32 to vector<2x32xf32>
    %1001 = arith.addf %1000, %999 : vector<2x32xf32>
    %1002 = arith.divf %1000, %1001 : vector<2x32xf32>
    %1003 = vector.extract_strided_slice %996 {offsets = [0, 32], sizes = [2, 32], strides = [1, 1]} : vector<2x128xf32> to vector<2x32xf32>
    %1004 = arith.negf %1003 : vector<2x32xf32>
    %1005 = math.exp %1004 : vector<2x32xf32>
    %cst_167 = arith.constant 1.000000e+00 : f32
    %1006 = vector.broadcast %cst_167 : f32 to vector<2x32xf32>
    %1007 = arith.addf %1006, %1005 : vector<2x32xf32>
    %1008 = arith.divf %1006, %1007 : vector<2x32xf32>
    %1009 = vector.extract_strided_slice %996 {offsets = [0, 64], sizes = [2, 32], strides = [1, 1]} : vector<2x128xf32> to vector<2x32xf32>
    %1010 = math.tanh %1009 : vector<2x32xf32>
    %1011 = vector.extract_strided_slice %996 {offsets = [0, 96], sizes = [2, 32], strides = [1, 1]} : vector<2x128xf32> to vector<2x32xf32>
    %1012 = arith.negf %1011 : vector<2x32xf32>
    %1013 = math.exp %1012 : vector<2x32xf32>
    %cst_168 = arith.constant 1.000000e+00 : f32
    %1014 = vector.broadcast %cst_168 : f32 to vector<2x32xf32>
    %1015 = arith.addf %1014, %1013 : vector<2x32xf32>
    %1016 = arith.divf %1014, %1015 : vector<2x32xf32>
    %1017 = arith.mulf %1008, %957 : vector<2x32xf32>
    %1018 = arith.mulf %1002, %1010 : vector<2x32xf32>
    %1019 = arith.addf %1017, %1018 : vector<2x32xf32>
    %1020 = math.tanh %1019 : vector<2x32xf32>
    %1021 = arith.mulf %1016, %1020 : vector<2x32xf32>
    %1022 = vector.extract_strided_slice %544 {offsets = [0, 128], sizes = [2, 128], strides = [1, 1]} : vector<16x256xf32> to vector<2x128xf32>
    %1023 = vector.extract_strided_slice %550 {offsets = [0, 128], sizes = [2, 128], strides = [1, 1]} : vector<2x256xf32> to vector<2x128xf32>
    %1024 = arith.addf %1022, %1023 : vector<2x128xf32>
    %1025 = arith.truncf %990 : vector<2x32xf32> to vector<2x32xbf16>
    %cst_169 = arith.constant dense<0.000000e+00> : vector<2x128xf32>
    %1026 = tpu.matmul %1025, %552, %cst_169 {dimension_numbers = #tpu.dot_dimension_numbers<[1], [0], [0], [1], [0, 0, 1, 1], [], []>} : vector<2x32xbf16>, vector<32x128xbf16>, vector<2x128xf32> -> vector<2x128xf32>
    %1027 = arith.addf %1024, %1026 : vector<2x128xf32>
    %1028 = vector.extract_strided_slice %1027 {offsets = [0, 0], sizes = [2, 32], strides = [1, 1]} : vector<2x128xf32> to vector<2x32xf32>
    %1029 = arith.negf %1028 : vector<2x32xf32>
    %1030 = math.exp %1029 : vector<2x32xf32>
    %cst_170 = arith.constant 1.000000e+00 : f32
    %1031 = vector.broadcast %cst_170 : f32 to vector<2x32xf32>
    %1032 = arith.addf %1031, %1030 : vector<2x32xf32>
    %1033 = arith.divf %1031, %1032 : vector<2x32xf32>
    %1034 = vector.extract_strided_slice %1027 {offsets = [0, 32], sizes = [2, 32], strides = [1, 1]} : vector<2x128xf32> to vector<2x32xf32>
    %1035 = arith.negf %1034 : vector<2x32xf32>
    %1036 = math.exp %1035 : vector<2x32xf32>
    %cst_171 = arith.constant 1.000000e+00 : f32
    %1037 = vector.broadcast %cst_171 : f32 to vector<2x32xf32>
    %1038 = arith.addf %1037, %1036 : vector<2x32xf32>
    %1039 = arith.divf %1037, %1038 : vector<2x32xf32>
    %1040 = vector.extract_strided_slice %1027 {offsets = [0, 64], sizes = [2, 32], strides = [1, 1]} : vector<2x128xf32> to vector<2x32xf32>
    %1041 = math.tanh %1040 : vector<2x32xf32>
    %1042 = vector.extract_strided_slice %1027 {offsets = [0, 96], sizes = [2, 32], strides = [1, 1]} : vector<2x128xf32> to vector<2x32xf32>
    %1043 = arith.negf %1042 : vector<2x32xf32>
    %1044 = math.exp %1043 : vector<2x32xf32>
    %cst_172 = arith.constant 1.000000e+00 : f32
    %1045 = vector.broadcast %cst_172 : f32 to vector<2x32xf32>
    %1046 = arith.addf %1045, %1044 : vector<2x32xf32>
    %1047 = arith.divf %1045, %1046 : vector<2x32xf32>
    %1048 = arith.mulf %1039, %988 : vector<2x32xf32>
    %1049 = arith.mulf %1033, %1041 : vector<2x32xf32>
    %1050 = arith.addf %1048, %1049 : vector<2x32xf32>
    %1051 = math.tanh %1050 : vector<2x32xf32>
    %1052 = arith.mulf %1047, %1051 : vector<2x32xf32>
    %1053 = tpu.concatenate %587, %1052 in 1 : vector<2x32xf32>, vector<2x32xf32> -> vector<2x64xf32>
    %1054 = tpu.concatenate %649, %990 in 1 : vector<2x32xf32>, vector<2x32xf32> -> vector<2x64xf32>
    %1055 = tpu.concatenate %711, %928 in 1 : vector<2x32xf32>, vector<2x32xf32> -> vector<2x64xf32>
    %1056 = tpu.concatenate %773, %866 in 1 : vector<2x32xf32>, vector<2x32xf32> -> vector<2x64xf32>
    %1057 = tpu.concatenate %835, %804 in 1 : vector<2x32xf32>, vector<2x32xf32> -> vector<2x64xf32>
    %1058 = tpu.concatenate %897, %742 in 1 : vector<2x32xf32>, vector<2x32xf32> -> vector<2x64xf32>
    %1059 = tpu.concatenate %959, %680 in 1 : vector<2x32xf32>, vector<2x32xf32> -> vector<2x64xf32>
    %1060 = tpu.concatenate %1021, %618 in 1 : vector<2x32xf32>, vector<2x32xf32> -> vector<2x64xf32>
    %1061 = tpu.concatenate %1053, %1054, %1055, %1056, %1057, %1058, %1059, %1060 in 0 : vector<2x64xf32>, vector<2x64xf32>, vector<2x64xf32>, vector<2x64xf32>, vector<2x64xf32>, vector<2x64xf32>, vector<2x64xf32>, vector<2x64xf32> -> vector<16x64xf32>
    %1062 = arith.truncf %1061 : vector<16x64xf32> to vector<16x64xbf16>
    %1063 = tpu.concatenate %1021, %1052 in 1 : vector<2x32xf32>, vector<2x32xf32> -> vector<2x64xf32>
    %1064 = arith.truncf %1063 : vector<2x64xf32> to vector<2x64xbf16>
    %c0_173 = arith.constant 0 : index
    %c0_174 = arith.constant 0 : index
    %1065 = vector.load %arg15[%c0_173, %c0_174] : memref<64x128xbf16, #tpu.memory_space<vmem>>, vector<64x128xbf16>
    %cst_175 = arith.constant dense<0.000000e+00> : vector<2x128xf32>
    %1066 = tpu.matmul %1064, %1065, %cst_175 {dimension_numbers = #tpu.dot_dimension_numbers<[1], [0], [0], [1], [0, 0, 1, 1], [], []>} : vector<2x64xbf16>, vector<64x128xbf16>, vector<2x128xf32> -> vector<2x128xf32>
    %c0_176 = arith.constant 0 : index
    %c0_177 = arith.constant 0 : index
    %1067 = vector.load %arg16[%c0_176, %c0_177] : memref<1x128xf32, #tpu.memory_space<vmem>>, vector<1x128xf32>
    %1068 = vector.broadcast %1067 : vector<1x128xf32> to vector<2x128xf32>
    %1069 = arith.addf %1066, %1068 : vector<2x128xf32>
    %c0_178 = arith.constant 0 : index
    %c0_179 = arith.constant 0 : index
    %1070 = vector.load %arg19[%c0_178, %c0_179] : memref<2x128xf32, #tpu.memory_space<vmem>>, vector<2x128xf32>
    tpu.vector_store %arg19[%c0_178, %c0_179], %1069 {strides = array<i32>} : memref<2x128xf32, #tpu.memory_space<vmem>>, vector<2x128xf32>,
    %c0_180 = arith.constant 0 : index
    %c0_181 = arith.constant 0 : index
    %1071 = vector.load %arg17[%c0_180, %c0_181] : memref<64x128xbf16, #tpu.memory_space<vmem>>, vector<64x128xbf16>
    %cst_182 = arith.constant dense<0.000000e+00> : vector<16x128xf32>
    %1072 = tpu.matmul %1062, %1071, %cst_182 {dimension_numbers = #tpu.dot_dimension_numbers<[1], [0], [0], [1], [0, 0, 1, 1], [], []>} : vector<16x64xbf16>, vector<64x128xbf16>, vector<16x128xf32> -> vector<16x128xf32>
    %c0_183 = arith.constant 0 : index
    %c0_184 = arith.constant 0 : index
    %1073 = vector.load %arg18[%c0_183, %c0_184] : memref<1x128xf32, #tpu.memory_space<vmem>>, vector<1x128xf32>
    %1074 = vector.broadcast %1073 : vector<1x128xf32> to vector<16x128xf32>
    %1075 = arith.addf %1072, %1074 : vector<16x128xf32>
    %c0_185 = arith.constant 0 : index
    %c0_186 = arith.constant 0 : index
    %1076 = vector.load %arg20[%c0_185, %c0_186] : memref<16x128xf32, #tpu.memory_space<vmem>>, vector<16x128xf32>
    tpu.vector_store %arg20[%c0_185, %c0_186], %1075 {strides = array<i32>} : memref<16x128xf32, #tpu.memory_space<vmem>>, vector<16x128xf32>,
    return
  }
}

</mosaic_0001>

<bundles_post_ra>
// kernel: _lambda_.4
= control target key start
LH: loop header
LB: loop body
LE: loop exit
PB: predicated region body
PF: predicated region fallthrough
CT: control target
= control target key end

     0   :  { %v1767_v0 = vmov 0.0   ;;  %vm1768_vm0 = vmmov 0   ;;  %vm49_vm1 = vcmask 130048   ;;  %v1769_v4 = vmov 0   ;;  %s1771_s9 = smov 48   ;;  %s1772_s11 = smov 32   ;;  %s2175_s2 = inlined_call_operand.vmem [shape: bf16[16,96], index: 2, kind: input, shape index: {}]   ;;  %s2176_s0 = inlined_call_operand.vmem [shape: bf16[16,16], index: 0, kind: input, shape index: {}]   ;;  %s2177_s4 = inlined_call_operand.vmem [shape: bf16[16,48], index: 4, kind: input, shape index: {}]   ;;  %s2178_s5 = inlined_call_operand.vmem [shape: bf16[16,48], index: 5, kind: input, shape index: {}]   ;;  %s2179_s6 = inlined_call_operand.vmem [shape: f32[1,32], index: 6, kind: input, shape index: {}]   ;;  %s2180_s3 = inlined_call_operand.vmem [shape: f32[1,96], index: 3, kind: input, shape index: {}]   ;;  %s2181_s1 = inlined_call_operand.vmem [shape: f32[16,1], index: 1, kind: input, shape index: {}]   ;;  %s2182_s7 = inlined_call_operand.vmem [shape: bf16[2,32], index: 7, kind: output, shape index: {}]  }
   0x1   :  { %1552 = vmatprep.subr.bf16.mxu0 %v1767_v0  ;;  %v1667_v1 = vld [vmem:[%s2175_s2] sm:$0xff]   ;;  %1554 = vmatprep.mubr.msk.bf16.mxu0 %vm1768_vm0, %v1767_v0  ;;  %v95_v31 = vld [vmem:[%s2181_s1 + $0x8] sm:$0xff]  ;;  %s1773_s12 = smov 112   ;;  %s1774_s13 = smov 96   ;;  %vm1475_vm6 = vcmask 253952  }
   0x2   :  { %1558 = vmatprep.subr.bf16.mxu1 %v1767_v0  ;;  %v1668_v2 = vld [vmem:[%s2176_s0] sm:$0xff]   ;;  %1560 = vmatprep.mubr.msk.bf16.mxu1 %vm1768_vm0, %v1767_v0  ;;  %vm274_vm2 = vcmp.gt.f32.partialorder %v95_v31, 0.5  ;;  %s1775_s14 = smov 64  }
   0x3   :  { %1553 = vmatpush3.bf16.msra.mxu0 %v1667_v1  ;;  %v1833_v3 = vld [vmem:[%s2177_s4] sm:$0xff]   ;;  %1665 = vset.pattern.permute.xlu0 %v1769_v4  ;;  %s1770_s4 = smov 16   ;;  %v275_v32 = vsel %vm274_vm2, 1, %v1769_v4 }
   0x4   :  { %1564 = vmatprep.subr.bf16.mxu0 %v1767_v0  ;;  %v1840_v5 = vld [vmem:[%s2178_s5] sm:$0xff]   ;;  %1666 = vset.pattern.permute.xlu1 %v1769_v4 }
   0x5   :  { %1559 = vmatpush3.bf16.msra.mxu1 %v1833_v3  ;;  %v1487_v6 = vld [vmem:[%s2179_s6] ss:$0 sm:$0xff] }
   0x6   :  { %1555 = vmatmul.mubr.msk.bf16.vlgmr.msra.gmra.mxu0 %vm49_vm1, %v1668_v2  ;;  %250 = vrot.lane.b32.xlu0 %v1487_v6, %s1770_s4  ;;  %v1481_v7 = vld [vmem:[%s2180_s3] ss:$0 sm:$0xff] }
   0x7   :  { %1565 = vmatpush3.bf16.msra.mxu0 %v1840_v5  ;;  %1566 = vmatprep.mubr.msk.bf16.mxu0 %vm1768_vm0, %v1767_v0  ;;  %v94_v54 = vld [vmem:[%s2181_s1] sm:$0xff]  ;;  %s1776_s1 = smov 80  }
   0x8   :  { %1561 = vmatmul.mubr.bf16.vlgmr.msra.gmra.mxu1 %v1769_v4  ;;  %1576 = vmatprep.subr.bf16.mxu0 %v1767_v0  ;;  %vm185_vm4 = vcmp.gt.f32.partialorder %v94_v54, 0.5 }
   0x9   :  { %1570 = vmatprep.subr.bf16.mxu1 %v1767_v0  ;;  %1572 = vmatprep.mubr.msk.bf16.mxu1 %vm1768_vm0, %v1767_v0  ;;  %v186_v55 = vsel %vm185_vm4, 1, %v1769_v4 }
   0xa   :  { %1571 = vmatpush3.bf16.msra.mxu1 %v1833_v3 }
   0xb   :  { %1582 = vmatprep.subr.bf16.mxu1 %v1767_v0 }
   0xe   :  { %1567 = vmatmul.mubr.bf16.vlgmr.msra.gmra.mxu0 %v1769_v4 }
   0xf   :  { %1577 = vmatpush3.bf16.msra.mxu0 %v1840_v5  ;;  %1578 = vmatprep.mubr.msk.bf16.mxu0 %vm1768_vm0, %v1767_v0 }
  0x10   :  { %1588 = vmatprep.subr.bf16.mxu0 %v1767_v0 }
  0x78   :  { %v1869_v14 = vpop.permute.xlu0 %250 }
  0xc6   :  { %v87_v8 = vpop.f32.mrf.mxu0 }
  0xc7   :  { %v1867_v9 = vadd.f32 %v1481_v7, %v87_v8 }
  0xc8   :  { %v1556_v10 = vpop.f32.mrf.mxu0  ;;  %v144_v11 = vpop.f32.mrf.mxu1 }
  0xc9   :  { %v150_v50 = vadd.f32 %v144_v11, %v1867_v9 }
  0xca   :  { %v90_v12 = vpop.f32.mrf.mxu0  ;;  %v1562_v13 = vpop.f32.mrf.mxu1 }
  0xcb   :  { %v1874_v25 = vadd.f32 %v1481_v7, %v90_v12  ;;  %v1486_v51 = vmul.f32 -1.442695, %v150_v50 }
  0xcc   :  { %v1557_v15 = vpop.f32.mrf.mxu0  ;;  %v147_v16 = vpop.f32.mrf.mxu1 }
  0xce   :  { %v232_v17 = vpop.f32.mrf.mxu0  ;;  %v1563_v18 = vpop.f32.mrf.mxu1 }
  0xcf   :  { %v239_v19 = vrot.slane %v232_v17, 2  ;;  %v253_v20 = vadd.f32 %v1869_v14, %v232_v17 }
  0xd0   :  { %v1568_v21 = vpop.f32.mrf.mxu0 }
  0xd1   :  { %240 = vrot.lane.b32.xlu0 %v239_v19, %s1771_s9  ;;  %v255_v22 = vrot.slane %v253_v20, 2 }
  0xd2   :  { %v235_v23 = vpop.f32.mrf.mxu0 }
  0xd3   :  { %256 = vrot.lane.b32.xlu1 %v255_v22, %s1770_s4 }
  0xd4   :  { %v1569_v24 = vpop.f32.mrf.mxu0 }
  0xd5   :  { %277 = vperm.xlu0 %1665, %v275_v32  }
 0x143   :  { %v241_v26 = vpop.permute.xlu0 %240 }
 0x144   :  { %v243_v27 = vadd.f32 %v241_v26, %v1874_v25 }
 0x145   :  { %v257_v34 = vpop.permute.xlu1 %256 }
 0x146   :  { %v1489_v28 = vmul.f32 -1.442695, %v243_v27 }
 0x148   :  { %1671 = vpow2.f32 %v1489_v28 }
 0x150   :  { %v1885_v40 = vpop.permute.xlu0 %277 }
 0x151   :  { %vm279_vm3 = vcmp.eq.s32.totalorder %v1885_v40, 1 }
 0x155   :  { %v1672_v29 = vpop.eup %1671 }
 0x156   :  { %v247_v30 = vadd.f32 1.0, %v1672_v29 }
 0x158   :  { %1673 = vrcp.f32 %v247_v30 }
 0x165   :  { %v1674_v33 = vpop.eup %1673 }
 0x166   :  { %v259_v35 = vmul.f32 %v1674_v33, %v257_v34  ;;  %v266_v39 = vsub.f32 1.0, %v1674_v33  ;;  %v272_v42 = vmul.f32 0.0, %v1674_v33 }
 0x168   :  { %261 = vrot.lane.b32.xlu1 %v259_v35, %s1772_s11 }
 0x1da   :  { %v262_v36 = vpop.permute.xlu1 %261 }
 0x1db   :  { %v264_v37 = vadd.f32 %v262_v36, %v1874_v25 }
 0x1dd   :  { %1675 = vtanh.f32 %v264_v37 }
 0x1de   :  { %1677 = vpow2.f32 %v1486_v51 }
 0x1ea   :  { %v1676_v38 = vpop.eup %1675 }
 0x1eb   :  { %268 = vrot.lane.b32.xlu1 %v1676_v38, %s1773_s12  ;;  %v1678_v52 = vpop.eup %1677 }
 0x1ec   :  { %v154_v53 = vadd.f32 1.0, %v1678_v52 }
 0x1ee   :  { %1679 = vrcp.f32 %v154_v53 }
 0x1ef   :  { %162 = vrot.lane.b32.xlu1 %v1487_v6, %s1772_s11 }
 0x1fb   :  { %v1680_v56 = vpop.eup %1679 }
 0x1fc   :  { %v177_v7 = vsub.f32 1.0, %v1680_v56 }
 0x25d   :  { %v269_v41 = vpop.permute.xlu1 %268 }
 0x25e   :  { %v271_v43 = vmul.f32 %v269_v41, %v266_v39 }
 0x260   :  { %v273_v44 = vadd.f32 %v272_v42, %v271_v43 }
 0x261   :  { %v1888_v45 = vpop.permute.xlu1 %162 }
 0x262   :  { %v165_v46 = vadd.f32 %v1888_v45, %v144_v11  ;;  %v1893_v47 = vsel %vm279_vm3, %v273_v44, 0.0  ;;  %v183_v11 = vmul.f32 0.0, %v1680_v56 }
 0x263   :  { %v363_v48 = vpack.c.bf16 %v1893_v47, %v1893_v47  ;;  %v443_v24 = vrot.slane %v1893_v47, 2 }
 0x264   :  { %167 = vrot.lane.b32.xlu1 %v165_v46, %s1774_s13 }
 0x265   :  { %v365_v49 = vrot.slane %v363_v48, 3 }
 0x267   :  { %366 = vrot.lane.b32.xlu0 %v365_v49, %s1775_s14 }
 0x268   :  { %188 = vperm.xlu1 %1666, %v186_v55  }
 0x2d6   :  { %v168_v57 = vpop.permute.xlu1 %167 }
 0x2d7   :  { %v170_v58 = vmul.f32 %v1680_v56, %v168_v57 }
 0x2d9   :  { %172 = vrot.lane.b32.xlu0 %v170_v58, %s1772_s11  ;;  %v367_v59 = vpop.permute.xlu0 %366 }
 0x2da   :  { %1579 = vmatmul.mubr.msk.bf16.vlgmr.msra.gmra.mxu0 %vm49_vm1, %v367_v59 }
 0x2db   :  { %1589 = vmatpush3.bf16.msra.mxu0 %v1840_v5  ;;  %1590 = vmatprep.mubr.msk.bf16.mxu0 %vm1768_vm0, %v1767_v0 }
 0x2dc   :  { %1600 = vmatprep.subr.bf16.mxu0 %v1767_v0 }
 0x2e3   :  { %v1913_v8 = vpop.permute.xlu1 %188 }
 0x2e4   :  { %vm190_vm5 = vcmp.eq.s32.totalorder %v1913_v8, 1 }
 0x34b   :  { %v173_v60 = vpop.permute.xlu0 %172 }
 0x34c   :  { %v175_v61 = vadd.f32 %v173_v60, %v1867_v9 }
 0x34e   :  { %1681 = vtanh.f32 %v175_v61 }
 0x35b   :  { %v1682_v62 = vpop.eup %1681 }
 0x35c   :  { %179 = vrot.lane.b32.xlu0 %v1682_v62, %s1773_s12 }
 0x39a   :  { %v405_v63 = vpop.f32.mrf.mxu0 }
 0x39b   :  { %v412_v1 = vrot.slane %v405_v63, 4  ;;  %v423_v16 = vadd.f32 %v405_v63, %v1869_v14 }
 0x39c   :  { %v1580_v2 = vpop.f32.mrf.mxu0 }
 0x39d   :  { %413 = vrot.lane.b32.xlu0 %v412_v1, %s1771_s9  ;;  %v425_v18 = vrot.slane %v423_v16, 4 }
 0x39e   :  { %v408_v4 = vpop.f32.mrf.mxu0 }
 0x3a0   :  { %v1581_v6 = vpop.f32.mrf.mxu0 }
 0x3ce   :  { %v180_v10 = vpop.permute.xlu0 %179 }
 0x3cf   :  { %v182_v12 = vmul.f32 %v180_v10, %v177_v7 }
 0x3d1   :  { %v184_v13 = vadd.f32 %v183_v11, %v182_v12 }
 0x3d3   :  { %v1918_v15 = vsel %vm190_vm5, %v184_v13, 0.0 }
 0x3d4   :  { %v281_v17 = vpack.c.bf16 %v1918_v15, %v1918_v15  ;;  %v358_v61 = vrot.slane %v1918_v15, 6 }
 0x3d6   :  { %283 = vrot.lane.b32.xlu1 %v281_v17, %s1773_s12 }
 0x3da   :  { %426 = vrot.lane.b32.xlu1 %v425_v18, %s1770_s4 }
 0x40f   :  { %v414_v19 = vpop.permute.xlu0 %413 }
 0x410   :  { %v416_v20 = vadd.f32 %v414_v19, %v1874_v25 }
 0x412   :  { %v1493_v21 = vmul.f32 -1.442695, %v416_v20 }
 0x414   :  { %1683 = vpow2.f32 %v1493_v21 }
 0x421   :  { %v1684_v22 = vpop.eup %1683 }
 0x422   :  { %v420_v23 = vadd.f32 1.0, %v1684_v22 }
 0x424   :  { %1685 = vrcp.f32 %v420_v23 }
 0x431   :  { %v1686_v26 = vpop.eup %1685 }
 0x432   :  { %v445_v27 = vmul.f32 %v1686_v26, %v443_v24  ;;  %v436_v41 = vsub.f32 1.0, %v1686_v26 }
 0x448   :  { %v284_v28 = vpop.permute.xlu1 %283 }
 0x449   :  { %1573 = vmatmul.mubr.msk.bf16.vlgmr.msra.gmra.mxu1 %vm49_vm1, %v284_v28 }
 0x44a   :  { %1583 = vmatpush3.bf16.msra.mxu1 %v1833_v3  ;;  %1584 = vmatprep.mubr.msk.bf16.mxu1 %vm1768_vm0, %v1767_v0 }
 0x44b   :  { %1594 = vmatprep.subr.bf16.mxu1 %v1767_v0 }
 0x44c   :  { %v427_v29 = vpop.permute.xlu1 %426 }
 0x44d   :  { %v429_v30 = vmul.f32 %v1686_v26, %v427_v29 }
 0x44f   :  { %431 = vrot.lane.b32.xlu0 %v429_v30, %s1772_s11 }
 0x4c1   :  { %v432_v31 = vpop.permute.xlu0 %431 }
 0x4c2   :  { %v434_v32 = vadd.f32 %v432_v31, %v1874_v25 }
 0x4c4   :  { %1687 = vtanh.f32 %v434_v32 }
 0x4d1   :  { %v1688_v33 = vpop.eup %1687 }
 0x4d2   :  { %438 = vrot.lane.b32.xlu1 %v1688_v33, %s1773_s12 }
 0x509   :  { %v322_v34 = vpop.f32.mrf.mxu1 }
 0x50a   :  { %v338_v35 = vadd.f32 %v322_v34, %v1888_v45  ;;  %v329_v49 = vrot.slane %v322_v34, 6 }
 0x50b   :  { %v1574_v36 = vpop.f32.mrf.mxu1 }
 0x50c   :  { %v340_v37 = vrot.slane %v338_v35, 6  ;;  %v331_v50 = vadd.f32 %v329_v49, %v1867_v9 }
 0x50d   :  { %v325_v38 = vpop.f32.mrf.mxu1 }
 0x50e   :  { %341 = vrot.lane.b32.xlu0 %v340_v37, %s1774_s13  ;;  %v1491_v51 = vmul.f32 -1.442695, %v331_v50 }
 0x50f   :  { %v1575_v39 = vpop.f32.mrf.mxu1 }
 0x510   :  { %1689 = vpow2.f32 %v1491_v51 }
 0x51d   :  { %v1690_v52 = vpop.eup %1689 }
 0x51e   :  { %v335_v53 = vadd.f32 1.0, %v1690_v52 }
 0x520   :  { %1691 = vrcp.f32 %v335_v53 }
 0x52d   :  { %v1692_v54 = vpop.eup %1691 }
 0x52e   :  { %v351_v62 = vsub.f32 1.0, %v1692_v54  ;;  %v360_v1 = vmul.f32 %v1692_v54, %v358_v61 }
 0x544   :  { %v439_v42 = vpop.permute.xlu1 %438 }
 0x545   :  { %v441_v43 = vmul.f32 %v439_v42, %v436_v41 }
 0x547   :  { %v446_v44 = vadd.f32 %v445_v27, %v441_v43 }
 0x549   :  { %v1939_v46 = vsel %vm279_vm3, %v446_v44, %v443_v24 }
 0x54a   :  { %v531_v47 = vpack.c.bf16 %v1939_v46, %v1939_v46  ;;  %v611_v26 = vrot.slane %v1939_v46, 2 }
 0x54c   :  { %v533_v48 = vrot.slane %v531_v47, 2 }
 0x54e   :  { %534 = vrot.lane.b32.xlu1 %v533_v48, %s1775_s14 }
 0x580   :  { %v342_v55 = vpop.permute.xlu0 %341 }
 0x581   :  { %v344_v56 = vmul.f32 %v1692_v54, %v342_v55 }
 0x583   :  { %346 = vrot.lane.b32.xlu0 %v344_v56, %s1772_s11 }
 0x5c0   :  { %v535_v57 = vpop.permute.xlu1 %534 }
 0x5c1   :  { %1591 = vmatmul.mubr.msk.bf16.vlgmr.msra.gmra.mxu0 %vm49_vm1, %v535_v57 }
 0x5c2   :  { %1601 = vmatpush3.bf16.msra.mxu0 %v1840_v5  ;;  %1602 = vmatprep.mubr.msk.bf16.mxu0 %vm1768_vm0, %v1767_v0 }
 0x5c3   :  { %1612 = vmatprep.subr.bf16.mxu0 %v1767_v0 }
 0x5f5   :  { %v347_v58 = vpop.permute.xlu0 %346 }
 0x5f6   :  { %v349_v59 = vadd.f32 %v347_v58, %v1867_v9 }
 0x5f8   :  { %1693 = vtanh.f32 %v349_v59 }
 0x605   :  { %v1694_v60 = vpop.eup %1693 }
 0x606   :  { %353 = vrot.lane.b32.xlu1 %v1694_v60, %s1773_s12 }
 0x678   :  { %v354_v63 = vpop.permute.xlu1 %353 }
 0x679   :  { %v356_v2 = vmul.f32 %v354_v63, %v351_v62 }
 0x67b   :  { %v361_v4 = vadd.f32 %v360_v1, %v356_v2 }
 0x67d   :  { %v1956_v6 = vsel %vm190_vm5, %v361_v4, %v358_v61 }
 0x67e   :  { %v448_v7 = vpack.c.bf16 %v1956_v6, %v1956_v6  ;;  %v526_v62 = vrot.slane %v1956_v6, 6 }
 0x680   :  { %v450_v10 = vrot.slane %v448_v7, 1 }
 0x681   :  { %v573_v11 = vpop.f32.mrf.mxu0 }
 0x682   :  { %v580_v12 = vrot.slane %v573_v11, 6  ;;  %v591_v13 = vadd.f32 %v573_v11, %v1869_v14  ;;  %451 = vrot.lane.b32.xlu0 %v450_v10, %s1773_s12 }
 0x683   :  { %v1592_v15 = vpop.f32.mrf.mxu0 }
 0x684   :  { %v593_v16 = vrot.slane %v591_v13, 6  ;;  %581 = vrot.lane.b32.xlu1 %v580_v12, %s1771_s9 }
 0x685   :  { %v576_v17 = vpop.f32.mrf.mxu0 }
 0x686   :  { %594 = vrot.lane.b32.xlu0 %v593_v16, %s1770_s4 }
 0x687   :  { %v1593_v18 = vpop.f32.mrf.mxu0 }
 0x6f4   :  { %v452_v19 = vpop.permute.xlu0 %451 }
 0x6f5   :  { %1585 = vmatmul.mubr.msk.bf16.vlgmr.msra.gmra.mxu1 %vm49_vm1, %v452_v19 }
 0x6f6   :  { %v582_v20 = vpop.permute.xlu1 %581  ;;  %1595 = vmatpush3.bf16.msra.mxu1 %v1833_v3  ;;  %1596 = vmatprep.mubr.msk.bf16.mxu1 %vm1768_vm0, %v1767_v0 }
 0x6f7   :  { %v584_v21 = vadd.f32 %v582_v20, %v1874_v25  ;;  %1606 = vmatprep.subr.bf16.mxu1 %v1767_v0 }
 0x6f8   :  { %v595_v28 = vpop.permute.xlu0 %594 }
 0x6f9   :  { %v1497_v22 = vmul.f32 -1.442695, %v584_v21 }
 0x6fb   :  { %1695 = vpow2.f32 %v1497_v22 }
 0x708   :  { %v1696_v23 = vpop.eup %1695 }
 0x709   :  { %v588_v24 = vadd.f32 1.0, %v1696_v23 }
 0x70b   :  { %1697 = vrcp.f32 %v588_v24 }
 0x718   :  { %v1698_v27 = vpop.eup %1697 }
 0x719   :  { %v597_v29 = vmul.f32 %v1698_v27, %v595_v28  ;;  %v613_v30 = vmul.f32 %v1698_v27, %v611_v26  ;;  %v604_v44 = vsub.f32 1.0, %v1698_v27 }
 0x71b   :  { %599 = vrot.lane.b32.xlu1 %v597_v29, %s1772_s11 }
 0x78d   :  { %v600_v31 = vpop.permute.xlu1 %599 }
 0x78e   :  { %v602_v32 = vadd.f32 %v600_v31, %v1874_v25 }
 0x790   :  { %1699 = vtanh.f32 %v602_v32 }
 0x79d   :  { %v1700_v33 = vpop.eup %1699 }
 0x79e   :  { %606 = vrot.lane.b32.xlu0 %v1700_v33, %s1773_s12 }
 0x7b5   :  { %v490_v34 = vpop.f32.mrf.mxu1 }
 0x7b6   :  { %v506_v35 = vadd.f32 %v490_v34, %v1888_v45  ;;  %v497_v41 = vrot.slane %v490_v34, 4 }
 0x7b7   :  { %v1586_v36 = vpop.f32.mrf.mxu1 }
 0x7b8   :  { %v508_v37 = vrot.slane %v506_v35, 4  ;;  %v499_v42 = vadd.f32 %v497_v41, %v1867_v9 }
 0x7b9   :  { %v493_v38 = vpop.f32.mrf.mxu1 }
 0x7ba   :  { %509 = vrot.lane.b32.xlu1 %v508_v37, %s1774_s13  ;;  %v1495_v43 = vmul.f32 -1.442695, %v499_v42 }
 0x7bb   :  { %v1587_v39 = vpop.f32.mrf.mxu1 }
 0x7bc   :  { %1701 = vpow2.f32 %v1495_v43 }
 0x7c9   :  { %v1702_v51 = vpop.eup %1701 }
 0x7ca   :  { %v503_v53 = vadd.f32 1.0, %v1702_v51 }
 0x7cc   :  { %1703 = vrcp.f32 %v503_v53 }
 0x7d9   :  { %v1704_v54 = vpop.eup %1703 }
 0x7da   :  { %v519_v61 = vsub.f32 1.0, %v1704_v54  ;;  %v528_v1 = vmul.f32 %v1704_v54, %v526_v62 }
 0x810   :  { %v607_v46 = vpop.permute.xlu0 %606 }
 0x811   :  { %v609_v47 = vmul.f32 %v607_v46, %v604_v44 }
 0x813   :  { %v614_v48 = vadd.f32 %v613_v30, %v609_v47 }
 0x815   :  { %v1979_v49 = vsel %vm279_vm3, %v614_v48, %v611_v26 }
 0x816   :  { %v699_v50 = vpack.c.bf16 %v1979_v49, %v1979_v49  ;;  %v777_v23 = vrot.slane %v1979_v49, 2 }
 0x818   :  { %v701_v52 = vrot.slane %v699_v50, 1 }
 0x81a   :  { %702 = vrot.lane.b32.xlu0 %v701_v52, %s1775_s14 }
 0x82c   :  { %v510_v55 = vpop.permute.xlu1 %509 }
 0x82d   :  { %v512_v56 = vmul.f32 %v1704_v54, %v510_v55 }
 0x82f   :  { %514 = vrot.lane.b32.xlu1 %v512_v56, %s1772_s11 }
 0x88c   :  { %v703_v57 = vpop.permute.xlu0 %702 }
 0x88d   :  { %1603 = vmatmul.mubr.msk.bf16.vlgmr.msra.gmra.mxu0 %vm49_vm1, %v703_v57 }
 0x88e   :  { %1613 = vmatpush3.bf16.msra.mxu0 %v1840_v5  ;;  %1614 = vmatprep.mubr.msk.bf16.mxu0 %vm1768_vm0, %v1767_v0 }
 0x88f   :  { %1624 = vmatprep.subr.bf16.mxu0 %v1767_v0 }
 0x8a1   :  { %v515_v58 = vpop.permute.xlu1 %514 }
 0x8a2   :  { %v517_v59 = vadd.f32 %v515_v58, %v1867_v9 }
 0x8a4   :  { %1705 = vtanh.f32 %v517_v59 }
 0x8b1   :  { %v1706_v60 = vpop.eup %1705 }
 0x8b2   :  { %521 = vrot.lane.b32.xlu0 %v1706_v60, %s1773_s12 }
 0x924   :  { %v522_v63 = vpop.permute.xlu0 %521 }
 0x925   :  { %v524_v2 = vmul.f32 %v522_v63, %v519_v61 }
 0x927   :  { %v529_v4 = vadd.f32 %v528_v1, %v524_v2 }
 0x929   :  { %v1995_v7 = vsel %vm190_vm5, %v529_v4, %v526_v62 }
 0x92a   :  { %v616_v10 = vpack.c.bf16 %v1995_v7, %v1995_v7  ;;  %v694_v59 = vrot.slane %v1995_v7, 6 }
 0x92c   :  { %v618_v11 = vrot.slane %v616_v10, 2 }
 0x92e   :  { %619 = vrot.lane.b32.xlu1 %v618_v11, %s1773_s12 }
 0x94d   :  { %v741_v12 = vpop.f32.mrf.mxu0 }
 0x94e   :  { %v758_v13 = vadd.f32 %v741_v12, %v1869_v14  ;;  %748 = vrot.lane.b32.xlu0 %v741_v12, %s1771_s9 }
 0x94f   :  { %v1604_v6 = vpop.f32.mrf.mxu0 }
 0x950   :  { %760 = vrot.lane.b32.xlu1 %v758_v13, %s1770_s4 }
 0x951   :  { %v744_v15 = vpop.f32.mrf.mxu0 }
 0x953   :  { %v1605_v16 = vpop.f32.mrf.mxu0 }
 0x9a0   :  { %v620_v17 = vpop.permute.xlu1 %619 }
 0x9a1   :  { %1597 = vmatmul.mubr.msk.bf16.vlgmr.msra.gmra.mxu1 %vm49_vm1, %v620_v17 }
 0x9a2   :  { %1607 = vmatpush3.bf16.msra.mxu1 %v1833_v3  ;;  %1608 = vmatprep.mubr.msk.bf16.mxu1 %vm1768_vm0, %v1767_v0 }
 0x9a3   :  { %1618 = vmatprep.subr.bf16.mxu1 %v1767_v0 }
 0x9c0   :  { %v749_v18 = vpop.permute.xlu0 %748 }
 0x9c1   :  { %v751_v19 = vadd.f32 %v749_v18, %v1874_v25 }
 0x9c2   :  { %v761_v26 = vpop.permute.xlu1 %760 }
 0x9c3   :  { %v1501_v20 = vmul.f32 -1.442695, %v751_v19 }
 0x9c5   :  { %1707 = vpow2.f32 %v1501_v20 }
 0x9d2   :  { %v1708_v21 = vpop.eup %1707 }
 0x9d3   :  { %v755_v22 = vadd.f32 1.0, %v1708_v21 }
 0x9d5   :  { %1709 = vrcp.f32 %v755_v22 }
 0x9e2   :  { %v1710_v24 = vpop.eup %1709 }
 0x9e3   :  { %v763_v27 = vmul.f32 %v1710_v24, %v761_v26  ;;  %v779_v28 = vmul.f32 %v1710_v24, %v777_v23  ;;  %v770_v48 = vsub.f32 1.0, %v1710_v24 }
 0x9e5   :  { %765 = vrot.lane.b32.xlu0 %v763_v27, %s1772_s11 }
 0xa57   :  { %v766_v29 = vpop.permute.xlu0 %765 }
 0xa58   :  { %v768_v30 = vadd.f32 %v766_v29, %v1874_v25 }
 0xa5a   :  { %1711 = vtanh.f32 %v768_v30 }
 0xa61   :  { %v658_v31 = vpop.f32.mrf.mxu1 }
 0xa62   :  { %v674_v32 = vadd.f32 %v658_v31, %v1888_v45  ;;  %v665_v38 = vrot.slane %v658_v31, 2 }
 0xa63   :  { %v1598_v33 = vpop.f32.mrf.mxu1 }
 0xa64   :  { %v676_v34 = vrot.slane %v674_v32, 2  ;;  %v667_v39 = vadd.f32 %v665_v38, %v1867_v9 }
 0xa65   :  { %v661_v35 = vpop.f32.mrf.mxu1 }
 0xa66   :  { %677 = vrot.lane.b32.xlu1 %v676_v34, %s1774_s13  ;;  %v1499_v41 = vmul.f32 -1.442695, %v667_v39 }
 0xa67   :  { %v1712_v36 = vpop.eup %1711  ;;  %v1599_v37 = vpop.f32.mrf.mxu1 }
 0xa68   :  { %772 = vrot.lane.b32.xlu0 %v1712_v36, %s1773_s12  ;;  %1713 = vpow2.f32 %v1499_v41 }
 0xa75   :  { %v1714_v42 = vpop.eup %1713 }
 0xa76   :  { %v671_v43 = vadd.f32 1.0, %v1714_v42 }
 0xa78   :  { %1715 = vrcp.f32 %v671_v43 }
 0xa85   :  { %v1716_v44 = vpop.eup %1715 }
 0xa86   :  { %v687_v58 = vsub.f32 1.0, %v1716_v44  ;;  %v696_v61 = vmul.f32 %v1716_v44, %v694_v59 }
 0xad8   :  { %v678_v46 = vpop.permute.xlu1 %677 }
 0xad9   :  { %v680_v47 = vmul.f32 %v1716_v44, %v678_v46 }
 0xada   :  { %v773_v49 = vpop.permute.xlu0 %772 }
 0xadb   :  { %v775_v50 = vmul.f32 %v773_v49, %v770_v48  ;;  %682 = vrot.lane.b32.xlu1 %v680_v47, %s1772_s11 }
 0xadd   :  { %v780_v51 = vadd.f32 %v779_v28, %v775_v50 }
 0xadf   :  { %v2019_v52 = vsel %vm279_vm3, %v780_v51, %v777_v23 }
 0xae0   :  { %v861_v53 = vpack.c.bf16 %v2019_v52, %v2019_v52  ;;  %v940_v22 = vrot.slane %v2019_v52, 2 }
 0xae2   :  { %863 = vrot.lane.b32.xlu0 %v861_v53, %s1775_s14 }
 0xb4d   :  { %v683_v54 = vpop.permute.xlu1 %682 }
 0xb4e   :  { %v685_v55 = vadd.f32 %v683_v54, %v1867_v9 }
 0xb50   :  { %1717 = vtanh.f32 %v685_v55 }
 0xb54   :  { %v864_v56 = vpop.permute.xlu0 %863 }
 0xb55   :  { %1615 = vmatmul.mubr.msk.bf16.vlgmr.msra.gmra.mxu0 %vm49_vm1, %v864_v56 }
 0xb56   :  { %1625 = vmatpush3.bf16.msra.mxu0 %v1840_v5  ;;  %1626 = vmatprep.mubr.msk.bf16.mxu0 %vm1768_vm0, %v1767_v0 }
 0xb57   :  { %1636 = vmatprep.subr.bf16.mxu0 %v1767_v0 }
 0xb5d   :  { %v1718_v57 = vpop.eup %1717 }
 0xb5e   :  { %689 = vrot.lane.b32.xlu1 %v1718_v57, %s1773_s12 }
 0xbd0   :  { %v690_v60 = vpop.permute.xlu1 %689 }
 0xbd1   :  { %v692_v62 = vmul.f32 %v690_v60, %v687_v58 }
 0xbd3   :  { %v697_v63 = vadd.f32 %v696_v61, %v692_v62 }
 0xbd5   :  { %v2034_v1 = vsel %vm190_vm5, %v697_v63, %v694_v59 }
 0xbd6   :  { %v782_v2 = vpack.c.bf16 %v2034_v1, %v2034_v1  ;;  %v856_v57 = vrot.slane %v2034_v1, 6 }
 0xbd8   :  { %v784_v4 = vrot.slane %v782_v2, 3 }
 0xbda   :  { %785 = vrot.lane.b32.xlu0 %v784_v4, %s1773_s12 }
 0xc15   :  { %v902_v10 = vpop.f32.mrf.mxu0 }
 0xc16   :  { %v909_v11 = vrot.slane %v902_v10, 2  ;;  %v920_v12 = vadd.f32 %v902_v10, %v1869_v14 }
 0xc17   :  { %v1616_v13 = vpop.f32.mrf.mxu0 }
 0xc18   :  { %v922_v7 = vrot.slane %v920_v12, 2  ;;  %910 = vrot.lane.b32.xlu1 %v909_v11, %s1771_s9 }
 0xc19   :  { %v905_v6 = vpop.f32.mrf.mxu0 }
 0xc1a   :  { %923 = vrot.lane.b32.xlu0 %v922_v7, %s1770_s4 }
 0xc1b   :  { %v1617_v15 = vpop.f32.mrf.mxu0 }
 0xc4c   :  { %v786_v16 = vpop.permute.xlu0 %785 }
 0xc4d   :  { %1609 = vmatmul.mubr.msk.bf16.vlgmr.msra.gmra.mxu1 %vm49_vm1, %v786_v16 }
 0xc4e   :  { %1619 = vmatpush3.bf16.msra.mxu1 %v1833_v3  ;;  %1620 = vmatprep.mubr.msk.bf16.mxu1 %vm1768_vm0, %v1767_v0 }
 0xc4f   :  { %1630 = vmatprep.subr.bf16.mxu1 %v1767_v0 }
 0xc8a   :  { %v911_v17 = vpop.permute.xlu1 %910 }
 0xc8b   :  { %v913_v18 = vadd.f32 %v911_v17, %v1867_v9 }
 0xc8c   :  { %v924_v24 = vpop.permute.xlu0 %923 }
 0xc8d   :  { %v1505_v19 = vmul.f32 -1.442695, %v913_v18 }
 0xc8f   :  { %1719 = vpow2.f32 %v1505_v19 }
 0xc9c   :  { %v1720_v20 = vpop.eup %1719 }
 0xc9d   :  { %v917_v21 = vadd.f32 1.0, %v1720_v20 }
 0xc9f   :  { %1721 = vrcp.f32 %v917_v21 }
 0xcac   :  { %v1722_v23 = vpop.eup %1721 }
 0xcad   :  { %v926_v26 = vmul.f32 %v1722_v23, %v924_v24  ;;  %v942_v27 = vmul.f32 %v1722_v23, %v940_v22  ;;  %v933_v44 = vsub.f32 1.0, %v1722_v23 }
 0xcaf   :  { %928 = vrot.lane.b32.xlu1 %v926_v26, %s1772_s11 }
 0xd0d   :  { %v824_v28 = vpop.f32.mrf.mxu1 }
 0xd0e   :  { %v837_v29 = vadd.f32 %v824_v28, %v1888_v45  ;;  %v830_v36 = vadd.f32 %v824_v28, %v1874_v25 }
 0xd0f   :  { %v1610_v30 = vpop.f32.mrf.mxu1 }
 0xd10   :  { %839 = vrot.lane.b32.xlu0 %v837_v29, %s1774_s13  ;;  %v1503_v37 = vmul.f32 -1.442695, %v830_v36 }
 0xd11   :  { %v827_v31 = vpop.f32.mrf.mxu1 }
 0xd13   :  { %v1611_v32 = vpop.f32.mrf.mxu1 }
 0xd21   :  { %v929_v33 = vpop.permute.xlu1 %928 }
 0xd22   :  { %v931_v34 = vadd.f32 %v929_v33, %v1867_v9 }
 0xd24   :  { %1723 = vtanh.f32 %v931_v34 }
 0xd25   :  { %1725 = vpow2.f32 %v1503_v37 }
 0xd31   :  { %v1724_v35 = vpop.eup %1723 }
 0xd32   :  { %935 = vrot.lane.b32.xlu1 %v1724_v35, %s1773_s12  ;;  %v1726_v38 = vpop.eup %1725 }
 0xd33   :  { %v834_v39 = vadd.f32 1.0, %v1726_v38 }
 0xd35   :  { %1727 = vrcp.f32 %v834_v39 }
 0xd42   :  { %v1728_v41 = vpop.eup %1727 }
 0xd43   :  { %v849_v56 = vsub.f32 1.0, %v1728_v41  ;;  %v858_v59 = vmul.f32 %v1728_v41, %v856_v57 }
 0xd82   :  { %v840_v42 = vpop.permute.xlu0 %839 }
 0xd83   :  { %v842_v43 = vmul.f32 %v1728_v41, %v840_v42 }
 0xd85   :  { %844 = vrot.lane.b32.xlu0 %v842_v43, %s1772_s11 }
 0xda4   :  { %v936_v46 = vpop.permute.xlu1 %935 }
 0xda5   :  { %v938_v47 = vmul.f32 %v936_v46, %v933_v44 }
 0xda7   :  { %v943_v48 = vadd.f32 %v942_v27, %v938_v47 }
 0xda9   :  { %v2058_v49 = vsel %vm190_vm5, %v943_v48, %v940_v22 }
 0xdaa   :  { %v1027_v50 = vpack.c.bf16 %v2058_v49, %v2058_v49  ;;  %v1107_v19 = vrot.slane %v2058_v49, 2 }
 0xdac   :  { %v1029_v51 = vrot.slane %v1027_v50, 3 }
 0xdae   :  { %1030 = vrot.lane.b32.xlu1 %v1029_v51, %s1775_s14 }
 0xdf7   :  { %v845_v52 = vpop.permute.xlu0 %844 }
 0xdf8   :  { %v847_v53 = vadd.f32 %v845_v52, %v1874_v25 }
 0xdfa   :  { %1729 = vtanh.f32 %v847_v53 }
 0xe07   :  { %v1730_v54 = vpop.eup %1729 }
 0xe08   :  { %851 = vrot.lane.b32.xlu0 %v1730_v54, %s1773_s12 }
 0xe20   :  { %v1031_v55 = vpop.permute.xlu1 %1030 }
 0xe21   :  { %1627 = vmatmul.mubr.msk.bf16.vlgmr.msra.gmra.mxu0 %vm49_vm1, %v1031_v55 }
 0xe22   :  { %1637 = vmatpush3.bf16.msra.mxu0 %v1840_v5  ;;  %1638 = vmatprep.mubr.msk.bf16.mxu0 %vm1768_vm0, %v1767_v0 }
 0xe23   :  { %1648 = vmatprep.subr.bf16.mxu0 %v1767_v0 }
 0xe7a   :  { %v852_v58 = vpop.permute.xlu0 %851 }
 0xe7b   :  { %v854_v60 = vmul.f32 %v852_v58, %v849_v56 }
 0xe7d   :  { %v859_v61 = vadd.f32 %v858_v59, %v854_v60 }
 0xe7f   :  { %v2073_v62 = vsel %vm279_vm3, %v859_v61, %v856_v57 }
 0xe80   :  { %v945_v63 = vpack.c.bf16 %v2073_v62, %v2073_v62  ;;  %v1022_v55 = vrot.slane %v2073_v62, 6 }
 0xe82   :  { %947 = vrot.lane.b32.xlu1 %v945_v63, %s1773_s12 }
 0xee1   :  { %v1069_v2 = vpop.f32.mrf.mxu0 }
 0xee2   :  { %v1076_v4 = vrot.slane %v1069_v2, 4  ;;  %v1087_v10 = vadd.f32 %v1069_v2, %v1869_v14 }
 0xee3   :  { %v1628_v11 = vpop.f32.mrf.mxu0 }
 0xee4   :  { %v1089_v12 = vrot.slane %v1087_v10, 4  ;;  %1077 = vrot.lane.b32.xlu0 %v1076_v4, %s1771_s9 }
 0xee5   :  { %v1072_v1 = vpop.f32.mrf.mxu0 }
 0xee6   :  { %1090 = vrot.lane.b32.xlu1 %v1089_v12, %s1770_s4 }
 0xee7   :  { %v1629_v13 = vpop.f32.mrf.mxu0 }
 0xef4   :  { %v948_v7 = vpop.permute.xlu1 %947 }
 0xef5   :  { %1621 = vmatmul.mubr.msk.bf16.vlgmr.msra.gmra.mxu1 %vm49_vm1, %v948_v7 }
 0xef6   :  { %1631 = vmatpush3.bf16.msra.mxu1 %v1833_v3  ;;  %1632 = vmatprep.mubr.msk.bf16.mxu1 %vm1768_vm0, %v1767_v0 }
 0xef7   :  { %1642 = vmatprep.subr.bf16.mxu1 %v1767_v0 }
 0xf56   :  { %v1078_v6 = vpop.permute.xlu0 %1077 }
 0xf57   :  { %v1080_v15 = vadd.f32 %v1078_v6, %v1867_v9 }
 0xf58   :  { %v1091_v21 = vpop.permute.xlu1 %1090 }
 0xf59   :  { %v1509_v16 = vmul.f32 -1.442695, %v1080_v15 }
 0xf5b   :  { %1731 = vpow2.f32 %v1509_v16 }
 0xf68   :  { %v1732_v17 = vpop.eup %1731 }
 0xf69   :  { %v1084_v18 = vadd.f32 1.0, %v1732_v17 }
 0xf6b   :  { %1733 = vrcp.f32 %v1084_v18 }
 0xf78   :  { %v1734_v20 = vpop.eup %1733 }
 0xf79   :  { %v1093_v22 = vmul.f32 %v1734_v20, %v1091_v21  ;;  %v1109_v23 = vmul.f32 %v1734_v20, %v1107_v19  ;;  %v1100_v43 = vsub.f32 1.0, %v1734_v20 }
 0xf7b   :  { %1095 = vrot.lane.b32.xlu0 %v1093_v22, %s1772_s11 }
 0xfb5   :  { %v986_v24 = vpop.f32.mrf.mxu1 }
 0xfb6   :  { %v1002_v26 = vadd.f32 %v986_v24, %v1888_v45  ;;  %v993_v34 = vrot.slane %v986_v24, 6 }
 0xfb7   :  { %v1622_v27 = vpop.f32.mrf.mxu1 }
 0xfb8   :  { %v1004_v28 = vrot.slane %v1002_v26, 6  ;;  %v995_v35 = vadd.f32 %v993_v34, %v1874_v25 }
 0xfb9   :  { %v989_v29 = vpop.f32.mrf.mxu1 }
 0xfba   :  { %1005 = vrot.lane.b32.xlu1 %v1004_v28, %s1774_s13  ;;  %v1507_v36 = vmul.f32 -1.442695, %v995_v35 }
 0xfbb   :  { %v1623_v30 = vpop.f32.mrf.mxu1 }
 0xfed   :  { %v1096_v31 = vpop.permute.xlu0 %1095 }
 0xfee   :  { %v1098_v32 = vadd.f32 %v1096_v31, %v1867_v9 }
 0xff0   :  { %1735 = vtanh.f32 %v1098_v32 }
 0xff1   :  { %1737 = vpow2.f32 %v1507_v36 }
 0xffd   :  { %v1736_v33 = vpop.eup %1735 }
 0xffe   :  { %1102 = vrot.lane.b32.xlu1 %v1736_v33, %s1773_s12  ;;  %v1738_v37 = vpop.eup %1737 }
 0xfff   :  { %v999_v38 = vadd.f32 1.0, %v1738_v37 }
0x1001   :  { %1739 = vrcp.f32 %v999_v38 }
0x100e   :  { %v1740_v39 = vpop.eup %1739 }
0x100f   :  { %v1015_v56 = vsub.f32 1.0, %v1740_v39  ;;  %v1024_v58 = vmul.f32 %v1740_v39, %v1022_v55 }
0x102c   :  { %v1006_v41 = vpop.permute.xlu1 %1005 }
0x102d   :  { %v1008_v42 = vmul.f32 %v1740_v39, %v1006_v41 }
0x102f   :  { %1010 = vrot.lane.b32.xlu0 %v1008_v42, %s1772_s11 }
0x1070   :  { %v1103_v44 = vpop.permute.xlu1 %1102 }
0x1071   :  { %v1105_v46 = vmul.f32 %v1103_v44, %v1100_v43 }
0x1073   :  { %v1110_v47 = vadd.f32 %v1109_v23, %v1105_v46 }
0x1075   :  { %v2097_v48 = vsel %vm190_vm5, %v1110_v47, %v1107_v19 }
0x1076   :  { %v1195_v49 = vpack.c.bf16 %v2097_v48, %v2097_v48 }
0x1078   :  { %v1197_v50 = vrot.slane %v1195_v49, 2 }
0x107a   :  { %1198 = vrot.lane.b32.xlu1 %v1197_v50, %s1775_s14 }
0x10a1   :  { %v1011_v51 = vpop.permute.xlu0 %1010 }
0x10a2   :  { %v1013_v52 = vadd.f32 %v1011_v51, %v1874_v25 }
0x10a4   :  { %1741 = vtanh.f32 %v1013_v52 }
0x10b1   :  { %v1742_v53 = vpop.eup %1741 }
0x10b2   :  { %1017 = vrot.lane.b32.xlu0 %v1742_v53, %s1773_s12 }
0x10ec   :  { %v1199_v54 = vpop.permute.xlu1 %1198 }
0x10ed   :  { %1639 = vmatmul.mubr.msk.bf16.vlgmr.msra.gmra.mxu0 %vm49_vm1, %v1199_v54 }
0x10ee   :  { %1649 = vmatpush3.bf16.msra.mxu0 %v1840_v5  ;;  %1650 = vmatprep.mubr.msk.bf16.mxu0 %vm1768_vm0, %v1767_v0 }
0x1124   :  { %v1018_v57 = vpop.permute.xlu0 %1017 }
0x1125   :  { %v1020_v59 = vmul.f32 %v1018_v57, %v1015_v56 }
0x1127   :  { %v1025_v60 = vadd.f32 %v1024_v58, %v1020_v59 }
0x1129   :  { %v2111_v61 = vsel %vm279_vm3, %v1025_v60, %v1022_v55 }
0x112a   :  { %v1112_v63 = vpack.c.bf16 %v2111_v61, %v2111_v61  ;;  %v1190_v53 = vrot.slane %v2111_v61, 6 }
0x112c   :  { %v1114_v2 = vrot.slane %v1112_v63, 1 }
0x112e   :  { %1115 = vrot.lane.b32.xlu0 %v1114_v2, %s1773_s12 }
0x11a0   :  { %v1116_v5 = vpop.permute.xlu0 %1115 }
0x11a1   :  { %1633 = vmatmul.mubr.msk.bf16.vlgmr.msra.gmra.mxu1 %vm49_vm1, %v1116_v5 }
0x11a2   :  { %1643 = vmatpush3.bf16.msra.mxu1 %v1833_v3  ;;  %1644 = vmatprep.mubr.msk.bf16.mxu1 %vm1768_vm0, %v1767_v0  ;;  %v1275_v0 = vrot.slane %v2097_v48, 2 }
0x11ad   :  { %v1237_v62 = vpop.f32.mrf.mxu0 }
0x11ae   :  { %v1244_v4 = vrot.slane %v1237_v62, 6  ;;  %v1255_v10 = vadd.f32 %v1237_v62, %v1869_v14 }
0x11af   :  { %v1640_v11 = vpop.f32.mrf.mxu0 }
0x11b0   :  { %v1257_v12 = vrot.slane %v1255_v10, 6  ;;  %1245 = vrot.lane.b32.xlu1 %v1244_v4, %s1771_s9 }
0x11b1   :  { %v1240_v1 = vpop.f32.mrf.mxu0 }
0x11b2   :  { %1258 = vrot.lane.b32.xlu0 %v1257_v12, %s1770_s4 }
0x11b3   :  { %v1641_v13 = vpop.f32.mrf.mxu0 }
0x1222   :  { %v1246_v7 = vpop.permute.xlu1 %1245 }
0x1223   :  { %v1248_v6 = vadd.f32 %v1246_v7, %v1867_v9 }
0x1224   :  { %v1259_v18 = vpop.permute.xlu0 %1258 }
0x1225   :  { %v1513_v15 = vmul.f32 -1.442695, %v1248_v6 }
0x1227   :  { %1743 = vpow2.f32 %v1513_v15 }
0x1234   :  { %v1744_v3 = vpop.eup %1743 }
0x1235   :  { %v1252_v16 = vadd.f32 1.0, %v1744_v3 }
0x1237   :  { %1745 = vrcp.f32 %v1252_v16 }
0x1244   :  { %v1746_v17 = vpop.eup %1745 }
0x1245   :  { %v1261_v19 = vmul.f32 %v1746_v17, %v1259_v18  ;;  %v1277_v20 = vmul.f32 %v1746_v17, %v1275_v0  ;;  %v1268_v39 = vsub.f32 1.0, %v1746_v17 }
0x1247   :  { %1263 = vrot.lane.b32.xlu0 %v1261_v19, %s1772_s11 }
0x1261   :  { %v1154_v21 = vpop.f32.mrf.mxu1 }
0x1262   :  { %v1170_v22 = vadd.f32 %v1154_v21, %v1888_v45  ;;  %v1161_v28 = vrot.slane %v1154_v21, 4 }
0x1263   :  { %v1634_v23 = vpop.f32.mrf.mxu1 }
0x1264   :  { %v1172_v24 = vrot.slane %v1170_v22, 4  ;;  %v1163_v29 = vadd.f32 %v1161_v28, %v1874_v25 }
0x1265   :  { %v1157_v26 = vpop.f32.mrf.mxu1 }
0x1266   :  { %1173 = vrot.lane.b32.xlu1 %v1172_v24, %s1774_s13  ;;  %v1511_v30 = vmul.f32 -1.442695, %v1163_v29 }
0x1267   :  { %v1635_v27 = vpop.f32.mrf.mxu1 }
0x1268   :  { %1747 = vpow2.f32 %v1511_v30 }
0x1275   :  { %v1748_v33 = vpop.eup %1747 }
0x1276   :  { %v1167_v34 = vadd.f32 1.0, %v1748_v33 }
0x12b9   :  { %v1264_v31 = vpop.permute.xlu0 %1263 }
0x12ba   :  { %v1266_v32 = vadd.f32 %v1264_v31, %v1867_v9 }
0x12bc   :  { %1749 = vtanh.f32 %v1266_v32 }
0x12bd   :  { %1751 = vrcp.f32 %v1167_v34 }
0x12c9   :  { %v1750_v35 = vpop.eup %1749 }
0x12ca   :  { %1270 = vrot.lane.b32.xlu0 %v1750_v35, %s1773_s12  ;;  %v1752_v36 = vpop.eup %1751 }
0x12cb   :  { %v1183_v52 = vsub.f32 1.0, %v1752_v36  ;;  %v1192_v55 = vmul.f32 %v1752_v36, %v1190_v53 }
0x12d8   :  { %v1174_v37 = vpop.permute.xlu1 %1173 }
0x12d9   :  { %v1176_v38 = vmul.f32 %v1752_v36, %v1174_v37 }
0x12db   :  { %1178 = vrot.lane.b32.xlu1 %v1176_v38, %s1772_s11 }
0x133c   :  { %v1271_v41 = vpop.permute.xlu0 %1270 }
0x133d   :  { %v1273_v42 = vmul.f32 %v1271_v41, %v1268_v39 }
0x133f   :  { %v1278_v43 = vadd.f32 %v1277_v20, %v1273_v42 }
0x1341   :  { %v2134_v44 = vsel %vm190_vm5, %v1278_v43, %v1275_v0 }
0x1342   :  { %v1363_v46 = vpack.c.bf16 %v2134_v44, %v2134_v44  ;;  %v1441_v6 = vrot.slane %v2134_v44, 2 }
0x1344   :  { %v1365_v47 = vrot.slane %v1363_v46, 1 }
0x1346   :  { %1366 = vrot.lane.b32.xlu0 %v1365_v47, %s1775_s14 }
0x134d   :  { %v1179_v48 = vpop.permute.xlu1 %1178 }
0x134e   :  { %v1181_v49 = vadd.f32 %v1179_v48, %v1874_v25  ;;  %v1777_v48 = vmov 1966171168  }
0x1350   :  { %1753 = vtanh.f32 %v1181_v49  ;;  %v1459_v49 = vunpack.c.l.s4 %v1777_v48 }
0x1352   :  { %v1460_v8 = vunpack.c.0.s8 %v1459_v49 }
0x135d   :  { %v1754_v50 = vpop.eup %1753 }
0x135e   :  { %1185 = vrot.lane.b32.xlu1 %v1754_v50, %s1773_s12  ;;  %v1461_v50 = vlaneseq }
0x13b8   :  { %v1367_v51 = vpop.permute.xlu0 %1366 }
0x13b9   :  { %1651 = vmatmul.mubr.msk.bf16.vlgmr.msra.gmra.mxu0 %vm49_vm1, %v1367_v51  ;;  %v1462_v51 = vshrl.u32 %v1461_v50, 7 }
0x13d0   :  { %v1186_v54 = vpop.permute.xlu1 %1185 }
0x13d1   :  { %v1188_v56 = vmul.f32 %v1186_v54, %v1183_v52 }
0x13d3   :  { %v1193_v57 = vadd.f32 %v1192_v55, %v1188_v56 }
0x13d5   :  { %v2145_v58 = vsel %vm279_vm3, %v1193_v57, %v1190_v53  ;;  %v1463_v53 = vsub.s32 %v1460_v8, %v1462_v51 }
0x13d6   :  { %v1280_v59 = vpack.c.bf16 %v2145_v58, %v2145_v58  ;;  %v1358_v42 = vrot.slane %v2145_v58, 6 }
0x13d8   :  { %v1282_v60 = vrot.slane %v1280_v59, 2 }
0x13da   :  { %1283 = vrot.lane.b32.xlu1 %v1282_v60, %s1773_s12 }
0x144c   :  { %v1284_v63 = vpop.permute.xlu1 %1283 }
0x144d   :  { %1645 = vmatmul.mubr.msk.bf16.vlgmr.msra.gmra.mxu1 %vm49_vm1, %v1284_v63 }
0x1479   :  { %v1405_v2 = vpop.f32.mrf.mxu0 }
0x147a   :  { %v1422_v61 = vadd.f32 %v1405_v2, %v1869_v14  ;;  %1412 = vrot.lane.b32.xlu0 %v1405_v2, %s1771_s9 }
0x147b   :  { %v1652_v5 = vpop.f32.mrf.mxu0 }
0x147c   :  { %1424 = vrot.lane.b32.xlu1 %v1422_v61, %s1770_s4 }
0x147d   :  { %v1408_v62 = vpop.f32.mrf.mxu0 }
0x147f   :  { %v1653_v4 = vpop.f32.mrf.mxu0 }
0x14ec   :  { %v1413_v10 = vpop.permute.xlu0 %1412 }
0x14ed   :  { %v1415_v11 = vadd.f32 %v1413_v10, %v1867_v9 }
0x14ee   :  { %v1425_v14 = vpop.permute.xlu1 %1424 }
0x14ef   :  { %v1517_v12 = vmul.f32 -1.442695, %v1415_v11 }
0x14f1   :  { %1755 = vpow2.f32 %v1517_v12 }
0x14fe   :  { %v1756_v1 = vpop.eup %1755 }
0x14ff   :  { %v1419_v13 = vadd.f32 1.0, %v1756_v1 }
0x1501   :  { %1757 = vrcp.f32 %v1419_v13 }
0x150d   :  { %v1322_v7 = vpop.f32.mrf.mxu1 }
0x150e   :  { %v1758_v15 = vpop.eup %1757  ;;  %v1338_v3 = vadd.f32 %v1322_v7, %v1888_v45  ;;  %v1329_v21 = vrot.slane %v1322_v7, 2 }
0x150f   :  { %v1427_v16 = vmul.f32 %v1758_v15, %v1425_v14  ;;  %v1646_v0 = vpop.f32.mrf.mxu1  ;;  %v1443_v17 = vmul.f32 %v1758_v15, %v1441_v6  ;;  %v1434_v34 = vsub.f32 1.0, %v1758_v15 }
0x1510   :  { %v1340_v18 = vrot.slane %v1338_v3, 2  ;;  %v1331_v22 = vadd.f32 %v1329_v21, %v1874_v25 }
0x1511   :  { %v1325_v19 = vpop.f32.mrf.mxu1  ;;  %1429 = vrot.lane.b32.xlu1 %v1427_v16, %s1772_s11 }
0x1512   :  { %1341 = vrot.lane.b32.xlu0 %v1340_v18, %s1774_s13  ;;  %v1515_v23 = vmul.f32 -1.442695, %v1331_v22 }
0x1513   :  { %v1647_v20 = vpop.f32.mrf.mxu1 }
0x1514   :  { %1759 = vpow2.f32 %v1515_v23 }
0x1521   :  { %v1760_v24 = vpop.eup %1759 }
0x1522   :  { %v1335_v26 = vadd.f32 1.0, %v1760_v24 }
0x1524   :  { %1761 = vrcp.f32 %v1335_v26 }
0x1531   :  { %v1762_v45 = vpop.eup %1761 }
0x1532   :  { %v1351_v41 = vsub.f32 1.0, %v1762_v45  ;;  %v1360_v44 = vmul.f32 %v1762_v45, %v1358_v42 }
0x1583   :  { %v1430_v27 = vpop.permute.xlu1 %1429 }
0x1584   :  { %v1432_v28 = vadd.f32 %v1430_v27, %v1867_v9  ;;  %v1342_v29 = vpop.permute.xlu0 %1341 }
0x1585   :  { %v1344_v30 = vmul.f32 %v1762_v45, %v1342_v29 }
0x1586   :  { %1763 = vtanh.f32 %v1432_v28 }
0x1587   :  { %1346 = vrot.lane.b32.xlu0 %v1344_v30, %s1772_s11 }
0x1593   :  { %v1764_v31 = vpop.eup %1763 }
0x1594   :  { %1436 = vrot.lane.b32.xlu1 %v1764_v31, %s1773_s12 }
0x15f9   :  { %v1347_v32 = vpop.permute.xlu0 %1346 }
0x15fa   :  { %v1349_v33 = vadd.f32 %v1347_v32, %v1874_v25 }
0x15fc   :  { %1765 = vtanh.f32 %v1349_v33 }
0x1606   :  { %v1437_v35 = vpop.permute.xlu1 %1436 }
0x1607   :  { %v1439_v36 = vmul.f32 %v1437_v35, %v1434_v34 }
0x1609   :  { %v1766_v37 = vpop.eup %1765  ;;  %v1444_v38 = vadd.f32 %v1443_v17, %v1439_v36 }
0x160a   :  { %1353 = vrot.lane.b32.xlu0 %v1766_v37, %s1773_s12 }
0x160b   :  { %v1445_v9 = vsel %vm190_vm5, %v1444_v38, %v1441_v6 }
0x160c   :  { %v1451_v39 = vrot.slane %v1445_v9, 2 }
0x160e   :  { %1452 = vrot.lane.b32.xlu0 %v1451_v39, %s1776_s1 }
0x167c   :  { %v1354_v43 = vpop.permute.xlu0 %1353 }
0x167d   :  { %v1356_v25 = vmul.f32 %v1354_v43, %v1351_v41 }
0x167f   :  { %v1361_v46 = vadd.f32 %v1360_v44, %v1356_v25 }
0x1680   :  { %v1453_v52 = vpop.permute.xlu0 %1452 }
0x1681   :  { %v1362_v47 = vsel %vm279_vm3, %v1361_v46, %v1358_v42 }
0x1682   :  { %1447 = vrot.lane.b32.xlu1 %v1362_v47, %s1773_s12 }
0x16f4   :  { %v1448_v54 = vpop.permute.xlu1 %1447 }
0x16f5   :  { %v1455_v55 = vsel %vm49_vm1, %v1448_v54, %v1453_v52 }
0x16f6   :  { %v1456_v56 = vpack.c.bf16 %v1455_v55, %v1455_v55 }
0x16f8   :  { %v1464_v57 = vrot.slane %v1456_v56, %v1463_v53 }
0x16fa   :  { %v1465_v58 = vcombine.high %v1464_v57, %v1464_v57 }
0x16fc   :  { %v1472_v59 = vrot.slane %v1465_v58, %v1463_v53 }
0x16fe   :  { %v1473_v60 = vcombine.high %v1472_v59, %v1472_v59 }
0x1700   :  { %1476 = vst.msk [vmem:[%s2182_s7] sm:$0x1] %vm1475_vm6, %v1473_v60 }

// kernel: _lambda_.3
= control target key start
LH: loop header
LB: loop body
LE: loop exit
PB: predicated region body
PF: predicated region fallthrough
CT: control target
= control target key end

     0   :  { %v1644_v0 = vmov 0.0   ;;  %vm60_vm0 = vcmask 130048   ;;  %vm1645_vm1 = vmmov 0   ;;  %v1646_v4 = vmov 0   ;;  %s1647_s9 = smov 16   ;;  %s1649_s17 = smov 32   ;;  %s2067_s2 = inlined_call_operand.vmem [shape: bf16[16,96], index: 2, kind: input, shape index: {}]   ;;  %s2068_s4 = inlined_call_operand.vmem [shape: bf16[16,48], index: 4, kind: input, shape index: {}]   ;;  %s2069_s0 = inlined_call_operand.vmem [shape: bf16[36,16], index: 0, kind: input, shape index: {}]   ;;  %s2070_s5 = inlined_call_operand.vmem [shape: bf16[16,48], index: 5, kind: input, shape index: {}]   ;;  %s2071_s6 = inlined_call_operand.vmem [shape: f32[1,32], index: 6, kind: input, shape index: {}]   ;;  %s2072_s3 = inlined_call_operand.vmem [shape: f32[1,96], index: 3, kind: input, shape index: {}]   ;;  %s2073_s1 = inlined_call_operand.vmem [shape: f32[36,1], index: 1, kind: input, shape index: {}]   ;;  %s2074_s7 = inlined_call_operand.vmem [shape: bf16[6,32], index: 7, kind: output, shape index: {}]  }
   0x1   :  { %1427 = vmatprep.subr.bf16.mxu0 %v1644_v0  ;;  %1441 = vmatprep.subr.bf16.mxu1 %v1644_v0  ;;  %v1530_v1 = vld [vmem:[%s2067_s2] sm:$0xff]   ;;  %v1534_v7 = vld [vmem:[%s2069_s0 + $0x8] sm:$0xff]   ;;  %v1535_v8 = vld [vmem:[%s2069_s0 + $0x10] ss:$0 sps:$4 sm:$0x33]   ;;  %s1650_s18 = smov 112  }
   0x2   :  { %v1702_v2 = vld [vmem:[%s2068_s4] sm:$0xff]   ;;  %1429 = vmatprep.mubr.msk.bf16.mxu0 %vm1645_vm1, %v1644_v0  ;;  %1443 = vmatprep.mubr.msk.bf16.mxu1 %vm1645_vm1, %v1644_v0  ;;  %v129_v48 = vld [vmem:[%s2073_s1 + $0x18] sm:$0xff]  ;;  %s1651_s19 = smov 96   ;;  %vm535_vm6 = vcmask 1041408   ;;  %s1652_s22 = smov 64   ;;  %vm642_vm11 = vcmask 1045504  }
   0x3   :  { %1428 = vmatpush3.bf16.msra.mxu0 %v1530_v1  ;;  %v1532_v3 = vld [vmem:[%s2069_s0] sm:$0xff]   ;;  %1524 = vset.pattern.permute.xlu1 %v1646_v4  ;;  %s1648_s0 = smov 48   ;;  %vm331_vm2 = vcmp.gt.f32.partialorder %v129_v48, 0.5  ;;  %vm1341_vm14 = vcmask 1040384   ;;  %vm1342_vm15 = vcmask 1044484  }
   0x4   :  { %1442 = vmatpush3.bf16.msra.mxu1 %v1702_v2  ;;  %v1716_v5 = vld [vmem:[%s2070_s5] sm:$0xff]   ;;  %1523 = vset.pattern.permute.xlu0 %v1646_v4  ;;  %v333_v55 = vsel %vm331_vm2, 1, %v1646_v4  ;;  %vm1349_vm2 = vcmask 256000  }
   0x5   :  { %1447 = vmatprep.subr.bf16.mxu1 %v1644_v0  ;;  %v1723_v6 = vld [vmem:[%s2071_s6] ss:$0 sm:$0xff]  ;;  %1459 = vmatprep.subr.bf16.mxu0 %v1644_v0 }
   0x6   :  { %1430 = vmatmul.mubr.msk.bf16.vlgmr.msra.gmra.mxu0 %vm60_vm0, %v1532_v3  ;;  %292 = vrot.lane.b32.xlu0 %v1723_v6, %s1647_s9  ;;  %v1355_v9 = vld [vmem:[%s2072_s3] ss:$0 sm:$0xff] }
   0x7   :  { %1444 = vmatmul.mubr.bf16.vlgmr.msra.gmra.mxu1 %v1646_v4  ;;  %1433 = vmatprep.mubr.msk.bf16.mxu0 %vm1645_vm1, %v1644_v0  ;;  %v130_v54 = vld [vmem:[%s2073_s1 + $0x20] sm:$0xf] }
   0x8   :  { %1448 = vmatpush3.bf16.msra.mxu1 %v1716_v5  ;;  %1449 = vmatprep.mubr.msk.bf16.mxu1 %vm1645_vm1, %v1644_v0  ;;  %vm332_vm3 = vcmp.gt.f32.partialorder %v130_v54, 0.5 }
   0x9   :  { %1460 = vmatpush3.bf16.msra.mxu0 %v1716_v5  ;;  %1453 = vmatprep.subr.bf16.mxu1 %v1644_v0  ;;  %v334_v56 = vsel %vm332_vm3, 1, %v1646_v4 }
   0xa   :  { %1471 = vmatprep.subr.bf16.mxu0 %v1644_v0 }
   0xe   :  { %1434 = vmatmul.mubr.msk.bf16.gmra.mxu0 %vm60_vm0, %v1534_v7 }
   0xf   :  { %1450 = vmatmul.mubr.bf16.vlgmr.msra.gmra.mxu1 %v1646_v4  ;;  %1437 = vmatprep.mubr.msk.bf16.mxu0 %vm1645_vm1, %v1644_v0 }
  0x10   :  { %1454 = vmatpush3.bf16.msra.mxu1 %v1702_v2  ;;  %1455 = vmatprep.mubr.msk.bf16.mxu1 %vm1645_vm1, %v1644_v0 }
  0x11   :  { %1465 = vmatprep.subr.bf16.mxu1 %v1644_v0 }
  0x16   :  { %1438 = vmatmul.mubr.msk.bf16.gmra.mxu0 %vm60_vm0, %v1535_v8 }
  0x17   :  { %1461 = vmatprep.mubr.msk.bf16.mxu0 %vm1645_vm1, %v1644_v0 }
  0x78   :  { %v1764_v20 = vpop.permute.xlu0 %292 }
  0xc6   :  { %v104_v10 = vpop.f32.mrf.mxu0 }
  0xc7   :  { %v1758_v11 = vadd.f32 %v1355_v9, %v104_v10  ;;  %v1760_v12 = vpop.f32.mrf.mxu1 }
  0xc8   :  { %v1431_v13 = vpop.f32.mrf.mxu0 }
  0xc9   :  { %v1445_v14 = vpop.f32.mrf.mxu1  ;;  %v185_v3 = vadd.f32 %v1760_v12, %v1758_v11 }
  0xca   :  { %v107_v15 = vpop.f32.mrf.mxu0 }
  0xcb   :  { %v182_v16 = vpop.f32.mrf.mxu1  ;;  %v1762_v17 = vadd.f32 %v1355_v9, %v107_v15 }
  0xcc   :  { %v1432_v18 = vpop.f32.mrf.mxu0 }
  0xcd   :  { %v1446_v19 = vpop.f32.mrf.mxu1 }
  0xce   :  { %v112_v21 = vpop.f32.mrf.mxu0 }
  0xcf   :  { %v267_v22 = vpop.f32.mrf.mxu1  ;;  %v1766_v23 = vadd.f32 %v1355_v9, %v112_v21 }
  0xd0   :  { %v274_v24 = vrot.slane %v267_v22, 2  ;;  %v295_v25 = vadd.f32 %v1764_v20, %v267_v22  ;;  %v1435_v26 = vpop.f32.mrf.mxu0 }
  0xd1   :  { %v1451_v27 = vpop.f32.mrf.mxu1 }
  0xd2   :  { %275 = vrot.lane.b32.xlu0 %v274_v24, %s1648_s0  ;;  %v297_v28 = vrot.slane %v295_v25, 2  ;;  %v115_v29 = vpop.f32.mrf.mxu0 }
  0xd3   :  { %v270_v30 = vpop.f32.mrf.mxu1  ;;  %v1773_v38 = vadd.f32 %v1355_v9, %v115_v29 }
  0xd4   :  { %298 = vrot.lane.b32.xlu1 %v297_v28, %s1647_s9  ;;  %v1436_v31 = vpop.f32.mrf.mxu0 }
  0xd5   :  { %v1452_v32 = vpop.f32.mrf.mxu1  ;;  %v126_v31 = vld [vmem:[%s2073_s1] sm:$0xff] }
  0xd6   :  { %v120_v33 = vpop.f32.mrf.mxu0  ;;  %vm220_vm7 = vcmp.gt.f32.partialorder %v126_v31, 0.5  ;;  %v127_v31 = vld [vmem:[%s2073_s1 + $0x8] sm:$0xff] }
  0xd7   :  { %v1771_v37 = vadd.f32 %v1355_v9, %v120_v33  ;;  %vm448_vm9 = vcmp.gt.f32.partialorder %v127_v31, 0.5 }
  0xd8   :  { %v1439_v34 = vpop.f32.mrf.mxu0 }
  0xda   :  { %v123_v35 = vpop.f32.mrf.mxu0 }
  0xdc   :  { %v1440_v36 = vpop.f32.mrf.mxu0 }
  0xdd   :  { %v221_v36 = vsel %vm220_vm7, 1, %v1646_v4 }
 0x144   :  { %v276_v39 = vpop.permute.xlu0 %275 }
 0x145   :  { %v278_v40 = vadd.f32 %v276_v39, %v1773_v38  ;;  %v279_v41 = vadd.f32 %v276_v39, %v1771_v37 }
 0x146   :  { %v299_v50 = vpop.permute.xlu1 %298 }
 0x147   :  { %v1367_v42 = vmul.f32 -1.442695, %v278_v40  ;;  %v1368_v43 = vmul.f32 -1.442695, %v279_v41 }
 0x149   :  { %1536 = vpow2.f32 %v1367_v42 }
 0x14a   :  { %1538 = vpow2.f32 %v1368_v43 }
 0x156   :  { %v1537_v44 = vpop.eup %1536 }
 0x157   :  { %v1539_v45 = vpop.eup %1538  ;;  %v286_v46 = vadd.f32 1.0, %v1537_v44 }
 0x158   :  { %v287_v47 = vadd.f32 1.0, %v1539_v45 }
 0x159   :  { %1540 = vrcp.f32 %v286_v46 }
 0x15a   :  { %1542 = vrcp.f32 %v287_v47 }
 0x166   :  { %v1541_v49 = vpop.eup %1540 }
 0x167   :  { %v1543_v51 = vpop.eup %1542  ;;  %v301_v52 = vmul.f32 %v1541_v49, %v299_v50  ;;  %v315_v13 = vsub.f32 1.0, %v1541_v49  ;;  %v327_v16 = vmul.f32 0.0, %v1541_v49 }
 0x168   :  { %v302_v53 = vmul.f32 %v1543_v51, %v299_v50  ;;  %v316_v15 = vsub.f32 1.0, %v1543_v51  ;;  %v328_v21 = vmul.f32 0.0, %v1543_v51 }
 0x169   :  { %305 = vrot.lane.b32.xlu1 %v301_v52, %s1649_s17 }
 0x16a   :  { %307 = vrot.lane.b32.xlu0 %v302_v53, %s1649_s17 }
 0x16d   :  { %197 = vrot.lane.b32.xlu1 %v1723_v6, %s1649_s17  ;;  %v1364_v6 = vmul.f32 -1.442695, %v185_v3 }
 0x16e   :  { %336 = vperm.xlu0 %1523, %v333_v55  }
 0x171   :  { %339 = vperm.xlu1 %1524, %v334_v56  }
 0x1db   :  { %v306_v57 = vpop.permute.xlu1 %305 }
 0x1dc   :  { %v311_v58 = vadd.f32 %v306_v57, %v1773_v38  ;;  %v308_v59 = vpop.permute.xlu0 %307 }
 0x1dd   :  { %v312_v60 = vadd.f32 %v308_v59, %v1771_v37 }
 0x1de   :  { %1544 = vtanh.f32 %v311_v58 }
 0x1df   :  { %1546 = vtanh.f32 %v312_v60  ;;  %v1791_v62 = vpop.permute.xlu1 %197 }
 0x1e0   :  { %v200_v1 = vadd.f32 %v1791_v62, %v1760_v12  ;;  %1548 = vpow2.f32 %v1364_v6 }
 0x1e9   :  { %v1802_v10 = vpop.permute.xlu0 %336 }
 0x1ea   :  { %vm341_vm4 = vcmp.eq.s32.totalorder %v1802_v10, 1 }
 0x1eb   :  { %v1545_v61 = vpop.eup %1544 }
 0x1ec   :  { %v1547_v63 = vpop.eup %1546  ;;  %319 = vrot.lane.b32.xlu1 %v1545_v61, %s1650_s18  ;;  %v1800_v9 = vpop.permute.xlu1 %339 }
 0x1ed   :  { %321 = vrot.lane.b32.xlu0 %v1547_v63, %s1650_s18  ;;  %v1549_v7 = vpop.eup %1548  ;;  %vm342_vm5 = vcmp.eq.s32.totalorder %v1800_v9, 1 }
 0x1ee   :  { %v189_v8 = vadd.f32 1.0, %v1549_v7 }
 0x1f0   :  { %202 = vrot.lane.b32.xlu1 %v200_v1, %s1651_s19  ;;  %1550 = vrcp.f32 %v189_v8 }
 0x1fd   :  { %v1551_v24 = vpop.eup %1550 }
 0x1fe   :  { %v212_v43 = vsub.f32 1.0, %v1551_v24  ;;  %v218_v46 = vmul.f32 0.0, %v1551_v24 }
 0x25e   :  { %v320_v14 = vpop.permute.xlu1 %319 }
 0x25f   :  { %v325_v18 = vmul.f32 %v320_v14, %v315_v13  ;;  %v322_v19 = vpop.permute.xlu0 %321 }
 0x260   :  { %v326_v22 = vmul.f32 %v322_v19, %v316_v15 }
 0x261   :  { %v329_v12 = vadd.f32 %v327_v16, %v325_v18 }
 0x262   :  { %v330_v25 = vadd.f32 %v328_v21, %v326_v22  ;;  %v203_v26 = vpop.permute.xlu1 %202 }
 0x263   :  { %v343_v27 = vsel %vm341_vm4, %v329_v12, 0.0  ;;  %v205_v28 = vmul.f32 %v1551_v24, %v203_v26 }
 0x264   :  { %v536_v29 = vrot.slane %v343_v27, 6  ;;  %v344_v30 = vsel %vm342_vm5, %v330_v25, 0.0 }
 0x265   :  { %v537_v32 = vrot.slane %v344_v30, 6  ;;  %207 = vrot.lane.b32.xlu1 %v205_v28, %s1649_s17  ;;  %v456_v33 = vpack.c.bf16 %v344_v30, %v343_v27 }
 0x267   :  { %v458_v34 = vrot.slane %v456_v33, 3  ;;  %v1815_v35 = vsel %vm535_vm6, %v536_v29, %v537_v32 }
 0x269   :  { %459 = vrot.lane.b32.xlu0 %v458_v34, %s1652_s22 }
 0x26d   :  { %223 = vperm.xlu0 %1523, %v221_v36  }
 0x2d7   :  { %v208_v39 = vpop.permute.xlu1 %207 }
 0x2d8   :  { %v210_v40 = vadd.f32 %v208_v39, %v1758_v11 }
 0x2da   :  { %1552 = vtanh.f32 %v210_v40  ;;  %v449_v40 = vsel %vm448_vm9, 1, %v1646_v4 }
 0x2db   :  { %v460_v41 = vpop.permute.xlu0 %459 }
 0x2dc   :  { %1462 = vmatmul.mubr.msk.bf16.vlgmr.msra.gmra.mxu0 %vm60_vm0, %v460_v41 }
 0x2dd   :  { %1472 = vmatpush3.bf16.msra.mxu0 %v1716_v5  ;;  %1473 = vmatprep.mubr.msk.bf16.mxu0 %vm1645_vm1, %v1644_v0 }
 0x2de   :  { %1483 = vmatprep.subr.bf16.mxu0 %v1644_v0 }
 0x2e7   :  { %v1553_v42 = vpop.eup %1552 }
 0x2e8   :  { %214 = vrot.lane.b32.xlu1 %v1553_v42, %s1650_s18  ;;  %v1826_v45 = vpop.permute.xlu0 %223 }
 0x2e9   :  { %vm225_vm8 = vcmp.eq.s32.totalorder %v1826_v45, 1 }
 0x35a   :  { %v215_v44 = vpop.permute.xlu1 %214 }
 0x35b   :  { %v217_v47 = vmul.f32 %v215_v44, %v212_v43 }
 0x35d   :  { %v219_v48 = vadd.f32 %v218_v46, %v217_v47 }
 0x35f   :  { %v1831_v49 = vsel %vm225_vm8, %v219_v48, 0.0 }
 0x360   :  { %v345_v50 = vpack.c.bf16 %v1831_v49, %v1831_v49 }
 0x362   :  { %347 = vrot.lane.b32.xlu0 %v345_v50, %s1650_s18 }
 0x39c   :  { %v498_v51 = vpop.f32.mrf.mxu0 }
 0x39d   :  { %v515_v52 = vadd.f32 %v498_v51, %v1764_v20  ;;  %505 = vrot.lane.b32.xlu1 %v498_v51, %s1648_s0 }
 0x39e   :  { %v1463_v53 = vpop.f32.mrf.mxu0 }
 0x39f   :  { %517 = vrot.lane.b32.xlu0 %v515_v52, %s1647_s9 }
 0x3a0   :  { %v501_v54 = vpop.f32.mrf.mxu0 }
 0x3a2   :  { %v1464_v55 = vpop.f32.mrf.mxu0 }
 0x3d4   :  { %v348_v56 = vpop.permute.xlu0 %347 }
 0x3d5   :  { %1456 = vmatmul.mubr.msk.bf16.vlgmr.msra.gmra.mxu1 %vm60_vm0, %v348_v56  ;;  %v442_v56 = vrot.slane %v1831_v49, 2 }
 0x3d6   :  { %1466 = vmatpush3.bf16.msra.mxu1 %v1702_v2  ;;  %1467 = vmatprep.mubr.msk.bf16.mxu1 %vm1645_vm1, %v1644_v0 }
 0x3d7   :  { %1477 = vmatprep.subr.bf16.mxu1 %v1644_v0 }
 0x40f   :  { %v506_v57 = vpop.permute.xlu1 %505 }
 0x410   :  { %v508_v58 = vadd.f32 %v506_v57, %v1773_v38 }
 0x411   :  { %v518_v1 = vpop.permute.xlu0 %517 }
 0x412   :  { %v1373_v59 = vmul.f32 -1.442695, %v508_v58 }
 0x414   :  { %1554 = vpow2.f32 %v1373_v59 }
 0x421   :  { %v1555_v60 = vpop.eup %1554 }
 0x422   :  { %v512_v61 = vadd.f32 1.0, %v1555_v60 }
 0x424   :  { %1556 = vrcp.f32 %v512_v61 }
 0x431   :  { %v1557_v63 = vpop.eup %1556 }
 0x432   :  { %v520_v3 = vmul.f32 %v1557_v63, %v518_v1  ;;  %v540_v6 = vmul.f32 %v1557_v63, %v1815_v35  ;;  %v527_v41 = vsub.f32 1.0, %v1557_v63 }
 0x434   :  { %522 = vrot.lane.b32.xlu1 %v520_v3, %s1649_s17 }
 0x495   :  { %v386_v7 = vpop.f32.mrf.mxu1 }
 0x496   :  { %v409_v8 = vadd.f32 %v386_v7, %v1791_v62  ;;  %v393_v22 = vrot.slane %v386_v7, 2 }
 0x497   :  { %v1457_v13 = vpop.f32.mrf.mxu1 }
 0x498   :  { %v411_v14 = vrot.slane %v409_v8, 2  ;;  %v395_v12 = vadd.f32 %v393_v22, %v1758_v11  ;;  %v396_v24 = vadd.f32 %v393_v22, %v1762_v17 }
 0x499   :  { %v389_v15 = vpop.f32.mrf.mxu1 }
 0x49a   :  { %412 = vrot.lane.b32.xlu0 %v411_v14, %s1651_s19  ;;  %v1370_v25 = vmul.f32 -1.442695, %v395_v12  ;;  %v1371_v26 = vmul.f32 -1.442695, %v396_v24 }
 0x49b   :  { %v1458_v16 = vpop.f32.mrf.mxu1 }
 0x4a6   :  { %v523_v18 = vpop.permute.xlu1 %522 }
 0x4a7   :  { %v525_v19 = vadd.f32 %v523_v18, %v1773_v38 }
 0x4a9   :  { %1558 = vtanh.f32 %v525_v19 }
 0x4aa   :  { %1560 = vpow2.f32 %v1370_v25 }
 0x4ab   :  { %1562 = vpow2.f32 %v1371_v26 }
 0x4b6   :  { %v1559_v21 = vpop.eup %1558 }
 0x4b7   :  { %529 = vrot.lane.b32.xlu1 %v1559_v21, %s1650_s18  ;;  %v1561_v27 = vpop.eup %1560 }
 0x4b8   :  { %v1563_v28 = vpop.eup %1562  ;;  %v403_v29 = vadd.f32 1.0, %v1561_v27 }
 0x4b9   :  { %v404_v30 = vadd.f32 1.0, %v1563_v28 }
 0x4ba   :  { %1564 = vrcp.f32 %v403_v29 }
 0x4bb   :  { %1566 = vrcp.f32 %v404_v30 }
 0x4c7   :  { %v1565_v32 = vpop.eup %1564 }
 0x4c8   :  { %v1567_v33 = vpop.eup %1566  ;;  %v429_v59 = vsub.f32 1.0, %v1565_v32  ;;  %v444_v1 = vmul.f32 %v1565_v32, %v442_v56 }
 0x4c9   :  { %v430_v57 = vsub.f32 1.0, %v1567_v33  ;;  %v445_v60 = vmul.f32 %v1567_v33, %v442_v56 }
 0x50c   :  { %v413_v34 = vpop.permute.xlu0 %412 }
 0x50d   :  { %v415_v36 = vmul.f32 %v1565_v32, %v413_v34  ;;  %v416_v39 = vmul.f32 %v1567_v33, %v413_v34  ;;  %v128_v33 = vld [vmem:[%s2073_s1 + $0x10] sm:$0xff]  ;;  %s1653_s1 = smov 80  }
 0x50e   :  { %vm652_vm12 = vcmp.gt.f32.partialorder %v128_v33, 0.5 }
 0x50f   :  { %421 = vrot.lane.b32.xlu1 %v416_v39, %s1649_s17  ;;  %419 = vrot.lane.b32.xlu0 %v415_v36, %s1649_s17 }
 0x513   :  { %451 = vperm.xlu1 %1524, %v449_v40  }
 0x529   :  { %v530_v42 = vpop.permute.xlu1 %529 }
 0x52a   :  { %v532_v43 = vmul.f32 %v530_v42, %v527_v41  ;;  %v653_v42 = vsel %vm652_vm12, 1, %v1646_v4 }
 0x52c   :  { %v541_v44 = vadd.f32 %v540_v6, %v532_v43 }
 0x52e   :  { %v1862_v46 = vsel %vm341_vm4, %v541_v44, %v1815_v35 }
 0x52f   :  { %v660_v47 = vpack.c.bf16 %v1862_v46, %v1862_v46  ;;  %v739_v34 = vrot.slane %v1862_v46, 6 }
 0x531   :  { %662 = vrot.lane.b32.xlu0 %v660_v47, %s1652_s22 }
 0x581   :  { %v422_v48 = vpop.permute.xlu1 %421  ;;  %v420_v50 = vpop.permute.xlu0 %419 }
 0x582   :  { %v426_v51 = vadd.f32 %v422_v48, %v1762_v17  ;;  %v425_v52 = vadd.f32 %v420_v50, %v1758_v11 }
 0x584   :  { %1568 = vtanh.f32 %v426_v51 }
 0x585   :  { %1570 = vtanh.f32 %v425_v52 }
 0x58e   :  { %v1876_v55 = vpop.permute.xlu1 %451 }
 0x58f   :  { %vm453_vm10 = vcmp.eq.s32.totalorder %v1876_v55, 1 }
 0x591   :  { %v1569_v53 = vpop.eup %1568 }
 0x592   :  { %v1571_v54 = vpop.eup %1570  ;;  %435 = vrot.lane.b32.xlu1 %v1569_v53, %s1650_s18 }
 0x593   :  { %433 = vrot.lane.b32.xlu0 %v1571_v54, %s1650_s18 }
 0x5a3   :  { %v663_v35 = vpop.permute.xlu0 %662 }
 0x5a4   :  { %1474 = vmatmul.mubr.msk.bf16.vlgmr.msra.gmra.mxu0 %vm60_vm0, %v663_v35 }
 0x5a5   :  { %1484 = vmatpush3.bf16.msra.mxu0 %v1716_v5  ;;  %1485 = vmatprep.mubr.msk.bf16.mxu0 %vm1645_vm1, %v1644_v0 }
 0x5a6   :  { %1495 = vmatprep.subr.bf16.mxu0 %v1644_v0 }
 0x604   :  { %v436_v58 = vpop.permute.xlu1 %435 }
 0x605   :  { %v440_v61 = vmul.f32 %v436_v58, %v430_v57  ;;  %v434_v63 = vpop.permute.xlu0 %433 }
 0x606   :  { %v439_v3 = vmul.f32 %v434_v63, %v429_v59 }
 0x607   :  { %v447_v6 = vadd.f32 %v445_v60, %v440_v61 }
 0x608   :  { %v446_v7 = vadd.f32 %v444_v1, %v439_v3 }
 0x609   :  { %v455_v8 = vsel %vm453_vm10, %v447_v6, %v442_v56 }
 0x60a   :  { %v454_v13 = vsel %vm225_vm8, %v446_v7, %v442_v56  ;;  %v1884_v14 = vrot.slane %v455_v8, 2 }
 0x60b   :  { %v543_v49 = vpack.c.bf16 %v455_v8, %v454_v13  ;;  %v643_v15 = vrot.slane %v454_v13, 2 }
 0x60d   :  { %v545_v16 = vrot.slane %v543_v49, 3  ;;  %v1888_v18 = vsel %vm642_vm11, %v643_v15, %v1884_v14 }
 0x60f   :  { %546 = vrot.lane.b32.xlu0 %v545_v16, %s1650_s18 }
 0x664   :  { %v701_v19 = vpop.f32.mrf.mxu0 }
 0x665   :  { %v708_v21 = vrot.slane %v701_v19, 6  ;;  %v719_v22 = vadd.f32 %v701_v19, %v1764_v20 }
 0x666   :  { %v1475_v12 = vpop.f32.mrf.mxu0 }
 0x667   :  { %v721_v24 = vrot.slane %v719_v22, 6  ;;  %709 = vrot.lane.b32.xlu1 %v708_v21, %s1648_s0 }
 0x668   :  { %v704_v25 = vpop.f32.mrf.mxu0 }
 0x669   :  { %722 = vrot.lane.b32.xlu0 %v721_v24, %s1647_s9 }
 0x66a   :  { %v1476_v26 = vpop.f32.mrf.mxu0 }
 0x681   :  { %v547_v27 = vpop.permute.xlu0 %546 }
 0x682   :  { %1468 = vmatmul.mubr.msk.bf16.vlgmr.msra.gmra.mxu1 %vm60_vm0, %v547_v27 }
 0x683   :  { %1478 = vmatpush3.bf16.msra.mxu1 %v1702_v2  ;;  %1479 = vmatprep.mubr.msk.bf16.mxu1 %vm1645_vm1, %v1644_v0 }
 0x684   :  { %1489 = vmatprep.subr.bf16.mxu1 %v1644_v0 }
 0x6d9   :  { %v710_v28 = vpop.permute.xlu1 %709 }
 0x6da   :  { %v712_v29 = vadd.f32 %v710_v28, %v1766_v23 }
 0x6db   :  { %v723_v39 = vpop.permute.xlu0 %722 }
 0x6dc   :  { %v1378_v30 = vmul.f32 -1.442695, %v712_v29 }
 0x6de   :  { %1572 = vpow2.f32 %v1378_v30 }
 0x6eb   :  { %v1573_v31 = vpop.eup %1572 }
 0x6ec   :  { %v716_v32 = vadd.f32 1.0, %v1573_v31 }
 0x6ee   :  { %1574 = vrcp.f32 %v716_v32 }
 0x6fb   :  { %v1575_v36 = vpop.eup %1574 }
 0x6fc   :  { %v725_v40 = vmul.f32 %v1575_v36, %v723_v39  ;;  %v741_v41 = vmul.f32 %v1575_v36, %v739_v34  ;;  %v732_v8 = vsub.f32 1.0, %v1575_v36 }
 0x6fe   :  { %727 = vrot.lane.b32.xlu1 %v725_v40, %s1649_s17 }
 0x702   :  { %655 = vperm.xlu1 %1524, %v653_v42  }
 0x742   :  { %v585_v43 = vpop.f32.mrf.mxu1 }
 0x743   :  { %v608_v44 = vadd.f32 %v585_v43, %v1791_v62  ;;  %v592_v54 = vrot.slane %v585_v43, 4 }
 0x744   :  { %v1469_v47 = vpop.f32.mrf.mxu1 }
 0x745   :  { %v610_v48 = vrot.slane %v608_v44, 4  ;;  %v594_v4 = vadd.f32 %v592_v54, %v1762_v17  ;;  %v595_v35 = vadd.f32 %v592_v54, %v1766_v23 }
 0x746   :  { %v588_v50 = vpop.f32.mrf.mxu1 }
 0x747   :  { %611 = vrot.lane.b32.xlu0 %v610_v48, %s1651_s19  ;;  %v1375_v56 = vmul.f32 -1.442695, %v594_v4  ;;  %v1376_v57 = vmul.f32 -1.442695, %v595_v35 }
 0x748   :  { %v1470_v51 = vpop.f32.mrf.mxu1 }
 0x770   :  { %v728_v46 = vpop.permute.xlu1 %727 }
 0x771   :  { %v730_v52 = vadd.f32 %v728_v46, %v1766_v23 }
 0x773   :  { %1576 = vtanh.f32 %v730_v52 }
 0x774   :  { %1578 = vpow2.f32 %v1375_v56 }
 0x775   :  { %1580 = vpow2.f32 %v1376_v57 }
 0x77d   :  { %v1914_v49 = vpop.permute.xlu1 %655 }
 0x77e   :  { %vm657_vm13 = vcmp.eq.s32.totalorder %v1914_v49, 1 }
 0x780   :  { %v1577_v53 = vpop.eup %1576 }
 0x781   :  { %734 = vrot.lane.b32.xlu0 %v1577_v53, %s1650_s18  ;;  %v1579_v58 = vpop.eup %1578 }
 0x782   :  { %v1581_v59 = vpop.eup %1580  ;;  %v602_v60 = vadd.f32 1.0, %v1579_v58 }
 0x783   :  { %v603_v61 = vadd.f32 1.0, %v1581_v59 }
 0x784   :  { %1582 = vrcp.f32 %v602_v60 }
 0x785   :  { %1584 = vrcp.f32 %v603_v61 }
 0x791   :  { %v1583_v63 = vpop.eup %1582 }
 0x792   :  { %v1585_v1 = vpop.eup %1584  ;;  %v628_v31 = vsub.f32 1.0, %v1583_v63  ;;  %v648_v39 = vmul.f32 %v1583_v63, %v1888_v18 }
 0x793   :  { %v629_v30 = vsub.f32 1.0, %v1585_v1 }
 0x7b9   :  { %v612_v3 = vpop.permute.xlu0 %611 }
 0x7ba   :  { %v614_v6 = vmul.f32 %v1583_v63, %v612_v3  ;;  %v615_v7 = vmul.f32 %v1585_v1, %v612_v3 }
 0x7bc   :  { %618 = vrot.lane.b32.xlu1 %v614_v6, %s1649_s17  ;;  %620 = vrot.lane.b32.xlu0 %v615_v7, %s1649_s17 }
 0x7f3   :  { %v735_v13 = vpop.permute.xlu0 %734 }
 0x7f4   :  { %v737_v15 = vmul.f32 %v735_v13, %v732_v8 }
 0x7f6   :  { %v742_v16 = vadd.f32 %v741_v41, %v737_v15 }
 0x7f8   :  { %v1919_v19 = vsel %vm657_vm13, %v742_v16, %v739_v34  ;;  %v649_v34 = vmul.f32 %v1585_v1, %v1884_v14 }
 0x7f9   :  { %v830_v21 = vpack.c.bf16 %v1919_v19, %v1919_v19  ;;  %v930_v7 = vrot.slane %v1919_v19, 6 }
 0x7fb   :  { %v832_v22 = vrot.slane %v830_v21, 1 }
 0x7fd   :  { %833 = vrot.lane.b32.xlu1 %v832_v22, %s1652_s22 }
 0x82e   :  { %v621_v12 = vpop.permute.xlu0 %620  ;;  %v619_v24 = vpop.permute.xlu1 %618 }
 0x82f   :  { %v625_v25 = vadd.f32 %v621_v12, %v1766_v23  ;;  %v624_v26 = vadd.f32 %v619_v24, %v1762_v17 }
 0x831   :  { %1586 = vtanh.f32 %v625_v25 }
 0x832   :  { %1588 = vtanh.f32 %v624_v26 }
 0x83e   :  { %v1587_v27 = vpop.eup %1586 }
 0x83f   :  { %v1589_v28 = vpop.eup %1588  ;;  %634 = vrot.lane.b32.xlu1 %v1587_v27, %s1650_s18 }
 0x840   :  { %632 = vrot.lane.b32.xlu0 %v1589_v28, %s1650_s18 }
 0x86f   :  { %v834_v29 = vpop.permute.xlu1 %833 }
 0x870   :  { %1486 = vmatmul.mubr.msk.bf16.vlgmr.msra.gmra.mxu0 %vm60_vm0, %v834_v29 }
 0x871   :  { %1496 = vmatpush3.bf16.msra.mxu0 %v1716_v5  ;;  %1497 = vmatprep.mubr.msk.bf16.mxu0 %vm1645_vm1, %v1644_v0 }
 0x872   :  { %1507 = vmatprep.subr.bf16.mxu0 %v1644_v0 }
 0x8b1   :  { %v635_v32 = vpop.permute.xlu1 %634 }
 0x8b2   :  { %v633_v33 = vpop.permute.xlu0 %632  ;;  %v639_v36 = vmul.f32 %v635_v32, %v629_v30 }
 0x8b3   :  { %v638_v40 = vmul.f32 %v633_v33, %v628_v31 }
 0x8b4   :  { %v651_v41 = vadd.f32 %v649_v34, %v639_v36 }
 0x8b5   :  { %v650_v42 = vadd.f32 %v648_v39, %v638_v40 }
 0x8b6   :  { %v659_v43 = vsel %vm657_vm13, %v651_v41, %v1884_v14 }
 0x8b7   :  { %v658_v44 = vsel %vm453_vm10, %v650_v42, %v1888_v18  ;;  %v824_v47 = vrot.slane %v659_v43, 2 }
 0x8b8   :  { %v744_v48 = vpack.c.bf16 %v659_v43, %v658_v44  ;;  %v823_v50 = vrot.slane %v658_v44, 2 }
 0x8ba   :  { %v746_v51 = vrot.slane %v744_v48, 2  ;;  %v1942_v46 = vsel %vm642_vm11, %v823_v50, %v824_v47 }
 0x8bc   :  { %747 = vrot.lane.b32.xlu0 %v746_v51, %s1650_s18 }
 0x92e   :  { %v748_v52 = vpop.permute.xlu0 %747 }
 0x92f   :  { %1480 = vmatmul.mubr.msk.bf16.vlgmr.msra.gmra.mxu1 %vm60_vm0, %v748_v52 }
 0x930   :  { %v872_v53 = vpop.f32.mrf.mxu0  ;;  %1490 = vmatpush3.bf16.msra.mxu1 %v1702_v2  ;;  %1491 = vmatprep.mubr.msk.bf16.mxu1 %vm1645_vm1, %v1644_v0 }
 0x931   :  { %v879_v14 = vrot.slane %v872_v53, 4  ;;  %v897_v18 = vadd.f32 %v872_v53, %v1764_v20  ;;  %1501 = vmatprep.subr.bf16.mxu1 %v1644_v0 }
 0x932   :  { %v1487_v54 = vpop.f32.mrf.mxu0 }
 0x933   :  { %v899_v4 = vrot.slane %v897_v18, 4  ;;  %880 = vrot.lane.b32.xlu1 %v879_v14, %s1648_s0 }
 0x934   :  { %v875_v35 = vpop.f32.mrf.mxu0 }
 0x935   :  { %900 = vrot.lane.b32.xlu0 %v899_v4, %s1647_s9 }
 0x936   :  { %v1488_v56 = vpop.f32.mrf.mxu0 }
 0x9a5   :  { %v881_v57 = vpop.permute.xlu1 %880 }
 0x9a6   :  { %v883_v58 = vadd.f32 %v881_v57, %v1762_v17  ;;  %v884_v59 = vadd.f32 %v881_v57, %v1766_v23 }
 0x9a7   :  { %v901_v13 = vpop.permute.xlu0 %900 }
 0x9a8   :  { %v1382_v60 = vmul.f32 -1.442695, %v883_v58  ;;  %v1383_v61 = vmul.f32 -1.442695, %v884_v59 }
 0x9aa   :  { %1590 = vpow2.f32 %v1382_v60 }
 0x9ab   :  { %1592 = vpow2.f32 %v1383_v61 }
 0x9b7   :  { %v1591_v63 = vpop.eup %1590 }
 0x9b8   :  { %v1593_v1 = vpop.eup %1592  ;;  %v891_v3 = vadd.f32 1.0, %v1591_v63 }
 0x9b9   :  { %v892_v6 = vadd.f32 1.0, %v1593_v1 }
 0x9ba   :  { %1594 = vrcp.f32 %v891_v3 }
 0x9bb   :  { %1596 = vrcp.f32 %v892_v6 }
 0x9c7   :  { %v1595_v8 = vpop.eup %1594 }
 0x9c8   :  { %v1597_v15 = vpop.eup %1596  ;;  %v903_v16 = vmul.f32 %v1595_v8, %v901_v13  ;;  %v932_v21 = vmul.f32 %v1595_v8, %v930_v7  ;;  %v917_v48 = vsub.f32 1.0, %v1595_v8 }
 0x9c9   :  { %v904_v22 = vmul.f32 %v1597_v15, %v901_v13  ;;  %v933_v12 = vmul.f32 %v1597_v15, %v930_v7  ;;  %v918_v54 = vsub.f32 1.0, %v1597_v15 }
 0x9ca   :  { %907 = vrot.lane.b32.xlu1 %v903_v16, %s1649_s17 }
 0x9cb   :  { %909 = vrot.lane.b32.xlu0 %v904_v22, %s1649_s17 }
 0x9ef   :  { %v786_v24 = vpop.f32.mrf.mxu1 }
 0x9f0   :  { %v802_v25 = vadd.f32 %v786_v24, %v1791_v62  ;;  %v793_v29 = vrot.slane %v786_v24, 6 }
 0x9f1   :  { %v1481_v26 = vpop.f32.mrf.mxu1 }
 0x9f2   :  { %v804_v27 = vrot.slane %v802_v25, 6  ;;  %v795_v31 = vadd.f32 %v793_v29, %v1766_v23 }
 0x9f3   :  { %v789_v28 = vpop.f32.mrf.mxu1 }
 0x9f4   :  { %805 = vrot.lane.b32.xlu1 %v804_v27, %s1651_s19  ;;  %v1380_v33 = vmul.f32 -1.442695, %v795_v31 }
 0x9f5   :  { %v1482_v19 = vpop.f32.mrf.mxu1 }
 0xa3c   :  { %v908_v30 = vpop.permute.xlu1 %907 }
 0xa3d   :  { %v913_v32 = vadd.f32 %v908_v30, %v1762_v17  ;;  %v910_v40 = vpop.permute.xlu0 %909 }
 0xa3e   :  { %v914_v41 = vadd.f32 %v910_v40, %v1766_v23 }
 0xa3f   :  { %1598 = vtanh.f32 %v913_v32 }
 0xa40   :  { %1600 = vpow2.f32 %v1380_v33 }
 0xa4c   :  { %v1599_v34 = vpop.eup %1598 }
 0xa4d   :  { %921 = vrot.lane.b32.xlu1 %v1599_v34, %s1650_s18  ;;  %v1601_v36 = vpop.eup %1600 }
 0xa4e   :  { %v799_v39 = vadd.f32 1.0, %v1601_v36 }
 0xa50   :  { %1602 = vrcp.f32 %v799_v39 }
 0xa51   :  { %1604 = vtanh.f32 %v914_v41 }
 0xa5d   :  { %v1603_v42 = vpop.eup %1602 }
 0xa5e   :  { %v1605_v47 = vpop.eup %1604  ;;  %v815_v3 = vsub.f32 1.0, %v1603_v42 }
 0xa66   :  { %v806_v43 = vpop.permute.xlu1 %805 }
 0xa67   :  { %v808_v44 = vmul.f32 %v1603_v42, %v806_v43 }
 0xa69   :  { %810 = vrot.lane.b32.xlu0 %v808_v44, %s1649_s17 }
 0xa6d   :  { %923 = vrot.lane.b32.xlu0 %v1605_v47, %s1650_s18 }
 0xabf   :  { %v922_v50 = vpop.permute.xlu1 %921 }
 0xac0   :  { %v927_v51 = vmul.f32 %v922_v50, %v917_v48 }
 0xac2   :  { %v934_v52 = vadd.f32 %v932_v21, %v927_v51 }
 0xac4   :  { %v936_v53 = vsel %vm453_vm10, %v934_v52, %v930_v7 }
 0xac5   :  { %v1971_v59 = vrot.slane %v936_v53, 6 }
 0xadb   :  { %v811_v14 = vpop.permute.xlu0 %810 }
 0xadc   :  { %v813_v18 = vadd.f32 %v811_v14, %v1766_v23 }
 0xade   :  { %1606 = vtanh.f32 %v813_v18 }
 0xadf   :  { %v924_v4 = vpop.permute.xlu0 %923 }
 0xae0   :  { %v928_v35 = vmul.f32 %v924_v4, %v918_v54 }
 0xae2   :  { %v935_v56 = vadd.f32 %v933_v12, %v928_v35 }
 0xae4   :  { %v937_v57 = vsel %vm657_vm13, %v935_v56, %v930_v7  ;;  %v827_v7 = vmul.f32 %v1603_v42, %v1942_v46 }
 0xae5   :  { %v1017_v58 = vpack.c.bf16 %v937_v57, %v936_v53  ;;  %v1119_v60 = vrot.slane %v937_v57, 6 }
 0xae7   :  { %v1019_v61 = vrot.slane %v1017_v58, 2  ;;  %v1975_v63 = vsel %vm535_vm6, %v1971_v59, %v1119_v60 }
 0xae9   :  { %1020 = vrot.lane.b32.xlu1 %v1019_v61, %s1652_s22 }
 0xaeb   :  { %v1607_v23 = vpop.eup %1606 }
 0xaec   :  { %817 = vrot.lane.b32.xlu0 %v1607_v23, %s1650_s18 }
 0xb5b   :  { %v1021_v1 = vpop.permute.xlu1 %1020 }
 0xb5c   :  { %1498 = vmatmul.mubr.msk.bf16.vlgmr.msra.gmra.mxu0 %vm60_vm0, %v1021_v1 }
 0xb5d   :  { %1508 = vmatpush3.bf16.msra.mxu0 %v1716_v5  ;;  %1509 = vmatprep.mubr.msk.bf16.mxu0 %vm1645_vm1, %v1644_v0 }
 0xb5e   :  { %v818_v6 = vpop.permute.xlu0 %817 }
 0xb5f   :  { %v820_v8 = vmul.f32 %v818_v6, %v815_v3 }
 0xb61   :  { %v828_v13 = vadd.f32 %v827_v7, %v820_v8 }
 0xb63   :  { %v1987_v15 = vsel %vm657_vm13, %v828_v13, %v1942_v46 }
 0xb64   :  { %v938_v16 = vpack.c.bf16 %v1987_v15, %v1987_v15 }
 0xb66   :  { %v940_v21 = vrot.slane %v938_v16, 1 }
 0xb68   :  { %941 = vrot.lane.b32.xlu1 %v940_v21, %s1650_s18 }
 0xbda   :  { %v942_v5 = vpop.permute.xlu1 %941 }
 0xbdb   :  { %1492 = vmatmul.mubr.msk.bf16.vlgmr.msra.gmra.mxu1 %vm60_vm0, %v942_v5 }
 0xbdc   :  { %1502 = vmatpush3.bf16.msra.mxu1 %v1702_v2  ;;  %1503 = vmatprep.mubr.msk.bf16.mxu1 %vm1645_vm1, %v1644_v0  ;;  %vm1343_vm1 = vmor %vm1341_vm14, %vm1342_vm15 }
 0xc1c   :  { %v1059_v22 = vpop.f32.mrf.mxu0 }
 0xc1d   :  { %v1066_v12 = vrot.slane %v1059_v22, 2  ;;  %v1084_v49 = vadd.f32 %v1059_v22, %v1764_v20 }
 0xc1e   :  { %v1499_v46 = vpop.f32.mrf.mxu0 }
 0xc1f   :  { %v1086_v24 = vrot.slane %v1084_v49, 2  ;;  %1067 = vrot.lane.b32.xlu0 %v1066_v12, %s1648_s0 }
 0xc20   :  { %v1062_v25 = vpop.f32.mrf.mxu0 }
 0xc21   :  { %1087 = vrot.lane.b32.xlu1 %v1086_v24, %s1647_s9 }
 0xc22   :  { %v1500_v26 = vpop.f32.mrf.mxu0 }
 0xc91   :  { %v1068_v27 = vpop.permute.xlu0 %1067 }
 0xc92   :  { %v1070_v28 = vadd.f32 %v1068_v27, %v1758_v11  ;;  %v1071_v2 = vadd.f32 %v1068_v27, %v1762_v17 }
 0xc93   :  { %v1088_v42 = vpop.permute.xlu1 %1087 }
 0xc94   :  { %v1387_v19 = vmul.f32 -1.442695, %v1070_v28  ;;  %v1388_v29 = vmul.f32 -1.442695, %v1071_v2  ;;  %v1012_v28 = vrot.slane %v1987_v15, 2 }
 0xc96   :  { %1608 = vpow2.f32 %v1387_v19 }
 0xc97   :  { %1610 = vpow2.f32 %v1388_v29 }
 0xc9b   :  { %v980_v0 = vpop.f32.mrf.mxu1 }
 0xc9c   :  { %v993_v30 = vadd.f32 %v980_v0, %v1791_v62  ;;  %v986_v51 = vadd.f32 %v980_v0, %v1773_v38 }
 0xc9d   :  { %v1493_v31 = vpop.f32.mrf.mxu1 }
 0xc9e   :  { %995 = vrot.lane.b32.xlu0 %v993_v30, %s1651_s19  ;;  %v1385_v52 = vmul.f32 -1.442695, %v986_v51 }
 0xc9f   :  { %v983_v32 = vpop.f32.mrf.mxu1 }
 0xca1   :  { %v1494_v33 = vpop.f32.mrf.mxu1 }
 0xca3   :  { %v1609_v34 = vpop.eup %1608 }
 0xca4   :  { %v1611_v36 = vpop.eup %1610  ;;  %v1078_v39 = vadd.f32 1.0, %v1609_v34 }
 0xca5   :  { %v1079_v40 = vadd.f32 1.0, %v1611_v36 }
 0xca6   :  { %1612 = vrcp.f32 %v1078_v39 }
 0xca7   :  { %1614 = vrcp.f32 %v1079_v40 }
 0xca8   :  { %1616 = vpow2.f32 %v1385_v52 }
 0xcb3   :  { %v1613_v41 = vpop.eup %1612 }
 0xcb4   :  { %v1615_v43 = vpop.eup %1614  ;;  %v1090_v44 = vmul.f32 %v1613_v41, %v1088_v42  ;;  %v1123_v47 = vmul.f32 %v1613_v41, %v1971_v59  ;;  %v1104_v6 = vsub.f32 1.0, %v1613_v41 }
 0xcb5   :  { %v1091_v48 = vmul.f32 %v1615_v43, %v1088_v42  ;;  %v1124_v50 = vmul.f32 %v1615_v43, %v1975_v63  ;;  %v1617_v53 = vpop.eup %1616  ;;  %v1105_v7 = vsub.f32 1.0, %v1615_v43 }
 0xcb6   :  { %1094 = vrot.lane.b32.xlu1 %v1090_v44, %s1649_s17  ;;  %v990_v14 = vadd.f32 1.0, %v1617_v53 }
 0xcb7   :  { %1096 = vrot.lane.b32.xlu0 %v1091_v48, %s1649_s17 }
 0xcb8   :  { %1618 = vrcp.f32 %v990_v14 }
 0xcc5   :  { %v1619_v18 = vpop.eup %1618 }
 0xcc6   :  { %v1005_v27 = vsub.f32 1.0, %v1619_v18  ;;  %v1014_v19 = vmul.f32 %v1619_v18, %v1012_v28 }
 0xd10   :  { %v996_v54 = vpop.permute.xlu0 %995 }
 0xd11   :  { %v998_v4 = vmul.f32 %v1619_v18, %v996_v54 }
 0xd13   :  { %1000 = vrot.lane.b32.xlu1 %v998_v4, %s1649_s17 }
 0xd28   :  { %v1095_v35 = vpop.permute.xlu1 %1094 }
 0xd29   :  { %v1100_v56 = vadd.f32 %v1095_v35, %v1758_v11  ;;  %v1097_v57 = vpop.permute.xlu0 %1096 }
 0xd2a   :  { %v1101_v58 = vadd.f32 %v1097_v57, %v1762_v17 }
 0xd2b   :  { %1620 = vtanh.f32 %v1100_v56 }
 0xd2c   :  { %1622 = vtanh.f32 %v1101_v58 }
 0xd38   :  { %v1621_v60 = vpop.eup %1620 }
 0xd39   :  { %v1623_v61 = vpop.eup %1622  ;;  %1108 = vrot.lane.b32.xlu0 %v1621_v60, %s1650_s18 }
 0xd3a   :  { %1110 = vrot.lane.b32.xlu1 %v1623_v61, %s1650_s18 }
 0xd85   :  { %v1001_v23 = vpop.permute.xlu1 %1000 }
 0xd86   :  { %v1003_v1 = vadd.f32 %v1001_v23, %v1773_v38 }
 0xd88   :  { %1624 = vtanh.f32 %v1003_v1 }
 0xd95   :  { %v1625_v3 = vpop.eup %1624 }
 0xd96   :  { %1007 = vrot.lane.b32.xlu0 %v1625_v3, %s1650_s18 }
 0xdab   :  { %v1109_v8 = vpop.permute.xlu0 %1108 }
 0xdac   :  { %v1111_v13 = vpop.permute.xlu1 %1110  ;;  %v1114_v17 = vmul.f32 %v1109_v8, %v1104_v6 }
 0xdad   :  { %v1115_v16 = vmul.f32 %v1111_v13, %v1105_v7 }
 0xdae   :  { %v1125_v21 = vadd.f32 %v1123_v47, %v1114_v17 }
 0xdaf   :  { %v1126_v5 = vadd.f32 %v1124_v50, %v1115_v16 }
 0xdb0   :  { %v1127_v22 = vsel %vm225_vm8, %v1125_v21, %v1971_v59 }
 0xdb1   :  { %v1128_v12 = vsel %vm453_vm10, %v1126_v5, %v1975_v63  ;;  %v1313_v49 = vrot.slane %v1127_v22, 6 }
 0xdb2   :  { %v1234_v46 = vpack.c.bf16 %v1128_v12, %v1127_v22  ;;  %v1314_v24 = vrot.slane %v1128_v12, 6 }
 0xdb4   :  { %v1236_v25 = vrot.slane %v1234_v46, 3  ;;  %v2022_v26 = vsel %vm535_vm6, %v1313_v49, %v1314_v24 }
 0xdb6   :  { %1237 = vrot.lane.b32.xlu1 %v1236_v25, %s1652_s22 }
 0xe08   :  { %v1008_v2 = vpop.permute.xlu0 %1007 }
 0xe09   :  { %v1010_v29 = vmul.f32 %v1008_v2, %v1005_v27 }
 0xe0b   :  { %v1015_v59 = vadd.f32 %v1014_v19, %v1010_v29 }
 0xe0d   :  { %v2028_v55 = vsel %vm341_vm4, %v1015_v59, %v1012_v28 }
 0xe0e   :  { %v1129_v63 = vpack.c.bf16 %v2028_v55, %v2028_v55 }
 0xe10   :  { %1131 = vrot.lane.b32.xlu0 %v1129_v63, %s1650_s18 }
 0xe28   :  { %v1238_v0 = vpop.permute.xlu1 %1237 }
 0xe29   :  { %1510 = vmatmul.mubr.msk.bf16.vlgmr.msra.gmra.mxu0 %vm60_vm0, %v1238_v0 }
 0xe82   :  { %v1132_v30 = vpop.permute.xlu0 %1131 }
 0xe83   :  { %1504 = vmatmul.mubr.msk.bf16.vlgmr.msra.gmra.mxu1 %vm60_vm0, %v1132_v30 }
 0xee9   :  { %v1276_v15 = vpop.f32.mrf.mxu0 }
 0xeea   :  { %v1293_v31 = vadd.f32 %v1276_v15, %v1764_v20  ;;  %1283 = vrot.lane.b32.xlu1 %v1276_v15, %s1648_s0 }
 0xeeb   :  { %v1511_v32 = vpop.f32.mrf.mxu0 }
 0xeec   :  { %1295 = vrot.lane.b32.xlu0 %v1293_v31, %s1647_s9 }
 0xeed   :  { %v1279_v33 = vpop.f32.mrf.mxu0 }
 0xeef   :  { %v1512_v34 = vpop.f32.mrf.mxu0 }
 0xf43   :  { %v1170_v36 = vpop.f32.mrf.mxu1 }
 0xf44   :  { %v1193_v39 = vadd.f32 %v1170_v36, %v1791_v62  ;;  %v1177_v62 = vrot.slane %v1170_v36, 2 }
 0xf45   :  { %v1505_v40 = vpop.f32.mrf.mxu1 }
 0xf46   :  { %v1195_v41 = vrot.slane %v1193_v39, 2  ;;  %v1179_v18 = vadd.f32 %v1177_v62, %v1773_v38  ;;  %v1180_v54 = vadd.f32 %v1177_v62, %v1771_v37 }
 0xf47   :  { %v1173_v42 = vpop.f32.mrf.mxu1 }
 0xf48   :  { %1196 = vrot.lane.b32.xlu1 %v1195_v41, %s1651_s19  ;;  %v1390_v4 = vmul.f32 -1.442695, %v1179_v18  ;;  %v1391_v35 = vmul.f32 -1.442695, %v1180_v54 }
 0xf49   :  { %v1506_v43 = vpop.f32.mrf.mxu1 }
 0xf5c   :  { %v1284_v44 = vpop.permute.xlu1 %1283 }
 0xf5d   :  { %v1286_v47 = vadd.f32 %v1284_v44, %v1758_v11 }
 0xf5e   :  { %v1296_v52 = vpop.permute.xlu0 %1295 }
 0xf5f   :  { %v1393_v20 = vmul.f32 -1.442695, %v1286_v47 }
 0xf61   :  { %1626 = vpow2.f32 %v1393_v20 }
 0xf6e   :  { %v1627_v48 = vpop.eup %1626 }
 0xf6f   :  { %v1290_v50 = vadd.f32 1.0, %v1627_v48 }
 0xf71   :  { %1628 = vrcp.f32 %v1290_v50 }
 0xf72   :  { %1630 = vpow2.f32 %v1390_v4 }
 0xf73   :  { %1632 = vpow2.f32 %v1391_v35 }
 0xf7e   :  { %v1629_v51 = vpop.eup %1628 }
 0xf7f   :  { %v1298_v53 = vmul.f32 %v1629_v51, %v1296_v52  ;;  %v1317_v14 = vmul.f32 %v1629_v51, %v2022_v26  ;;  %v1631_v56 = vpop.eup %1630  ;;  %v1305_v49 = vsub.f32 1.0, %v1629_v51 }
 0xf80   :  { %v1633_v57 = vpop.eup %1632  ;;  %v1187_v58 = vadd.f32 1.0, %v1631_v56 }
 0xf81   :  { %1300 = vrot.lane.b32.xlu0 %v1298_v53, %s1649_s17  ;;  %v1188_v60 = vadd.f32 1.0, %v1633_v57 }
 0xf82   :  { %1634 = vrcp.f32 %v1187_v58 }
 0xf83   :  { %1636 = vrcp.f32 %v1188_v60 }
 0xf8f   :  { %v1635_v61 = vpop.eup %1634 }
 0xf90   :  { %v1637_v23 = vpop.eup %1636 }
 0xf91   :  { %v1214_v28 = vsub.f32 1.0, %v1637_v23 }
 0xfba   :  { %v1197_v1 = vpop.permute.xlu1 %1196 }
 0xfbb   :  { %v1199_v3 = vmul.f32 %v1635_v61, %v1197_v1  ;;  %v1200_v6 = vmul.f32 %v1637_v23, %v1197_v1 }
 0xfbd   :  { %1203 = vrot.lane.b32.xlu1 %v1199_v3, %s1649_s17  ;;  %1205 = vrot.lane.b32.xlu0 %v1200_v6, %s1649_s17 }
 0xff3   :  { %v1301_v7 = vpop.permute.xlu0 %1300 }
 0xff4   :  { %v1303_v8 = vadd.f32 %v1301_v7, %v1758_v11 }
 0xff6   :  { %1638 = vtanh.f32 %v1303_v8 }
0x1003   :  { %v1639_v13 = vpop.eup %1638 }
0x1004   :  { %1307 = vrot.lane.b32.xlu1 %v1639_v13, %s1650_s18 }
0x102f   :  { %v1204_v17 = vpop.permute.xlu1 %1203  ;;  %v1206_v16 = vpop.permute.xlu0 %1205 }
0x1030   :  { %v1209_v21 = vadd.f32 %v1204_v17, %v1773_v38  ;;  %v1210_v5 = vadd.f32 %v1206_v16, %v1771_v37  ;;  %v1226_v37 = vrot.slane %v2028_v55, 2  ;;  %v1213_v38 = vsub.f32 1.0, %v1635_v61 }
0x1032   :  { %1640 = vtanh.f32 %v1209_v21  ;;  %v1228_v29 = vmul.f32 %v1635_v61, %v1226_v37  ;;  %v1229_v63 = vmul.f32 %v1637_v23, %v1226_v37 }
0x1033   :  { %1642 = vtanh.f32 %v1210_v5 }
0x103f   :  { %v1641_v22 = vpop.eup %1640 }
0x1040   :  { %v1643_v12 = vpop.eup %1642  ;;  %1217 = vrot.lane.b32.xlu0 %v1641_v22, %s1650_s18 }
0x1041   :  { %1219 = vrot.lane.b32.xlu1 %v1643_v12, %s1650_s18 }
0x1076   :  { %v1308_v11 = vpop.permute.xlu1 %1307 }
0x1077   :  { %v1310_v46 = vmul.f32 %v1308_v11, %v1305_v49 }
0x1079   :  { %v1318_v24 = vadd.f32 %v1317_v14, %v1310_v46 }
0x107b   :  { %v1319_v25 = vsel %vm225_vm8, %v1318_v24, %v2022_v26 }
0x107c   :  { %v1329_v27 = vrot.slane %v1319_v25, 2 }
0x107e   :  { %1330 = vrot.lane.b32.xlu1 %v1329_v27, %s1653_s1 }
0x10b2   :  { %v1218_v2 = vpop.permute.xlu0 %1217 }
0x10b3   :  { %v1220_v19 = vpop.permute.xlu1 %1219  ;;  %v1223_v59 = vmul.f32 %v1218_v2, %v1213_v38 }
0x10b4   :  { %v1224_v0 = vmul.f32 %v1220_v19, %v1214_v28 }
0x10b5   :  { %v1230_v30 = vadd.f32 %v1228_v29, %v1223_v59 }
0x10b6   :  { %v1231_v15 = vadd.f32 %v1229_v63, %v1224_v0 }
0x10b7   :  { %v1232_v31 = vsel %vm341_vm4, %v1230_v30, %v1226_v37 }
0x10b8   :  { %v1233_v45 = vsel %vm342_vm5, %v1231_v15, %v1226_v37 }
0x10b9   :  { %v1525_v26 = vpack.i.bf16 %v1233_v45, %v1232_v31 }
0x10bb   :  { %1526 = vrot.lane.b32.xlu0 %v1525_v26, %s1650_s18 }
0x10f0   :  { %v1331_v34 = vpop.permute.xlu1 %1330 }
0x112d   :  { %v1527_v55 = vpop.permute.xlu0 %1526 }
0x112e   :  { %v1529_v32 = vunpack.i.h.bf16 %v1527_v55  ;;  %v1528_v33 = vunpack.i.l.bf16 %v1527_v55 }
0x1130   :  { %v1334_v36 = vsel %vm60_vm0, %v1529_v32, %v1331_v34  ;;  %v1333_v39 = vsel %vm60_vm0, %v1528_v33, %v1331_v34 }
0x1131   :  { %v1398_v40 = vpack.c.bf16 %v1334_v36, %v1334_v36  ;;  %v1397_v41 = vpack.c.bf16 %v1333_v39, %v1333_v39 }
0x1133   :  { %v1346_v10 = vrot.slane %v1398_v40, 7  ;;  %v1396_v9 = vrot.slane %v1397_v41, 11 }
0x1135   :  { %v1347_v42 = vsel %vm1343_vm1, %v1396_v9, %v1346_v10 }
0x1136   :  { %1350 = vst.msk [vmem:[%s2074_s7] sm:$0x7] %vm1349_vm2, %v1347_v42 }

// kernel: _lambda_.5
= control target key start
LH: loop header
LB: loop body
LE: loop exit
PB: predicated region body
PF: predicated region fallthrough
CT: control target
= control target key end

     0   :  { %s5743_s0 = inlined_call_operand.vmem [shape: bf16[16,16], index: 0, kind: input, shape index: {}]   ;;  %s5744_s1 = inlined_call_operand.vmem [shape: bf16[2,1,32], index: 1, kind: input, shape index: {}]   ;;  %s5745_s2 = inlined_call_operand.vmem [shape: bf16[2,3,32], index: 2, kind: input, shape index: {}]   ;;  %s5746_s3 = inlined_call_operand.vmem [shape: bf16[32,64], index: 3, kind: input, shape index: {}]   ;;  %s5747_s4 = inlined_call_operand.vmem [shape: f32[1,64], index: 4, kind: input, shape index: {}]   ;;  %s5748_s5 = inlined_call_operand.vmem [shape: bf16[16,192], index: 5, kind: input, shape index: {}]   ;;  %s5749_s6 = inlined_call_operand.vmem [shape: f32[1,192], index: 6, kind: input, shape index: {}]   ;;  %s5750_s7 = inlined_call_operand.vmem [shape: bf16[32,96], index: 7, kind: input, shape index: {}]   ;;  %s5751_s8 = inlined_call_operand.vmem [shape: bf16[32,96], index: 8, kind: input, shape index: {}]   ;;  %s5752_s9 = inlined_call_operand.vmem [shape: f32[1,64], index: 9, kind: input, shape index: {}]   ;;  %s5753_s10 = inlined_call_operand.vmem [shape: bf16[64,256], index: 10, kind: input, shape index: {}]   ;;  %s5754_s11 = inlined_call_operand.vmem [shape: bf16[64,256], index: 11, kind: input, shape index: {}]   ;;  %s5755_s12 = inlined_call_operand.vmem [shape: f32[1,256], index: 12, kind: input, shape index: {}]   ;;  %s5756_s13 = inlined_call_operand.vmem [shape: bf16[32,128], index: 13, kind: input, shape index: {}]   ;;  %s5757_s14 = inlined_call_operand.vmem [shape: bf16[32,128], index: 14, kind: input, shape index: {}]   ;;  %s5758_s15 = inlined_call_operand.vmem [shape: bf16[64,128], index: 15, kind: input, shape index: {}]   ;;  %s5759_s16 = inlined_call_operand.vmem [shape: f32[1,128], index: 16, kind: input, shape index: {}]   ;;  %s5760_s17 = inlined_call_operand.vmem [shape: bf16[64,128], index: 17, kind: input, shape index: {}]   ;;  %s5761_s18 = inlined_call_operand.vmem [shape: f32[1,128], index: 18, kind: input, shape index: {}]   ;;  %s5762_s19 = inlined_call_operand.hbm [shape: f32[2,128], index: 19, kind: output, shape index: {0}]   ;;  %s5763_s20 = inlined_call_operand.vmem [shape: f32[16,128], index: 20, kind: output, shape index: {1}]  }
   0x1   :  { %5767 = sst [smem:[#allocation5_spill]] %s5743_s0 }
   0x2   :  { %5768 = sst [smem:[#allocation6_spill]] %s5744_s1 }
   0x3   :  { %5769 = sst [smem:[#allocation7_spill]] %s5745_s2 }
   0x4   :  { %5770 = sst [smem:[#allocation8_spill]] %s5746_s3 }
   0x5   :  { %5771 = sst [smem:[#allocation9_spill]] %s5747_s4 }
   0x6   :  { %s5772_s23 = sld [smem:[#allocation7_spill]]  ;;  %vm70_vm0 = vcmask 261120   ;;  %vm192_vm1 = vcmask 1040384   ;;  %vm193_vm2 = vcmask 1041408   ;;  %v4623_v1 = vmov 0.0  }
   0x7   :  { %3885 = vmatprep.subr.bf16.mxu0 %v4623_v1  ;;  %3891 = vmatprep.subr.bf16.mxu1 %v4623_v1  ;;  %v4624_v4 = vmov 65535   ;;  %vm4625_vm3 = vmmov 0   ;;  %s5773_s26 = sld [smem:[#allocation6_spill]] }
   0x8   :  { %v194_v5 = vsel %vm192_vm1, 4294967295, %v4624_v4  ;;  %3887 = vmatprep.mubr.msk.bf16.mxu0 %vm4625_vm3, %v4623_v1  ;;  %3893 = vmatprep.mubr.msk.bf16.mxu1 %vm4625_vm3, %v4623_v1 }
   0x9   :  { %v195_v7 = vsel %vm193_vm2, %v194_v5, 0 }
   0xc   :  { %v68_v0 = vld [vmem:[%s5772_s23] sm:$0x3]  ;;  %v69_v3 = vld [vmem:[%s5772_s23 + $0x2] sm:$0x3] }
   0xd   :  { %v75_v2 = vsel %vm70_vm0, %v68_v0, 0  ;;  %v121_v6 = vsel %vm70_vm0, %v69_v3, 0  ;;  %v4754_v8 = vld [vmem:[%s5773_s26] sm:$0x1]  ;;  %v4761_v9 = vld [vmem:[%s5773_s26 + $0x1] sm:$0x1]  ;;  %v196_v10 = vand.u32 %v195_v7, %v68_v0  ;;  %v241_v11 = vand.u32 %v195_v7, %v69_v3 }
   0xe   :  { %3886 = vmatpush3.bf16.xpose.msra.mxu0 %v75_v2  ;;  %3892 = vmatpush3.bf16.xpose.msra.mxu1 %v121_v6 }
   0xf   :  { %3903 = vmatprep.subr.bf16.mxu1 %v4623_v1  ;;  %3897 = vmatprep.subr.bf16.mxu0 %v4623_v1 }
  0x15   :  { %3888 = vmatmul.mubr.msk.bf16.vlgmr.msra.gmra.mxu0 %vm70_vm0, %v4754_v8  ;;  %3894 = vmatmul.mubr.msk.bf16.vlgmr.msra.gmra.mxu1 %vm70_vm0, %v4761_v9 }
  0x16   :  { %3898 = vmatpush3.bf16.msra.mxu0 %v196_v10  ;;  %3904 = vmatpush3.bf16.msra.mxu1 %v241_v11 }
  0x17   :  { %3905 = vmatprep.mubr.msk.bf16.mxu1 %vm4625_vm3, %v4623_v1  ;;  %3899 = vmatprep.mubr.msk.bf16.mxu0 %vm4625_vm3, %v4623_v1 }
  0x18   :  { %3909 = vmatprep.subr.bf16.mxu0 %v4623_v1 }
  0x19   :  { %26 = vsyncpa [#allocation3], 0  ;;  %vm163_vm4 = vcmask 16384   ;;  %vm188_vm5 = vcmask 23552   ;;  %s5774_s30 = sld [smem:[#allocation8_spill]]  ;;  %v4626_v45 = vmov 0   ;;  %v284_v49 = vunpack.c.l.bf16 %v4761_v9 }
  0x1a   :  { %v4290_v42 = vld [vmem:[%s5748_s5 + $0x4] ss:$8 sps:$4 sm:$0xff]   ;;  %v4288_v43 = vld [vmem:[%s5748_s5] ss:$8 sps:$4 sm:$0xff]   ;;  %s5775_s3 = sld [smem:[#allocation5_spill]]  ;;  %vm394_vm6 = vcmask 130048   ;;  %v283_v52 = vunpack.c.l.bf16 %v4754_v8  ;;  %v369_v7 = vlaneseq }
  0x1b   :  { %412 = vmatprep.subr.bf16.mxu1 %v4290_v42  ;;  %v4802_v46 = vld [vmem:[%s5752_s9] ss:$0 sm:$0xff]  ;;  %v4807_v47 = vld [vmem:[%s5751_s8 + $0x8] sm:$0xff]   ;;  %s4627_s4 = smov 64   ;;  %vm305_vm7 = vcmask 1041409   ;;  %s4629_s24 = smov 96  }
  0x1c   :  { %v4815_v48 = vld [vmem:[%s5751_s8] sm:$0xff]   ;;  %v4832_v4 = vld [vmem:[%s5750_s7 + $0x8] sm:$0xff]   ;;  %v4853_v8 = vshrl.u32 %v369_v7, 7  ;;  %s5776_s29 = sld [smem:[#allocation9_spill]]  ;;  %vm1935_vm8 = vcmask 523264   ;;  %vm1879_vm9 = vcmask 1043456  }
  0x1d   :  { %v4839_v6 = vld [vmem:[%s5750_s7] sm:$0xff]   ;;  %vm1881_vm10 = vcmask 1045504   ;;  %s4630_s0 = smov [#allocation2]  }
  0x1e   :  { %v371_v9 = vsub.s32 0, %v4853_v8  ;;  %v367_v10 = vld [vmem:[%s5749_s6] sm:$0x3]  ;;  %s4628_s6 = smov 32  }
  0x1f   :  { %v4285_v40 = vld [vmem:[%s5774_s30 + $0x8] sm:$0xff]   ;;  %v4286_v41 = vld [vmem:[%s5774_s30] sm:$0xff]  }
  0x20   :  { %v4292_v44 = vld [vmem:[%s5775_s3] sm:$0xff]  }
  0xd5   :  { %v111_v12 = vpop.f32.mrf.mxu0  ;;  %v157_v13 = vpop.f32.mrf.mxu1 }
  0xd6   :  { %v167_v14 = vsel %vm163_vm4, %v157_v13, -inf  ;;  %v164_v18 = vsel %vm163_vm4, %v111_v12, -inf }
  0xd7   :  { %v3889_v15 = vpop.f32.mrf.mxu0  ;;  %168 = vmax.xlane.f32.xlu0 %v167_v14  ;;  %v3895_v16 = vpop.f32.mrf.mxu1  ;;  %v372_v14 = vrot.slane %v367_v10, %v371_v9 }
  0xd9   :  { %v114_v17 = vpop.f32.mrf.mxu0  ;;  %v160_v19 = vpop.f32.mrf.mxu1 }
  0xdb   :  { %v3890_v20 = vpop.f32.mrf.mxu0  ;;  %v3896_v21 = vpop.f32.mrf.mxu1  ;;  %165 = vmax.xlane.f32.xlu0 %v164_v18 }
  0xf1   :  { %517 = vrot.lane.b32.xlu0 %v4802_v46, %s4627_s4 }
 0x160   :  { %v169_v22 = vpop.xlane.xlu0 %168 }
 0x161   :  { %v171_v23 = vsub.f32 %v157_v13, %v169_v22 }
 0x163   :  { %v174_v24 = vmul.f32 1.442695, %v171_v23 }
 0x164   :  { %v166_v25 = vpop.xlane.xlu0 %165 }
 0x165   :  { %4331 = vpow2.f32 %v174_v24  ;;  %v170_v26 = vsub.f32 %v111_v12, %v166_v25  ;;  %v375_v12 = vsub.s32 1, %v4853_v8 }
 0x167   :  { %v172_v27 = vmul.f32 1.442695, %v170_v26  ;;  %v4864_v15 = vrot.slane %v367_v10, %v375_v12 }
 0x168   :  { %v4873_v24 = vpop.permute.xlu0 %517 }
 0x169   :  { %4333 = vpow2.f32 %v172_v27 }
 0x172   :  { %v4332_v28 = vpop.eup %4331 }
 0x173   :  { %v179_v29 = vsel %vm163_vm4, %v4332_v28, 0.0 }
 0x174   :  { %180 = vadd.xlane.f32.xlu1 %v179_v29 }
 0x176   :  { %v4334_v30 = vpop.eup %4333 }
 0x177   :  { %v176_v31 = vsel %vm163_vm4, %v4334_v30, 0.0 }
 0x178   :  { %177 = vadd.xlane.f32.xlu1 %v176_v31 }
 0x1fd   :  { %v181_v32 = vpop.xlane.xlu1 %180 }
 0x1fe   :  { %4335 = vrcp.f32 %v181_v32 }
 0x201   :  { %v178_v33 = vpop.xlane.xlu1 %177 }
 0x202   :  { %4337 = vrcp.f32 %v178_v33 }
 0x20b   :  { %v4336_v34 = vpop.eup %4335 }
 0x20c   :  { %v185_v35 = vmul.f32 %v4336_v34, %v4332_v28 }
 0x20e   :  { %v187_v36 = vpack.c.bf16 %v185_v35, %v185_v35 }
 0x20f   :  { %v4338_v37 = vpop.eup %4337 }
 0x210   :  { %3906 = vmatmul.mubr.msk.bf16.vlgmr.msra.gmra.mxu1 %vm188_vm5, %v187_v36  ;;  %v184_v38 = vmul.f32 %v4338_v37, %v4334_v30 }
 0x211   :  { %413 = vmatpush1.bf16.msra.mxu1 %v4288_v43  ;;  %430 = vmatprep.mubr.bf16.mxu1 %v4626_v45 }
 0x212   :  { %v186_v39 = vpack.c.bf16 %v184_v38, %v184_v38  ;;  %3925 = vmatprep.subr.bf16.mxu1 %v4623_v1 }
 0x214   :  { %3900 = vmatmul.mubr.msk.bf16.vlgmr.msra.gmra.mxu0 %vm188_vm5, %v186_v39 }
 0x215   :  { %3913 = vmatprep.mubr.msk.bf16.mxu0 %vm4625_vm3, %v4623_v1  ;;  %3910 = vmatpush3.bf16.msra.mxu0 %v4285_v40 }
 0x216   :  { %3911 = vmatprep.subr.bf16.mxu0 %v4623_v1 }
 0x218   :  { %3660 = vmatmul.mubr.msk.bf16.vlgmr.msra.gmra.mxu1 %vm394_vm6, %v4292_v44 }
 0x219   :  { %3912 = vmatpush3.bf16.msra.mxu0 %v4286_v41  ;;  %3929 = vmatprep.mubr.msk.bf16.mxu1 %vm4625_vm3, %v4623_v1 }
 0x21a   :  { %3917 = vmatprep.subr.bf16.mxu0 %v4623_v1  ;;  %3926 = vmatpush3.bf16.msra.mxu1 %v4807_v47 }
 0x21b   :  { %3927 = vmatprep.subr.bf16.mxu1 %v4623_v1 }
 0x21e   :  { %3928 = vmatpush3.bf16.msra.mxu1 %v4815_v48 }
 0x21f   :  { %3941 = vmatprep.subr.bf16.mxu1 %v4623_v1 }
 0x221   :  { %3930 = vmatmul.mubr.bf16.vlgmr.msra.gmra.mxu1 %v4626_v45 }
 0x222   :  { %3942 = vmatpush3.bf16.msra.mxu1 %v4807_v47  ;;  %3945 = vmatprep.mubr.msk.bf16.mxu1 %vm4625_vm3, %v4623_v1 }
 0x223   :  { %3943 = vmatprep.subr.bf16.mxu1 %v4623_v1 }
 0x226   :  { %3944 = vmatpush3.bf16.msra.mxu1 %v4815_v48 }
 0x227   :  { %3957 = vmatprep.subr.bf16.mxu1 %v4623_v1 }
 0x2d0   :  { %v277_v50 = vpop.f32.mrf.mxu1 }
 0x2d1   :  { %v286_v51 = vadd.f32 %v284_v49, %v277_v50 }
 0x2d2   :  { %v3907_v53 = vpop.f32.mrf.mxu1 }
 0x2d3   :  { %v288_v54 = vpack.c.bf16 %v286_v51, %v286_v51 }
 0x2d4   :  { %v232_v55 = vpop.f32.mrf.mxu0  ;;  %v280_v56 = vpop.f32.mrf.mxu1 }
 0x2d5   :  { %v303_v57 = vunpack.c.l.b16 %v288_v54  ;;  %v285_v58 = vadd.f32 %v283_v52, %v232_v55 }
 0x2d6   :  { %v3901_v59 = vpop.f32.mrf.mxu0  ;;  %v3908_v60 = vpop.f32.mrf.mxu1 }
 0x2d7   :  { %v287_v61 = vpack.c.bf16 %v285_v58, %v285_v58  ;;  %v304_v63 = vrot.slane %v303_v57, 7 }
 0x2d8   :  { %v235_v62 = vpop.f32.mrf.mxu0  ;;  %v432_v11 = vpop.f32.mrf.mxu1 }
 0x2d9   :  { %v302_v0 = vunpack.c.l.b16 %v287_v61  ;;  %v4877_v34 = vadd.f32 %v432_v11, %v372_v14 }
 0x2da   :  { %v3902_v2 = vpop.f32.mrf.mxu0  ;;  %v434_v13 = vpop.f32.mrf.mxu1 }
 0x2db   :  { %v306_v3 = vsel %vm305_vm7, %v304_v63, %v302_v0  ;;  %v4869_v18 = vadd.f32 %v434_v13, %v4864_v15 }
 0x2dc   :  { %v307_v5 = vpack.c.b16 %v306_v3, %v306_v3  ;;  %v436_v16 = vpop.f32.mrf.mxu1 }
 0x2dd   :  { %v4866_v17 = vadd.f32 %v436_v16, %v372_v14 }
 0x2de   :  { %3914 = vmatmul.mubr.msk.bf16.vlgmr.msra.gmra.mxu0 %vm70_vm0, %v307_v5  ;;  %v438_v21 = vpop.f32.mrf.mxu1 }
 0x2df   :  { %3918 = vmatpush3.bf16.msra.mxu0 %v4832_v4  ;;  %3921 = vmatprep.mubr.msk.bf16.mxu0 %vm4625_vm3, %v4623_v1  ;;  %v4898_v3 = vadd.f32 %v438_v21, %v4864_v15 }
 0x2e0   :  { %3919 = vmatprep.subr.bf16.mxu0 %v4623_v1 }
 0x2e1   :  { %v586_v23 = vpop.f32.mrf.mxu1 }
 0x2e2   :  { %v593_v42 = vrot.slane %v586_v23, 2 }
 0x2e3   :  { %3920 = vmatpush3.bf16.msra.mxu0 %v4839_v6  ;;  %v3931_v26 = vpop.f32.mrf.mxu1 }
 0x2e4   :  { %3933 = vmatprep.subr.bf16.mxu0 %v4623_v1 }
 0x2e5   :  { %v589_v28 = vpop.f32.mrf.mxu1 }
 0x2e6   :  { %3922 = vmatmul.mubr.bf16.vlgmr.msra.gmra.mxu0 %v4626_v45 }
 0x2e7   :  { %3934 = vmatpush3.bf16.msra.mxu0 %v4832_v4  ;;  %3937 = vmatprep.mubr.msk.bf16.mxu0 %vm4625_vm3, %v4623_v1  ;;  %v3932_v31 = vpop.f32.mrf.mxu1 }
 0x2e8   :  { %3935 = vmatprep.subr.bf16.mxu0 %v4623_v1 }
 0x2eb   :  { %3936 = vmatpush3.bf16.msra.mxu0 %v4839_v6 }
 0x2ec   :  { %3949 = vmatprep.subr.bf16.mxu0 %v4623_v1 }
 0x39e   :  { %v4871_v19 = vpop.f32.mrf.mxu0 }
 0x3a0   :  { %v3915_v20 = vpop.f32.mrf.mxu0 }
 0x3a2   :  { %v360_v22 = vpop.f32.mrf.mxu0 }
 0x3a4   :  { %v3916_v25 = vpop.f32.mrf.mxu0 }
 0x3a6   :  { %v499_v27 = vpop.f32.mrf.mxu0 }
 0x3a7   :  { %v520_v29 = vadd.f32 %v4873_v24, %v499_v27  ;;  %v505_v35 = vadd.f32 %v499_v27, %v4877_v34 }
 0x3a8   :  { %v3923_v30 = vpop.f32.mrf.mxu0 }
 0x3a9   :  { %522 = vrot.lane.b32.xlu1 %v520_v29, %s4627_s4  ;;  %v3663_v36 = vmul.f32 -1.442695, %v505_v35 }
 0x3aa   :  { %v502_v32 = vpop.f32.mrf.mxu0 }
 0x3ab   :  { %4339 = vpow2.f32 %v3663_v36 }
 0x3ac   :  { %v3924_v33 = vpop.f32.mrf.mxu0 }
 0x3b8   :  { %v4340_v37 = vpop.eup %4339 }
 0x3b9   :  { %v509_v38 = vadd.f32 1.0, %v4340_v37 }
 0x3bb   :  { %4341 = vrcp.f32 %v509_v38 }
 0x3c8   :  { %v4342_v39 = vpop.eup %4341 }
 0x3c9   :  { %v532_v57 = vsub.f32 1.0, %v4342_v39  ;;  %v538_v59 = vmul.f32 0.0, %v4342_v39 }
 0x41b   :  { %v523_v40 = vpop.permute.xlu1 %522 }
 0x41c   :  { %v525_v41 = vmul.f32 %v4342_v39, %v523_v40 }
 0x41e   :  { %527 = vrot.lane.b32.xlu1 %v525_v41, %s4627_s4 }
 0x422   :  { %611 = vrot.lane.b32.xlu1 %v4802_v46, %s4628_s6 }
 0x426   :  { %594 = vrot.lane.b32.xlu1 %v593_v42, %s4629_s24 }
 0x490   :  { %v528_v43 = vpop.permute.xlu1 %527 }
 0x491   :  { %v530_v44 = vadd.f32 %v528_v43, %v4877_v34 }
 0x493   :  { %4343 = vtanh.f32 %v530_v44 }
 0x494   :  { %v4885_v49 = vpop.permute.xlu1 %611 }
 0x495   :  { %v614_v50 = vadd.f32 %v4885_v49, %v586_v23 }
 0x497   :  { %v616_v52 = vrot.slane %v614_v50, 2 }
 0x498   :  { %v595_v53 = vpop.permute.xlu1 %594 }
 0x499   :  { %v597_v46 = vadd.f32 %v595_v53, %v4866_v17  ;;  %v604_v13 = vadd.f32 %v595_v53, %v4898_v3 }
 0x49b   :  { %v3667_v54 = vmul.f32 -1.442695, %v597_v46  ;;  %v3668_v14 = vmul.f32 -1.442695, %v604_v13 }
 0x49d   :  { %4345 = vpow2.f32 %v3667_v54 }
 0x4a0   :  { %v4344_v51 = vpop.eup %4343 }
 0x4a1   :  { %534 = vrot.lane.b32.xlu0 %v4344_v51, %s4629_s24 }
 0x4a5   :  { %617 = vrot.lane.b32.xlu0 %v616_v52, %s4628_s6 }
 0x4aa   :  { %v4346_v55 = vpop.eup %4345 }
 0x4ab   :  { %v601_v56 = vadd.f32 1.0, %v4346_v55 }
 0x4ad   :  { %4347 = vrcp.f32 %v601_v56 }
 0x4ba   :  { %v4348_v62 = vpop.eup %4347 }
 0x513   :  { %v535_v58 = vpop.permute.xlu0 %534 }
 0x514   :  { %v537_v60 = vmul.f32 %v535_v58, %v532_v57 }
 0x516   :  { %v4891_v61 = vadd.f32 %v538_v59, %v537_v60 }
 0x517   :  { %v618_v63 = vpop.permute.xlu0 %617 }
 0x518   :  { %v620_v0 = vmul.f32 %v4348_v62, %v618_v63  ;;  %v635_v2 = vpack.c.bf16 %v4891_v61, %v4891_v61 }
 0x51a   :  { %637 = vrot.lane.b32.xlu1 %v635_v2, %s4629_s24  ;;  %622 = vrot.lane.b32.xlu0 %v620_v0, %s4627_s4 }
 0x58c   :  { %v623_v5 = vpop.permute.xlu0 %622  ;;  %v638_v7 = vpop.permute.xlu1 %637 }
 0x58d   :  { %v625_v10 = vadd.f32 %v623_v5, %v4898_v3  ;;  %3938 = vmatmul.mubr.msk.bf16.vlgmr.msra.gmra.mxu0 %vm70_vm0, %v638_v7 }
 0x58e   :  { %3950 = vmatpush3.bf16.msra.mxu0 %v4832_v4  ;;  %3953 = vmatprep.mubr.msk.bf16.mxu0 %vm4625_vm3, %v4623_v1 }
 0x58f   :  { %4349 = vtanh.f32 %v625_v10  ;;  %3951 = vmatprep.subr.bf16.mxu0 %v4623_v1  ;;  %v712_v10 = vrot.slane %v4891_v61, 6 }
 0x590   :  { %4351 = vpow2.f32 %v3668_v14 }
 0x592   :  { %3952 = vmatpush3.bf16.msra.mxu0 %v4839_v6 }
 0x593   :  { %3965 = vmatprep.subr.bf16.mxu0 %v4623_v1 }
 0x59c   :  { %v4350_v11 = vpop.eup %4349 }
 0x59d   :  { %629 = vrot.lane.b32.xlu1 %v4350_v11, %s4629_s24  ;;  %v4352_v15 = vpop.eup %4351 }
 0x59e   :  { %v608_v16 = vadd.f32 1.0, %v4352_v15 }
 0x5a0   :  { %4353 = vrcp.f32 %v608_v16 }
 0x5ad   :  { %v4354_v20 = vpop.eup %4353 }
 0x5ae   :  { %v627_v21 = vsub.f32 1.0, %v4354_v20  ;;  %v633_v23 = vmul.f32 0.0, %v4354_v20 }
 0x60f   :  { %v630_v22 = vpop.permute.xlu1 %629 }
 0x610   :  { %v632_v25 = vmul.f32 %v630_v22, %v627_v21 }
 0x612   :  { %v4910_v26 = vadd.f32 %v633_v23, %v632_v25 }
 0x614   :  { %v716_v27 = vpack.c.bf16 %v4910_v26, %v4910_v26 }
 0x616   :  { %v718_v28 = vrot.slane %v716_v27, 3 }
 0x618   :  { %3946 = vmatmul.mubr.msk.bf16.vlgmr.msra.gmra.mxu1 %vm70_vm0, %v718_v28 }
 0x619   :  { %3958 = vmatpush3.bf16.msra.mxu1 %v4807_v47  ;;  %3961 = vmatprep.mubr.msk.bf16.mxu1 %vm4625_vm3, %v4623_v1 }
 0x61a   :  { %3959 = vmatprep.subr.bf16.mxu1 %v4623_v1 }
 0x61d   :  { %3960 = vmatpush3.bf16.msra.mxu1 %v4815_v48 }
 0x61e   :  { %3973 = vmatprep.subr.bf16.mxu1 %v4623_v1 }
 0x64d   :  { %v676_v29 = vpop.f32.mrf.mxu0 }
 0x64e   :  { %v692_v30 = vadd.f32 %v676_v29, %v4873_v24  ;;  %v683_v36 = vrot.slane %v676_v29, 6 }
 0x64f   :  { %v3939_v31 = vpop.f32.mrf.mxu0 }
 0x650   :  { %v694_v32 = vrot.slane %v692_v30, 6  ;;  %v685_v37 = vadd.f32 %v683_v36, %v4877_v34 }
 0x651   :  { %v679_v33 = vpop.f32.mrf.mxu0 }
 0x652   :  { %695 = vrot.lane.b32.xlu0 %v694_v32, %s4627_s4  ;;  %v3670_v38 = vmul.f32 -1.442695, %v685_v37  ;;  %v801_v33 = vrot.slane %v4910_v26, 2 }
 0x653   :  { %v3940_v35 = vpop.f32.mrf.mxu0 }
 0x654   :  { %4355 = vpow2.f32 %v3670_v38 }
 0x661   :  { %v4356_v39 = vpop.eup %4355 }
 0x662   :  { %v689_v40 = vadd.f32 1.0, %v4356_v39 }
 0x664   :  { %4357 = vrcp.f32 %v689_v40 }
 0x671   :  { %v4358_v41 = vpop.eup %4357 }
 0x672   :  { %v705_v7 = vsub.f32 1.0, %v4358_v41  ;;  %v714_v13 = vmul.f32 %v4358_v41, %v712_v10 }
 0x6c4   :  { %v696_v42 = vpop.permute.xlu0 %695 }
 0x6c5   :  { %v698_v43 = vmul.f32 %v4358_v41, %v696_v42 }
 0x6c7   :  { %700 = vrot.lane.b32.xlu1 %v698_v43, %s4627_s4 }
 0x6d8   :  { %v756_v44 = vpop.f32.mrf.mxu1 }
 0x6d9   :  { %v763_v50 = vrot.slane %v756_v44, 4  ;;  %v781_v51 = vadd.f32 %v756_v44, %v4885_v49 }
 0x6da   :  { %v3947_v52 = vpop.f32.mrf.mxu1 }
 0x6db   :  { %764 = vrot.lane.b32.xlu0 %v763_v50, %s4629_s24  ;;  %v783_v46 = vrot.slane %v781_v51, 4 }
 0x6dc   :  { %v759_v53 = vpop.f32.mrf.mxu1 }
 0x6de   :  { %v3948_v54 = vpop.f32.mrf.mxu1 }
 0x6df   :  { %784 = vrot.lane.b32.xlu0 %v783_v46, %s4628_s6 }
 0x739   :  { %v701_v55 = vpop.permute.xlu1 %700 }
 0x73a   :  { %v703_v56 = vadd.f32 %v701_v55, %v4877_v34 }
 0x73c   :  { %4359 = vtanh.f32 %v703_v56 }
 0x749   :  { %v4360_v57 = vpop.eup %4359 }
 0x74a   :  { %707 = vrot.lane.b32.xlu1 %v4360_v57, %s4629_s24 }
 0x74d   :  { %v765_v58 = vpop.permute.xlu0 %764 }
 0x74e   :  { %v767_v59 = vadd.f32 %v765_v58, %v4866_v17  ;;  %v774_v27 = vadd.f32 %v765_v58, %v4898_v3 }
 0x750   :  { %v3672_v60 = vmul.f32 -1.442695, %v767_v59  ;;  %v3673_v28 = vmul.f32 -1.442695, %v774_v27 }
 0x751   :  { %v785_v2 = vpop.permute.xlu0 %784 }
 0x752   :  { %4361 = vpow2.f32 %v3672_v60 }
 0x75f   :  { %v4362_v62 = vpop.eup %4361 }
 0x760   :  { %v771_v63 = vadd.f32 1.0, %v4362_v62 }
 0x762   :  { %4363 = vrcp.f32 %v771_v63 }
 0x76f   :  { %v4364_v0 = vpop.eup %4363 }
 0x770   :  { %v787_v5 = vmul.f32 %v4364_v0, %v785_v2 }
 0x772   :  { %789 = vrot.lane.b32.xlu0 %v787_v5, %s4627_s4 }
 0x7bc   :  { %v708_v11 = vpop.permute.xlu1 %707 }
 0x7bd   :  { %v710_v14 = vmul.f32 %v708_v11, %v705_v7 }
 0x7bf   :  { %v4933_v15 = vadd.f32 %v714_v13, %v710_v14 }
 0x7c1   :  { %v805_v16 = vpack.c.bf16 %v4933_v15, %v4933_v15 }
 0x7c3   :  { %v807_v20 = vrot.slane %v805_v16, 1 }
 0x7c5   :  { %808 = vrot.lane.b32.xlu1 %v807_v20, %s4629_s24 }
 0x7e4   :  { %v790_v21 = vpop.permute.xlu0 %789 }
 0x7e5   :  { %v792_v22 = vadd.f32 %v790_v21, %v4898_v3 }
 0x7e7   :  { %4365 = vtanh.f32 %v792_v22 }
 0x7e8   :  { %4367 = vpow2.f32 %v3673_v28 }
 0x7f4   :  { %v4366_v23 = vpop.eup %4365 }
 0x7f5   :  { %796 = vrot.lane.b32.xlu1 %v4366_v23, %s4629_s24  ;;  %v4368_v29 = vpop.eup %4367 }
 0x7f6   :  { %v778_v30 = vadd.f32 1.0, %v4368_v29 }
 0x7f8   :  { %4369 = vrcp.f32 %v778_v30  ;;  %v883_v30 = vrot.slane %v4933_v15, 6 }
 0x805   :  { %v4370_v31 = vpop.eup %4369 }
 0x806   :  { %v794_v32 = vsub.f32 1.0, %v4370_v31  ;;  %v803_v36 = vmul.f32 %v4370_v31, %v801_v33 }
 0x837   :  { %v809_v25 = vpop.permute.xlu1 %808 }
 0x838   :  { %3954 = vmatmul.mubr.msk.bf16.vlgmr.msra.gmra.mxu0 %vm70_vm0, %v809_v25 }
 0x839   :  { %3966 = vmatpush3.bf16.msra.mxu0 %v4832_v4  ;;  %3969 = vmatprep.mubr.msk.bf16.mxu0 %vm4625_vm3, %v4623_v1 }
 0x83a   :  { %3967 = vmatprep.subr.bf16.mxu0 %v4623_v1 }
 0x83d   :  { %3968 = vmatpush3.bf16.msra.mxu0 %v4839_v6 }
 0x83e   :  { %3981 = vmatprep.subr.bf16.mxu0 %v4623_v1 }
 0x867   :  { %v797_v35 = vpop.permute.xlu1 %796 }
 0x868   :  { %v799_v37 = vmul.f32 %v797_v35, %v794_v32 }
 0x86a   :  { %v4949_v38 = vadd.f32 %v803_v36, %v799_v37 }
 0x86c   :  { %v887_v39 = vpack.c.bf16 %v4949_v38, %v4949_v38 }
 0x86e   :  { %v889_v40 = vrot.slane %v887_v39, 2 }
 0x870   :  { %3962 = vmatmul.mubr.msk.bf16.vlgmr.msra.gmra.mxu1 %vm70_vm0, %v889_v40 }
 0x871   :  { %3974 = vmatpush3.bf16.msra.mxu1 %v4807_v47  ;;  %3977 = vmatprep.mubr.msk.bf16.mxu1 %vm4625_vm3, %v4623_v1 }
 0x872   :  { %3975 = vmatprep.subr.bf16.mxu1 %v4623_v1 }
 0x875   :  { %3976 = vmatpush3.bf16.msra.mxu1 %v4815_v48 }
 0x876   :  { %3989 = vmatprep.subr.bf16.mxu1 %v4623_v1 }
 0x8f8   :  { %v847_v41 = vpop.f32.mrf.mxu0 }
 0x8f9   :  { %v863_v42 = vadd.f32 %v847_v41, %v4873_v24  ;;  %v854_v56 = vrot.slane %v847_v41, 4 }
 0x8fa   :  { %v3955_v43 = vpop.f32.mrf.mxu0 }
 0x8fb   :  { %v865_v44 = vrot.slane %v863_v42, 4  ;;  %v856_v57 = vadd.f32 %v854_v56, %v4877_v34 }
 0x8fc   :  { %v850_v50 = vpop.f32.mrf.mxu0 }
 0x8fd   :  { %866 = vrot.lane.b32.xlu0 %v865_v44, %s4627_s4  ;;  %v3675_v58 = vmul.f32 -1.442695, %v856_v57 }
 0x8fe   :  { %v3956_v51 = vpop.f32.mrf.mxu0 }
 0x8ff   :  { %4371 = vpow2.f32 %v3675_v58  ;;  %v972_v51 = vrot.slane %v4949_v38, 2 }
 0x90c   :  { %v4372_v59 = vpop.eup %4371 }
 0x90d   :  { %v860_v60 = vadd.f32 1.0, %v4372_v59 }
 0x90f   :  { %4373 = vrcp.f32 %v860_v60 }
 0x91c   :  { %v4374_v62 = vpop.eup %4373 }
 0x91d   :  { %v876_v29 = vsub.f32 1.0, %v4374_v62  ;;  %v885_v32 = vmul.f32 %v4374_v62, %v883_v30 }
 0x930   :  { %v927_v52 = vpop.f32.mrf.mxu1 }
 0x931   :  { %v934_v53 = vrot.slane %v927_v52, 6  ;;  %v952_v0 = vadd.f32 %v927_v52, %v4885_v49 }
 0x932   :  { %v3963_v46 = vpop.f32.mrf.mxu1 }
 0x933   :  { %935 = vrot.lane.b32.xlu0 %v934_v53, %s4629_s24  ;;  %v954_v5 = vrot.slane %v952_v0, 6 }
 0x934   :  { %v930_v54 = vpop.f32.mrf.mxu1 }
 0x936   :  { %v3964_v55 = vpop.f32.mrf.mxu1 }
 0x96f   :  { %v867_v63 = vpop.permute.xlu0 %866 }
 0x970   :  { %v869_v2 = vmul.f32 %v4374_v62, %v867_v63 }
 0x972   :  { %871 = vrot.lane.b32.xlu1 %v869_v2, %s4627_s4 }
 0x976   :  { %955 = vrot.lane.b32.xlu1 %v954_v5, %s4628_s6 }
 0x9a5   :  { %v936_v7 = vpop.permute.xlu0 %935 }
 0x9a6   :  { %v938_v10 = vadd.f32 %v936_v7, %v4866_v17  ;;  %v945_v40 = vadd.f32 %v936_v7, %v4898_v3 }
 0x9a8   :  { %v3677_v11 = vmul.f32 -1.442695, %v938_v10  ;;  %v3678_v41 = vmul.f32 -1.442695, %v945_v40 }
 0x9aa   :  { %4375 = vpow2.f32 %v3677_v11 }
 0x9b7   :  { %v4376_v13 = vpop.eup %4375 }
 0x9b8   :  { %v942_v14 = vadd.f32 1.0, %v4376_v13 }
 0x9ba   :  { %4377 = vrcp.f32 %v942_v14 }
 0x9c7   :  { %v4378_v21 = vpop.eup %4377 }
 0x9e4   :  { %v872_v16 = vpop.permute.xlu1 %871 }
 0x9e5   :  { %v874_v20 = vadd.f32 %v872_v16, %v4877_v34 }
 0x9e7   :  { %4379 = vtanh.f32 %v874_v20 }
 0x9e8   :  { %v956_v22 = vpop.permute.xlu1 %955 }
 0x9e9   :  { %v958_v23 = vmul.f32 %v4378_v21, %v956_v22 }
 0x9eb   :  { %960 = vrot.lane.b32.xlu1 %v958_v23, %s4627_s4 }
 0x9f4   :  { %v4380_v25 = vpop.eup %4379 }
 0x9f5   :  { %878 = vrot.lane.b32.xlu0 %v4380_v25, %s4629_s24 }
 0xa5d   :  { %v961_v27 = vpop.permute.xlu1 %960 }
 0xa5e   :  { %v963_v28 = vadd.f32 %v961_v27, %v4898_v3 }
 0xa60   :  { %4381 = vtanh.f32 %v963_v28 }
 0xa61   :  { %4383 = vpow2.f32 %v3678_v41 }
 0xa67   :  { %v879_v31 = vpop.permute.xlu0 %878 }
 0xa68   :  { %v881_v33 = vmul.f32 %v879_v31, %v876_v29 }
 0xa6a   :  { %v4973_v35 = vadd.f32 %v885_v32, %v881_v33 }
 0xa6c   :  { %v976_v36 = vpack.c.bf16 %v4973_v35, %v4973_v35 }
 0xa6d   :  { %v4382_v37 = vpop.eup %4381 }
 0xa6e   :  { %967 = vrot.lane.b32.xlu1 %v4382_v37, %s4629_s24  ;;  %v978_v39 = vrot.slane %v976_v36, 2  ;;  %v4384_v42 = vpop.eup %4383 }
 0xa6f   :  { %v949_v43 = vadd.f32 1.0, %v4384_v42 }
 0xa70   :  { %979 = vrot.lane.b32.xlu0 %v978_v39, %s4629_s24 }
 0xa71   :  { %4385 = vrcp.f32 %v949_v43 }
 0xa7e   :  { %v4386_v44 = vpop.eup %4385 }
 0xa7f   :  { %v965_v50 = vsub.f32 1.0, %v4386_v44  ;;  %v974_v53 = vmul.f32 %v4386_v44, %v972_v51  ;;  %v1054_v44 = vrot.slane %v4973_v35, 6 }
 0xae0   :  { %v968_v52 = vpop.permute.xlu1 %967 }
 0xae1   :  { %v970_v46 = vmul.f32 %v968_v52, %v965_v50 }
 0xae2   :  { %v980_v54 = vpop.permute.xlu0 %979 }
 0xae3   :  { %v4981_v55 = vadd.f32 %v974_v53, %v970_v46  ;;  %3970 = vmatmul.mubr.msk.bf16.vlgmr.msra.gmra.mxu0 %vm70_vm0, %v980_v54 }
 0xae4   :  { %3982 = vmatpush3.bf16.msra.mxu0 %v4832_v4  ;;  %3985 = vmatprep.mubr.msk.bf16.mxu0 %vm4625_vm3, %v4623_v1 }
 0xae5   :  { %v1058_v56 = vpack.c.bf16 %v4981_v55, %v4981_v55  ;;  %3983 = vmatprep.subr.bf16.mxu0 %v4623_v1 }
 0xae7   :  { %v1060_v57 = vrot.slane %v1058_v56, 1 }
 0xae8   :  { %3984 = vmatpush3.bf16.msra.mxu0 %v4839_v6 }
 0xae9   :  { %3978 = vmatmul.mubr.msk.bf16.vlgmr.msra.gmra.mxu1 %vm70_vm0, %v1060_v57  ;;  %3997 = vmatprep.subr.bf16.mxu0 %v4623_v1 }
 0xaea   :  { %3990 = vmatpush3.bf16.msra.mxu1 %v4807_v47  ;;  %3993 = vmatprep.mubr.msk.bf16.mxu1 %vm4625_vm3, %v4623_v1 }
 0xaeb   :  { %3991 = vmatprep.subr.bf16.mxu1 %v4623_v1 }
 0xaee   :  { %3992 = vmatpush3.bf16.msra.mxu1 %v4815_v48 }
 0xaef   :  { %4005 = vmatprep.subr.bf16.mxu1 %v4623_v1 }
 0xba3   :  { %v1018_v58 = vpop.f32.mrf.mxu0 }
 0xba4   :  { %v1034_v59 = vadd.f32 %v1018_v58, %v4873_v24  ;;  %v1025_v11 = vrot.slane %v1018_v58, 2 }
 0xba5   :  { %v3971_v60 = vpop.f32.mrf.mxu0 }
 0xba6   :  { %v1036_v62 = vrot.slane %v1034_v59, 2  ;;  %v1027_v13 = vadd.f32 %v1025_v11, %v4877_v34 }
 0xba7   :  { %v1021_v63 = vpop.f32.mrf.mxu0 }
 0xba8   :  { %1037 = vrot.lane.b32.xlu0 %v1036_v62, %s4627_s4  ;;  %v3680_v14 = vmul.f32 -1.442695, %v1027_v13 }
 0xba9   :  { %v3972_v0 = vpop.f32.mrf.mxu0  ;;  %v1098_v2 = vpop.f32.mrf.mxu1 }
 0xbaa   :  { %4387 = vpow2.f32 %v3680_v14  ;;  %v1122_v25 = vadd.f32 %v1098_v2, %v4885_v49  ;;  %v1141_v0 = vrot.slane %v4981_v55, 2 }
 0xbab   :  { %v3979_v5 = vpop.f32.mrf.mxu1 }
 0xbac   :  { %1105 = vrot.lane.b32.xlu0 %v1098_v2, %s4629_s24 }
 0xbad   :  { %v1101_v7 = vpop.f32.mrf.mxu1 }
 0xbaf   :  { %v3980_v10 = vpop.f32.mrf.mxu1 }
 0xbb7   :  { %v4388_v16 = vpop.eup %4387 }
 0xbb8   :  { %v1031_v20 = vadd.f32 1.0, %v4388_v16 }
 0xbba   :  { %4389 = vrcp.f32 %v1031_v20 }
 0xbc7   :  { %v4390_v21 = vpop.eup %4389 }
 0xbc8   :  { %v1047_v43 = vsub.f32 1.0, %v4390_v21  ;;  %v1056_v51 = vmul.f32 %v4390_v21, %v1054_v44 }
 0xc1a   :  { %v1038_v22 = vpop.permute.xlu0 %1037 }
 0xc1b   :  { %v1040_v23 = vmul.f32 %v4390_v21, %v1038_v22 }
 0xc1d   :  { %1042 = vrot.lane.b32.xlu1 %v1040_v23, %s4627_s4 }
 0xc1e   :  { %v1106_v27 = vpop.permute.xlu0 %1105 }
 0xc1f   :  { %v1108_v28 = vadd.f32 %v1106_v27, %v4866_v17  ;;  %v1115_v57 = vadd.f32 %v1106_v27, %v4898_v3 }
 0xc21   :  { %1124 = vrot.lane.b32.xlu1 %v1122_v25, %s4628_s6  ;;  %v3682_v29 = vmul.f32 -1.442695, %v1108_v28  ;;  %v3683_v58 = vmul.f32 -1.442695, %v1115_v57 }
 0xc23   :  { %4391 = vpow2.f32 %v3682_v29 }
 0xc30   :  { %v4392_v30 = vpop.eup %4391 }
 0xc31   :  { %v1112_v31 = vadd.f32 1.0, %v4392_v30 }
 0xc33   :  { %4393 = vrcp.f32 %v1112_v31 }
 0xc40   :  { %v4394_v36 = vpop.eup %4393 }
 0xc8f   :  { %v1043_v32 = vpop.permute.xlu1 %1042 }
 0xc90   :  { %v1045_v33 = vadd.f32 %v1043_v32, %v4877_v34 }
 0xc92   :  { %4395 = vtanh.f32 %v1045_v33 }
 0xc93   :  { %v1125_v37 = vpop.permute.xlu1 %1124 }
 0xc94   :  { %v1127_v39 = vmul.f32 %v4394_v36, %v1125_v37 }
 0xc96   :  { %1129 = vrot.lane.b32.xlu1 %v1127_v39, %s4627_s4 }
 0xc9f   :  { %v4396_v40 = vpop.eup %4395 }
 0xca0   :  { %1049 = vrot.lane.b32.xlu0 %v4396_v40, %s4629_s24 }
 0xd08   :  { %v1130_v41 = vpop.permute.xlu1 %1129 }
 0xd09   :  { %v1132_v42 = vadd.f32 %v1130_v41, %v4898_v3 }
 0xd0b   :  { %4397 = vtanh.f32 %v1132_v42 }
 0xd0c   :  { %4399 = vpow2.f32 %v3683_v58 }
 0xd12   :  { %v1050_v50 = vpop.permute.xlu0 %1049 }
 0xd13   :  { %v1052_v52 = vmul.f32 %v1050_v50, %v1047_v43 }
 0xd15   :  { %v5012_v53 = vadd.f32 %v1056_v51, %v1052_v52 }
 0xd17   :  { %v1145_v46 = vpack.c.bf16 %v5012_v53, %v5012_v53 }
 0xd18   :  { %v4398_v54 = vpop.eup %4397 }
 0xd19   :  { %1136 = vrot.lane.b32.xlu1 %v4398_v54, %s4629_s24  ;;  %v1147_v56 = vrot.slane %v1145_v46, 3  ;;  %v4400_v59 = vpop.eup %4399 }
 0xd1a   :  { %v1119_v60 = vadd.f32 1.0, %v4400_v59 }
 0xd1b   :  { %1148 = vrot.lane.b32.xlu0 %v1147_v56, %s4629_s24 }
 0xd1c   :  { %4401 = vrcp.f32 %v1119_v60 }
 0xd29   :  { %v4402_v62 = vpop.eup %4401 }
 0xd2a   :  { %v1134_v63 = vsub.f32 1.0, %v4402_v62  ;;  %v1143_v5 = vmul.f32 %v4402_v62, %v1141_v0 }
 0xd8b   :  { %v1137_v2 = vpop.permute.xlu1 %1136 }
 0xd8c   :  { %v1139_v7 = vmul.f32 %v1137_v2, %v1134_v63  ;;  %v1219_v2 = vrot.slane %v5012_v53, 6 }
 0xd8d   :  { %v1149_v10 = vpop.permute.xlu0 %1148 }
 0xd8e   :  { %v5020_v11 = vadd.f32 %v1143_v5, %v1139_v7  ;;  %3986 = vmatmul.mubr.msk.bf16.vlgmr.msra.gmra.mxu0 %vm70_vm0, %v1149_v10 }
 0xd8f   :  { %3998 = vmatpush3.bf16.msra.mxu0 %v4832_v4  ;;  %4001 = vmatprep.mubr.msk.bf16.mxu0 %vm4625_vm3, %v4623_v1 }
 0xd90   :  { %v1223_v3 = vpack.c.bf16 %v5020_v11, %v5020_v11  ;;  %3999 = vmatprep.subr.bf16.mxu0 %v4623_v1 }
 0xd92   :  { %3994 = vmatmul.mubr.msk.bf16.vlgmr.msra.gmra.mxu1 %vm70_vm0, %v1223_v3 }
 0xd93   :  { %4006 = vmatpush3.bf16.msra.mxu1 %v4807_v47  ;;  %4009 = vmatprep.mubr.msk.bf16.mxu1 %vm4625_vm3, %v4623_v1 }
 0xd94   :  { %4007 = vmatprep.subr.bf16.mxu1 %v4623_v1  ;;  %4000 = vmatpush3.bf16.msra.mxu0 %v4839_v6 }
 0xd95   :  { %4013 = vmatprep.subr.bf16.mxu0 %v4623_v1 }
 0xd97   :  { %4008 = vmatpush3.bf16.msra.mxu1 %v4815_v48 }
 0xd98   :  { %4021 = vmatprep.subr.bf16.mxu1 %v4623_v1 }
 0xe4e   :  { %v1187_v13 = vpop.f32.mrf.mxu0 }
 0xe4f   :  { %v1200_v14 = vadd.f32 %v1187_v13, %v4873_v24  ;;  %v1193_v31 = vadd.f32 %v1187_v13, %v4866_v17 }
 0xe50   :  { %v3987_v16 = vpop.f32.mrf.mxu0 }
 0xe51   :  { %1202 = vrot.lane.b32.xlu0 %v1200_v14, %s4627_s4  ;;  %v3685_v32 = vmul.f32 -1.442695, %v1193_v31 }
 0xe52   :  { %v1190_v20 = vpop.f32.mrf.mxu0  ;;  %v1261_v21 = vpop.f32.mrf.mxu1 }
 0xe53   :  { %v1268_v22 = vrot.slane %v1261_v21, 2  ;;  %v1286_v23 = vadd.f32 %v1261_v21, %v4885_v49  ;;  %4403 = vpow2.f32 %v3685_v32 }
 0xe54   :  { %v3988_v25 = vpop.f32.mrf.mxu0  ;;  %v3995_v27 = vpop.f32.mrf.mxu1 }
 0xe55   :  { %1269 = vrot.lane.b32.xlu1 %v1268_v22, %s4629_s24  ;;  %v1288_v29 = vrot.slane %v1286_v23, 2  ;;  %v1306_v22 = vrot.slane %v5020_v11, 2 }
 0xe56   :  { %v1264_v28 = vpop.f32.mrf.mxu1 }
 0xe58   :  { %v3996_v30 = vpop.f32.mrf.mxu1 }
 0xe59   :  { %1289 = vrot.lane.b32.xlu1 %v1288_v29, %s4628_s6 }
 0xe60   :  { %v4404_v33 = vpop.eup %4403 }
 0xe61   :  { %v1197_v36 = vadd.f32 1.0, %v4404_v33 }
 0xe63   :  { %4405 = vrcp.f32 %v1197_v36 }
 0xe70   :  { %v4406_v37 = vpop.eup %4405 }
 0xe71   :  { %v1212_v0 = vsub.f32 1.0, %v4406_v37  ;;  %v1221_v7 = vmul.f32 %v4406_v37, %v1219_v2 }
 0xec3   :  { %v1203_v39 = vpop.permute.xlu0 %1202 }
 0xec4   :  { %v1205_v40 = vmul.f32 %v4406_v37, %v1203_v39 }
 0xec6   :  { %1207 = vrot.lane.b32.xlu0 %v1205_v40, %s4627_s4 }
 0xec7   :  { %v1270_v41 = vpop.permute.xlu1 %1269 }
 0xec8   :  { %v1272_v42 = vadd.f32 %v1270_v41, %v4877_v34  ;;  %v1279_v62 = vadd.f32 %v1270_v41, %v4869_v18 }
 0xeca   :  { %v3687_v43 = vmul.f32 -1.442695, %v1272_v42  ;;  %v3688_v63 = vmul.f32 -1.442695, %v1279_v62 }
 0xecb   :  { %v1290_v52 = vpop.permute.xlu1 %1289 }
 0xecc   :  { %4407 = vpow2.f32 %v3687_v43 }
 0xed9   :  { %v4408_v44 = vpop.eup %4407 }
 0xeda   :  { %v1276_v50 = vadd.f32 1.0, %v4408_v44 }
 0xedc   :  { %4409 = vrcp.f32 %v1276_v50 }
 0xee9   :  { %v4410_v51 = vpop.eup %4409 }
 0xeea   :  { %v1292_v46 = vmul.f32 %v4410_v51, %v1290_v52 }
 0xeec   :  { %1294 = vrot.lane.b32.xlu1 %v1292_v46, %s4627_s4 }
 0xf38   :  { %v1208_v54 = vpop.permute.xlu0 %1207 }
 0xf39   :  { %v1210_v56 = vadd.f32 %v1208_v54, %v4866_v17 }
 0xf3b   :  { %4411 = vtanh.f32 %v1210_v56 }
 0xf48   :  { %v4412_v57 = vpop.eup %4411 }
 0xf49   :  { %1214 = vrot.lane.b32.xlu0 %v4412_v57, %s4629_s24 }
 0xf5e   :  { %v1295_v58 = vpop.permute.xlu1 %1294 }
 0xf5f   :  { %v1297_v59 = vadd.f32 %v1295_v58, %v4869_v18 }
 0xf61   :  { %4413 = vtanh.f32 %v1297_v59 }
 0xf62   :  { %4415 = vpow2.f32 %v3688_v63 }
 0xf6e   :  { %v4414_v60 = vpop.eup %4413 }
 0xf6f   :  { %1301 = vrot.lane.b32.xlu1 %v4414_v60, %s4629_s24  ;;  %v4416_v14 = vpop.eup %4415 }
 0xf70   :  { %v1283_v16 = vadd.f32 1.0, %v4416_v14 }
 0xf72   :  { %4417 = vrcp.f32 %v1283_v16 }
 0xf7f   :  { %v4418_v20 = vpop.eup %4417 }
 0xf80   :  { %v1299_v21 = vsub.f32 1.0, %v4418_v20  ;;  %v1308_v25 = vmul.f32 %v4418_v20, %v1306_v22 }
 0xfbb   :  { %v1215_v5 = vpop.permute.xlu0 %1214 }
 0xfbc   :  { %v1217_v10 = vmul.f32 %v1215_v5, %v1212_v0 }
 0xfbe   :  { %v5053_v3 = vadd.f32 %v1221_v7, %v1217_v10 }
 0xfc0   :  { %v1310_v13 = vpack.c.bf16 %v5053_v3, %v5053_v3 }
 0xfc2   :  { %1312 = vrot.lane.b32.xlu0 %v1310_v13, %s4629_s24 }
 0xfe1   :  { %v1302_v23 = vpop.permute.xlu1 %1301 }
 0xfe2   :  { %v1304_v27 = vmul.f32 %v1302_v23, %v1299_v21 }
 0xfe4   :  { %v5059_v28 = vadd.f32 %v1308_v25, %v1304_v27 }
 0xfe6   :  { %v1391_v29 = vpack.c.bf16 %v5059_v28, %v5059_v28 }
 0xfe8   :  { %v1393_v30 = vrot.slane %v1391_v29, 3  ;;  %v1387_v29 = vrot.slane %v5053_v3, 6 }
 0xfea   :  { %4010 = vmatmul.mubr.msk.bf16.vlgmr.msra.gmra.mxu1 %vm70_vm0, %v1393_v30 }
 0xfeb   :  { %4022 = vmatpush3.bf16.msra.mxu1 %v4807_v47  ;;  %4025 = vmatprep.mubr.msk.bf16.mxu1 %vm4625_vm3, %v4623_v1 }
 0xfec   :  { %4023 = vmatprep.subr.bf16.mxu1 %v4623_v1 }
 0xfef   :  { %4024 = vmatpush3.bf16.msra.mxu1 %v4815_v48 }
 0xff0   :  { %4037 = vmatprep.subr.bf16.mxu1 %v4623_v1 }
0x1034   :  { %v1313_v31 = vpop.permute.xlu0 %1312 }
0x1035   :  { %4002 = vmatmul.mubr.msk.bf16.vlgmr.msra.gmra.mxu0 %vm70_vm0, %v1313_v31 }
0x1036   :  { %4014 = vmatpush3.bf16.msra.mxu0 %v4832_v4  ;;  %4017 = vmatprep.mubr.msk.bf16.mxu0 %vm4625_vm3, %v4623_v1 }
0x1037   :  { %4015 = vmatprep.subr.bf16.mxu0 %v4623_v1 }
0x103a   :  { %4016 = vmatpush3.bf16.msra.mxu0 %v4839_v6 }
0x103b   :  { %4029 = vmatprep.subr.bf16.mxu0 %v4623_v1 }
0x10aa   :  { %v1431_v47 = vpop.f32.mrf.mxu1 }
0x10ab   :  { %v1438_v32 = vrot.slane %v1431_v47, 4  ;;  %v1456_v40 = vadd.f32 %v1431_v47, %v4885_v49 }
0x10ac   :  { %v4011_v33 = vpop.f32.mrf.mxu1 }
0x10ad   :  { %1439 = vrot.lane.b32.xlu1 %v1438_v32, %s4629_s24  ;;  %v1458_v43 = vrot.slane %v1456_v40, 4 }
0x10ae   :  { %v1434_v48 = vpop.f32.mrf.mxu1 }
0x10b0   :  { %v4012_v36 = vpop.f32.mrf.mxu1 }
0x10b1   :  { %v1476_v36 = vrot.slane %v5059_v28, 2 }
0x10f5   :  { %v1351_v37 = vpop.f32.mrf.mxu0 }
0x10f6   :  { %v1367_v39 = vadd.f32 %v1351_v37, %v4873_v24  ;;  %v1358_v44 = vrot.slane %v1351_v37, 6 }
0x10f7   :  { %v4003_v4 = vpop.f32.mrf.mxu0 }
0x10f8   :  { %v1369_v41 = vrot.slane %v1367_v39, 6  ;;  %v1360_v50 = vadd.f32 %v1358_v44, %v4866_v17  ;;  %v4595_v44 = vld [vmem:[%s5751_s8 + $0x8] sm:$0xff]  }
0x10f9   :  { %v1354_v42 = vpop.f32.mrf.mxu0 }
0x10fa   :  { %1370 = vrot.lane.b32.xlu0 %v1369_v41, %s4627_s4  ;;  %v3690_v52 = vmul.f32 -1.442695, %v1360_v50  ;;  %v4596_v50 = vld [vmem:[%s5751_s8] sm:$0xff]  }
0x10fb   :  { %v4004_v6 = vpop.f32.mrf.mxu0 }
0x10fc   :  { %4419 = vpow2.f32 %v3690_v52  ;;  %v4597_v52 = vld [vmem:[%s5750_s7 + $0x8] sm:$0xff]  }
0x10fe   :  { %1459 = vrot.lane.b32.xlu0 %v1458_v43, %s4628_s6 }
0x1109   :  { %v4420_v56 = vpop.eup %4419 }
0x110a   :  { %v1364_v57 = vadd.f32 1.0, %v4420_v56 }
0x111f   :  { %v1440_v51 = vpop.permute.xlu1 %1439 }
0x1120   :  { %v1442_v46 = vadd.f32 %v1440_v51, %v4877_v34  ;;  %v1449_v21 = vadd.f32 %v1440_v51, %v4869_v18 }
0x1122   :  { %v3692_v54 = vmul.f32 -1.442695, %v1442_v46  ;;  %v3693_v22 = vmul.f32 -1.442695, %v1449_v21  ;;  %v4598_v46 = vld [vmem:[%s5750_s7] sm:$0xff]  }
0x1124   :  { %4421 = vpow2.f32 %v3692_v54 }
0x1125   :  { %4423 = vrcp.f32 %v1364_v57 }
0x1131   :  { %v4422_v58 = vpop.eup %4421 }
0x1132   :  { %v1446_v59 = vadd.f32 1.0, %v4422_v58  ;;  %v4424_v60 = vpop.eup %4423 }
0x1133   :  { %v1380_v27 = vsub.f32 1.0, %v4424_v60  ;;  %v1389_v47 = vmul.f32 %v4424_v60, %v1387_v29 }
0x1134   :  { %4425 = vrcp.f32 %v1446_v59 }
0x1141   :  { %v4426_v0 = vpop.eup %4425 }
0x116c   :  { %v1371_v62 = vpop.permute.xlu0 %1370 }
0x116d   :  { %v1373_v63 = vmul.f32 %v4424_v60, %v1371_v62 }
0x116f   :  { %1375 = vrot.lane.b32.xlu1 %v1373_v63, %s4627_s4 }
0x1170   :  { %v1460_v2 = vpop.permute.xlu0 %1459 }
0x1171   :  { %v1462_v5 = vmul.f32 %v4426_v0, %v1460_v2 }
0x1173   :  { %1464 = vrot.lane.b32.xlu0 %v1462_v5, %s4627_s4 }
0x11e1   :  { %v1376_v7 = vpop.permute.xlu1 %1375 }
0x11e2   :  { %v1378_v10 = vadd.f32 %v1376_v7, %v4866_v17 }
0x11e4   :  { %4427 = vtanh.f32 %v1378_v10 }
0x11e5   :  { %v1465_v13 = vpop.permute.xlu0 %1464 }
0x11e6   :  { %v1467_v14 = vadd.f32 %v1465_v13, %v4869_v18 }
0x11e8   :  { %4429 = vtanh.f32 %v1467_v14 }
0x11e9   :  { %4431 = vpow2.f32 %v3693_v22 }
0x11f1   :  { %v4428_v16 = vpop.eup %4427 }
0x11f2   :  { %1382 = vrot.lane.b32.xlu1 %v4428_v16, %s4629_s24 }
0x11f5   :  { %v4430_v20 = vpop.eup %4429 }
0x11f6   :  { %1471 = vrot.lane.b32.xlu0 %v4430_v20, %s4629_s24  ;;  %v4432_v23 = vpop.eup %4431 }
0x11f7   :  { %v1453_v25 = vadd.f32 1.0, %v4432_v23 }
0x11f9   :  { %4433 = vrcp.f32 %v1453_v25 }
0x1206   :  { %v4434_v30 = vpop.eup %4433 }
0x1207   :  { %v1469_v48 = vsub.f32 1.0, %v4434_v30  ;;  %v1478_v39 = vmul.f32 %v4434_v30, %v1476_v36 }
0x1264   :  { %v1383_v31 = vpop.permute.xlu1 %1382 }
0x1265   :  { %v1385_v32 = vmul.f32 %v1383_v31, %v1380_v27 }
0x1267   :  { %v5092_v33 = vadd.f32 %v1389_v47, %v1385_v32 }
0x1268   :  { %v1472_v37 = vpop.permute.xlu0 %1471 }
0x1269   :  { %v1474_v4 = vmul.f32 %v1472_v37, %v1469_v48  ;;  %v1480_v40 = vpack.c.bf16 %v5092_v33, %v5092_v33 }
0x126b   :  { %v5097_v41 = vadd.f32 %v1478_v39, %v1474_v4  ;;  %v1482_v42 = vrot.slane %v1480_v40, 1 }
0x126d   :  { %v1562_v6 = vpack.c.bf16 %v5097_v41, %v5097_v41  ;;  %1483 = vrot.lane.b32.xlu1 %v1482_v42, %s4629_s24  ;;  %v1647_v31 = vrot.slane %v5097_v41, 2 }
0x126f   :  { %v1564_v43 = vrot.slane %v1562_v6, 2 }
0x1271   :  { %4026 = vmatmul.mubr.msk.bf16.vlgmr.msra.gmra.mxu1 %vm70_vm0, %v1564_v43 }
0x1272   :  { %4038 = vmatpush3.bf16.msra.mxu1 %v4595_v44  ;;  %4041 = vmatprep.mubr.msk.bf16.mxu1 %vm4625_vm3, %v4623_v1 }
0x1273   :  { %4039 = vmatprep.subr.bf16.mxu1 %v4623_v1 }
0x1276   :  { %4040 = vmatpush3.bf16.msra.mxu1 %v4596_v50 }
0x12df   :  { %v1484_v51 = vpop.permute.xlu1 %1483 }
0x12e0   :  { %4018 = vmatmul.mubr.msk.bf16.vlgmr.msra.gmra.mxu0 %vm70_vm0, %v1484_v51  ;;  %v4297_v51 = vld [vmem:[%s5754_s11 + $0x34] ss:$8 sps:$4 sm:$0xff]  }
0x12e1   :  { %4030 = vmatpush3.bf16.msra.mxu0 %v4597_v52  ;;  %4033 = vmatprep.mubr.msk.bf16.mxu0 %vm4625_vm3, %v4623_v1 }
0x12e2   :  { %4031 = vmatprep.subr.bf16.mxu0 %v4623_v1  ;;  %2054 = vmatprep.subr.bf16.mxu1 %v4297_v51 }
0x12e5   :  { %4032 = vmatpush3.bf16.msra.mxu0 %v4598_v46 }
0x1331   :  { %v1602_v54 = vpop.f32.mrf.mxu1 }
0x1332   :  { %v1609_v56 = vrot.slane %v1602_v54, 6  ;;  %v1627_v57 = vadd.f32 %v1602_v54, %v4885_v49 }
0x1333   :  { %v4027_v58 = vpop.f32.mrf.mxu1 }
0x1334   :  { %1610 = vrot.lane.b32.xlu0 %v1609_v56, %s4629_s24  ;;  %v1629_v60 = vrot.slane %v1627_v57, 6 }
0x1335   :  { %v1605_v59 = vpop.f32.mrf.mxu1 }
0x1337   :  { %v4028_v62 = vpop.f32.mrf.mxu1 }
0x1338   :  { %1630 = vrot.lane.b32.xlu0 %v1629_v60, %s4628_s6 }
0x13a0   :  { %v1522_v63 = vpop.f32.mrf.mxu0 }
0x13a1   :  { %v1538_v0 = vadd.f32 %v1522_v63, %v4873_v24  ;;  %v1529_v36 = vrot.slane %v1522_v63, 4  ;;  %v4295_v63 = vld [vmem:[%s5754_s11 + $0x30] ss:$8 sps:$4 sm:$0xff]  }
0x13a2   :  { %v4019_v2 = vpop.f32.mrf.mxu0 }
0x13a3   :  { %v1540_v5 = vrot.slane %v1538_v0, 4  ;;  %v1531_v37 = vadd.f32 %v1529_v36, %v4866_v17  ;;  %v4300_v2 = vld [vmem:[%s5754_s11 + $0x24] ss:$8 sps:$4 sm:$0xff]  }
0x13a4   :  { %v1525_v7 = vpop.f32.mrf.mxu0 }
0x13a5   :  { %1541 = vrot.lane.b32.xlu1 %v1540_v5, %s4627_s4  ;;  %v3695_v39 = vmul.f32 -1.442695, %v1531_v37  ;;  %v4298_v5 = vld [vmem:[%s5754_s11 + $0x20] ss:$8 sps:$4 sm:$0xff]   ;;  %v4303_v7 = vld [vmem:[%s5754_s11 + $0x14] ss:$8 sps:$4 sm:$0xff]  }
0x13a6   :  { %v1611_v10 = vpop.permute.xlu0 %1610  ;;  %v4020_v13 = vpop.f32.mrf.mxu0 }
0x13a7   :  { %v1613_v14 = vadd.f32 %v1611_v10, %v4877_v34  ;;  %v1620_v16 = vadd.f32 %v1611_v10, %v4869_v18  ;;  %v4301_v10 = vld [vmem:[%s5754_s11 + $0x10] ss:$8 sps:$4 sm:$0xff]   ;;  %v4306_v13 = vld [vmem:[%s5754_s11 + $0x4] ss:$8 sps:$4 sm:$0xff]  }
0x13a9   :  { %v3697_v20 = vmul.f32 -1.442695, %v1613_v14  ;;  %v3698_v21 = vmul.f32 -1.442695, %v1620_v16  ;;  %v3653_v14 = vld [vmem:[%s5776_s29] ss:$0 sm:$0xff] }
0x13aa   :  { %v1631_v30 = vpop.permute.xlu0 %1630  ;;  %v4304_v16 = vld [vmem:[%s5754_s11] ss:$8 sps:$4 sm:$0xff]  }
0x13ab   :  { %4435 = vpow2.f32 %v3697_v20  ;;  %v358_v20 = vadd.f32 %v3653_v14, %v4871_v19 }
0x13ac   :  { %4437 = vpow2.f32 %v3698_v21 }
0x13ad   :  { %v1982_v21 = vpack.c.bf16 %v358_v20, %v358_v20 }
0x13b8   :  { %v4436_v22 = vpop.eup %4435 }
0x13b9   :  { %v4438_v23 = vpop.eup %4437  ;;  %v1617_v25 = vadd.f32 1.0, %v4436_v22 }
0x13ba   :  { %v1624_v27 = vadd.f32 1.0, %v4438_v23  ;;  %v1558_v23 = vrot.slane %v5092_v33, 6 }
0x13bb   :  { %4439 = vrcp.f32 %v1617_v25 }
0x13bc   :  { %4441 = vrcp.f32 %v1624_v27 }
0x13bd   :  { %4443 = vpow2.f32 %v3695_v39 }
0x13c8   :  { %v4440_v29 = vpop.eup %4439 }
0x13c9   :  { %v4442_v47 = vpop.eup %4441  ;;  %v1633_v32 = vmul.f32 %v4440_v29, %v1631_v30 }
0x13ca   :  { %v1649_v48 = vmul.f32 %v4442_v47, %v1647_v31  ;;  %v4444_v4 = vpop.eup %4443  ;;  %v1640_v57 = vsub.f32 1.0, %v4442_v47 }
0x13cb   :  { %1635 = vrot.lane.b32.xlu0 %v1633_v32, %s4627_s4  ;;  %v1535_v40 = vadd.f32 1.0, %v4444_v4 }
0x13cd   :  { %4445 = vrcp.f32 %v1535_v40 }
0x13da   :  { %v4446_v42 = vpop.eup %4445 }
0x13db   :  { %v1551_v22 = vsub.f32 1.0, %v4446_v42  ;;  %v1560_v27 = vmul.f32 %v4446_v42, %v1558_v23 }
0x1417   :  { %v1542_v6 = vpop.permute.xlu1 %1541 }
0x1418   :  { %v1544_v43 = vmul.f32 %v4446_v42, %v1542_v6 }
0x141a   :  { %1546 = vrot.lane.b32.xlu1 %v1544_v43, %s4627_s4 }
0x143d   :  { %v1636_v44 = vpop.permute.xlu0 %1635 }
0x143e   :  { %v1638_v50 = vadd.f32 %v1636_v44, %v4869_v18 }
0x1440   :  { %4447 = vtanh.f32 %v1638_v50 }
0x144d   :  { %v4448_v52 = vpop.eup %4447 }
0x144e   :  { %1642 = vrot.lane.b32.xlu0 %v4448_v52, %s4629_s24 }
0x148c   :  { %v1547_v46 = vpop.permute.xlu1 %1546 }
0x148d   :  { %v1549_v54 = vadd.f32 %v1547_v46, %v4866_v17 }
0x148f   :  { %4449 = vtanh.f32 %v1549_v54 }
0x149c   :  { %v4450_v56 = vpop.eup %4449 }
0x149d   :  { %1553 = vrot.lane.b32.xlu1 %v4450_v56, %s4629_s24 }
0x14c0   :  { %v1643_v58 = vpop.permute.xlu0 %1642 }
0x14c1   :  { %v1645_v59 = vmul.f32 %v1643_v58, %v1640_v57 }
0x14c3   :  { %v5140_v60 = vadd.f32 %v1649_v48, %v1645_v59 }
0x14c5   :  { %v1733_v62 = vpack.c.bf16 %v5140_v60, %v5140_v60 }
0x14c7   :  { %v1735_v0 = vrot.slane %v1733_v62, 1 }
0x14c9   :  { %4042 = vmatmul.mubr.msk.bf16.vlgmr.msra.gmra.mxu1 %vm70_vm0, %v1735_v0 }
0x14ca   :  { %2055 = vmatpush1.bf16.msra.mxu1 %v4295_v63  ;;  %2078 = vmatprep.mubr.bf16.mxu1 %v4626_v45 }
0x14cb   :  { %2056 = vmatprep.subr.bf16.mxu1 %v4300_v2 }
0x14ce   :  { %2057 = vmatpush1.bf16.msra.mxu1 %v4298_v5 }
0x14cf   :  { %2058 = vmatprep.subr.bf16.mxu1 %v4303_v7 }
0x14d2   :  { %2059 = vmatpush1.bf16.msra.mxu1 %v4301_v10 }
0x14d3   :  { %2060 = vmatprep.subr.bf16.mxu1 %v4306_v13  ;;  %v4215_v13 = vpack.i.bf16 %v5092_v33, %v5053_v3 }
0x14d6   :  { %2061 = vmatpush1.bf16.msra.mxu1 %v4304_v16 }
0x14d7   :  { %4053 = vmatprep.subr.bf16.mxu1 %v4623_v1 }
0x14d9   :  { %3721 = vmatmul.mubr.msk.bf16.vlgmr.msra.gmra.mxu1 %vm1935_vm8, %v1982_v21 }
0x14da   :  { %4057 = vmatprep.mubr.msk.bf16.mxu1 %vm4625_vm3, %v4623_v1 }
0x150f   :  { %v1554_v25 = vpop.permute.xlu1 %1553 }
0x1510   :  { %v1556_v29 = vmul.f32 %v1554_v25, %v1551_v22 }
0x1512   :  { %v5176_v30 = vadd.f32 %v1560_v27, %v1556_v29 }
0x1514   :  { %v1651_v19 = vpack.c.bf16 %v5176_v30, %v5176_v30  ;;  %v4225_v16 = vpack.i.bf16 %v5176_v30, %v4973_v35 }
0x1516   :  { %v1653_v31 = vrot.slane %v1651_v19, 2 }
0x1518   :  { %1654 = vrot.lane.b32.xlu1 %v1653_v31, %s4629_s24  ;;  %v1816_v31 = vrot.slane %v5140_v60, 2 }
0x1589   :  { %v1773_v47 = vpop.f32.mrf.mxu1 }
0x158a   :  { %v1797_v32 = vadd.f32 %v1773_v47, %v4885_v49  ;;  %1780 = vrot.lane.b32.xlu0 %v1773_v47, %s4629_s24  ;;  %v1655_v48 = vpop.permute.xlu1 %1654 }
0x158b   :  { %4034 = vmatmul.mubr.msk.bf16.vlgmr.msra.gmra.mxu0 %vm70_vm0, %v1655_v48  ;;  %v4043_v36 = vpop.f32.mrf.mxu1 }
0x158c   :  { %1799 = vrot.lane.b32.xlu1 %v1797_v32, %s4628_s6  ;;  %1971 = vmatprep.mubr.bf16.mxu0 %v4626_v45 }
0x158d   :  { %v1776_v37 = vpop.f32.mrf.mxu1 }
0x158e   :  { %v4307_v37 = vld [vmem:[%s5753_s10 + $0x30] ss:$8 sps:$4 sm:$0xff]  }
0x158f   :  { %v4044_v39 = vpop.f32.mrf.mxu1 }
0x1590   :  { %v4312_v39 = vld [vmem:[%s5753_s10 + $0x24] ss:$8 sps:$4 sm:$0xff]  }
0x1599   :  { %v5186_v4 = vpop.f32.mrf.mxu1 }
0x159b   :  { %v5188_v40 = vpop.f32.mrf.mxu1 }
0x159d   :  { %v2084_v42 = vpop.f32.mrf.mxu1 }
0x159e   :  { %v5225_v42 = vld [vmem:[%s5757_s14 + $0x8] sm:$0xff]  }
0x159f   :  { %v2085_v6 = vpop.f32.mrf.mxu1  ;;  %4054 = vmatpush3.bf16.msra.mxu1 %v5225_v42 }
0x15a0   :  { %v4310_v6 = vld [vmem:[%s5753_s10 + $0x20] ss:$8 sps:$4 sm:$0xff]   ;;  %4055 = vmatprep.subr.bf16.mxu1 %v4623_v1 }
0x15fc   :  { %v1781_v43 = vpop.permute.xlu0 %1780 }
0x15fd   :  { %v1783_v49 = vadd.f32 %v1781_v43, %v4877_v34 }
0x15fe   :  { %v1800_v46 = vpop.permute.xlu1 %1799 }
0x15ff   :  { %v3702_v44 = vmul.f32 -1.442695, %v1783_v49  ;;  %v4230_v49 = vpack.i.bf16 %v4949_v38, %v5097_v41  ;;  %v4317_v38 = vld [vmem:[%s5753_s10] ss:$8 sps:$4 sm:$0xff]  }
0x1600   :  { %v5256_v41 = vld [vmem:[%s5757_s14] sm:$0xff]  }
0x1601   :  { %4451 = vpow2.f32 %v3702_v44  ;;  %v4319_v44 = vld [vmem:[%s5753_s10 + $0x4] ss:$8 sps:$4 sm:$0xff]   ;;  %4056 = vmatpush3.bf16.msra.mxu1 %v5256_v41 }
0x1602   :  { %4069 = vmatprep.subr.bf16.mxu1 %v4623_v1 }
0x1604   :  { %4058 = vmatmul.mubr.bf16.vlgmr.msra.gmra.mxu1 %v4626_v45 }
0x1605   :  { %4070 = vmatpush3.bf16.msra.mxu1 %v5225_v42  ;;  %4073 = vmatprep.mubr.msk.bf16.mxu1 %vm4625_vm3, %v4623_v1 }
0x1606   :  { %4071 = vmatprep.subr.bf16.mxu1 %v4623_v1 }
0x1609   :  { %4072 = vmatpush3.bf16.msra.mxu1 %v5256_v41 }
0x160a   :  { %4085 = vmatprep.subr.bf16.mxu1 %v4623_v1 }
0x160e   :  { %v4452_v50 = vpop.eup %4451 }
0x160f   :  { %v1787_v51 = vadd.f32 1.0, %v4452_v50 }
0x1611   :  { %4453 = vrcp.f32 %v1787_v51 }
0x161e   :  { %v4454_v52 = vpop.eup %4453 }
0x161f   :  { %v1802_v54 = vmul.f32 %v4454_v52, %v1800_v46 }
0x1621   :  { %1804 = vrot.lane.b32.xlu1 %v1802_v54, %s4627_s4 }
0x164b   :  { %v1693_v56 = vpop.f32.mrf.mxu0 }
0x164c   :  { %v1709_v57 = vadd.f32 %v1693_v56, %v4873_v24  ;;  %v1700_v2 = vrot.slane %v1693_v56, 2  ;;  %v4205_v24 = vpack.i.bf16 %v4933_v15, %v4891_v61  ;;  %v1790_v61 = vadd.f32 %v1781_v43, %v4869_v18  ;;  %v4315_v43 = vld [vmem:[%s5753_s10 + $0x14] ss:$8 sps:$4 sm:$0xff]  }
0x164d   :  { %v4035_v58 = vpop.f32.mrf.mxu0 }
0x164e   :  { %v1711_v59 = vrot.slane %v1709_v57, 2  ;;  %v1702_v5 = vadd.f32 %v1700_v2, %v4866_v17  ;;  %v3703_v15 = vmul.f32 -1.442695, %v1790_v61 }
0x164f   :  { %v1696_v62 = vpop.f32.mrf.mxu0 }
0x1650   :  { %1712 = vrot.lane.b32.xlu0 %v1711_v59, %s4627_s4  ;;  %v3700_v7 = vmul.f32 -1.442695, %v1702_v5 }
0x1651   :  { %v4036_v63 = vpop.f32.mrf.mxu0 }
0x1693   :  { %v1805_v34 = vpop.permute.xlu1 %1804 }
0x1694   :  { %v1807_v0 = vadd.f32 %v1805_v34, %v4869_v18 }
0x1696   :  { %4455 = vtanh.f32 %v1807_v0 }
0x1697   :  { %4457 = vpow2.f32 %v3700_v7 }
0x16a3   :  { %v4456_v10 = vpop.eup %4455 }
0x16a4   :  { %1811 = vrot.lane.b32.xlu1 %v4456_v10, %s4629_s24  ;;  %v4458_v14 = vpop.eup %4457 }
0x16a5   :  { %v1706_v20 = vadd.f32 1.0, %v4458_v14 }
0x16a7   :  { %4459 = vrcp.f32 %v1706_v20 }
0x16a8   :  { %4206 = vrot.lane.b32.xlu1 %v4205_v24, %s4629_s24  ;;  %4461 = vpow2.f32 %v3703_v15 }
0x16ac   :  { %4216 = vrot.lane.b32.xlu1 %v4215_v13, %s4629_s24 }
0x16b0   :  { %4226 = vrot.lane.b32.xlu1 %v4225_v16, %s4629_s24 }
0x16b4   :  { %v4460_v21 = vpop.eup %4459 }
0x16b5   :  { %v4462_v3 = vpop.eup %4461 }
0x16b6   :  { %v1794_v33 = vadd.f32 1.0, %v4462_v3 }
0x16b8   :  { %4463 = vrcp.f32 %v1794_v33 }
0x16c2   :  { %v1713_v22 = vpop.permute.xlu0 %1712 }
0x16c3   :  { %v1715_v23 = vmul.f32 %v4460_v21, %v1713_v22 }
0x16c5   :  { %1717 = vrot.lane.b32.xlu0 %v1715_v23, %s4627_s4  ;;  %v4464_v35 = vpop.eup %4463 }
0x16c6   :  { %v1809_v19 = vsub.f32 1.0, %v4464_v35  ;;  %v1818_v32 = vmul.f32 %v4464_v35, %v1816_v31 }
0x1716   :  { %v1812_v29 = vpop.permute.xlu1 %1811 }
0x1717   :  { %v1814_v47 = vmul.f32 %v1812_v29, %v1809_v19 }
0x1719   :  { %v1819_v48 = vadd.f32 %v1818_v32, %v1814_v47 }
0x171a   :  { %v4207_v56 = vpop.permute.xlu1 %4206 }
0x171b   :  { %v4210_v18 = vpack.i.bf16 %v5140_v60, %v1819_v48  ;;  %v4220_v60 = vpack.i.bf16 %v4981_v55, %v5020_v11  ;;  %v4313_v55 = vld [vmem:[%s5753_s10 + $0x10] ss:$8 sps:$4 sm:$0xff]   ;;  %v4240_v11 = vpack.i.bf16 %v4910_v26, %v5059_v28  ;;  %v1722_v26 = vsub.f32 1.0, %v4460_v21 }
0x171c   :  { %v1729_v28 = vrot.slane %v5176_v30, 6  ;;  %v4209_v10 = vunpack.i.h.bf16 %v4207_v56 }
0x171e   :  { %v1731_v51 = vmul.f32 %v4460_v21, %v1729_v28  ;;  %v4217_v58 = vpop.permute.xlu1 %4216 }
0x171f   :  { %v4219_v24 = vunpack.i.h.bf16 %v4217_v58  ;;  %v4218_v13 = vunpack.i.l.bf16 %v4217_v58 }
0x1722   :  { %v4227_v62 = vpop.permute.xlu1 %4226 }
0x1723   :  { %v4229_v14 = vunpack.i.h.bf16 %v4227_v62  ;;  %v4228_v16 = vunpack.i.l.bf16 %v4227_v62 }
0x1737   :  { %v1718_v25 = vpop.permute.xlu0 %1717 }
0x1738   :  { %v1720_v27 = vadd.f32 %v1718_v25, %v4866_v17  ;;  %v4309_v17 = vld [vmem:[%s5753_s10 + $0x34] ss:$8 sps:$4 sm:$0xff]  }
0x1739   :  { %1947 = vmatprep.subr.bf16.mxu0 %v4309_v17  ;;  %v5288_v17 = vld [vmem:[%s5756_s13 + $0x8] sm:$0xff]  }
0x173a   :  { %4465 = vtanh.f32 %v1720_v27  ;;  %1948 = vmatpush1.bf16.msra.mxu0 %v4307_v37 }
0x173b   :  { %1949 = vmatprep.subr.bf16.mxu0 %v4312_v39 }
0x173e   :  { %1950 = vmatpush1.bf16.msra.mxu0 %v4310_v6  ;;  %v2223_v6 = vpop.f32.mrf.mxu1 }
0x173f   :  { %1951 = vmatprep.subr.bf16.mxu0 %v4315_v43 }
0x1740   :  { %v4059_v43 = vpop.f32.mrf.mxu1 }
0x1742   :  { %1952 = vmatpush1.bf16.msra.mxu0 %v4313_v55 }
0x1743   :  { %1953 = vmatprep.subr.bf16.mxu0 %v4319_v44 }
0x1746   :  { %1954 = vmatpush1.bf16.msra.mxu0 %v4317_v38 }
0x1747   :  { %v4466_v36 = vpop.eup %4465  ;;  %4045 = vmatprep.subr.bf16.mxu0 %v4623_v1 }
0x1748   :  { %1724 = vrot.lane.b32.xlu0 %v4466_v36, %s4629_s24 }
0x174c   :  { %4211 = vrot.lane.b32.xlu0 %v4210_v18, %s4628_s6 }
0x1750   :  { %4221 = vrot.lane.b32.xlu0 %v4220_v60, %s4628_s6  ;;  %v5295_v60 = vld [vmem:[%s5756_s13] sm:$0xff]   ;;  %s3637_s13 = sshll.u32 %s4630_s0, 4  ;;  %s3638_s13 = int_to_ptr.vmem [resolvable:$true] %s3637_s13 }
0x1751   :  { %p4606_p1 = scmp.lt.s32.totalorder %s3638_s13, %s3638_s13 }
0x1754   :  { %4231 = vrot.lane.b32.xlu0 %v4230_v49, %s4628_s6  ;;  %v2226_v49 = vpop.f32.mrf.mxu1 }
0x1756   :  { %v4060_v55 = vpop.f32.mrf.mxu1 }
0x1758   :  { %4241 = vrot.lane.b32.xlu0 %v4240_v11, %s4628_s6  ;;  %v1991_v11 = vld [vmem:[%s5755_s12] sm:$0x3] }
0x1759   :  { %v1996_v44 = vrot.slane %v1991_v11, %v371_v9 }
0x17ba   :  { %v1725_v50 = vpop.permute.xlu0 %1724 }
0x17bb   :  { %v1727_v52 = vmul.f32 %v1725_v50, %v1722_v26  ;;  %v5320_v26 = vadd.f32 %v5186_v4, %v1996_v44 }
0x17bd   :  { %v1732_v46 = vadd.f32 %v1731_v51, %v1727_v52  ;;  %v2421_v8 = vrot.slane %v5320_v26, 4  ;;  %v2585_v9 = vrot.slane %v5320_v26, 2 }
0x17be   :  { %v4212_v30 = vpop.permute.xlu0 %4211 }
0x17bf   :  { %v4235_v54 = vpack.i.bf16 %v1732_v46, %v5012_v53  ;;  %v4214_v63 = vunpack.i.h.bf16 %v4212_v30  ;;  %v4213_v34 = vunpack.i.l.bf16 %v4212_v30  ;;  %v4208_v53 = vunpack.i.l.bf16 %v4207_v56 }
0x17c0   :  { %v2230_v56 = vrot.slane %v2223_v6, 2 }
0x17c1   :  { %4236 = vrot.lane.b32.xlu1 %v4235_v54, %s4629_s24  ;;  %v1834_v21 = vsel %vm70_vm0, %v4209_v10, %v4214_v63  ;;  %v1827_v22 = vsel %vm70_vm0, %v4208_v53, %v4213_v34 }
0x17c2   :  { %v4222_v57 = vpop.permute.xlu0 %4221  ;;  %v1878_v19 = vsel %vm193_vm2, %v1827_v22, %v1834_v21 }
0x17c3   :  { %v4224_v0 = vunpack.i.h.bf16 %v4222_v57  ;;  %v4223_v2 = vunpack.i.l.bf16 %v4222_v57 }
0x17c5   :  { %v1862_v23 = vsel %vm70_vm0, %v4219_v24, %v4224_v0  ;;  %v1855_v61 = vsel %vm70_vm0, %v4218_v13, %v4223_v2 }
0x17c6   :  { %v4232_v59 = vpop.permute.xlu0 %4231  ;;  %v1883_v31 = vsel %vm193_vm2, %v1855_v61, %v1862_v23 }
0x17c7   :  { %v4234_v5 = vunpack.i.h.bf16 %v4232_v59  ;;  %v4233_v7 = vunpack.i.l.bf16 %v4232_v59 }
0x17c9   :  { %v1869_v15 = vsel %vm70_vm0, %v4229_v14, %v4234_v5  ;;  %v1841_v3 = vsel %vm70_vm0, %v4228_v16, %v4233_v7 }
0x17ca   :  { %v4242_v20 = vpop.permute.xlu0 %4241  ;;  %v1880_v47 = vsel %vm1879_vm9, %v1878_v19, %v1841_v3  ;;  %v1884_v32 = vsel %vm1879_vm9, %v1883_v31, %v1869_v15 }
0x17cb   :  { %v4244_v25 = vunpack.i.h.bf16 %v4242_v20  ;;  %v4243_v27 = vunpack.i.l.bf16 %v4242_v20 }
0x1833   :  { %v4237_v33 = vpop.permute.xlu1 %4236 }
0x1834   :  { %v4239_v35 = vunpack.i.h.bf16 %v4237_v33  ;;  %v4238_v29 = vunpack.i.l.bf16 %v4237_v33 }
0x1836   :  { %v1848_v48 = vsel %vm70_vm0, %v4238_v29, %v4243_v27  ;;  %v1877_v36 = vsel %vm70_vm0, %v4239_v35, %v4244_v25 }
0x1837   :  { %v1882_v18 = vsel %vm1881_vm10, %v1880_v47, %v1848_v48  ;;  %v1885_v37 = vsel %vm1881_vm10, %v1884_v32, %v1877_v36 }
0x1838   :  { %v1886_v39 = vpack.c.bf16 %v1885_v37, %v1882_v18 }
0x183a   :  { %3712 = vmatmul.mubr.msk.bf16.vlgmr.msra.gmra.mxu0 %vm1935_vm8, %v1886_v39 }
0x183b   :  { %4046 = vmatpush3.bf16.msra.mxu0 %v5288_v17  ;;  %4049 = vmatprep.mubr.msk.bf16.mxu0 %vm4625_vm3, %v4623_v1 }
0x183c   :  { %4047 = vmatprep.subr.bf16.mxu0 %v4623_v1 }
0x183f   :  { %4048 = vmatpush3.bf16.msra.mxu0 %v5295_v60 }
0x1840   :  { %4061 = vmatprep.subr.bf16.mxu0 %v4623_v1 }
0x1842   :  { %4050 = vmatmul.mubr.bf16.vlgmr.msra.gmra.mxu0 %v4626_v45  ;;  %v2000_v45 = vrot.slane %v1991_v11, %v375_v12  ;;  %v2258_v12 = vrot.slane %v5320_v26, 6 }
0x1843   :  { %4062 = vmatpush3.bf16.msra.mxu0 %v5288_v17  ;;  %4065 = vmatprep.mubr.msk.bf16.mxu0 %vm4625_vm3, %v4623_v1 }
0x1844   :  { %4063 = vmatprep.subr.bf16.mxu0 %v4623_v1  ;;  %v5317_v38 = vadd.f32 %v5188_v40, %v2000_v45 }
0x1846   :  { %v2174_v50 = vrot.slane %v5317_v38, 2  ;;  %v2339_v51 = vrot.slane %v5317_v38, 4  ;;  %v2503_v52 = vrot.slane %v5317_v38, 6 }
0x1847   :  { %4064 = vmatpush3.bf16.msra.mxu0 %v5295_v60 }
0x1848   :  { %4077 = vmatprep.subr.bf16.mxu0 %v4623_v1 }
0x18fa   :  { %v5322_v28 = vpop.f32.mrf.mxu0 }
0x18fb   :  { %v2095_v34 = vadd.f32 %v5320_v26, %v5322_v28 }
0x18fc   :  { %v5327_v46 = vpop.f32.mrf.mxu0 }
0x18fd   :  { %v5333_v40 = vadd.f32 %v2174_v50, %v5327_v46  ;;  %v5338_v4 = vadd.f32 %v2339_v51, %v5327_v46  ;;  %v5343_v54 = vadd.f32 %v2503_v52, %v5327_v46 }
0x18fe   :  { %v5345_v30 = vpop.f32.mrf.mxu0 }
0x18ff   :  { %v5350_v57 = vadd.f32 %v2258_v12, %v5345_v30  ;;  %v5355_v58 = vadd.f32 %v2421_v8, %v5345_v30  ;;  %v5360_v59 = vadd.f32 %v2585_v9, %v5345_v30 }
0x1900   :  { %v5362_v62 = vpop.f32.mrf.mxu0 }
0x1901   :  { %v2176_v63 = vadd.f32 %v2174_v50, %v5362_v62  ;;  %v2260_v50 = vadd.f32 %v2258_v12, %v5322_v28 }
0x1902   :  { %v2142_v0 = vpop.f32.mrf.mxu0 }
0x1903   :  { %v2232_v2 = vadd.f32 %v2230_v56, %v2176_v63  ;;  %v2148_v5 = vadd.f32 %v2142_v0, %v2095_v34  ;;  %v2341_v0 = vadd.f32 %v2339_v51, %v5362_v62 }
0x1904   :  { %v4051_v7 = vpop.f32.mrf.mxu0 }
0x1905   :  { %4467 = vtanh.f32 %v2232_v2  ;;  %v3727_v14 = vmul.f32 -1.442695, %v2232_v2  ;;  %v3724_v16 = vmul.f32 -1.442695, %v2148_v5 }
0x1906   :  { %4469 = vtanh.f32 %v2148_v5  ;;  %v2145_v10 = vpop.f32.mrf.mxu0 }
0x1907   :  { %4471 = vpow2.f32 %v3727_v14 }
0x1908   :  { %v4052_v53 = vpop.f32.mrf.mxu0  ;;  %4473 = vpow2.f32 %v3724_v16 }
0x1912   :  { %v4468_v24 = vpop.eup %4467 }
0x1913   :  { %v4470_v13 = vpop.eup %4469  ;;  %2242 = vrot.lane.b32.xlu1 %v4468_v24, %s4627_s4 }
0x1914   :  { %2158 = vrot.lane.b32.xlu0 %v4470_v13, %s4627_s4  ;;  %v4472_v20 = vpop.eup %4471 }
0x1915   :  { %v4474_v21 = vpop.eup %4473  ;;  %v2236_v22 = vadd.f32 1.0, %v4472_v20 }
0x1916   :  { %v2152_v23 = vadd.f32 1.0, %v4474_v21 }
0x1917   :  { %4475 = vrcp.f32 %v2236_v22 }
0x1918   :  { %4477 = vrcp.f32 %v2152_v23 }
0x1924   :  { %v4476_v61 = vpop.eup %4475 }
0x1925   :  { %v4478_v3 = vpop.eup %4477  ;;  %v2240_v35 = vmul.f32 0.0, %v4476_v61 }
0x1926   :  { %v2156_v19 = vmul.f32 0.0, %v4478_v3 }
0x1985   :  { %v2243_v15 = vpop.permute.xlu1 %2242 }
0x1986   :  { %v2245_v33 = vmul.f32 %v4476_v61, %v2243_v15  ;;  %v2159_v25 = vpop.permute.xlu0 %2158 }
0x1987   :  { %v2161_v27 = vmul.f32 %v4478_v3, %v2159_v25 }
0x1988   :  { %2247 = vrot.lane.b32.xlu1 %v2245_v33, %s4628_s6 }
0x1989   :  { %2163 = vrot.lane.b32.xlu0 %v2161_v27, %s4628_s6 }
0x19fa   :  { %v2248_v29 = vpop.permute.xlu1 %2247 }
0x19fb   :  { %v5371_v31 = vadd.f32 %v2248_v29, %v2240_v35  ;;  %v2164_v47 = vpop.permute.xlu0 %2163 }
0x19fc   :  { %v5373_v32 = vadd.f32 %v2164_v47, %v2156_v19 }
0x19fd   :  { %4479 = vtanh.f32 %v5371_v31  ;;  %v2402_v19 = vrot.slane %v5371_v31, 2 }
0x19fe   :  { %4481 = vtanh.f32 %v5373_v32  ;;  %v2320_v29 = vrot.slane %v5373_v32, 6 }
0x1a0a   :  { %v4480_v48 = vpop.eup %4479 }
0x1a0b   :  { %v4482_v36 = vpop.eup %4481  ;;  %2253 = vrot.lane.b32.xlu1 %v4480_v48, %s4627_s4 }
0x1a0c   :  { %2169 = vrot.lane.b32.xlu0 %v4482_v36, %s4627_s4 }
0x1a7d   :  { %v2254_v18 = vpop.permute.xlu1 %2253 }
0x1a7e   :  { %v5379_v37 = vmul.f32 %v4476_v61, %v2254_v18  ;;  %v2170_v39 = vpop.permute.xlu0 %2169 }
0x1a7f   :  { %v5381_v6 = vmul.f32 %v4478_v3, %v2170_v39 }
0x1a80   :  { %v2342_v43 = vpack.c.bf16 %v5379_v37, %v5379_v37 }
0x1a81   :  { %v2261_v49 = vpack.c.bf16 %v5381_v6, %v5381_v6 }
0x1a82   :  { %v2344_v55 = vrot.slane %v2342_v43, 3 }
0x1a83   :  { %2263 = vrot.lane.b32.xlu1 %v2261_v49, %s4628_s6 }
0x1a84   :  { %2345 = vrot.lane.b32.xlu0 %v2344_v55, %s4628_s6 }
0x1af5   :  { %v2264_v11 = vpop.permute.xlu1 %2263 }
0x1af6   :  { %4066 = vmatmul.mubr.msk.bf16.vlgmr.msra.gmra.mxu0 %vm70_vm0, %v2264_v11  ;;  %v2346_v45 = vpop.permute.xlu0 %2345 }
0x1af7   :  { %4074 = vmatmul.mubr.msk.bf16.vlgmr.msra.gmra.mxu1 %vm70_vm0, %v2346_v45  ;;  %4078 = vmatpush3.bf16.msra.mxu0 %v5288_v17 }
0x1af8   :  { %4086 = vmatpush3.bf16.msra.mxu1 %v5225_v42  ;;  %4079 = vmatprep.subr.bf16.mxu0 %v4623_v1 }
0x1af9   :  { %4087 = vmatprep.subr.bf16.mxu1 %v4623_v1  ;;  %4081 = vmatprep.mubr.msk.bf16.mxu0 %vm4625_vm3, %v4623_v1 }
0x1afa   :  { %4089 = vmatprep.mubr.msk.bf16.mxu1 %vm4625_vm3, %v4623_v1 }
0x1afb   :  { %4080 = vmatpush3.bf16.msra.mxu0 %v5295_v60 }
0x1afc   :  { %4088 = vmatpush3.bf16.msra.mxu1 %v5256_v41  ;;  %4093 = vmatprep.subr.bf16.mxu0 %v4623_v1 }
0x1afd   :  { %4101 = vmatprep.subr.bf16.mxu1 %v4623_v1 }
0x1bb6   :  { %v2302_v44 = vpop.f32.mrf.mxu0 }
0x1bb7   :  { %v2309_v56 = vrot.slane %v2302_v44, 6  ;;  %v2384_v63 = vpop.f32.mrf.mxu1 }
0x1bb8   :  { %v4067_v34 = vpop.f32.mrf.mxu0  ;;  %v2391_v2 = vrot.slane %v2384_v63, 4 }
0x1bb9   :  { %v2311_v5 = vadd.f32 %v2309_v56, %v2260_v50  ;;  %v4075_v7 = vpop.f32.mrf.mxu1 }
0x1bba   :  { %v2393_v10 = vadd.f32 %v2391_v2, %v2341_v0  ;;  %v2305_v53 = vpop.f32.mrf.mxu0 }
0x1bbb   :  { %4483 = vtanh.f32 %v2311_v5  ;;  %v2387_v24 = vpop.f32.mrf.mxu1  ;;  %v3729_v12 = vmul.f32 -1.442695, %v2311_v5  ;;  %v2423_v5 = vadd.f32 %v2421_v8, %v5322_v28 }
0x1bbc   :  { %4485 = vtanh.f32 %v2393_v10  ;;  %v4068_v13 = vpop.f32.mrf.mxu0  ;;  %v3731_v21 = vmul.f32 -1.442695, %v2393_v10  ;;  %v2505_v24 = vadd.f32 %v2503_v52, %v5362_v62 }
0x1bbd   :  { %v4076_v14 = vpop.f32.mrf.mxu1  ;;  %4487 = vpow2.f32 %v3729_v12 }
0x1bbe   :  { %4489 = vpow2.f32 %v3731_v21 }
0x1bc8   :  { %v4484_v16 = vpop.eup %4483 }
0x1bc9   :  { %v4486_v20 = vpop.eup %4485  ;;  %2324 = vrot.lane.b32.xlu1 %v4484_v16, %s4627_s4 }
0x1bca   :  { %2406 = vrot.lane.b32.xlu0 %v4486_v20, %s4627_s4  ;;  %v4488_v51 = vpop.eup %4487 }
0x1bcb   :  { %v4490_v22 = vpop.eup %4489  ;;  %v2315_v23 = vadd.f32 1.0, %v4488_v51 }
0x1bcc   :  { %v2397_v61 = vadd.f32 1.0, %v4490_v22 }
0x1bcd   :  { %4491 = vrcp.f32 %v2315_v23 }
0x1bce   :  { %4493 = vrcp.f32 %v2397_v61 }
0x1bda   :  { %v4492_v15 = vpop.eup %4491 }
0x1bdb   :  { %v4494_v33 = vpop.eup %4493  ;;  %v2322_v47 = vmul.f32 %v4492_v15, %v2320_v29 }
0x1bdc   :  { %v2404_v36 = vmul.f32 %v4494_v33, %v2402_v19 }
0x1c3b   :  { %v2325_v3 = vpop.permute.xlu1 %2324 }
0x1c3c   :  { %v2327_v25 = vmul.f32 %v4492_v15, %v2325_v3  ;;  %v2407_v27 = vpop.permute.xlu0 %2406 }
0x1c3d   :  { %v2409_v35 = vmul.f32 %v4494_v33, %v2407_v27 }
0x1c3e   :  { %2329 = vrot.lane.b32.xlu1 %v2327_v25, %s4628_s6 }
0x1c3f   :  { %2411 = vrot.lane.b32.xlu0 %v2409_v35, %s4628_s6 }
0x1cb0   :  { %v2330_v48 = vpop.permute.xlu1 %2329 }
0x1cb1   :  { %v5415_v18 = vadd.f32 %v2330_v48, %v2322_v47  ;;  %v2412_v39 = vpop.permute.xlu0 %2411 }
0x1cb2   :  { %v5417_v43 = vadd.f32 %v2412_v39, %v2404_v36 }
0x1cb3   :  { %4495 = vtanh.f32 %v5415_v18  ;;  %v2484_v36 = vrot.slane %v5415_v18, 6 }
0x1cb4   :  { %4497 = vtanh.f32 %v5417_v43  ;;  %v2566_v39 = vrot.slane %v5417_v43, 2 }
0x1cc0   :  { %v4496_v49 = vpop.eup %4495 }
0x1cc1   :  { %v4498_v55 = vpop.eup %4497  ;;  %2335 = vrot.lane.b32.xlu1 %v4496_v49, %s4627_s4 }
0x1cc2   :  { %2417 = vrot.lane.b32.xlu0 %v4498_v55, %s4627_s4 }
0x1d33   :  { %v2336_v32 = vpop.permute.xlu1 %2335 }
0x1d34   :  { %v5423_v31 = vmul.f32 %v4492_v15, %v2336_v32  ;;  %v2418_v11 = vpop.permute.xlu0 %2417 }
0x1d35   :  { %v5425_v45 = vmul.f32 %v4494_v33, %v2418_v11 }
0x1d36   :  { %v2424_v44 = vpack.c.bf16 %v5423_v31, %v5423_v31 }
0x1d37   :  { %v2506_v50 = vpack.c.bf16 %v5425_v45, %v5425_v45 }
0x1d38   :  { %v2426_v56 = vrot.slane %v2424_v44, 1 }
0x1d39   :  { %v2508_v63 = vrot.slane %v2506_v50, 2 }
0x1d3a   :  { %2427 = vrot.lane.b32.xlu1 %v2426_v56, %s4628_s6 }
0x1d3b   :  { %2509 = vrot.lane.b32.xlu0 %v2508_v63, %s4628_s6 }
0x1dac   :  { %v2428_v34 = vpop.permute.xlu1 %2427 }
0x1dad   :  { %4082 = vmatmul.mubr.msk.bf16.vlgmr.msra.gmra.mxu0 %vm70_vm0, %v2428_v34  ;;  %v2510_v0 = vpop.permute.xlu0 %2509 }
0x1dae   :  { %4090 = vmatmul.mubr.msk.bf16.vlgmr.msra.gmra.mxu1 %vm70_vm0, %v2510_v0  ;;  %4094 = vmatpush3.bf16.msra.mxu0 %v5288_v17 }
0x1daf   :  { %4102 = vmatpush3.bf16.msra.mxu1 %v5225_v42  ;;  %4095 = vmatprep.subr.bf16.mxu0 %v4623_v1 }
0x1db0   :  { %4103 = vmatprep.subr.bf16.mxu1 %v4623_v1  ;;  %4097 = vmatprep.mubr.msk.bf16.mxu0 %vm4625_vm3, %v4623_v1 }
0x1db1   :  { %4105 = vmatprep.mubr.msk.bf16.mxu1 %vm4625_vm3, %v4623_v1 }
0x1db2   :  { %4096 = vmatpush3.bf16.msra.mxu0 %v5295_v60 }
0x1db3   :  { %4104 = vmatpush3.bf16.msra.mxu1 %v5256_v41  ;;  %4109 = vmatprep.subr.bf16.mxu0 %v4623_v1 }
0x1db4   :  { %4117 = vmatprep.subr.bf16.mxu1 %v4623_v1 }
0x1e6d   :  { %v2466_v2 = vpop.f32.mrf.mxu0 }
0x1e6e   :  { %v2473_v7 = vrot.slane %v2466_v2, 4  ;;  %v2548_v10 = vpop.f32.mrf.mxu1 }
0x1e6f   :  { %v4083_v53 = vpop.f32.mrf.mxu0  ;;  %v2555_v13 = vrot.slane %v2548_v10, 6 }
0x1e70   :  { %v2475_v14 = vadd.f32 %v2473_v7, %v2423_v5  ;;  %v4091_v16 = vpop.f32.mrf.mxu1 }
0x1e71   :  { %v2557_v20 = vadd.f32 %v2555_v13, %v2505_v24  ;;  %v2469_v12 = vpop.f32.mrf.mxu0  ;;  %v2587_v16 = vadd.f32 %v2585_v9, %v5322_v28 }
0x1e72   :  { %4499 = vtanh.f32 %v2475_v14  ;;  %v2551_v21 = vpop.f32.mrf.mxu1  ;;  %v3733_v8 = vmul.f32 -1.442695, %v2475_v14  ;;  %v2667_v14 = vadd.f32 %v5317_v38, %v5362_v62 }
0x1e73   :  { %4501 = vtanh.f32 %v2557_v20  ;;  %v4084_v51 = vpop.f32.mrf.mxu0  ;;  %v3735_v15 = vmul.f32 -1.442695, %v2557_v20 }
0x1e74   :  { %v4092_v22 = vpop.f32.mrf.mxu1  ;;  %4503 = vpow2.f32 %v3733_v8 }
0x1e75   :  { %4505 = vpow2.f32 %v3735_v15 }
0x1e7f   :  { %v4500_v23 = vpop.eup %4499 }
0x1e80   :  { %v4502_v61 = vpop.eup %4501  ;;  %2488 = vrot.lane.b32.xlu1 %v4500_v23, %s4627_s4 }
0x1e81   :  { %2570 = vrot.lane.b32.xlu0 %v4502_v61, %s4627_s4  ;;  %v4504_v52 = vpop.eup %4503 }
0x1e82   :  { %v4506_v3 = vpop.eup %4505  ;;  %v2479_v33 = vadd.f32 1.0, %v4504_v52 }
0x1e83   :  { %v2561_v25 = vadd.f32 1.0, %v4506_v3 }
0x1e84   :  { %4507 = vrcp.f32 %v2479_v33 }
0x1e85   :  { %4509 = vrcp.f32 %v2561_v25 }
0x1e91   :  { %v4508_v27 = vpop.eup %4507 }
0x1e92   :  { %v4510_v29 = vpop.eup %4509  ;;  %v2486_v49 = vmul.f32 %v4508_v27, %v2484_v36 }
0x1e93   :  { %v2568_v32 = vmul.f32 %v4510_v29, %v2566_v39 }
0x1ef2   :  { %v2489_v35 = vpop.permute.xlu1 %2488 }
0x1ef3   :  { %v2491_v19 = vmul.f32 %v4508_v27, %v2489_v35  ;;  %v2571_v47 = vpop.permute.xlu0 %2570 }
0x1ef4   :  { %v2573_v48 = vmul.f32 %v4510_v29, %v2571_v47 }
0x1ef5   :  { %2493 = vrot.lane.b32.xlu1 %v2491_v19, %s4628_s6 }
0x1ef6   :  { %2575 = vrot.lane.b32.xlu0 %v2573_v48, %s4628_s6 }
0x1f67   :  { %v2494_v55 = vpop.permute.xlu1 %2493 }
0x1f68   :  { %v5459_v11 = vadd.f32 %v2494_v55, %v2486_v49  ;;  %v2576_v44 = vpop.permute.xlu0 %2575 }
0x1f69   :  { %v5461_v50 = vadd.f32 %v2576_v44, %v2568_v32 }
0x1f6a   :  { %4511 = vtanh.f32 %v5459_v11  ;;  %v2648_v55 = vrot.slane %v5459_v11, 6 }
0x1f6b   :  { %4513 = vtanh.f32 %v5461_v50  ;;  %v2725_v49 = vrot.slane %v5461_v50, 2 }
0x1f77   :  { %v4512_v56 = vpop.eup %4511 }
0x1f78   :  { %v4514_v63 = vpop.eup %4513  ;;  %2499 = vrot.lane.b32.xlu1 %v4512_v56, %s4627_s4 }
0x1f79   :  { %2581 = vrot.lane.b32.xlu0 %v4514_v63, %s4627_s4 }
0x1fea   :  { %v2500_v18 = vpop.permute.xlu1 %2499 }
0x1feb   :  { %v5467_v43 = vmul.f32 %v4508_v27, %v2500_v18  ;;  %v2582_v34 = vpop.permute.xlu0 %2581 }
0x1fec   :  { %v5469_v0 = vmul.f32 %v4510_v29, %v2582_v34 }
0x1fed   :  { %v2588_v2 = vpack.c.bf16 %v5467_v43, %v5467_v43 }
0x1fee   :  { %v2668_v5 = vpack.c.bf16 %v5469_v0, %v5469_v0 }
0x1fef   :  { %v2590_v7 = vrot.slane %v2588_v2, 2 }
0x1ff0   :  { %v2670_v10 = vrot.slane %v2668_v5, 1 }
0x1ff1   :  { %2591 = vrot.lane.b32.xlu1 %v2590_v7, %s4628_s6 }
0x1ff2   :  { %2671 = vrot.lane.b32.xlu0 %v2670_v10, %s4628_s6 }
0x2063   :  { %v2592_v53 = vpop.permute.xlu1 %2591 }
0x2064   :  { %4098 = vmatmul.mubr.msk.bf16.vlgmr.msra.gmra.mxu0 %vm70_vm0, %v2592_v53  ;;  %v2672_v24 = vpop.permute.xlu0 %2671 }
0x2065   :  { %4106 = vmatmul.mubr.msk.bf16.vlgmr.msra.gmra.mxu1 %vm70_vm0, %v2672_v24  ;;  %4110 = vmatpush3.bf16.msra.mxu0 %v5288_v17 }
0x2066   :  { %4118 = vmatpush3.bf16.msra.mxu1 %v5225_v42  ;;  %4111 = vmatprep.subr.bf16.mxu0 %v4623_v1 }
0x2067   :  { %4119 = vmatprep.subr.bf16.mxu1 %v4623_v1  ;;  %4121 = vmatprep.mubr.msk.bf16.mxu1 %vm4625_vm3, %v4623_v1 }
0x2068   :  { %4113 = vmatprep.mubr.msk.bf16.mxu0 %vm4625_vm3, %v4623_v1 }
0x2069   :  { %4112 = vmatpush3.bf16.msra.mxu0 %v5295_v60 }
0x206a   :  { %4120 = vmatpush3.bf16.msra.mxu1 %v5256_v41  ;;  %4125 = vmatprep.subr.bf16.mxu0 %v4623_v1 }
0x206b   :  { %4133 = vmatprep.subr.bf16.mxu1 %v4623_v1 }
0x2124   :  { %v2630_v13 = vpop.f32.mrf.mxu0 }
0x2125   :  { %v2637_v20 = vrot.slane %v2630_v13, 2  ;;  %v2710_v12 = vpop.f32.mrf.mxu1 }
0x2126   :  { %v4099_v21 = vpop.f32.mrf.mxu0  ;;  %v2716_v51 = vadd.f32 %v2710_v12, %v2667_v14 }
0x2127   :  { %v2639_v22 = vadd.f32 %v2637_v20, %v2587_v16  ;;  %v4107_v23 = vpop.f32.mrf.mxu1  ;;  %v2744_v21 = vadd.f32 %v5320_v26, %v5345_v30 }
0x2128   :  { %4515 = vtanh.f32 %v2716_v51  ;;  %v2633_v61 = vpop.f32.mrf.mxu0  ;;  %v3739_v62 = vmul.f32 -1.442695, %v2716_v51 }
0x2129   :  { %4517 = vtanh.f32 %v2639_v22  ;;  %v2713_v8 = vpop.f32.mrf.mxu1  ;;  %v3737_v28 = vmul.f32 -1.442695, %v2639_v22 }
0x212a   :  { %v4100_v15 = vpop.f32.mrf.mxu0  ;;  %4519 = vpow2.f32 %v3739_v62 }
0x212b   :  { %v4108_v52 = vpop.f32.mrf.mxu1  ;;  %4521 = vpow2.f32 %v3737_v28 }
0x2135   :  { %v4516_v3 = vpop.eup %4515 }
0x2136   :  { %v4518_v33 = vpop.eup %4517  ;;  %2729 = vrot.lane.b32.xlu1 %v4516_v3, %s4627_s4 }
0x2137   :  { %2652 = vrot.lane.b32.xlu0 %v4518_v33, %s4627_s4  ;;  %v4520_v9 = vpop.eup %4519 }
0x2138   :  { %v4522_v25 = vpop.eup %4521  ;;  %v2720_v27 = vadd.f32 1.0, %v4520_v9 }
0x2139   :  { %v2643_v35 = vadd.f32 1.0, %v4522_v25 }
0x213a   :  { %4523 = vrcp.f32 %v2720_v27 }
0x213b   :  { %4525 = vrcp.f32 %v2643_v35 }
0x2147   :  { %v4524_v29 = vpop.eup %4523 }
0x2148   :  { %v4526_v47 = vpop.eup %4525  ;;  %v2727_v32 = vmul.f32 %v4524_v29, %v2725_v49 }
0x2149   :  { %v2650_v56 = vmul.f32 %v4526_v47, %v2648_v55 }
0x21a8   :  { %v2730_v19 = vpop.permute.xlu1 %2729 }
0x21a9   :  { %v2732_v48 = vmul.f32 %v4524_v29, %v2730_v19  ;;  %v2653_v36 = vpop.permute.xlu0 %2652 }
0x21aa   :  { %v2655_v39 = vmul.f32 %v4526_v47, %v2653_v36 }
0x21ab   :  { %2734 = vrot.lane.b32.xlu1 %v2732_v48, %s4628_s6 }
0x21ac   :  { %2657 = vrot.lane.b32.xlu0 %v2655_v39, %s4628_s6 }
0x221d   :  { %v2735_v44 = vpop.permute.xlu1 %2734 }
0x221e   :  { %v5502_v63 = vadd.f32 %v2735_v44, %v2727_v32  ;;  %v2658_v18 = vpop.permute.xlu0 %2657 }
0x221f   :  { %v5504_v34 = vadd.f32 %v2658_v18, %v2650_v56 }
0x2220   :  { %4527 = vtanh.f32 %v5502_v63  ;;  %v2881_v39 = vrot.slane %v5502_v63, 2 }
0x2221   :  { %4529 = vtanh.f32 %v5504_v34  ;;  %v2802_v49 = vrot.slane %v5504_v34, 6 }
0x222d   :  { %v4528_v2 = vpop.eup %4527 }
0x222e   :  { %v4530_v5 = vpop.eup %4529  ;;  %2740 = vrot.lane.b32.xlu1 %v4528_v2, %s4627_s4 }
0x222f   :  { %2663 = vrot.lane.b32.xlu0 %v4530_v5, %s4627_s4 }
0x22a0   :  { %v2741_v50 = vpop.permute.xlu1 %2740 }
0x22a1   :  { %v5510_v11 = vmul.f32 %v4524_v29, %v2741_v50  ;;  %v2664_v7 = vpop.permute.xlu0 %2663 }
0x22a2   :  { %v5512_v10 = vmul.f32 %v4526_v47, %v2664_v7 }
0x22a3   :  { %v2822_v53 = vpack.c.bf16 %v5510_v11, %v5510_v11 }
0x22a4   :  { %v2745_v24 = vpack.c.bf16 %v5512_v10, %v5512_v10 }
0x22a5   :  { %2824 = vrot.lane.b32.xlu1 %v2822_v53, %s4628_s6 }
0x22a6   :  { %v2747_v13 = vrot.slane %v2745_v24, 3 }
0x22a8   :  { %2748 = vrot.lane.b32.xlu0 %v2747_v13, %s4628_s6 }
0x2317   :  { %v2825_v14 = vpop.permute.xlu1 %2824 }
0x2318   :  { %4122 = vmatmul.mubr.msk.bf16.vlgmr.msra.gmra.mxu1 %vm70_vm0, %v2825_v14 }
0x2319   :  { %4134 = vmatpush3.bf16.msra.mxu1 %v5225_v42  ;;  %4137 = vmatprep.mubr.msk.bf16.mxu1 %vm4625_vm3, %v4623_v1 }
0x231a   :  { %v2749_v16 = vpop.permute.xlu0 %2748  ;;  %4135 = vmatprep.subr.bf16.mxu1 %v4623_v1 }
0x231b   :  { %4114 = vmatmul.mubr.msk.bf16.vlgmr.msra.gmra.mxu0 %vm70_vm0, %v2749_v16 }
0x231c   :  { %4126 = vmatpush3.bf16.msra.mxu0 %v5288_v17  ;;  %4129 = vmatprep.mubr.msk.bf16.mxu0 %vm4625_vm3, %v4623_v1 }
0x231d   :  { %4127 = vmatprep.subr.bf16.mxu0 %v4623_v1  ;;  %4136 = vmatpush3.bf16.msra.mxu1 %v5256_v41 }
0x231e   :  { %4149 = vmatprep.subr.bf16.mxu1 %v4623_v1 }
0x2320   :  { %4128 = vmatpush3.bf16.msra.mxu0 %v5295_v60 }
0x2321   :  { %4141 = vmatprep.subr.bf16.mxu0 %v4623_v1 }
0x23d8   :  { %v2863_v20 = vpop.f32.mrf.mxu1 }
0x23d9   :  { %v2870_v12 = vrot.slane %v2863_v20, 2 }
0x23da   :  { %v4123_v51 = vpop.f32.mrf.mxu1 }
0x23db   :  { %v2872_v22 = vadd.f32 %v2870_v12, %v5333_v40  ;;  %v2787_v23 = vpop.f32.mrf.mxu0 }
0x23dc   :  { %v2793_v61 = vadd.f32 %v2787_v23, %v2744_v21  ;;  %v2866_v8 = vpop.f32.mrf.mxu1 }
0x23dd   :  { %4531 = vtanh.f32 %v2872_v22  ;;  %v4115_v15 = vpop.f32.mrf.mxu0  ;;  %v3743_v9 = vmul.f32 -1.442695, %v2872_v22 }
0x23de   :  { %4533 = vtanh.f32 %v2793_v61  ;;  %v4124_v52 = vpop.f32.mrf.mxu1  ;;  %v3741_v26 = vmul.f32 -1.442695, %v2793_v61 }
0x23df   :  { %v2790_v3 = vpop.f32.mrf.mxu0  ;;  %4535 = vpow2.f32 %v3743_v9 }
0x23e0   :  { %4537 = vpow2.f32 %v3741_v26 }
0x23e1   :  { %v4116_v33 = vpop.f32.mrf.mxu0 }
0x23ea   :  { %v4532_v62 = vpop.eup %4531 }
0x23eb   :  { %v4534_v28 = vpop.eup %4533  ;;  %2885 = vrot.lane.b32.xlu1 %v4532_v62, %s4627_s4 }
0x23ec   :  { %2806 = vrot.lane.b32.xlu0 %v4534_v28, %s4627_s4  ;;  %v4536_v40 = vpop.eup %4535 }
0x23ed   :  { %v4538_v30 = vpop.eup %4537  ;;  %v2876_v25 = vadd.f32 1.0, %v4536_v40 }
0x23ee   :  { %v2797_v27 = vadd.f32 1.0, %v4538_v30 }
0x23ef   :  { %4539 = vrcp.f32 %v2876_v25 }
0x23f0   :  { %4541 = vrcp.f32 %v2797_v27 }
0x23fc   :  { %v4540_v35 = vpop.eup %4539 }
0x23fd   :  { %v4542_v19 = vpop.eup %4541  ;;  %v2883_v55 = vmul.f32 %v4540_v35, %v2881_v39 }
0x23fe   :  { %v2804_v44 = vmul.f32 %v4542_v19, %v2802_v49 }
0x245d   :  { %v2886_v29 = vpop.permute.xlu1 %2885 }
0x245e   :  { %v2888_v47 = vmul.f32 %v4540_v35, %v2886_v29  ;;  %v2807_v48 = vpop.permute.xlu0 %2806 }
0x245f   :  { %v2809_v36 = vmul.f32 %v4542_v19, %v2807_v48 }
0x2460   :  { %2890 = vrot.lane.b32.xlu1 %v2888_v47, %s4628_s6 }
0x2461   :  { %2811 = vrot.lane.b32.xlu0 %v2809_v36, %s4628_s6 }
0x24d2   :  { %v2891_v32 = vpop.permute.xlu1 %2890 }
0x24d3   :  { %v5543_v56 = vadd.f32 %v2891_v32, %v2883_v55  ;;  %v2812_v18 = vpop.permute.xlu0 %2811 }
0x24d4   :  { %v5545_v2 = vadd.f32 %v2812_v18, %v2804_v44 }
0x24d5   :  { %4543 = vtanh.f32 %v5543_v56  ;;  %v3040_v48 = vrot.slane %v5543_v56, 2 }
0x24d6   :  { %4545 = vtanh.f32 %v5545_v2  ;;  %v2960_v47 = vrot.slane %v5545_v2, 6 }
0x24e2   :  { %v4544_v5 = vpop.eup %4543 }
0x24e3   :  { %v4546_v50 = vpop.eup %4545  ;;  %2896 = vrot.lane.b32.xlu1 %v4544_v5, %s4627_s4 }
0x24e4   :  { %2817 = vrot.lane.b32.xlu0 %v4546_v50, %s4627_s4 }
0x2555   :  { %v2897_v63 = vpop.permute.xlu1 %2896 }
0x2556   :  { %v5551_v34 = vmul.f32 %v4540_v35, %v2897_v63  ;;  %v2818_v7 = vpop.permute.xlu0 %2817 }
0x2557   :  { %v5553_v53 = vmul.f32 %v4542_v19, %v2818_v7 }
0x2558   :  { %v2980_v24 = vpack.c.bf16 %v5551_v34, %v5551_v34 }
0x2559   :  { %v2901_v13 = vpack.c.bf16 %v5553_v53, %v5553_v53 }
0x255a   :  { %v2982_v14 = vrot.slane %v2980_v24, 3 }
0x255b   :  { %2903 = vrot.lane.b32.xlu1 %v2901_v13, %s4628_s6 }
0x255c   :  { %2983 = vrot.lane.b32.xlu0 %v2982_v14, %s4628_s6 }
0x25cd   :  { %v2904_v16 = vpop.permute.xlu1 %2903 }
0x25ce   :  { %4130 = vmatmul.mubr.msk.bf16.vlgmr.msra.gmra.mxu0 %vm70_vm0, %v2904_v16  ;;  %v2984_v20 = vpop.permute.xlu0 %2983 }
0x25cf   :  { %4138 = vmatmul.mubr.msk.bf16.vlgmr.msra.gmra.mxu1 %vm70_vm0, %v2984_v20  ;;  %4142 = vmatpush3.bf16.msra.mxu0 %v5288_v17 }
0x25d0   :  { %4150 = vmatpush3.bf16.msra.mxu1 %v5225_v42  ;;  %4143 = vmatprep.subr.bf16.mxu0 %v4623_v1 }
0x25d1   :  { %4151 = vmatprep.subr.bf16.mxu1 %v4623_v1  ;;  %4145 = vmatprep.mubr.msk.bf16.mxu0 %vm4625_vm3, %v4623_v1 }
0x25d2   :  { %4153 = vmatprep.mubr.msk.bf16.mxu1 %vm4625_vm3, %v4623_v1 }
0x25d3   :  { %4144 = vmatpush3.bf16.msra.mxu0 %v5295_v60 }
0x25d4   :  { %4152 = vmatpush3.bf16.msra.mxu1 %v5256_v41  ;;  %4157 = vmatprep.subr.bf16.mxu0 %v4623_v1 }
0x25d5   :  { %4165 = vmatprep.subr.bf16.mxu1 %v4623_v1 }
0x268e   :  { %v2942_v12 = vpop.f32.mrf.mxu0 }
0x268f   :  { %v2949_v42 = vrot.slane %v2942_v12, 6  ;;  %v3022_v21 = vpop.f32.mrf.mxu1  ;;  %v4599_v12 = vld [vmem:[%s5757_s14 + $0x8] sm:$0xff]  }
0x2690   :  { %v4131_v51 = vpop.f32.mrf.mxu0  ;;  %v3029_v22 = vrot.slane %v3022_v21, 4 }
0x2691   :  { %v2951_v23 = vadd.f32 %v2949_v42, %v5350_v57  ;;  %v4139_v61 = vpop.f32.mrf.mxu1 }
0x2692   :  { %v3031_v8 = vadd.f32 %v3029_v22, %v5338_v4  ;;  %v2945_v15 = vpop.f32.mrf.mxu0 }
0x2693   :  { %4547 = vtanh.f32 %v2951_v23  ;;  %v3025_v52 = vpop.f32.mrf.mxu1  ;;  %v3745_v28 = vmul.f32 -1.442695, %v2951_v23 }
0x2694   :  { %4549 = vtanh.f32 %v3031_v8  ;;  %v4132_v3 = vpop.f32.mrf.mxu0  ;;  %v3747_v9 = vmul.f32 -1.442695, %v3031_v8 }
0x2695   :  { %v4140_v41 = vpop.f32.mrf.mxu1  ;;  %4551 = vpow2.f32 %v3745_v28 }
0x2696   :  { %4553 = vpow2.f32 %v3747_v9 }
0x26a0   :  { %v4548_v33 = vpop.eup %4547 }
0x26a1   :  { %v4550_v62 = vpop.eup %4549  ;;  %2964 = vrot.lane.b32.xlu1 %v4548_v33, %s4627_s4 }
0x26a2   :  { %3044 = vrot.lane.b32.xlu0 %v4550_v62, %s4627_s4  ;;  %v4552_v57 = vpop.eup %4551 }
0x26a3   :  { %v4554_v26 = vpop.eup %4553  ;;  %v2955_v40 = vadd.f32 1.0, %v4552_v57 }
0x26a4   :  { %v3035_v4 = vadd.f32 1.0, %v4554_v26 }
0x26a5   :  { %4555 = vrcp.f32 %v2955_v40 }
0x26a6   :  { %4557 = vrcp.f32 %v3035_v4 }
0x26b2   :  { %v4556_v30 = vpop.eup %4555 }
0x26b3   :  { %v4558_v27 = vpop.eup %4557  ;;  %v2962_v36 = vmul.f32 %v4556_v30, %v2960_v47 }
0x26b4   :  { %v3042_v49 = vmul.f32 %v4558_v27, %v3040_v48 }
0x2713   :  { %v2965_v25 = vpop.permute.xlu1 %2964 }
0x2714   :  { %v2967_v35 = vmul.f32 %v4556_v30, %v2965_v25  ;;  %v3045_v29 = vpop.permute.xlu0 %3044 }
0x2715   :  { %v3047_v19 = vmul.f32 %v4558_v27, %v3045_v29 }
0x2716   :  { %2969 = vrot.lane.b32.xlu1 %v2967_v35, %s4628_s6 }
0x2717   :  { %3049 = vrot.lane.b32.xlu0 %v3047_v19, %s4628_s6 }
0x2788   :  { %v2970_v39 = vpop.permute.xlu1 %2969 }
0x2789   :  { %v5583_v55 = vadd.f32 %v2970_v39, %v2962_v36  ;;  %v3050_v32 = vpop.permute.xlu0 %3049 }
0x278a   :  { %v5585_v44 = vadd.f32 %v3050_v32, %v3042_v49 }
0x278b   :  { %4559 = vtanh.f32 %v5583_v55  ;;  %v3120_v29 = vrot.slane %v5583_v55, 6 }
0x278c   :  { %4561 = vtanh.f32 %v5585_v44  ;;  %v3200_v19 = vrot.slane %v5585_v44, 2 }
0x2798   :  { %v4560_v18 = vpop.eup %4559 }
0x2799   :  { %v4562_v5 = vpop.eup %4561  ;;  %2975 = vrot.lane.b32.xlu1 %v4560_v18, %s4627_s4 }
0x279a   :  { %3055 = vrot.lane.b32.xlu0 %v4562_v5, %s4627_s4 }
0x280b   :  { %v2976_v2 = vpop.permute.xlu1 %2975 }
0x280c   :  { %v5591_v56 = vmul.f32 %v4556_v30, %v2976_v2  ;;  %v3056_v50 = vpop.permute.xlu0 %3055 }
0x280d   :  { %v5593_v63 = vmul.f32 %v4558_v27, %v3056_v50 }
0x280e   :  { %v3060_v7 = vpack.c.bf16 %v5591_v56, %v5591_v56 }
0x280f   :  { %v3140_v24 = vpack.c.bf16 %v5593_v63, %v5593_v63 }
0x2810   :  { %v3062_v13 = vrot.slane %v3060_v7, 1 }
0x2811   :  { %v3142_v14 = vrot.slane %v3140_v24, 2 }
0x2812   :  { %3063 = vrot.lane.b32.xlu1 %v3062_v13, %s4628_s6 }
0x2813   :  { %3143 = vrot.lane.b32.xlu0 %v3142_v14, %s4628_s6 }
0x2884   :  { %v3064_v16 = vpop.permute.xlu1 %3063 }
0x2885   :  { %4146 = vmatmul.mubr.msk.bf16.vlgmr.msra.gmra.mxu0 %vm70_vm0, %v3064_v16  ;;  %v3144_v20 = vpop.permute.xlu0 %3143 }
0x2886   :  { %4154 = vmatmul.mubr.msk.bf16.vlgmr.msra.gmra.mxu1 %vm70_vm0, %v3144_v20  ;;  %4158 = vmatpush3.bf16.msra.mxu0 %v5288_v17  ;;  %v4600_v17 = vld [vmem:[%s5757_s14] sm:$0xff]  }
0x2887   :  { %4166 = vmatpush3.bf16.msra.mxu1 %v4599_v12  ;;  %4159 = vmatprep.subr.bf16.mxu0 %v4623_v1 }
0x2888   :  { %4167 = vmatprep.subr.bf16.mxu1 %v4623_v1  ;;  %4161 = vmatprep.mubr.msk.bf16.mxu0 %vm4625_vm3, %v4623_v1 }
0x2889   :  { %4169 = vmatprep.mubr.msk.bf16.mxu1 %vm4625_vm3, %v4623_v1 }
0x288a   :  { %4160 = vmatpush3.bf16.msra.mxu0 %v5295_v60 }
0x288b   :  { %4168 = vmatpush3.bf16.msra.mxu1 %v4600_v17  ;;  %4173 = vmatprep.subr.bf16.mxu0 %v4623_v1  ;;  %v3299_v17 = vadd.f32 %v5317_v38, %v5327_v46 }
0x288c   :  { %4185 = vmatprep.subr.bf16.mxu1 %v4623_v1 }
0x2945   :  { %v3102_v42 = vpop.f32.mrf.mxu0 }
0x2946   :  { %v3109_v21 = vrot.slane %v3102_v42, 4  ;;  %v3182_v51 = vpop.f32.mrf.mxu1 }
0x2947   :  { %v4147_v22 = vpop.f32.mrf.mxu0  ;;  %v3189_v23 = vrot.slane %v3182_v51, 6 }
0x2948   :  { %v3111_v61 = vadd.f32 %v3109_v21, %v5355_v58  ;;  %v4155_v8 = vpop.f32.mrf.mxu1 }
0x2949   :  { %v3191_v15 = vadd.f32 %v3189_v23, %v5343_v54  ;;  %v3105_v60 = vpop.f32.mrf.mxu0 }
0x294a   :  { %4563 = vtanh.f32 %v3111_v61  ;;  %v3185_v52 = vpop.f32.mrf.mxu1  ;;  %v3749_v28 = vmul.f32 -1.442695, %v3111_v61 }
0x294b   :  { %4565 = vtanh.f32 %v3191_v15  ;;  %v4148_v3 = vpop.f32.mrf.mxu0  ;;  %v3751_v9 = vmul.f32 -1.442695, %v3191_v15 }
0x294c   :  { %v4156_v41 = vpop.f32.mrf.mxu1  ;;  %4567 = vpow2.f32 %v3749_v28 }
0x294d   :  { %4569 = vpow2.f32 %v3751_v9 }
0x2957   :  { %v4564_v33 = vpop.eup %4563 }
0x2958   :  { %v4566_v62 = vpop.eup %4565  ;;  %3124 = vrot.lane.b32.xlu1 %v4564_v33, %s4627_s4 }
0x2959   :  { %3204 = vrot.lane.b32.xlu0 %v4566_v62, %s4627_s4  ;;  %v4568_v58 = vpop.eup %4567 }
0x295a   :  { %v4570_v57 = vpop.eup %4569  ;;  %v3115_v26 = vadd.f32 1.0, %v4568_v58 }
0x295b   :  { %v3195_v54 = vadd.f32 1.0, %v4570_v57 }
0x295c   :  { %4571 = vrcp.f32 %v3115_v26 }
0x295d   :  { %4573 = vrcp.f32 %v3195_v54 }
0x2969   :  { %v4572_v40 = vpop.eup %4571 }
0x296a   :  { %v4574_v30 = vpop.eup %4573  ;;  %v3122_v47 = vmul.f32 %v4572_v40, %v3120_v29 }
0x296b   :  { %v3202_v36 = vmul.f32 %v4574_v30, %v3200_v19 }
0x29ca   :  { %v3125_v4 = vpop.permute.xlu1 %3124 }
0x29cb   :  { %v3127_v25 = vmul.f32 %v4572_v40, %v3125_v4  ;;  %v3205_v27 = vpop.permute.xlu0 %3204 }
0x29cc   :  { %v3207_v35 = vmul.f32 %v4574_v30, %v3205_v27 }
0x29cd   :  { %3129 = vrot.lane.b32.xlu1 %v3127_v25, %s4628_s6 }
0x29ce   :  { %3209 = vrot.lane.b32.xlu0 %v3207_v35, %s4628_s6 }
0x2a3f   :  { %v3130_v48 = vpop.permute.xlu1 %3129 }
0x2a40   :  { %v5627_v39 = vadd.f32 %v3130_v48, %v3122_v47  ;;  %v3210_v49 = vpop.permute.xlu0 %3209 }
0x2a41   :  { %v3212_v32 = vadd.f32 %v3210_v49, %v3202_v36  ;;  %v4245_v49 = vpack.i.bf16 %v5423_v31, %v5381_v6  ;;  %v4326_v6 = vld [vmem:[%s5760_s17 + $0x10] sm:$0xff]   ;;  %v4250_v31 = vpack.i.bf16 %v5591_v56, %v5553_v53  ;;  %v4327_v53 = vld [vmem:[%s5758_s15 + $0x8] sm:$0xff]   ;;  %v4330_v56 = vld [vmem:[%s5760_s17] sm:$0xff]  }
0x2a42   :  { %4575 = vtanh.f32 %v5627_v39 }
0x2a43   :  { %4577 = vtanh.f32 %v3212_v32  ;;  %v3357_v4 = vrot.slane %v3212_v32, 2  ;;  %v4324_v32 = vld [vmem:[%s5760_s17 + $0x18] sm:$0xff]  }
0x2a4f   :  { %v4576_v18 = vpop.eup %4575 }
0x2a50   :  { %v4578_v5 = vpop.eup %4577  ;;  %3135 = vrot.lane.b32.xlu1 %v4576_v18, %s4627_s4  ;;  %v4255_v18 = vpack.i.bf16 %v5469_v0, %v5510_v11  ;;  %v4265_v0 = vpack.i.bf16 %v5425_v45, %v5593_v63  ;;  %v4328_v45 = vld [vmem:[%s5760_s17 + $0x8] sm:$0xff]  }
0x2a51   :  { %3215 = vrot.lane.b32.xlu0 %v4578_v5, %s4627_s4  ;;  %v4325_v5 = vld [vmem:[%s5758_s15 + $0x10] sm:$0xff]  }
0x2ac2   :  { %v3136_v2 = vpop.permute.xlu1 %3135 }
0x2ac3   :  { %v5632_v55 = vmul.f32 %v4572_v40, %v3136_v2  ;;  %v3216_v44 = vpop.permute.xlu0 %3215 }
0x2ac4   :  { %v5634_v50 = vmul.f32 %v4574_v30, %v3216_v44  ;;  %v3280_v30 = vrot.slane %v5627_v39, 6  ;;  %v4323_v39 = vld [vmem:[%s5758_s15 + $0x18] sm:$0xff]  }
0x2ac5   :  { %v3220_v7 = vpack.c.bf16 %v5632_v55, %v5632_v55  ;;  %v4260_v11 = vpack.i.bf16 %v5632_v55, %v5467_v43  ;;  %v4329_v43 = vld [vmem:[%s5758_s15] sm:$0xff]  }
0x2ac6   :  { %v3300_v24 = vpack.c.bf16 %v5634_v50, %v5634_v50 }
0x2ac7   :  { %v3222_v13 = vrot.slane %v3220_v7, 2 }
0x2ac8   :  { %v3302_v14 = vrot.slane %v3300_v24, 1 }
0x2ac9   :  { %3223 = vrot.lane.b32.xlu1 %v3222_v13, %s4628_s6 }
0x2aca   :  { %3303 = vrot.lane.b32.xlu0 %v3302_v14, %s4628_s6 }
0x2b3b   :  { %v3224_v16 = vpop.permute.xlu1 %3223 }
0x2b3c   :  { %4162 = vmatmul.mubr.msk.bf16.vlgmr.msra.gmra.mxu0 %vm70_vm0, %v3224_v16  ;;  %v3304_v20 = vpop.permute.xlu0 %3303 }
0x2b3d   :  { %4170 = vmatmul.mubr.msk.bf16.vlgmr.msra.gmra.mxu1 %vm70_vm0, %v3304_v20  ;;  %4181 = vmatprep.mubr.msk.bf16.mxu0 %vm4625_vm3, %v4623_v1 }
0x2b3e   :  { %4193 = vmatprep.mubr.msk.bf16.mxu1 %vm4625_vm3, %v4623_v1  ;;  %4174 = vmatpush3.bf16.msra.mxu0 %v4323_v39  ;;  %v3762_v39 = vld [vmem:[%s5761_s18] ss:$0 sm:$0xff] }
0x2b3f   :  { %4186 = vmatpush3.bf16.msra.mxu1 %v4324_v32  ;;  %4175 = vmatprep.subr.bf16.mxu0 %v4623_v1 }
0x2b40   :  { %4187 = vmatprep.subr.bf16.mxu1 %v4623_v1 }
0x2b42   :  { %4176 = vmatpush3.bf16.msra.mxu0 %v4325_v5 }
0x2b43   :  { %4188 = vmatpush3.bf16.msra.mxu1 %v4326_v6  ;;  %4177 = vmatprep.subr.bf16.mxu0 %v4623_v1 }
0x2b44   :  { %4189 = vmatprep.subr.bf16.mxu1 %v4623_v1 }
0x2b46   :  { %4178 = vmatpush3.bf16.msra.mxu0 %v4327_v53 }
0x2b47   :  { %4190 = vmatpush3.bf16.msra.mxu1 %v4328_v45  ;;  %4179 = vmatprep.subr.bf16.mxu0 %v4623_v1 }
0x2b48   :  { %4191 = vmatprep.subr.bf16.mxu1 %v4623_v1  ;;  %v4280_v1 = vpack.i.bf16 %v5379_v37, %v5551_v34 }
0x2b4a   :  { %4180 = vmatpush3.bf16.msra.mxu0 %v4329_v43 }
0x2b4b   :  { %4192 = vmatpush3.bf16.msra.mxu1 %v4330_v56 }
0x2bfc   :  { %v3262_v12 = vpop.f32.mrf.mxu0 }
0x2bfd   :  { %v3269_v42 = vrot.slane %v3262_v12, 2  ;;  %v3342_v21 = vpop.f32.mrf.mxu1 }
0x2bfe   :  { %v4163_v51 = vpop.f32.mrf.mxu0  ;;  %v3348_v22 = vadd.f32 %v3342_v21, %v3299_v17 }
0x2bff   :  { %v3271_v23 = vadd.f32 %v3269_v42, %v5360_v59  ;;  %v4171_v61 = vpop.f32.mrf.mxu1 }
0x2c00   :  { %4579 = vtanh.f32 %v3348_v22  ;;  %v3265_v8 = vpop.f32.mrf.mxu0  ;;  %v3755_v38 = vmul.f32 -1.442695, %v3348_v22 }
0x2c01   :  { %4581 = vtanh.f32 %v3271_v23  ;;  %v3345_v15 = vpop.f32.mrf.mxu1  ;;  %v3753_v46 = vmul.f32 -1.442695, %v3271_v23 }
0x2c02   :  { %v4164_v60 = vpop.f32.mrf.mxu0  ;;  %4583 = vpow2.f32 %v3755_v38 }
0x2c03   :  { %v4172_v52 = vpop.f32.mrf.mxu1  ;;  %4585 = vpow2.f32 %v3753_v46 }
0x2c0d   :  { %v4580_v3 = vpop.eup %4579 }
0x2c0e   :  { %v4582_v41 = vpop.eup %4581  ;;  %3361 = vrot.lane.b32.xlu1 %v4580_v3, %s4627_s4 }
0x2c0f   :  { %3284 = vrot.lane.b32.xlu0 %v4582_v41, %s4627_s4  ;;  %v4584_v33 = vpop.eup %4583 }
0x2c10   :  { %v4586_v62 = vpop.eup %4585  ;;  %v3352_v59 = vadd.f32 1.0, %v4584_v33 }
0x2c11   :  { %v3275_v28 = vadd.f32 1.0, %v4586_v62 }
0x2c12   :  { %4587 = vrcp.f32 %v3352_v59 }
0x2c13   :  { %4589 = vrcp.f32 %v3275_v28 }
0x2c1f   :  { %v4588_v9 = vpop.eup %4587 }
0x2c20   :  { %v4590_v57 = vpop.eup %4589  ;;  %v3359_v25 = vmul.f32 %v4588_v9, %v3357_v4 }
0x2c21   :  { %v3282_v35 = vmul.f32 %v4590_v57, %v3280_v30 }
0x2c80   :  { %v3362_v58 = vpop.permute.xlu1 %3361 }
0x2c81   :  { %v3364_v26 = vmul.f32 %v4588_v9, %v3362_v58  ;;  %v3285_v54 = vpop.permute.xlu0 %3284 }
0x2c82   :  { %v3287_v40 = vmul.f32 %v4590_v57, %v3285_v54 }
0x2c83   :  { %3366 = vrot.lane.b32.xlu1 %v3364_v26, %s4628_s6 }
0x2c84   :  { %3289 = vrot.lane.b32.xlu0 %v3287_v40, %s4628_s6 }
0x2cf5   :  { %v3367_v27 = vpop.permute.xlu1 %3366 }
0x2cf6   :  { %v3369_v29 = vadd.f32 %v3367_v27, %v3359_v25  ;;  %v3290_v19 = vpop.permute.xlu0 %3289 }
0x2cf7   :  { %v3292_v47 = vadd.f32 %v3290_v19, %v3282_v35 }
0x2cf8   :  { %4591 = vtanh.f32 %v3369_v29 }
0x2cf9   :  { %4593 = vtanh.f32 %v3292_v47 }
0x2d05   :  { %v4592_v48 = vpop.eup %4591 }
0x2d06   :  { %v4594_v36 = vpop.eup %4593  ;;  %3372 = vrot.lane.b32.xlu1 %v4592_v48, %s4627_s4 }
0x2d07   :  { %3295 = vrot.lane.b32.xlu0 %v4594_v36, %s4627_s4 }
0x2d0a   :  { %4246 = vrot.lane.b32.xlu1 %v4245_v49, %s4628_s6  ;;  %v3756_v49 = vld [vmem:[%s5759_s16] ss:$0 sm:$0xff]  ;;  %s4601_s16 = scalar_lea.vmem %s3638_s13, 32 }
0x2d0b   :  { %4256 = vrot.lane.b32.xlu0 %v4255_v18, %s4627_s4  ;;  %p4602_p0 = scmp.ne.s32.totalorder %s3638_s13, %s4601_s16  ;;  %p4607_p2 = scmp.lt.s32.totalorder %s4601_s16, %s4601_s16 }
0x2d0d   :  { %p4608_p3 = por %p4607_p2, %p4606_p1 }
0x2d0e   :  { %4251 = vrot.lane.b32.xlu1 %v4250_v31, %s4628_s6 }
0x2d0f   :  { %4266 = vrot.lane.b32.xlu0 %v4265_v0, %s4627_s4  ;;  %p4609_p4 = pnand %p4608_p3, %p4602_p0 }
0x2d12   :  { %4261 = vrot.lane.b32.xlu1 %v4260_v11, %s4628_s6 }
0x2d78   :  { %v3373_v63 = vpop.permute.xlu1 %3372 }
0x2d79   :  { %v3375_v2 = vmul.f32 %v4588_v9, %v3373_v63  ;;  %v3296_v55 = vpop.permute.xlu0 %3295 }
0x2d7a   :  { %v3298_v44 = vmul.f32 %v4590_v57, %v3296_v55 }
0x2d7b   :  { %v4270_v7 = vpack.i.bf16 %v5634_v50, %v3375_v2  ;;  %v3455_v13 = vrot.slane %v3375_v2, 2 }
0x2d7c   :  { %v4275_v24 = vpack.i.bf16 %v3298_v44, %v5512_v10  ;;  %v4247_v14 = vpop.permute.xlu1 %4246 }
0x2d7d   :  { %4271 = vrot.lane.b32.xlu0 %v4270_v7, %s4627_s4  ;;  %v4257_v16 = vpop.permute.xlu0 %4256  ;;  %v4249_v21 = vunpack.i.h.bf16 %v4247_v14  ;;  %v4248_v61 = vunpack.i.l.bf16 %v4247_v14 }
0x2d7e   :  { %4276 = vrot.lane.b32.xlu1 %v4275_v24, %s4628_s6  ;;  %v4259_v51 = vunpack.i.h.bf16 %v4257_v16  ;;  %v4258_v22 = vunpack.i.l.bf16 %v4257_v16 }
0x2d80   :  { %v4252_v20 = vpop.permute.xlu1 %4251 }
0x2d81   :  { %4281 = vrot.lane.b32.xlu0 %v4280_v1, %s4627_s4  ;;  %v4267_v12 = vpop.permute.xlu0 %4266  ;;  %v4254_v50 = vunpack.i.h.bf16 %v4252_v20  ;;  %v4253_v42 = vunpack.i.l.bf16 %v4252_v20 }
0x2d82   :  { %3456 = vrot.lane.b32.xlu1 %v3455_v13, %s4627_s4  ;;  %v4269_v8 = vunpack.i.h.bf16 %v4267_v12  ;;  %v4268_v33 = vunpack.i.l.bf16 %v4267_v12 }
0x2d83   :  { %v3420_v60 = vsel %vm70_vm0, %v4253_v42, %v4258_v22  ;;  %v3429_v52 = vsel %vm70_vm0, %v4254_v50, %v4259_v51 }
0x2d84   :  { %v4262_v17 = vpop.permute.xlu1 %4261  ;;  %v3451_v9 = vsel %vm193_vm2, %v3420_v60, %v3429_v52 }
0x2d85   :  { %v4264_v10 = vunpack.i.h.bf16 %v4262_v17  ;;  %v4263_v3 = vunpack.i.l.bf16 %v4262_v17 }
0x2d87   :  { %v3438_v41 = vsel %vm70_vm0, %v4264_v10, %v4269_v8  ;;  %v3402_v40 = vsel %vm70_vm0, %v4263_v3, %v4268_v33 }
0x2d88   :  { %v3452_v4 = vsel %vm1879_vm9, %v3451_v9, %v3438_v41 }
0x2def   :  { %v4272_v23 = vpop.permute.xlu0 %4271 }
0x2df0   :  { %v4277_v37 = vpop.permute.xlu1 %4276  ;;  %v4274_v34 = vunpack.i.h.bf16 %v4272_v23  ;;  %v4273_v15 = vunpack.i.l.bf16 %v4272_v23 }
0x2df1   :  { %v4279_v62 = vunpack.i.h.bf16 %v4277_v37  ;;  %v4278_v58 = vunpack.i.l.bf16 %v4277_v37 }
0x2df2   :  { %v3393_v38 = vsel %vm70_vm0, %v4249_v21, %v4274_v34  ;;  %v3384_v46 = vsel %vm70_vm0, %v4248_v61, %v4273_v15 }
0x2df3   :  { %v3448_v59 = vsel %vm193_vm2, %v3384_v46, %v3393_v38  ;;  %v4282_v28 = vpop.permute.xlu0 %4281 }
0x2df4   :  { %v3457_v57 = vpop.permute.xlu1 %3456  ;;  %v4284_v26 = vunpack.i.h.bf16 %v4282_v28  ;;  %v4283_v54 = vunpack.i.l.bf16 %v4282_v28  ;;  %v3449_v29 = vsel %vm1879_vm9, %v3448_v59, %v3402_v40 }
0x2df5   :  { %v3459_v30 = vsel %vm70_vm0, %v4279_v62, %v3457_v57 }
0x2df6   :  { %v3460_v25 = vpack.c.bf16 %v3459_v30, %v3459_v30  ;;  %v3447_v27 = vsel %vm70_vm0, %v4279_v62, %v4284_v26  ;;  %v3411_v35 = vsel %vm70_vm0, %v4278_v58, %v4283_v54 }
0x2df7   :  { %v3450_v19 = vsel %vm1881_vm10, %v3449_v29, %v3411_v35  ;;  %v3453_v47 = vsel %vm1881_vm10, %v3452_v4, %v3447_v27 }
0x2df8   :  { %v3477_v48 = vrot.slane %v3460_v25, 3  ;;  %v3454_v36 = vpack.c.bf16 %v3453_v47, %v3450_v19 }
0x2dfa   :  { %4182 = vmatmul.mubr.msk.bf16.vlgmr.msra.gmra.mxu0 %vm1935_vm8, %v3477_v48  ;;  %4194 = vmatmul.mubr.msk.bf16.vlgmr.msra.gmra.mxu1 %vm1935_vm8, %v3454_v36 }
0x2eba   :  { %v3539_v32 = vpop.f32.mrf.mxu0  ;;  %v3622_v18 = vpop.f32.mrf.mxu1 }
0x2ebb   :  { %v3540_v5 = vadd.f32 %v3756_v49, %v3539_v32  ;;  %v3623_v6 = vadd.f32 %v3762_v39, %v3622_v18 }
0x2ebc   :  { %v4183_v31 = vpop.f32.mrf.mxu0  ;;  %v4195_v0 = vpop.f32.mrf.mxu1 }
0x2ebd   :  { %3545 = vst [vmem:[#allocation2] sm:$0x3] %v3540_v5  ;;  %3629 = vst [vmem:[%s5763_s20] sm:$0xff] %v3623_v6 }
0x2ebe   :  { %v3542_v11 = vpop.f32.mrf.mxu0  ;;  %v3625_v53 = vpop.f32.mrf.mxu1 }
0x2ebf   :  { %4612 = shalt.err (!%p4609_p4)
}
0x2ec0   :  { %3640 = dma.vmem_to_hbm [thread:$0]  %s3638_s13, 32, %s5762_s19, [#allocation3]   ;;  %v3626_v45 = vadd.f32 %v3762_v39, %v3625_v53  ;;  %v4184_v43 = vpop.f32.mrf.mxu0  ;;  %v4196_v56 = vpop.f32.mrf.mxu1 }
0x2ec2   :  { %3630 = vst [vmem:[%s5763_s20 + $0x8] sm:$0xff] %v3626_v45 }
0x2ec3   :  { %4621 = dma.done.wait [#allocation3], 32  }
0x2ec4   :  { %4622 = vsyncadd [#allocation3], 4294967264 }
0x2ec5   :  { %3648 = vsyncpa [#allocation3], 1 }

</bundles_post_ra>
